<compile_context>
chip_gen: v6e
topology: v6e:2x2x1
jax: 0.10.0
libtpu: 0.0.40
codegen_flags: <defaults>
</compile_context>

<pallas_src>
import functools
import math

import jax
import jax.numpy as jnp
import numpy as np
from jax.experimental import pallas as pl
from jax.experimental.pallas import tpu as pltpu


# ----------------------------------------------------------------------------
# Fused IFBlock kernel: conv0a + conv0b + 8 residual blocks + lastconv
# ----------------------------------------------------------------------------
def _ifblock_kernel(planes_ref, w0a_ref, b0a_ref, w0b_ref, b0b_ref,
                    wres_ref, bres_ref, beta_ref, wlast_ref, blast_ref,
                    o_ref, y1p_ref, fb_ref, *, alpha):
    H4, W4 = o_ref.shape[1], o_ref.shape[2]
    Hq = planes_ref.shape[1] // 16
    c2 = y1p_ref.shape[-1]
    c = fb_ref.shape[-1]
    rows = H4 * W4

    def lrelu(v):
        return jnp.where(v >= 0.0, v, v * alpha)

    def conv(taps, w_bf16, bias):
        # im2col: concat taps on the lane axis -> single MXU matmul (bf16 in,
        # f32 accumulate), f32 epilogue.
        k = sum(t.shape[-1] for t in taps)
        lhs = jnp.concatenate(taps, axis=-1).reshape(rows, k).astype(jnp.bfloat16)
        return jnp.dot(lhs, w_bf16, preferred_element_type=jnp.float32) + bias

    # Zero scratch: padded borders / halo cells that are never written must be 0.
    y1p_ref[...] = jnp.zeros_like(y1p_ref)
    fb_ref[...] = jnp.zeros_like(fb_ref)

    # ---- conv0a: 3x3 stride-2 pad-1 + LeakyReLU.  Computed per output parity
    #      phase from the mod-4 parity-plane packed input; written directly in
    #      the padded mod-2 parity layout that conv0b reads.
    w0a = w0a_ref[...]
    b0a = b0a_ref[...]
    for pa in range(2):
        for pb in range(2):
            taps = []
            for kh in range(3):
                for kw in range(3):
                    orr = 2 * pa + kh
                    occ = 2 * pb + kw
                    plane = (orr % 4) * 4 + (occ % 4)
                    r0 = plane * Hq + orr // 4
                    c0 = occ // 4
                    taps.append(planes_ref[0, r0:r0 + H4, c0:c0 + W4, :])
            y = lrelu(conv(taps, w0a, b0a))                        # (rows, c2)
            y1p_ref[pa * 2 + pb, pa:pa + H4, pb:pb + W4, :] = y.reshape(H4, W4, c2)

    # ---- conv0b: 3x3 stride-2 pad-1 + LeakyReLU over conv0a's parity phases.
    taps = []
    for kh in range(3):
        for kw in range(3):
            pa, pb = (kh + 1) % 2, (kw + 1) % 2
            r0, c0 = kh // 2, kw // 2
            taps.append(y1p_ref[pa * 2 + pb, r0:r0 + H4, c0:c0 + W4, :])
    y = lrelu(conv(taps, w0b_ref[...], b0b_ref[...]))              # (rows, c)
    fb_ref[0, 1:1 + H4, 1:1 + W4, :] = y.reshape(H4, W4, c)

    # ---- 8 residual blocks: LeakyReLU(conv3x3(x)*beta + x), ping-pong in VMEM.
    for i in range(8):
        src, dst = i % 2, (i + 1) % 2
        taps = [fb_ref[src, kh:kh + H4, kw:kw + W4, :]
                for kh in range(3) for kw in range(3)]
        res = fb_ref[src, 1:1 + H4, 1:1 + W4, :].reshape(rows, c)
        y = conv(taps, wres_ref[i], bres_ref[i])
        y = lrelu(y * beta_ref[i] + res)
        fb_ref[dst, 1:1 + H4, 1:1 + W4, :] = y.reshape(H4, W4, c)

    # ---- lastconv: ConvTranspose2d(c, 52, 4, 2, 1) expressed as a dense 3x3
    #      conv whose 4*64 output channels are the 4 output-parity phases
    #      (zero-padded weights), no activation.  Lane-dense (256) HBM store.
    src = 8 % 2
    taps = [fb_ref[src, kh:kh + H4, kw:kw + W4, :]
            for kh in range(3) for kw in range(3)]
    t = conv(taps, wlast_ref[...], blast_ref[...])                 # (rows, 256)
    o_ref[0] = t.reshape(H4, W4, t.shape[-1])


# ----------------------------------------------------------------------------
# Host-side glue
# ----------------------------------------------------------------------------
def pixel_shuffle_nhwc(x, r):
    N, H, W, C = x.shape
    Co = C // (r * r)
    x = x.reshape(N, H, W, Co, r, r)
    x = x.transpose(0, 1, 4, 2, 5, 3)
    return x.reshape(N, H * r, W * r, Co)


def _pack_mod4_planes(x_nhwc):
    """conv pad=1, then pack row/col mod-4 parity planes along the row axis."""
    N, H, W, C = x_nhwc.shape
    Hp, Wp = H + 2, W + 2
    Hq, Wq = -(-Hp // 4), -(-Wp // 4)
    xp = jnp.pad(x_nhwc,
                 ((0, 0), (1, 1 + 4 * Hq - Hp), (1, 1 + 4 * Wq - Wp), (0, 0)))
    planes = (xp.reshape(N, Hq, 4, Wq, 4, C)
                .transpose(0, 2, 4, 1, 3, 5)
                .reshape(N, 16 * Hq, Wq, C))
    return planes, Hq, Wq


def if_block_forward(x_nchw, params, scale=1.0):
    # TODO(synk): bilinear F.interpolate rescale for scale != 1 not implemented;
    #             this reproduces the scale == 1 path of the module.
    assert scale == 1.0
    N, cin, H, W = x_nchw.shape
    assert H % 4 == 0 and W % 4 == 0
    c2 = params["w0a"].shape[-1]
    c = params["w0b"].shape[-1]
    H4, W4 = H // 4, W // 4
    cl = params["bt"].shape[0]            # 52
    clp = 64                              # per-phase channels, padded for lanes

    x = jnp.transpose(x_nchw, (0, 2, 3, 1)).astype(jnp.float32)    # NCHW -> NHWC
    planes, Hq, Wq = _pack_mod4_planes(x)

    bf16, f32 = jnp.bfloat16, jnp.float32
    w0a = params["w0a"].reshape(9 * cin, c2).astype(bf16)
    b0a = params["b0a"].reshape(1, c2).astype(f32)
    w0b = params["w0b"].reshape(9 * c2, c).astype(bf16)
    b0b = params["b0b"].reshape(1, c).astype(f32)
    wres = jnp.stack([w.reshape(9 * c, c) for w in params["wres"]]).astype(bf16)
    bres = jnp.stack([b.reshape(1, c) for b in params["bres"]]).astype(f32)
    beta = jnp.stack([b.reshape(1, c) for b in params["beta"]]).astype(f32)

    # ConvTranspose2d(c, 52, 4, 2, 1) -> dense 3x3 conv with per-output-phase
    # blocked zero-padded weights.  Wf = spatially flipped weights in HWIO.
    wt = params["wt"]                                              # (c, 52, 4, 4)
    wf = jnp.transpose(jnp.flip(wt, axis=(2, 3)), (2, 3, 0, 1))    # (4, 4, c, 52)
    wd = jnp.zeros((3, 3, c, 4, clp), f32)
    for py in range(2):
        for px in range(2):
            for j in range(2):
                for l in range(2):
                    wd = wd.at[py + j, px + l, :, py * 2 + px, :cl].set(
                        wf[py + 2 * j, px + 2 * l])
    wlast = wd.reshape(9 * c, 4 * clp).astype(bf16)
    blast = jnp.tile(jnp.pad(params["bt"], (0, clp - cl)), 4).reshape(1, 4 * clp).astype(f32)

    kernel = functools.partial(_ifblock_kernel, alpha=0.2)
    out = pl.pallas_call(
        kernel,
        out_shape=jax.ShapeDtypeStruct((N, H4, W4, 4 * clp), jnp.float32),
        grid=(N,),
        in_specs=[
            pl.BlockSpec((1, 16 * Hq, Wq, cin), lambda n: (n, 0, 0, 0)),
            pl.BlockSpec((9 * cin, c2), lambda n: (0, 0)),
            pl.BlockSpec((1, c2), lambda n: (0, 0)),
            pl.BlockSpec((9 * c2, c), lambda n: (0, 0)),
            pl.BlockSpec((1, c), lambda n: (0, 0)),
            pl.BlockSpec((8, 9 * c, c), lambda n: (0, 0, 0)),
            pl.BlockSpec((8, 1, c), lambda n: (0, 0, 0)),
            pl.BlockSpec((8, 1, c), lambda n: (0, 0, 0)),
            pl.BlockSpec((9 * c, 4 * clp), lambda n: (0, 0)),
            pl.BlockSpec((1, 4 * clp), lambda n: (0, 0)),
        ],
        out_specs=pl.BlockSpec((1, H4, W4, 4 * clp), lambda n: (n, 0, 0, 0)),
        scratch_shapes=[
            pltpu.VMEM((4, H4 + 1, W4 + 1, c2), jnp.float32),   # conv0a parity phases
            pltpu.VMEM((2, H4 + 2, W4 + 2, c), jnp.float32),    # residual ping-pong
        ],
        compiler_params=pltpu.CompilerParams(
            dimension_semantics=("parallel",)),
    )(planes, w0a, b0a, w0b, b0b, wres, bres, beta, wlast, blast)

    # Interleave the 4 phases, drop pad channels, PixelShuffle(2), back to NCHW.
    t = out.reshape(N, H4, W4, 2, 2, clp)[..., :cl]
    t = t.transpose(0, 1, 3, 2, 4, 5).reshape(N, 2 * H4, 2 * W4, cl)
    t = pixel_shuffle_nhwc(t, 2)
    t = jnp.transpose(t, (0, 3, 1, 2))
    return t[:, :4], t[:, 4:5], t[:, 5:]


# ----------------------------------------------------------------------------
# Parameters (kaiming-style init; biases/betas randomized so the test
# exercises those code paths -- forward semantics are identical to the module)
# ----------------------------------------------------------------------------
def _kaiming_std(fan_out):
    return math.sqrt(2.0) / math.sqrt(fan_out)


def init_params(key, in_planes, c):
    ks = jax.random.split(key, 32)
    c2 = c // 2
    p = {}
    p["w0a"] = jax.random.normal(ks[0], (3, 3, in_planes, c2), jnp.float32) * _kaiming_std(9 * c2)
    p["b0a"] = 0.1 * jax.random.normal(ks[1], (c2,), jnp.float32)
    p["w0b"] = jax.random.normal(ks[2], (3, 3, c2, c), jnp.float32) * _kaiming_std(9 * c)
    p["b0b"] = 0.1 * jax.random.normal(ks[3], (c,), jnp.float32)
    p["wres"] = [jax.random.normal(ks[4 + i], (3, 3, c, c), jnp.float32) * _kaiming_std(9 * c)
                 for i in range(8)]
    p["bres"] = [0.1 * jax.random.normal(ks[12 + i], (c,), jnp.float32) for i in range(8)]
    p["beta"] = [1.0 + 0.1 * jax.random.normal(ks[20 + i], (c,), jnp.float32) for i in range(8)]
    # ConvTranspose2d weight in PyTorch layout (Cin=c, Cout=52, 4, 4) + bias
    p["wt"] = jax.random.normal(ks[28], (c, 4 * 13, 4, 4), jnp.float32) * _kaiming_std(16 * c)
    p["bt"] = 0.1 * jax.random.normal(ks[29], (4 * 13,), jnp.float32)
    return p


# ----------------------------------------------------------------------------
# Pure-JAX reference (XLA convs), mirroring the kernel's numerics
# (bf16 matmul operands, f32 accumulation and epilogue)
# ----------------------------------------------------------------------------
def ref_forward(x_nchw, p):
    bf16, f32 = jnp.bfloat16, jnp.float32
    x = jnp.transpose(x_nchw, (0, 2, 3, 1)).astype(f32)

    def conv(inp, w, b, stride, pad, lhs_dilation=None):
        y = jax.lax.conv_general_dilated(
            inp.astype(bf16), w.astype(bf16), (stride, stride),
            [(pad, pad), (pad, pad)], lhs_dilation=lhs_dilation,
            dimension_numbers=("NHWC", "HWIO", "NHWC"),
            preferred_element_type=f32)
        return y + b

    lrelu = lambda v: jnp.where(v >= 0, v, 0.2 * v)
    y = lrelu(conv(x, p["w0a"], p["b0a"], 2, 1))
    y = lrelu(conv(y, p["w0b"], p["b0b"], 2, 1))
    for i in range(8):
        y = lrelu(conv(y, p["wres"][i], p["bres"][i], 1, 1) * p["beta"][i] + y)
    wf = jnp.transpose(jnp.flip(p["wt"], axis=(2, 3)), (2, 3, 0, 1))  # (4,4,c,52)
    t = conv(y, wf, p["bt"], 1, 2, lhs_dilation=(2, 2))               # transposed conv
    t = pixel_shuffle_nhwc(t, 2)
    t = jnp.transpose(t, (0, 3, 1, 2))
    return t[:, :4], t[:, 4:5], t[:, 5:]


# ----------------------------------------------------------------------------
if __name__ == "__main__":
    key = jax.random.PRNGKey(0)
    k_par, k_x = jax.random.split(key)

    N, in_planes, H, W = 2, 8, 32, 32
    c = 32
    params = init_params(k_par, in_planes, c)
    x = jax.random.normal(k_x, (N, in_planes, H, W), jnp.float32)

    fwd = jax.jit(functools.partial(if_block_forward, scale=1.0))
    flow, mask, feat = fwd(x, params)
    jax.block_until_ready((flow, mask, feat))

    assert flow.shape == (N, 4, H, W)
    assert mask.shape == (N, 1, H, W)
    assert feat.shape == (N, 8, H, W)

    rflow, rmask, rfeat = ref_forward(x, params)
    np.testing.assert_allclose(np.asarray(flow), np.asarray(rflow), rtol=1e-2, atol=1e-2)
    np.testing.assert_allclose(np.asarray(mask), np.asarray(rmask), rtol=1e-2, atol=1e-2)
    np.testing.assert_allclose(np.asarray(feat), np.asarray(rfeat), rtol=1e-2, atol=1e-2)

    print("KERNEL_OK")
</pallas_src>

<mosaic_0001>
module attributes {stable_mosaic.version = 11 : i64} {
  func.func @_ifblock_kernel(%arg0: i32, %arg1: memref<1x144x9x8xf32, #tpu.memory_space<vmem>>, %arg2: memref<72x16xbf16, #tpu.memory_space<vmem>>, %arg3: memref<1x16xf32, #tpu.memory_space<vmem>>, %arg4: memref<144x32xbf16, #tpu.memory_space<vmem>>, %arg5: memref<1x32xf32, #tpu.memory_space<vmem>>, %arg6: memref<8x288x32xbf16, #tpu.memory_space<vmem>>, %arg7: memref<8x1x32xf32, #tpu.memory_space<vmem>>, %arg8: memref<8x1x32xf32, #tpu.memory_space<vmem>>, %arg9: memref<288x256xbf16, #tpu.memory_space<vmem>>, %arg10: memref<1x256xf32, #tpu.memory_space<vmem>>, %arg11: memref<1x8x8x256xf32, #tpu.memory_space<vmem>>, %arg12: memref<4x9x9x16xf32, #tpu.memory_space<vmem>>, %arg13: memref<2x10x10x32xf32, #tpu.memory_space<vmem>>) attributes {dimension_semantics = [#tpu.dimension_semantics<parallel>], iteration_bounds = array<i64: 2>, scalar_prefetch = 0 : i64, scratch_operands = 2 : i64, tpu.core_type = #tpu.core_type<tc>, window_params = [{transform_indices = @transform_0, window_bounds = array<i64: 1, 144, 9, 8>}, {pipeline_mode = #tpu.pipeline_mode<synchronous>, transform_indices = @transform_1, window_bounds = array<i64: 72, 16>}, {pipeline_mode = #tpu.pipeline_mode<synchronous>, transform_indices = @transform_2, window_bounds = array<i64: 1, 16>}, {pipeline_mode = #tpu.pipeline_mode<synchronous>, transform_indices = @transform_3, window_bounds = array<i64: 144, 32>}, {pipeline_mode = #tpu.pipeline_mode<synchronous>, transform_indices = @transform_4, window_bounds = array<i64: 1, 32>}, {pipeline_mode = #tpu.pipeline_mode<synchronous>, transform_indices = @transform_5, window_bounds = array<i64: 8, 288, 32>}, {pipeline_mode = #tpu.pipeline_mode<synchronous>, transform_indices = @transform_6, window_bounds = array<i64: 8, 1, 32>}, {pipeline_mode = #tpu.pipeline_mode<synchronous>, transform_indices = @transform_7, window_bounds = array<i64: 8, 1, 32>}, {pipeline_mode = #tpu.pipeline_mode<synchronous>, transform_indices = @transform_8, window_bounds = array<i64: 288, 256>}, {pipeline_mode = #tpu.pipeline_mode<synchronous>, transform_indices = @transform_9, window_bounds = array<i64: 1, 256>}, {transform_indices = @transform_10, window_bounds = array<i64: 1, 8, 8, 256>}]} {
    %cst = arith.constant 0.000000e+00 : f32
    %0 = vector.broadcast %cst : f32 to vector<4x9x9x16xf32>
    %c0 = arith.constant 0 : index
    %c0_0 = arith.constant 0 : index
    %c0_1 = arith.constant 0 : index
    %c0_2 = arith.constant 0 : index
    %1 = vector.load %arg12[%c0, %c0_0, %c0_1, %c0_2] : memref<4x9x9x16xf32, #tpu.memory_space<vmem>>, vector<4x9x9x16xf32>
    tpu.vector_store %arg12[%c0, %c0_0, %c0_1, %c0_2], %0 {strides = array<i32>} : memref<4x9x9x16xf32, #tpu.memory_space<vmem>>, vector<4x9x9x16xf32>,
    %cst_3 = arith.constant 0.000000e+00 : f32
    %2 = vector.broadcast %cst_3 : f32 to vector<2x10x10x32xf32>
    %c0_4 = arith.constant 0 : index
    %c0_5 = arith.constant 0 : index
    %c0_6 = arith.constant 0 : index
    %c0_7 = arith.constant 0 : index
    %3 = vector.load %arg13[%c0_4, %c0_5, %c0_6, %c0_7] : memref<2x10x10x32xf32, #tpu.memory_space<vmem>>, vector<2x10x10x32xf32>
    tpu.vector_store %arg13[%c0_4, %c0_5, %c0_6, %c0_7], %2 {strides = array<i32>} : memref<2x10x10x32xf32, #tpu.memory_space<vmem>>, vector<2x10x10x32xf32>,
    %c0_8 = arith.constant 0 : index
    %c0_9 = arith.constant 0 : index
    %4 = vector.load %arg2[%c0_8, %c0_9] : memref<72x16xbf16, #tpu.memory_space<vmem>>, vector<72x16xbf16>
    %c0_10 = arith.constant 0 : index
    %c0_11 = arith.constant 0 : index
    %5 = vector.load %arg3[%c0_10, %c0_11] : memref<1x16xf32, #tpu.memory_space<vmem>>, vector<1x16xf32>
    %c0_12 = arith.constant 0 : index
    %c0_13 = arith.constant 0 : index
    %c0_14 = arith.constant 0 : index
    %c0_15 = arith.constant 0 : index
    %6 = vector.load %arg1[%c0_12, %c0_13, %c0_14, %c0_15] : memref<1x144x9x8xf32, #tpu.memory_space<vmem>>, vector<1x8x8x8xf32>
    %7 = vector.shape_cast %6 : vector<1x8x8x8xf32> to vector<8x8x8xf32>
    %c0_16 = arith.constant 0 : index
    %c9 = arith.constant 9 : index
    %c0_17 = arith.constant 0 : index
    %c0_18 = arith.constant 0 : index
    %8 = vector.load %arg1[%c0_16, %c9, %c0_17, %c0_18] : memref<1x144x9x8xf32, #tpu.memory_space<vmem>>, vector<1x8x8x8xf32>
    %9 = vector.shape_cast %8 : vector<1x8x8x8xf32> to vector<8x8x8xf32>
    %c0_19 = arith.constant 0 : index
    %c18 = arith.constant 18 : index
    %c0_20 = arith.constant 0 : index
    %c0_21 = arith.constant 0 : index
    %10 = vector.load %arg1[%c0_19, %c18, %c0_20, %c0_21] : memref<1x144x9x8xf32, #tpu.memory_space<vmem>>, vector<1x8x8x8xf32>
    %11 = vector.shape_cast %10 : vector<1x8x8x8xf32> to vector<8x8x8xf32>
    %c0_22 = arith.constant 0 : index
    %c36 = arith.constant 36 : index
    %c0_23 = arith.constant 0 : index
    %c0_24 = arith.constant 0 : index
    %12 = vector.load %arg1[%c0_22, %c36, %c0_23, %c0_24] : memref<1x144x9x8xf32, #tpu.memory_space<vmem>>, vector<1x8x8x8xf32>
    %13 = vector.shape_cast %12 : vector<1x8x8x8xf32> to vector<8x8x8xf32>
    %c0_25 = arith.constant 0 : index
    %c45 = arith.constant 45 : index
    %c0_26 = arith.constant 0 : index
    %c0_27 = arith.constant 0 : index
    %14 = vector.load %arg1[%c0_25, %c45, %c0_26, %c0_27] : memref<1x144x9x8xf32, #tpu.memory_space<vmem>>, vector<1x8x8x8xf32>
    %15 = vector.shape_cast %14 : vector<1x8x8x8xf32> to vector<8x8x8xf32>
    %c0_28 = arith.constant 0 : index
    %c54 = arith.constant 54 : index
    %c0_29 = arith.constant 0 : index
    %c0_30 = arith.constant 0 : index
    %16 = vector.load %arg1[%c0_28, %c54, %c0_29, %c0_30] : memref<1x144x9x8xf32, #tpu.memory_space<vmem>>, vector<1x8x8x8xf32>
    %17 = vector.shape_cast %16 : vector<1x8x8x8xf32> to vector<8x8x8xf32>
    %c0_31 = arith.constant 0 : index
    %c72 = arith.constant 72 : index
    %c0_32 = arith.constant 0 : index
    %c0_33 = arith.constant 0 : index
    %18 = vector.load %arg1[%c0_31, %c72, %c0_32, %c0_33] : memref<1x144x9x8xf32, #tpu.memory_space<vmem>>, vector<1x8x8x8xf32>
    %19 = vector.shape_cast %18 : vector<1x8x8x8xf32> to vector<8x8x8xf32>
    %c0_34 = arith.constant 0 : index
    %c81 = arith.constant 81 : index
    %c0_35 = arith.constant 0 : index
    %c0_36 = arith.constant 0 : index
    %20 = vector.load %arg1[%c0_34, %c81, %c0_35, %c0_36] : memref<1x144x9x8xf32, #tpu.memory_space<vmem>>, vector<1x8x8x8xf32>
    %21 = vector.shape_cast %20 : vector<1x8x8x8xf32> to vector<8x8x8xf32>
    %c0_37 = arith.constant 0 : index
    %c90 = arith.constant 90 : index
    %c0_38 = arith.constant 0 : index
    %c0_39 = arith.constant 0 : index
    %22 = vector.load %arg1[%c0_37, %c90, %c0_38, %c0_39] : memref<1x144x9x8xf32, #tpu.memory_space<vmem>>, vector<1x8x8x8xf32>
    %23 = vector.shape_cast %22 : vector<1x8x8x8xf32> to vector<8x8x8xf32>
    %24 = tpu.concatenate %7, %9, %11, %13, %15, %17, %19, %21, %23 in 2 : vector<8x8x8xf32>, vector<8x8x8xf32>, vector<8x8x8xf32>, vector<8x8x8xf32>, vector<8x8x8xf32>, vector<8x8x8xf32>, vector<8x8x8xf32>, vector<8x8x8xf32>, vector<8x8x8xf32> -> vector<8x8x72xf32>
    %25 = vector.shape_cast %24 : vector<8x8x72xf32> to vector<64x72xf32>
    %26 = arith.truncf %25 : vector<64x72xf32> to vector<64x72xbf16>
    %cst_40 = arith.constant dense<0.000000e+00> : vector<64x16xf32>
    %27 = tpu.matmul %26, %4, %cst_40 {dimension_numbers = #tpu.dot_dimension_numbers<[1], [0], [0], [1], [0, 0, 1, 1], [], []>} : vector<64x72xbf16>, vector<72x16xbf16>, vector<64x16xf32> -> vector<64x16xf32>
    %28 = vector.broadcast %5 : vector<1x16xf32> to vector<64x16xf32>
    %29 = arith.addf %27, %28 : vector<64x16xf32>
    %cst_41 = arith.constant 0.000000e+00 : f32
    %30 = vector.broadcast %cst_41 : f32 to vector<64x16xf32>
    %31 = arith.cmpf oge, %29, %30 : vector<64x16xf32>
    %cst_42 = arith.constant 2.000000e-01 : f32
    %32 = vector.broadcast %cst_42 : f32 to vector<64x16xf32>
    %33 = arith.mulf %29, %32 : vector<64x16xf32>
    %34 = arith.select %31, %29, %33 : vector<64x16xi1>, vector<64x16xf32>
    %35 = vector.shape_cast %34 : vector<64x16xf32> to vector<8x8x16xf32>
    %c0_43 = arith.constant 0 : index
    %c0_44 = arith.constant 0 : index
    %c0_45 = arith.constant 0 : index
    %c0_46 = arith.constant 0 : index
    %36 = vector.load %arg12[%c0_43, %c0_44, %c0_45, %c0_46] : memref<4x9x9x16xf32, #tpu.memory_space<vmem>>, vector<1x8x8x16xf32>
    %37 = vector.shape_cast %36 : vector<1x8x8x16xf32> to vector<8x8x16xf32>
    %38 = vector.shape_cast %35 : vector<8x8x16xf32> to vector<1x8x8x16xf32>
    tpu.vector_store %arg12[%c0_43, %c0_44, %c0_45, %c0_46], %38 {strides = array<i32>} : memref<4x9x9x16xf32, #tpu.memory_space<vmem>>, vector<1x8x8x16xf32>,
    %c0_47 = arith.constant 0 : index
    %c18_48 = arith.constant 18 : index
    %c0_49 = arith.constant 0 : index
    %c0_50 = arith.constant 0 : index
    %39 = vector.load %arg1[%c0_47, %c18_48, %c0_49, %c0_50] : memref<1x144x9x8xf32, #tpu.memory_space<vmem>>, vector<1x8x8x8xf32>
    %40 = vector.shape_cast %39 : vector<1x8x8x8xf32> to vector<8x8x8xf32>
    %c0_51 = arith.constant 0 : index
    %c27 = arith.constant 27 : index
    %c0_52 = arith.constant 0 : index
    %c0_53 = arith.constant 0 : index
    %41 = vector.load %arg1[%c0_51, %c27, %c0_52, %c0_53] : memref<1x144x9x8xf32, #tpu.memory_space<vmem>>, vector<1x8x8x8xf32>
    %42 = vector.shape_cast %41 : vector<1x8x8x8xf32> to vector<8x8x8xf32>
    %c0_54 = arith.constant 0 : index
    %c0_55 = arith.constant 0 : index
    %c1 = arith.constant 1 : index
    %c0_56 = arith.constant 0 : index
    %43 = vector.load %arg1[%c0_54, %c0_55, %c1, %c0_56] : memref<1x144x9x8xf32, #tpu.memory_space<vmem>>, vector<1x8x8x8xf32>
    %44 = vector.shape_cast %43 : vector<1x8x8x8xf32> to vector<8x8x8xf32>
    %c0_57 = arith.constant 0 : index
    %c54_58 = arith.constant 54 : index
    %c0_59 = arith.constant 0 : index
    %c0_60 = arith.constant 0 : index
    %45 = vector.load %arg1[%c0_57, %c54_58, %c0_59, %c0_60] : memref<1x144x9x8xf32, #tpu.memory_space<vmem>>, vector<1x8x8x8xf32>
    %46 = vector.shape_cast %45 : vector<1x8x8x8xf32> to vector<8x8x8xf32>
    %c0_61 = arith.constant 0 : index
    %c63 = arith.constant 63 : index
    %c0_62 = arith.constant 0 : index
    %c0_63 = arith.constant 0 : index
    %47 = vector.load %arg1[%c0_61, %c63, %c0_62, %c0_63] : memref<1x144x9x8xf32, #tpu.memory_space<vmem>>, vector<1x8x8x8xf32>
    %48 = vector.shape_cast %47 : vector<1x8x8x8xf32> to vector<8x8x8xf32>
    %c0_64 = arith.constant 0 : index
    %c36_65 = arith.constant 36 : index
    %c1_66 = arith.constant 1 : index
    %c0_67 = arith.constant 0 : index
    %49 = vector.load %arg1[%c0_64, %c36_65, %c1_66, %c0_67] : memref<1x144x9x8xf32, #tpu.memory_space<vmem>>, vector<1x8x8x8xf32>
    %50 = vector.shape_cast %49 : vector<1x8x8x8xf32> to vector<8x8x8xf32>
    %c0_68 = arith.constant 0 : index
    %c90_69 = arith.constant 90 : index
    %c0_70 = arith.constant 0 : index
    %c0_71 = arith.constant 0 : index
    %51 = vector.load %arg1[%c0_68, %c90_69, %c0_70, %c0_71] : memref<1x144x9x8xf32, #tpu.memory_space<vmem>>, vector<1x8x8x8xf32>
    %52 = vector.shape_cast %51 : vector<1x8x8x8xf32> to vector<8x8x8xf32>
    %c0_72 = arith.constant 0 : index
    %c99 = arith.constant 99 : index
    %c0_73 = arith.constant 0 : index
    %c0_74 = arith.constant 0 : index
    %53 = vector.load %arg1[%c0_72, %c99, %c0_73, %c0_74] : memref<1x144x9x8xf32, #tpu.memory_space<vmem>>, vector<1x8x8x8xf32>
    %54 = vector.shape_cast %53 : vector<1x8x8x8xf32> to vector<8x8x8xf32>
    %c0_75 = arith.constant 0 : index
    %c72_76 = arith.constant 72 : index
    %c1_77 = arith.constant 1 : index
    %c0_78 = arith.constant 0 : index
    %55 = vector.load %arg1[%c0_75, %c72_76, %c1_77, %c0_78] : memref<1x144x9x8xf32, #tpu.memory_space<vmem>>, vector<1x8x8x8xf32>
    %56 = vector.shape_cast %55 : vector<1x8x8x8xf32> to vector<8x8x8xf32>
    %57 = tpu.concatenate %40, %42, %44, %46, %48, %50, %52, %54, %56 in 2 : vector<8x8x8xf32>, vector<8x8x8xf32>, vector<8x8x8xf32>, vector<8x8x8xf32>, vector<8x8x8xf32>, vector<8x8x8xf32>, vector<8x8x8xf32>, vector<8x8x8xf32>, vector<8x8x8xf32> -> vector<8x8x72xf32>
    %58 = vector.shape_cast %57 : vector<8x8x72xf32> to vector<64x72xf32>
    %59 = arith.truncf %58 : vector<64x72xf32> to vector<64x72xbf16>
    %cst_79 = arith.constant dense<0.000000e+00> : vector<64x16xf32>
    %60 = tpu.matmul %59, %4, %cst_79 {dimension_numbers = #tpu.dot_dimension_numbers<[1], [0], [0], [1], [0, 0, 1, 1], [], []>} : vector<64x72xbf16>, vector<72x16xbf16>, vector<64x16xf32> -> vector<64x16xf32>
    %61 = vector.broadcast %5 : vector<1x16xf32> to vector<64x16xf32>
    %62 = arith.addf %60, %61 : vector<64x16xf32>
    %cst_80 = arith.constant 0.000000e+00 : f32
    %63 = vector.broadcast %cst_80 : f32 to vector<64x16xf32>
    %64 = arith.cmpf oge, %62, %63 : vector<64x16xf32>
    %cst_81 = arith.constant 2.000000e-01 : f32
    %65 = vector.broadcast %cst_81 : f32 to vector<64x16xf32>
    %66 = arith.mulf %62, %65 : vector<64x16xf32>
    %67 = arith.select %64, %62, %66 : vector<64x16xi1>, vector<64x16xf32>
    %68 = vector.shape_cast %67 : vector<64x16xf32> to vector<8x8x16xf32>
    %c1_82 = arith.constant 1 : index
    %c0_83 = arith.constant 0 : index
    %c1_84 = arith.constant 1 : index
    %c0_85 = arith.constant 0 : index
    %69 = vector.load %arg12[%c1_82, %c0_83, %c1_84, %c0_85] : memref<4x9x9x16xf32, #tpu.memory_space<vmem>>, vector<1x8x8x16xf32>
    %70 = vector.shape_cast %69 : vector<1x8x8x16xf32> to vector<8x8x16xf32>
    %71 = vector.shape_cast %68 : vector<8x8x16xf32> to vector<1x8x8x16xf32>
    tpu.vector_store %arg12[%c1_82, %c0_83, %c1_84, %c0_85], %71 {strides = array<i32>} : memref<4x9x9x16xf32, #tpu.memory_space<vmem>>, vector<1x8x8x16xf32>,
    %c0_86 = arith.constant 0 : index
    %c72_87 = arith.constant 72 : index
    %c0_88 = arith.constant 0 : index
    %c0_89 = arith.constant 0 : index
    %72 = vector.load %arg1[%c0_86, %c72_87, %c0_88, %c0_89] : memref<1x144x9x8xf32, #tpu.memory_space<vmem>>, vector<1x8x8x8xf32>
    %73 = vector.shape_cast %72 : vector<1x8x8x8xf32> to vector<8x8x8xf32>
    %c0_90 = arith.constant 0 : index
    %c81_91 = arith.constant 81 : index
    %c0_92 = arith.constant 0 : index
    %c0_93 = arith.constant 0 : index
    %74 = vector.load %arg1[%c0_90, %c81_91, %c0_92, %c0_93] : memref<1x144x9x8xf32, #tpu.memory_space<vmem>>, vector<1x8x8x8xf32>
    %75 = vector.shape_cast %74 : vector<1x8x8x8xf32> to vector<8x8x8xf32>
    %c0_94 = arith.constant 0 : index
    %c90_95 = arith.constant 90 : index
    %c0_96 = arith.constant 0 : index
    %c0_97 = arith.constant 0 : index
    %76 = vector.load %arg1[%c0_94, %c90_95, %c0_96, %c0_97] : memref<1x144x9x8xf32, #tpu.memory_space<vmem>>, vector<1x8x8x8xf32>
    %77 = vector.shape_cast %76 : vector<1x8x8x8xf32> to vector<8x8x8xf32>
    %c0_98 = arith.constant 0 : index
    %c108 = arith.constant 108 : index
    %c0_99 = arith.constant 0 : index
    %c0_100 = arith.constant 0 : index
    %78 = vector.load %arg1[%c0_98, %c108, %c0_99, %c0_100] : memref<1x144x9x8xf32, #tpu.memory_space<vmem>>, vector<1x8x8x8xf32>
    %79 = vector.shape_cast %78 : vector<1x8x8x8xf32> to vector<8x8x8xf32>
    %c0_101 = arith.constant 0 : index
    %c117 = arith.constant 117 : index
    %c0_102 = arith.constant 0 : index
    %c0_103 = arith.constant 0 : index
    %80 = vector.load %arg1[%c0_101, %c117, %c0_102, %c0_103] : memref<1x144x9x8xf32, #tpu.memory_space<vmem>>, vector<1x8x8x8xf32>
    %81 = vector.shape_cast %80 : vector<1x8x8x8xf32> to vector<8x8x8xf32>
    %c0_104 = arith.constant 0 : index
    %c126 = arith.constant 126 : index
    %c0_105 = arith.constant 0 : index
    %c0_106 = arith.constant 0 : index
    %82 = vector.load %arg1[%c0_104, %c126, %c0_105, %c0_106] : memref<1x144x9x8xf32, #tpu.memory_space<vmem>>, vector<1x8x8x8xf32>
    %83 = vector.shape_cast %82 : vector<1x8x8x8xf32> to vector<8x8x8xf32>
    %c0_107 = arith.constant 0 : index
    %c1_108 = arith.constant 1 : index
    %c0_109 = arith.constant 0 : index
    %c0_110 = arith.constant 0 : index
    %84 = vector.load %arg1[%c0_107, %c1_108, %c0_109, %c0_110] : memref<1x144x9x8xf32, #tpu.memory_space<vmem>>, vector<1x8x8x8xf32>
    %85 = vector.shape_cast %84 : vector<1x8x8x8xf32> to vector<8x8x8xf32>
    %c0_111 = arith.constant 0 : index
    %c10 = arith.constant 10 : index
    %c0_112 = arith.constant 0 : index
    %c0_113 = arith.constant 0 : index
    %86 = vector.load %arg1[%c0_111, %c10, %c0_112, %c0_113] : memref<1x144x9x8xf32, #tpu.memory_space<vmem>>, vector<1x8x8x8xf32>
    %87 = vector.shape_cast %86 : vector<1x8x8x8xf32> to vector<8x8x8xf32>
    %c0_114 = arith.constant 0 : index
    %c19 = arith.constant 19 : index
    %c0_115 = arith.constant 0 : index
    %c0_116 = arith.constant 0 : index
    %88 = vector.load %arg1[%c0_114, %c19, %c0_115, %c0_116] : memref<1x144x9x8xf32, #tpu.memory_space<vmem>>, vector<1x8x8x8xf32>
    %89 = vector.shape_cast %88 : vector<1x8x8x8xf32> to vector<8x8x8xf32>
    %90 = tpu.concatenate %73, %75, %77, %79, %81, %83, %85, %87, %89 in 2 : vector<8x8x8xf32>, vector<8x8x8xf32>, vector<8x8x8xf32>, vector<8x8x8xf32>, vector<8x8x8xf32>, vector<8x8x8xf32>, vector<8x8x8xf32>, vector<8x8x8xf32>, vector<8x8x8xf32> -> vector<8x8x72xf32>
    %91 = vector.shape_cast %90 : vector<8x8x72xf32> to vector<64x72xf32>
    %92 = arith.truncf %91 : vector<64x72xf32> to vector<64x72xbf16>
    %cst_117 = arith.constant dense<0.000000e+00> : vector<64x16xf32>
    %93 = tpu.matmul %92, %4, %cst_117 {dimension_numbers = #tpu.dot_dimension_numbers<[1], [0], [0], [1], [0, 0, 1, 1], [], []>} : vector<64x72xbf16>, vector<72x16xbf16>, vector<64x16xf32> -> vector<64x16xf32>
    %94 = vector.broadcast %5 : vector<1x16xf32> to vector<64x16xf32>
    %95 = arith.addf %93, %94 : vector<64x16xf32>
    %cst_118 = arith.constant 0.000000e+00 : f32
    %96 = vector.broadcast %cst_118 : f32 to vector<64x16xf32>
    %97 = arith.cmpf oge, %95, %96 : vector<64x16xf32>
    %cst_119 = arith.constant 2.000000e-01 : f32
    %98 = vector.broadcast %cst_119 : f32 to vector<64x16xf32>
    %99 = arith.mulf %95, %98 : vector<64x16xf32>
    %100 = arith.select %97, %95, %99 : vector<64x16xi1>, vector<64x16xf32>
    %101 = vector.shape_cast %100 : vector<64x16xf32> to vector<8x8x16xf32>
    %c2 = arith.constant 2 : index
    %c1_120 = arith.constant 1 : index
    %c0_121 = arith.constant 0 : index
    %c0_122 = arith.constant 0 : index
    %102 = vector.load %arg12[%c2, %c1_120, %c0_121, %c0_122] : memref<4x9x9x16xf32, #tpu.memory_space<vmem>>, vector<1x8x8x16xf32>
    %103 = vector.shape_cast %102 : vector<1x8x8x16xf32> to vector<8x8x16xf32>
    %104 = vector.shape_cast %101 : vector<8x8x16xf32> to vector<1x8x8x16xf32>
    tpu.vector_store %arg12[%c2, %c1_120, %c0_121, %c0_122], %104 {strides = array<i32>} : memref<4x9x9x16xf32, #tpu.memory_space<vmem>>, vector<1x8x8x16xf32>,
    %c0_123 = arith.constant 0 : index
    %c90_124 = arith.constant 90 : index
    %c0_125 = arith.constant 0 : index
    %c0_126 = arith.constant 0 : index
    %105 = vector.load %arg1[%c0_123, %c90_124, %c0_125, %c0_126] : memref<1x144x9x8xf32, #tpu.memory_space<vmem>>, vector<1x8x8x8xf32>
    %106 = vector.shape_cast %105 : vector<1x8x8x8xf32> to vector<8x8x8xf32>
    %c0_127 = arith.constant 0 : index
    %c99_128 = arith.constant 99 : index
    %c0_129 = arith.constant 0 : index
    %c0_130 = arith.constant 0 : index
    %107 = vector.load %arg1[%c0_127, %c99_128, %c0_129, %c0_130] : memref<1x144x9x8xf32, #tpu.memory_space<vmem>>, vector<1x8x8x8xf32>
    %108 = vector.shape_cast %107 : vector<1x8x8x8xf32> to vector<8x8x8xf32>
    %c0_131 = arith.constant 0 : index
    %c72_132 = arith.constant 72 : index
    %c1_133 = arith.constant 1 : index
    %c0_134 = arith.constant 0 : index
    %109 = vector.load %arg1[%c0_131, %c72_132, %c1_133, %c0_134] : memref<1x144x9x8xf32, #tpu.memory_space<vmem>>, vector<1x8x8x8xf32>
    %110 = vector.shape_cast %109 : vector<1x8x8x8xf32> to vector<8x8x8xf32>
    %c0_135 = arith.constant 0 : index
    %c126_136 = arith.constant 126 : index
    %c0_137 = arith.constant 0 : index
    %c0_138 = arith.constant 0 : index
    %111 = vector.load %arg1[%c0_135, %c126_136, %c0_137, %c0_138] : memref<1x144x9x8xf32, #tpu.memory_space<vmem>>, vector<1x8x8x8xf32>
    %112 = vector.shape_cast %111 : vector<1x8x8x8xf32> to vector<8x8x8xf32>
    %c0_139 = arith.constant 0 : index
    %c135 = arith.constant 135 : index
    %c0_140 = arith.constant 0 : index
    %c0_141 = arith.constant 0 : index
    %113 = vector.load %arg1[%c0_139, %c135, %c0_140, %c0_141] : memref<1x144x9x8xf32, #tpu.memory_space<vmem>>, vector<1x8x8x8xf32>
    %114 = vector.shape_cast %113 : vector<1x8x8x8xf32> to vector<8x8x8xf32>
    %c0_142 = arith.constant 0 : index
    %c108_143 = arith.constant 108 : index
    %c1_144 = arith.constant 1 : index
    %c0_145 = arith.constant 0 : index
    %115 = vector.load %arg1[%c0_142, %c108_143, %c1_144, %c0_145] : memref<1x144x9x8xf32, #tpu.memory_space<vmem>>, vector<1x8x8x8xf32>
    %116 = vector.shape_cast %115 : vector<1x8x8x8xf32> to vector<8x8x8xf32>
    %c0_146 = arith.constant 0 : index
    %c19_147 = arith.constant 19 : index
    %c0_148 = arith.constant 0 : index
    %c0_149 = arith.constant 0 : index
    %117 = vector.load %arg1[%c0_146, %c19_147, %c0_148, %c0_149] : memref<1x144x9x8xf32, #tpu.memory_space<vmem>>, vector<1x8x8x8xf32>
    %118 = vector.shape_cast %117 : vector<1x8x8x8xf32> to vector<8x8x8xf32>
    %c0_150 = arith.constant 0 : index
    %c28 = arith.constant 28 : index
    %c0_151 = arith.constant 0 : index
    %c0_152 = arith.constant 0 : index
    %119 = vector.load %arg1[%c0_150, %c28, %c0_151, %c0_152] : memref<1x144x9x8xf32, #tpu.memory_space<vmem>>, vector<1x8x8x8xf32>
    %120 = vector.shape_cast %119 : vector<1x8x8x8xf32> to vector<8x8x8xf32>
    %c0_153 = arith.constant 0 : index
    %c1_154 = arith.constant 1 : index
    %c1_155 = arith.constant 1 : index
    %c0_156 = arith.constant 0 : index
    %121 = vector.load %arg1[%c0_153, %c1_154, %c1_155, %c0_156] : memref<1x144x9x8xf32, #tpu.memory_space<vmem>>, vector<1x8x8x8xf32>
    %122 = vector.shape_cast %121 : vector<1x8x8x8xf32> to vector<8x8x8xf32>
    %123 = tpu.concatenate %106, %108, %110, %112, %114, %116, %118, %120, %122 in 2 : vector<8x8x8xf32>, vector<8x8x8xf32>, vector<8x8x8xf32>, vector<8x8x8xf32>, vector<8x8x8xf32>, vector<8x8x8xf32>, vector<8x8x8xf32>, vector<8x8x8xf32>, vector<8x8x8xf32> -> vector<8x8x72xf32>
    %124 = vector.shape_cast %123 : vector<8x8x72xf32> to vector<64x72xf32>
    %125 = arith.truncf %124 : vector<64x72xf32> to vector<64x72xbf16>
    %cst_157 = arith.constant dense<0.000000e+00> : vector<64x16xf32>
    %126 = tpu.matmul %125, %4, %cst_157 {dimension_numbers = #tpu.dot_dimension_numbers<[1], [0], [0], [1], [0, 0, 1, 1], [], []>} : vector<64x72xbf16>, vector<72x16xbf16>, vector<64x16xf32> -> vector<64x16xf32>
    %127 = vector.broadcast %5 : vector<1x16xf32> to vector<64x16xf32>
    %128 = arith.addf %126, %127 : vector<64x16xf32>
    %cst_158 = arith.constant 0.000000e+00 : f32
    %129 = vector.broadcast %cst_158 : f32 to vector<64x16xf32>
    %130 = arith.cmpf oge, %128, %129 : vector<64x16xf32>
    %cst_159 = arith.constant 2.000000e-01 : f32
    %131 = vector.broadcast %cst_159 : f32 to vector<64x16xf32>
    %132 = arith.mulf %128, %131 : vector<64x16xf32>
    %133 = arith.select %130, %128, %132 : vector<64x16xi1>, vector<64x16xf32>
    %134 = vector.shape_cast %133 : vector<64x16xf32> to vector<8x8x16xf32>
    %c3 = arith.constant 3 : index
    %c1_160 = arith.constant 1 : index
    %c1_161 = arith.constant 1 : index
    %c0_162 = arith.constant 0 : index
    %135 = vector.load %arg12[%c3, %c1_160, %c1_161, %c0_162] : memref<4x9x9x16xf32, #tpu.memory_space<vmem>>, vector<1x8x8x16xf32>
    %136 = vector.shape_cast %135 : vector<1x8x8x16xf32> to vector<8x8x16xf32>
    %137 = vector.shape_cast %134 : vector<8x8x16xf32> to vector<1x8x8x16xf32>
    tpu.vector_store %arg12[%c3, %c1_160, %c1_161, %c0_162], %137 {strides = array<i32>} : memref<4x9x9x16xf32, #tpu.memory_space<vmem>>, vector<1x8x8x16xf32>,
    %c3_163 = arith.constant 3 : index
    %c0_164 = arith.constant 0 : index
    %c0_165 = arith.constant 0 : index
    %c0_166 = arith.constant 0 : index
    %138 = vector.load %arg12[%c3_163, %c0_164, %c0_165, %c0_166] : memref<4x9x9x16xf32, #tpu.memory_space<vmem>>, vector<1x8x8x16xf32>
    %139 = vector.shape_cast %138 : vector<1x8x8x16xf32> to vector<8x8x16xf32>
    %c2_167 = arith.constant 2 : index
    %c0_168 = arith.constant 0 : index
    %c0_169 = arith.constant 0 : index
    %c0_170 = arith.constant 0 : index
    %140 = vector.load %arg12[%c2_167, %c0_168, %c0_169, %c0_170] : memref<4x9x9x16xf32, #tpu.memory_space<vmem>>, vector<1x8x8x16xf32>
    %141 = vector.shape_cast %140 : vector<1x8x8x16xf32> to vector<8x8x16xf32>
    %c3_171 = arith.constant 3 : index
    %c0_172 = arith.constant 0 : index
    %c1_173 = arith.constant 1 : index
    %c0_174 = arith.constant 0 : index
    %142 = vector.load %arg12[%c3_171, %c0_172, %c1_173, %c0_174] : memref<4x9x9x16xf32, #tpu.memory_space<vmem>>, vector<1x8x8x16xf32>
    %143 = vector.shape_cast %142 : vector<1x8x8x16xf32> to vector<8x8x16xf32>
    %c1_175 = arith.constant 1 : index
    %c0_176 = arith.constant 0 : index
    %c0_177 = arith.constant 0 : index
    %c0_178 = arith.constant 0 : index
    %144 = vector.load %arg12[%c1_175, %c0_176, %c0_177, %c0_178] : memref<4x9x9x16xf32, #tpu.memory_space<vmem>>, vector<1x8x8x16xf32>
    %145 = vector.shape_cast %144 : vector<1x8x8x16xf32> to vector<8x8x16xf32>
    %c0_179 = arith.constant 0 : index
    %c0_180 = arith.constant 0 : index
    %c0_181 = arith.constant 0 : index
    %c0_182 = arith.constant 0 : index
    %146 = vector.load %arg12[%c0_179, %c0_180, %c0_181, %c0_182] : memref<4x9x9x16xf32, #tpu.memory_space<vmem>>, vector<1x8x8x16xf32>
    %147 = vector.shape_cast %146 : vector<1x8x8x16xf32> to vector<8x8x16xf32>
    %c1_183 = arith.constant 1 : index
    %c0_184 = arith.constant 0 : index
    %c1_185 = arith.constant 1 : index
    %c0_186 = arith.constant 0 : index
    %148 = vector.load %arg12[%c1_183, %c0_184, %c1_185, %c0_186] : memref<4x9x9x16xf32, #tpu.memory_space<vmem>>, vector<1x8x8x16xf32>
    %149 = vector.shape_cast %148 : vector<1x8x8x16xf32> to vector<8x8x16xf32>
    %c3_187 = arith.constant 3 : index
    %c1_188 = arith.constant 1 : index
    %c0_189 = arith.constant 0 : index
    %c0_190 = arith.constant 0 : index
    %150 = vector.load %arg12[%c3_187, %c1_188, %c0_189, %c0_190] : memref<4x9x9x16xf32, #tpu.memory_space<vmem>>, vector<1x8x8x16xf32>
    %151 = vector.shape_cast %150 : vector<1x8x8x16xf32> to vector<8x8x16xf32>
    %c2_191 = arith.constant 2 : index
    %c1_192 = arith.constant 1 : index
    %c0_193 = arith.constant 0 : index
    %c0_194 = arith.constant 0 : index
    %152 = vector.load %arg12[%c2_191, %c1_192, %c0_193, %c0_194] : memref<4x9x9x16xf32, #tpu.memory_space<vmem>>, vector<1x8x8x16xf32>
    %153 = vector.shape_cast %152 : vector<1x8x8x16xf32> to vector<8x8x16xf32>
    %c3_195 = arith.constant 3 : index
    %c1_196 = arith.constant 1 : index
    %c1_197 = arith.constant 1 : index
    %c0_198 = arith.constant 0 : index
    %154 = vector.load %arg12[%c3_195, %c1_196, %c1_197, %c0_198] : memref<4x9x9x16xf32, #tpu.memory_space<vmem>>, vector<1x8x8x16xf32>
    %155 = vector.shape_cast %154 : vector<1x8x8x16xf32> to vector<8x8x16xf32>
    %c0_199 = arith.constant 0 : index
    %c0_200 = arith.constant 0 : index
    %156 = vector.load %arg4[%c0_199, %c0_200] : memref<144x32xbf16, #tpu.memory_space<vmem>>, vector<144x32xbf16>
    %c0_201 = arith.constant 0 : index
    %c0_202 = arith.constant 0 : index
    %157 = vector.load %arg5[%c0_201, %c0_202] : memref<1x32xf32, #tpu.memory_space<vmem>>, vector<1x32xf32>
    %158 = tpu.concatenate %139, %141, %143, %145, %147, %149, %151, %153, %155 in 2 : vector<8x8x16xf32>, vector<8x8x16xf32>, vector<8x8x16xf32>, vector<8x8x16xf32>, vector<8x8x16xf32>, vector<8x8x16xf32>, vector<8x8x16xf32>, vector<8x8x16xf32>, vector<8x8x16xf32> -> vector<8x8x144xf32>
    %159 = vector.shape_cast %158 : vector<8x8x144xf32> to vector<64x144xf32>
    %160 = arith.truncf %159 : vector<64x144xf32> to vector<64x144xbf16>
    %cst_203 = arith.constant dense<0.000000e+00> : vector<64x32xf32>
    %161 = tpu.matmul %160, %156, %cst_203 {dimension_numbers = #tpu.dot_dimension_numbers<[1], [0], [0], [1], [0, 0, 1, 1], [], []>} : vector<64x144xbf16>, vector<144x32xbf16>, vector<64x32xf32> -> vector<64x32xf32>
    %162 = vector.broadcast %157 : vector<1x32xf32> to vector<64x32xf32>
    %163 = arith.addf %161, %162 : vector<64x32xf32>
    %cst_204 = arith.constant 0.000000e+00 : f32
    %164 = vector.broadcast %cst_204 : f32 to vector<64x32xf32>
    %165 = arith.cmpf oge, %163, %164 : vector<64x32xf32>
    %cst_205 = arith.constant 2.000000e-01 : f32
    %166 = vector.broadcast %cst_205 : f32 to vector<64x32xf32>
    %167 = arith.mulf %163, %166 : vector<64x32xf32>
    %168 = arith.select %165, %163, %167 : vector<64x32xi1>, vector<64x32xf32>
    %169 = vector.shape_cast %168 : vector<64x32xf32> to vector<8x8x32xf32>
    %c0_206 = arith.constant 0 : index
    %c1_207 = arith.constant 1 : index
    %c1_208 = arith.constant 1 : index
    %c0_209 = arith.constant 0 : index
    %170 = vector.load %arg13[%c0_206, %c1_207, %c1_208, %c0_209] : memref<2x10x10x32xf32, #tpu.memory_space<vmem>>, vector<1x8x8x32xf32>
    %171 = vector.shape_cast %170 : vector<1x8x8x32xf32> to vector<8x8x32xf32>
    %172 = vector.shape_cast %169 : vector<8x8x32xf32> to vector<1x8x8x32xf32>
    tpu.vector_store %arg13[%c0_206, %c1_207, %c1_208, %c0_209], %172 {strides = array<i32>} : memref<2x10x10x32xf32, #tpu.memory_space<vmem>>, vector<1x8x8x32xf32>,
    %c0_210 = arith.constant 0 : index
    %c0_211 = arith.constant 0 : index
    %c0_212 = arith.constant 0 : index
    %c0_213 = arith.constant 0 : index
    %173 = vector.load %arg13[%c0_210, %c0_211, %c0_212, %c0_213] : memref<2x10x10x32xf32, #tpu.memory_space<vmem>>, vector<1x8x8x32xf32>
    %174 = vector.shape_cast %173 : vector<1x8x8x32xf32> to vector<8x8x32xf32>
    %c0_214 = arith.constant 0 : index
    %c0_215 = arith.constant 0 : index
    %c1_216 = arith.constant 1 : index
    %c0_217 = arith.constant 0 : index
    %175 = vector.load %arg13[%c0_214, %c0_215, %c1_216, %c0_217] : memref<2x10x10x32xf32, #tpu.memory_space<vmem>>, vector<1x8x8x32xf32>
    %176 = vector.shape_cast %175 : vector<1x8x8x32xf32> to vector<8x8x32xf32>
    %c0_218 = arith.constant 0 : index
    %c0_219 = arith.constant 0 : index
    %c2_220 = arith.constant 2 : index
    %c0_221 = arith.constant 0 : index
    %177 = vector.load %arg13[%c0_218, %c0_219, %c2_220, %c0_221] : memref<2x10x10x32xf32, #tpu.memory_space<vmem>>, vector<1x8x8x32xf32>
    %178 = vector.shape_cast %177 : vector<1x8x8x32xf32> to vector<8x8x32xf32>
    %c0_222 = arith.constant 0 : index
    %c1_223 = arith.constant 1 : index
    %c0_224 = arith.constant 0 : index
    %c0_225 = arith.constant 0 : index
    %179 = vector.load %arg13[%c0_222, %c1_223, %c0_224, %c0_225] : memref<2x10x10x32xf32, #tpu.memory_space<vmem>>, vector<1x8x8x32xf32>
    %180 = vector.shape_cast %179 : vector<1x8x8x32xf32> to vector<8x8x32xf32>
    %c0_226 = arith.constant 0 : index
    %c1_227 = arith.constant 1 : index
    %c1_228 = arith.constant 1 : index
    %c0_229 = arith.constant 0 : index
    %181 = vector.load %arg13[%c0_226, %c1_227, %c1_228, %c0_229] : memref<2x10x10x32xf32, #tpu.memory_space<vmem>>, vector<1x8x8x32xf32>
    %182 = vector.shape_cast %181 : vector<1x8x8x32xf32> to vector<8x8x32xf32>
    %c0_230 = arith.constant 0 : index
    %c1_231 = arith.constant 1 : index
    %c2_232 = arith.constant 2 : index
    %c0_233 = arith.constant 0 : index
    %183 = vector.load %arg13[%c0_230, %c1_231, %c2_232, %c0_233] : memref<2x10x10x32xf32, #tpu.memory_space<vmem>>, vector<1x8x8x32xf32>
    %184 = vector.shape_cast %183 : vector<1x8x8x32xf32> to vector<8x8x32xf32>
    %c0_234 = arith.constant 0 : index
    %c2_235 = arith.constant 2 : index
    %c0_236 = arith.constant 0 : index
    %c0_237 = arith.constant 0 : index
    %185 = vector.load %arg13[%c0_234, %c2_235, %c0_236, %c0_237] : memref<2x10x10x32xf32, #tpu.memory_space<vmem>>, vector<1x8x8x32xf32>
    %186 = vector.shape_cast %185 : vector<1x8x8x32xf32> to vector<8x8x32xf32>
    %c0_238 = arith.constant 0 : index
    %c2_239 = arith.constant 2 : index
    %c1_240 = arith.constant 1 : index
    %c0_241 = arith.constant 0 : index
    %187 = vector.load %arg13[%c0_238, %c2_239, %c1_240, %c0_241] : memref<2x10x10x32xf32, #tpu.memory_space<vmem>>, vector<1x8x8x32xf32>
    %188 = vector.shape_cast %187 : vector<1x8x8x32xf32> to vector<8x8x32xf32>
    %c0_242 = arith.constant 0 : index
    %c2_243 = arith.constant 2 : index
    %c2_244 = arith.constant 2 : index
    %c0_245 = arith.constant 0 : index
    %189 = vector.load %arg13[%c0_242, %c2_243, %c2_244, %c0_245] : memref<2x10x10x32xf32, #tpu.memory_space<vmem>>, vector<1x8x8x32xf32>
    %190 = vector.shape_cast %189 : vector<1x8x8x32xf32> to vector<8x8x32xf32>
    %c0_246 = arith.constant 0 : index
    %c1_247 = arith.constant 1 : index
    %c1_248 = arith.constant 1 : index
    %c0_249 = arith.constant 0 : index
    %191 = vector.load %arg13[%c0_246, %c1_247, %c1_248, %c0_249] : memref<2x10x10x32xf32, #tpu.memory_space<vmem>>, vector<1x8x8x32xf32>
    %192 = vector.shape_cast %191 : vector<1x8x8x32xf32> to vector<8x8x32xf32>
    %193 = vector.shape_cast %192 : vector<8x8x32xf32> to vector<64x32xf32>
    %c0_250 = arith.constant 0 : index
    %c0_251 = arith.constant 0 : index
    %c0_252 = arith.constant 0 : index
    %194 = vector.load %arg6[%c0_250, %c0_251, %c0_252] : memref<8x288x32xbf16, #tpu.memory_space<vmem>>, vector<1x288x32xbf16>
    %195 = vector.shape_cast %194 : vector<1x288x32xbf16> to vector<288x32xbf16>
    %c0_253 = arith.constant 0 : index
    %c0_254 = arith.constant 0 : index
    %c0_255 = arith.constant 0 : index
    %196 = vector.load %arg7[%c0_253, %c0_254, %c0_255] : memref<8x1x32xf32, #tpu.memory_space<vmem>>, vector<1x1x32xf32>
    %197 = vector.shape_cast %196 : vector<1x1x32xf32> to vector<1x32xf32>
    %198 = tpu.concatenate %174, %176, %178, %180, %182, %184, %186, %188, %190 in 2 : vector<8x8x32xf32>, vector<8x8x32xf32>, vector<8x8x32xf32>, vector<8x8x32xf32>, vector<8x8x32xf32>, vector<8x8x32xf32>, vector<8x8x32xf32>, vector<8x8x32xf32>, vector<8x8x32xf32> -> vector<8x8x288xf32>
    %199 = vector.shape_cast %198 : vector<8x8x288xf32> to vector<64x288xf32>
    %200 = arith.truncf %199 : vector<64x288xf32> to vector<64x288xbf16>
    %cst_256 = arith.constant dense<0.000000e+00> : vector<64x32xf32>
    %201 = tpu.matmul %200, %195, %cst_256 {dimension_numbers = #tpu.dot_dimension_numbers<[1], [0], [0], [1], [0, 0, 1, 1], [], []>} : vector<64x288xbf16>, vector<288x32xbf16>, vector<64x32xf32> -> vector<64x32xf32>
    %202 = vector.broadcast %197 : vector<1x32xf32> to vector<64x32xf32>
    %203 = arith.addf %201, %202 : vector<64x32xf32>
    %c0_257 = arith.constant 0 : index
    %c0_258 = arith.constant 0 : index
    %c0_259 = arith.constant 0 : index
    %204 = vector.load %arg8[%c0_257, %c0_258, %c0_259] : memref<8x1x32xf32, #tpu.memory_space<vmem>>, vector<1x1x32xf32>
    %205 = vector.shape_cast %204 : vector<1x1x32xf32> to vector<1x32xf32>
    %206 = vector.broadcast %205 : vector<1x32xf32> to vector<64x32xf32>
    %207 = arith.mulf %203, %206 : vector<64x32xf32>
    %208 = arith.addf %207, %193 : vector<64x32xf32>
    %cst_260 = arith.constant 0.000000e+00 : f32
    %209 = vector.broadcast %cst_260 : f32 to vector<64x32xf32>
    %210 = arith.cmpf oge, %208, %209 : vector<64x32xf32>
    %cst_261 = arith.constant 2.000000e-01 : f32
    %211 = vector.broadcast %cst_261 : f32 to vector<64x32xf32>
    %212 = arith.mulf %208, %211 : vector<64x32xf32>
    %213 = arith.select %210, %208, %212 : vector<64x32xi1>, vector<64x32xf32>
    %214 = vector.shape_cast %213 : vector<64x32xf32> to vector<8x8x32xf32>
    %c1_262 = arith.constant 1 : index
    %c1_263 = arith.constant 1 : index
    %c1_264 = arith.constant 1 : index
    %c0_265 = arith.constant 0 : index
    %215 = vector.load %arg13[%c1_262, %c1_263, %c1_264, %c0_265] : memref<2x10x10x32xf32, #tpu.memory_space<vmem>>, vector<1x8x8x32xf32>
    %216 = vector.shape_cast %215 : vector<1x8x8x32xf32> to vector<8x8x32xf32>
    %217 = vector.shape_cast %214 : vector<8x8x32xf32> to vector<1x8x8x32xf32>
    tpu.vector_store %arg13[%c1_262, %c1_263, %c1_264, %c0_265], %217 {strides = array<i32>} : memref<2x10x10x32xf32, #tpu.memory_space<vmem>>, vector<1x8x8x32xf32>,
    %c1_266 = arith.constant 1 : index
    %c0_267 = arith.constant 0 : index
    %c0_268 = arith.constant 0 : index
    %c0_269 = arith.constant 0 : index
    %218 = vector.load %arg13[%c1_266, %c0_267, %c0_268, %c0_269] : memref<2x10x10x32xf32, #tpu.memory_space<vmem>>, vector<1x8x8x32xf32>
    %219 = vector.shape_cast %218 : vector<1x8x8x32xf32> to vector<8x8x32xf32>
    %c1_270 = arith.constant 1 : index
    %c0_271 = arith.constant 0 : index
    %c1_272 = arith.constant 1 : index
    %c0_273 = arith.constant 0 : index
    %220 = vector.load %arg13[%c1_270, %c0_271, %c1_272, %c0_273] : memref<2x10x10x32xf32, #tpu.memory_space<vmem>>, vector<1x8x8x32xf32>
    %221 = vector.shape_cast %220 : vector<1x8x8x32xf32> to vector<8x8x32xf32>
    %c1_274 = arith.constant 1 : index
    %c0_275 = arith.constant 0 : index
    %c2_276 = arith.constant 2 : index
    %c0_277 = arith.constant 0 : index
    %222 = vector.load %arg13[%c1_274, %c0_275, %c2_276, %c0_277] : memref<2x10x10x32xf32, #tpu.memory_space<vmem>>, vector<1x8x8x32xf32>
    %223 = vector.shape_cast %222 : vector<1x8x8x32xf32> to vector<8x8x32xf32>
    %c1_278 = arith.constant 1 : index
    %c1_279 = arith.constant 1 : index
    %c0_280 = arith.constant 0 : index
    %c0_281 = arith.constant 0 : index
    %224 = vector.load %arg13[%c1_278, %c1_279, %c0_280, %c0_281] : memref<2x10x10x32xf32, #tpu.memory_space<vmem>>, vector<1x8x8x32xf32>
    %225 = vector.shape_cast %224 : vector<1x8x8x32xf32> to vector<8x8x32xf32>
    %c1_282 = arith.constant 1 : index
    %c1_283 = arith.constant 1 : index
    %c1_284 = arith.constant 1 : index
    %c0_285 = arith.constant 0 : index
    %226 = vector.load %arg13[%c1_282, %c1_283, %c1_284, %c0_285] : memref<2x10x10x32xf32, #tpu.memory_space<vmem>>, vector<1x8x8x32xf32>
    %227 = vector.shape_cast %226 : vector<1x8x8x32xf32> to vector<8x8x32xf32>
    %c1_286 = arith.constant 1 : index
    %c1_287 = arith.constant 1 : index
    %c2_288 = arith.constant 2 : index
    %c0_289 = arith.constant 0 : index
    %228 = vector.load %arg13[%c1_286, %c1_287, %c2_288, %c0_289] : memref<2x10x10x32xf32, #tpu.memory_space<vmem>>, vector<1x8x8x32xf32>
    %229 = vector.shape_cast %228 : vector<1x8x8x32xf32> to vector<8x8x32xf32>
    %c1_290 = arith.constant 1 : index
    %c2_291 = arith.constant 2 : index
    %c0_292 = arith.constant 0 : index
    %c0_293 = arith.constant 0 : index
    %230 = vector.load %arg13[%c1_290, %c2_291, %c0_292, %c0_293] : memref<2x10x10x32xf32, #tpu.memory_space<vmem>>, vector<1x8x8x32xf32>
    %231 = vector.shape_cast %230 : vector<1x8x8x32xf32> to vector<8x8x32xf32>
    %c1_294 = arith.constant 1 : index
    %c2_295 = arith.constant 2 : index
    %c1_296 = arith.constant 1 : index
    %c0_297 = arith.constant 0 : index
    %232 = vector.load %arg13[%c1_294, %c2_295, %c1_296, %c0_297] : memref<2x10x10x32xf32, #tpu.memory_space<vmem>>, vector<1x8x8x32xf32>
    %233 = vector.shape_cast %232 : vector<1x8x8x32xf32> to vector<8x8x32xf32>
    %c1_298 = arith.constant 1 : index
    %c2_299 = arith.constant 2 : index
    %c2_300 = arith.constant 2 : index
    %c0_301 = arith.constant 0 : index
    %234 = vector.load %arg13[%c1_298, %c2_299, %c2_300, %c0_301] : memref<2x10x10x32xf32, #tpu.memory_space<vmem>>, vector<1x8x8x32xf32>
    %235 = vector.shape_cast %234 : vector<1x8x8x32xf32> to vector<8x8x32xf32>
    %c1_302 = arith.constant 1 : index
    %c1_303 = arith.constant 1 : index
    %c1_304 = arith.constant 1 : index
    %c0_305 = arith.constant 0 : index
    %236 = vector.load %arg13[%c1_302, %c1_303, %c1_304, %c0_305] : memref<2x10x10x32xf32, #tpu.memory_space<vmem>>, vector<1x8x8x32xf32>
    %237 = vector.shape_cast %236 : vector<1x8x8x32xf32> to vector<8x8x32xf32>
    %238 = vector.shape_cast %237 : vector<8x8x32xf32> to vector<64x32xf32>
    %c1_306 = arith.constant 1 : index
    %c0_307 = arith.constant 0 : index
    %c0_308 = arith.constant 0 : index
    %239 = vector.load %arg6[%c1_306, %c0_307, %c0_308] : memref<8x288x32xbf16, #tpu.memory_space<vmem>>, vector<1x288x32xbf16>
    %240 = vector.shape_cast %239 : vector<1x288x32xbf16> to vector<288x32xbf16>
    %c1_309 = arith.constant 1 : index
    %c0_310 = arith.constant 0 : index
    %c0_311 = arith.constant 0 : index
    %241 = vector.load %arg7[%c1_309, %c0_310, %c0_311] : memref<8x1x32xf32, #tpu.memory_space<vmem>>, vector<1x1x32xf32>
    %242 = vector.shape_cast %241 : vector<1x1x32xf32> to vector<1x32xf32>
    %243 = tpu.concatenate %219, %221, %223, %225, %227, %229, %231, %233, %235 in 2 : vector<8x8x32xf32>, vector<8x8x32xf32>, vector<8x8x32xf32>, vector<8x8x32xf32>, vector<8x8x32xf32>, vector<8x8x32xf32>, vector<8x8x32xf32>, vector<8x8x32xf32>, vector<8x8x32xf32> -> vector<8x8x288xf32>
    %244 = vector.shape_cast %243 : vector<8x8x288xf32> to vector<64x288xf32>
    %245 = arith.truncf %244 : vector<64x288xf32> to vector<64x288xbf16>
    %cst_312 = arith.constant dense<0.000000e+00> : vector<64x32xf32>
    %246 = tpu.matmul %245, %240, %cst_312 {dimension_numbers = #tpu.dot_dimension_numbers<[1], [0], [0], [1], [0, 0, 1, 1], [], []>} : vector<64x288xbf16>, vector<288x32xbf16>, vector<64x32xf32> -> vector<64x32xf32>
    %247 = vector.broadcast %242 : vector<1x32xf32> to vector<64x32xf32>
    %248 = arith.addf %246, %247 : vector<64x32xf32>
    %c1_313 = arith.constant 1 : index
    %c0_314 = arith.constant 0 : index
    %c0_315 = arith.constant 0 : index
    %249 = vector.load %arg8[%c1_313, %c0_314, %c0_315] : memref<8x1x32xf32, #tpu.memory_space<vmem>>, vector<1x1x32xf32>
    %250 = vector.shape_cast %249 : vector<1x1x32xf32> to vector<1x32xf32>
    %251 = vector.broadcast %250 : vector<1x32xf32> to vector<64x32xf32>
    %252 = arith.mulf %248, %251 : vector<64x32xf32>
    %253 = arith.addf %252, %238 : vector<64x32xf32>
    %cst_316 = arith.constant 0.000000e+00 : f32
    %254 = vector.broadcast %cst_316 : f32 to vector<64x32xf32>
    %255 = arith.cmpf oge, %253, %254 : vector<64x32xf32>
    %cst_317 = arith.constant 2.000000e-01 : f32
    %256 = vector.broadcast %cst_317 : f32 to vector<64x32xf32>
    %257 = arith.mulf %253, %256 : vector<64x32xf32>
    %258 = arith.select %255, %253, %257 : vector<64x32xi1>, vector<64x32xf32>
    %259 = vector.shape_cast %258 : vector<64x32xf32> to vector<8x8x32xf32>
    %c0_318 = arith.constant 0 : index
    %c1_319 = arith.constant 1 : index
    %c1_320 = arith.constant 1 : index
    %c0_321 = arith.constant 0 : index
    %260 = vector.load %arg13[%c0_318, %c1_319, %c1_320, %c0_321] : memref<2x10x10x32xf32, #tpu.memory_space<vmem>>, vector<1x8x8x32xf32>
    %261 = vector.shape_cast %260 : vector<1x8x8x32xf32> to vector<8x8x32xf32>
    %262 = vector.shape_cast %259 : vector<8x8x32xf32> to vector<1x8x8x32xf32>
    tpu.vector_store %arg13[%c0_318, %c1_319, %c1_320, %c0_321], %262 {strides = array<i32>} : memref<2x10x10x32xf32, #tpu.memory_space<vmem>>, vector<1x8x8x32xf32>,
    %c0_322 = arith.constant 0 : index
    %c0_323 = arith.constant 0 : index
    %c0_324 = arith.constant 0 : index
    %c0_325 = arith.constant 0 : index
    %263 = vector.load %arg13[%c0_322, %c0_323, %c0_324, %c0_325] : memref<2x10x10x32xf32, #tpu.memory_space<vmem>>, vector<1x8x8x32xf32>
    %264 = vector.shape_cast %263 : vector<1x8x8x32xf32> to vector<8x8x32xf32>
    %c0_326 = arith.constant 0 : index
    %c0_327 = arith.constant 0 : index
    %c1_328 = arith.constant 1 : index
    %c0_329 = arith.constant 0 : index
    %265 = vector.load %arg13[%c0_326, %c0_327, %c1_328, %c0_329] : memref<2x10x10x32xf32, #tpu.memory_space<vmem>>, vector<1x8x8x32xf32>
    %266 = vector.shape_cast %265 : vector<1x8x8x32xf32> to vector<8x8x32xf32>
    %c0_330 = arith.constant 0 : index
    %c0_331 = arith.constant 0 : index
    %c2_332 = arith.constant 2 : index
    %c0_333 = arith.constant 0 : index
    %267 = vector.load %arg13[%c0_330, %c0_331, %c2_332, %c0_333] : memref<2x10x10x32xf32, #tpu.memory_space<vmem>>, vector<1x8x8x32xf32>
    %268 = vector.shape_cast %267 : vector<1x8x8x32xf32> to vector<8x8x32xf32>
    %c0_334 = arith.constant 0 : index
    %c1_335 = arith.constant 1 : index
    %c0_336 = arith.constant 0 : index
    %c0_337 = arith.constant 0 : index
    %269 = vector.load %arg13[%c0_334, %c1_335, %c0_336, %c0_337] : memref<2x10x10x32xf32, #tpu.memory_space<vmem>>, vector<1x8x8x32xf32>
    %270 = vector.shape_cast %269 : vector<1x8x8x32xf32> to vector<8x8x32xf32>
    %c0_338 = arith.constant 0 : index
    %c1_339 = arith.constant 1 : index
    %c1_340 = arith.constant 1 : index
    %c0_341 = arith.constant 0 : index
    %271 = vector.load %arg13[%c0_338, %c1_339, %c1_340, %c0_341] : memref<2x10x10x32xf32, #tpu.memory_space<vmem>>, vector<1x8x8x32xf32>
    %272 = vector.shape_cast %271 : vector<1x8x8x32xf32> to vector<8x8x32xf32>
    %c0_342 = arith.constant 0 : index
    %c1_343 = arith.constant 1 : index
    %c2_344 = arith.constant 2 : index
    %c0_345 = arith.constant 0 : index
    %273 = vector.load %arg13[%c0_342, %c1_343, %c2_344, %c0_345] : memref<2x10x10x32xf32, #tpu.memory_space<vmem>>, vector<1x8x8x32xf32>
    %274 = vector.shape_cast %273 : vector<1x8x8x32xf32> to vector<8x8x32xf32>
    %c0_346 = arith.constant 0 : index
    %c2_347 = arith.constant 2 : index
    %c0_348 = arith.constant 0 : index
    %c0_349 = arith.constant 0 : index
    %275 = vector.load %arg13[%c0_346, %c2_347, %c0_348, %c0_349] : memref<2x10x10x32xf32, #tpu.memory_space<vmem>>, vector<1x8x8x32xf32>
    %276 = vector.shape_cast %275 : vector<1x8x8x32xf32> to vector<8x8x32xf32>
    %c0_350 = arith.constant 0 : index
    %c2_351 = arith.constant 2 : index
    %c1_352 = arith.constant 1 : index
    %c0_353 = arith.constant 0 : index
    %277 = vector.load %arg13[%c0_350, %c2_351, %c1_352, %c0_353] : memref<2x10x10x32xf32, #tpu.memory_space<vmem>>, vector<1x8x8x32xf32>
    %278 = vector.shape_cast %277 : vector<1x8x8x32xf32> to vector<8x8x32xf32>
    %c0_354 = arith.constant 0 : index
    %c2_355 = arith.constant 2 : index
    %c2_356 = arith.constant 2 : index
    %c0_357 = arith.constant 0 : index
    %279 = vector.load %arg13[%c0_354, %c2_355, %c2_356, %c0_357] : memref<2x10x10x32xf32, #tpu.memory_space<vmem>>, vector<1x8x8x32xf32>
    %280 = vector.shape_cast %279 : vector<1x8x8x32xf32> to vector<8x8x32xf32>
    %c0_358 = arith.constant 0 : index
    %c1_359 = arith.constant 1 : index
    %c1_360 = arith.constant 1 : index
    %c0_361 = arith.constant 0 : index
    %281 = vector.load %arg13[%c0_358, %c1_359, %c1_360, %c0_361] : memref<2x10x10x32xf32, #tpu.memory_space<vmem>>, vector<1x8x8x32xf32>
    %282 = vector.shape_cast %281 : vector<1x8x8x32xf32> to vector<8x8x32xf32>
    %283 = vector.shape_cast %282 : vector<8x8x32xf32> to vector<64x32xf32>
    %c2_362 = arith.constant 2 : index
    %c0_363 = arith.constant 0 : index
    %c0_364 = arith.constant 0 : index
    %284 = vector.load %arg6[%c2_362, %c0_363, %c0_364] : memref<8x288x32xbf16, #tpu.memory_space<vmem>>, vector<1x288x32xbf16>
    %285 = vector.shape_cast %284 : vector<1x288x32xbf16> to vector<288x32xbf16>
    %c2_365 = arith.constant 2 : index
    %c0_366 = arith.constant 0 : index
    %c0_367 = arith.constant 0 : index
    %286 = vector.load %arg7[%c2_365, %c0_366, %c0_367] : memref<8x1x32xf32, #tpu.memory_space<vmem>>, vector<1x1x32xf32>
    %287 = vector.shape_cast %286 : vector<1x1x32xf32> to vector<1x32xf32>
    %288 = tpu.concatenate %264, %266, %268, %270, %272, %274, %276, %278, %280 in 2 : vector<8x8x32xf32>, vector<8x8x32xf32>, vector<8x8x32xf32>, vector<8x8x32xf32>, vector<8x8x32xf32>, vector<8x8x32xf32>, vector<8x8x32xf32>, vector<8x8x32xf32>, vector<8x8x32xf32> -> vector<8x8x288xf32>
    %289 = vector.shape_cast %288 : vector<8x8x288xf32> to vector<64x288xf32>
    %290 = arith.truncf %289 : vector<64x288xf32> to vector<64x288xbf16>
    %cst_368 = arith.constant dense<0.000000e+00> : vector<64x32xf32>
    %291 = tpu.matmul %290, %285, %cst_368 {dimension_numbers = #tpu.dot_dimension_numbers<[1], [0], [0], [1], [0, 0, 1, 1], [], []>} : vector<64x288xbf16>, vector<288x32xbf16>, vector<64x32xf32> -> vector<64x32xf32>
    %292 = vector.broadcast %287 : vector<1x32xf32> to vector<64x32xf32>
    %293 = arith.addf %291, %292 : vector<64x32xf32>
    %c2_369 = arith.constant 2 : index
    %c0_370 = arith.constant 0 : index
    %c0_371 = arith.constant 0 : index
    %294 = vector.load %arg8[%c2_369, %c0_370, %c0_371] : memref<8x1x32xf32, #tpu.memory_space<vmem>>, vector<1x1x32xf32>
    %295 = vector.shape_cast %294 : vector<1x1x32xf32> to vector<1x32xf32>
    %296 = vector.broadcast %295 : vector<1x32xf32> to vector<64x32xf32>
    %297 = arith.mulf %293, %296 : vector<64x32xf32>
    %298 = arith.addf %297, %283 : vector<64x32xf32>
    %cst_372 = arith.constant 0.000000e+00 : f32
    %299 = vector.broadcast %cst_372 : f32 to vector<64x32xf32>
    %300 = arith.cmpf oge, %298, %299 : vector<64x32xf32>
    %cst_373 = arith.constant 2.000000e-01 : f32
    %301 = vector.broadcast %cst_373 : f32 to vector<64x32xf32>
    %302 = arith.mulf %298, %301 : vector<64x32xf32>
    %303 = arith.select %300, %298, %302 : vector<64x32xi1>, vector<64x32xf32>
    %304 = vector.shape_cast %303 : vector<64x32xf32> to vector<8x8x32xf32>
    %c1_374 = arith.constant 1 : index
    %c1_375 = arith.constant 1 : index
    %c1_376 = arith.constant 1 : index
    %c0_377 = arith.constant 0 : index
    %305 = vector.load %arg13[%c1_374, %c1_375, %c1_376, %c0_377] : memref<2x10x10x32xf32, #tpu.memory_space<vmem>>, vector<1x8x8x32xf32>
    %306 = vector.shape_cast %305 : vector<1x8x8x32xf32> to vector<8x8x32xf32>
    %307 = vector.shape_cast %304 : vector<8x8x32xf32> to vector<1x8x8x32xf32>
    tpu.vector_store %arg13[%c1_374, %c1_375, %c1_376, %c0_377], %307 {strides = array<i32>} : memref<2x10x10x32xf32, #tpu.memory_space<vmem>>, vector<1x8x8x32xf32>,
    %c1_378 = arith.constant 1 : index
    %c0_379 = arith.constant 0 : index
    %c0_380 = arith.constant 0 : index
    %c0_381 = arith.constant 0 : index
    %308 = vector.load %arg13[%c1_378, %c0_379, %c0_380, %c0_381] : memref<2x10x10x32xf32, #tpu.memory_space<vmem>>, vector<1x8x8x32xf32>
    %309 = vector.shape_cast %308 : vector<1x8x8x32xf32> to vector<8x8x32xf32>
    %c1_382 = arith.constant 1 : index
    %c0_383 = arith.constant 0 : index
    %c1_384 = arith.constant 1 : index
    %c0_385 = arith.constant 0 : index
    %310 = vector.load %arg13[%c1_382, %c0_383, %c1_384, %c0_385] : memref<2x10x10x32xf32, #tpu.memory_space<vmem>>, vector<1x8x8x32xf32>
    %311 = vector.shape_cast %310 : vector<1x8x8x32xf32> to vector<8x8x32xf32>
    %c1_386 = arith.constant 1 : index
    %c0_387 = arith.constant 0 : index
    %c2_388 = arith.constant 2 : index
    %c0_389 = arith.constant 0 : index
    %312 = vector.load %arg13[%c1_386, %c0_387, %c2_388, %c0_389] : memref<2x10x10x32xf32, #tpu.memory_space<vmem>>, vector<1x8x8x32xf32>
    %313 = vector.shape_cast %312 : vector<1x8x8x32xf32> to vector<8x8x32xf32>
    %c1_390 = arith.constant 1 : index
    %c1_391 = arith.constant 1 : index
    %c0_392 = arith.constant 0 : index
    %c0_393 = arith.constant 0 : index
    %314 = vector.load %arg13[%c1_390, %c1_391, %c0_392, %c0_393] : memref<2x10x10x32xf32, #tpu.memory_space<vmem>>, vector<1x8x8x32xf32>
    %315 = vector.shape_cast %314 : vector<1x8x8x32xf32> to vector<8x8x32xf32>
    %c1_394 = arith.constant 1 : index
    %c1_395 = arith.constant 1 : index
    %c1_396 = arith.constant 1 : index
    %c0_397 = arith.constant 0 : index
    %316 = vector.load %arg13[%c1_394, %c1_395, %c1_396, %c0_397] : memref<2x10x10x32xf32, #tpu.memory_space<vmem>>, vector<1x8x8x32xf32>
    %317 = vector.shape_cast %316 : vector<1x8x8x32xf32> to vector<8x8x32xf32>
    %c1_398 = arith.constant 1 : index
    %c1_399 = arith.constant 1 : index
    %c2_400 = arith.constant 2 : index
    %c0_401 = arith.constant 0 : index
    %318 = vector.load %arg13[%c1_398, %c1_399, %c2_400, %c0_401] : memref<2x10x10x32xf32, #tpu.memory_space<vmem>>, vector<1x8x8x32xf32>
    %319 = vector.shape_cast %318 : vector<1x8x8x32xf32> to vector<8x8x32xf32>
    %c1_402 = arith.constant 1 : index
    %c2_403 = arith.constant 2 : index
    %c0_404 = arith.constant 0 : index
    %c0_405 = arith.constant 0 : index
    %320 = vector.load %arg13[%c1_402, %c2_403, %c0_404, %c0_405] : memref<2x10x10x32xf32, #tpu.memory_space<vmem>>, vector<1x8x8x32xf32>
    %321 = vector.shape_cast %320 : vector<1x8x8x32xf32> to vector<8x8x32xf32>
    %c1_406 = arith.constant 1 : index
    %c2_407 = arith.constant 2 : index
    %c1_408 = arith.constant 1 : index
    %c0_409 = arith.constant 0 : index
    %322 = vector.load %arg13[%c1_406, %c2_407, %c1_408, %c0_409] : memref<2x10x10x32xf32, #tpu.memory_space<vmem>>, vector<1x8x8x32xf32>
    %323 = vector.shape_cast %322 : vector<1x8x8x32xf32> to vector<8x8x32xf32>
    %c1_410 = arith.constant 1 : index
    %c2_411 = arith.constant 2 : index
    %c2_412 = arith.constant 2 : index
    %c0_413 = arith.constant 0 : index
    %324 = vector.load %arg13[%c1_410, %c2_411, %c2_412, %c0_413] : memref<2x10x10x32xf32, #tpu.memory_space<vmem>>, vector<1x8x8x32xf32>
    %325 = vector.shape_cast %324 : vector<1x8x8x32xf32> to vector<8x8x32xf32>
    %c1_414 = arith.constant 1 : index
    %c1_415 = arith.constant 1 : index
    %c1_416 = arith.constant 1 : index
    %c0_417 = arith.constant 0 : index
    %326 = vector.load %arg13[%c1_414, %c1_415, %c1_416, %c0_417] : memref<2x10x10x32xf32, #tpu.memory_space<vmem>>, vector<1x8x8x32xf32>
    %327 = vector.shape_cast %326 : vector<1x8x8x32xf32> to vector<8x8x32xf32>
    %328 = vector.shape_cast %327 : vector<8x8x32xf32> to vector<64x32xf32>
    %c3_418 = arith.constant 3 : index
    %c0_419 = arith.constant 0 : index
    %c0_420 = arith.constant 0 : index
    %329 = vector.load %arg6[%c3_418, %c0_419, %c0_420] : memref<8x288x32xbf16, #tpu.memory_space<vmem>>, vector<1x288x32xbf16>
    %330 = vector.shape_cast %329 : vector<1x288x32xbf16> to vector<288x32xbf16>
    %c3_421 = arith.constant 3 : index
    %c0_422 = arith.constant 0 : index
    %c0_423 = arith.constant 0 : index
    %331 = vector.load %arg7[%c3_421, %c0_422, %c0_423] : memref<8x1x32xf32, #tpu.memory_space<vmem>>, vector<1x1x32xf32>
    %332 = vector.shape_cast %331 : vector<1x1x32xf32> to vector<1x32xf32>
    %333 = tpu.concatenate %309, %311, %313, %315, %317, %319, %321, %323, %325 in 2 : vector<8x8x32xf32>, vector<8x8x32xf32>, vector<8x8x32xf32>, vector<8x8x32xf32>, vector<8x8x32xf32>, vector<8x8x32xf32>, vector<8x8x32xf32>, vector<8x8x32xf32>, vector<8x8x32xf32> -> vector<8x8x288xf32>
    %334 = vector.shape_cast %333 : vector<8x8x288xf32> to vector<64x288xf32>
    %335 = arith.truncf %334 : vector<64x288xf32> to vector<64x288xbf16>
    %cst_424 = arith.constant dense<0.000000e+00> : vector<64x32xf32>
    %336 = tpu.matmul %335, %330, %cst_424 {dimension_numbers = #tpu.dot_dimension_numbers<[1], [0], [0], [1], [0, 0, 1, 1], [], []>} : vector<64x288xbf16>, vector<288x32xbf16>, vector<64x32xf32> -> vector<64x32xf32>
    %337 = vector.broadcast %332 : vector<1x32xf32> to vector<64x32xf32>
    %338 = arith.addf %336, %337 : vector<64x32xf32>
    %c3_425 = arith.constant 3 : index
    %c0_426 = arith.constant 0 : index
    %c0_427 = arith.constant 0 : index
    %339 = vector.load %arg8[%c3_425, %c0_426, %c0_427] : memref<8x1x32xf32, #tpu.memory_space<vmem>>, vector<1x1x32xf32>
    %340 = vector.shape_cast %339 : vector<1x1x32xf32> to vector<1x32xf32>
    %341 = vector.broadcast %340 : vector<1x32xf32> to vector<64x32xf32>
    %342 = arith.mulf %338, %341 : vector<64x32xf32>
    %343 = arith.addf %342, %328 : vector<64x32xf32>
    %cst_428 = arith.constant 0.000000e+00 : f32
    %344 = vector.broadcast %cst_428 : f32 to vector<64x32xf32>
    %345 = arith.cmpf oge, %343, %344 : vector<64x32xf32>
    %cst_429 = arith.constant 2.000000e-01 : f32
    %346 = vector.broadcast %cst_429 : f32 to vector<64x32xf32>
    %347 = arith.mulf %343, %346 : vector<64x32xf32>
    %348 = arith.select %345, %343, %347 : vector<64x32xi1>, vector<64x32xf32>
    %349 = vector.shape_cast %348 : vector<64x32xf32> to vector<8x8x32xf32>
    %c0_430 = arith.constant 0 : index
    %c1_431 = arith.constant 1 : index
    %c1_432 = arith.constant 1 : index
    %c0_433 = arith.constant 0 : index
    %350 = vector.load %arg13[%c0_430, %c1_431, %c1_432, %c0_433] : memref<2x10x10x32xf32, #tpu.memory_space<vmem>>, vector<1x8x8x32xf32>
    %351 = vector.shape_cast %350 : vector<1x8x8x32xf32> to vector<8x8x32xf32>
    %352 = vector.shape_cast %349 : vector<8x8x32xf32> to vector<1x8x8x32xf32>
    tpu.vector_store %arg13[%c0_430, %c1_431, %c1_432, %c0_433], %352 {strides = array<i32>} : memref<2x10x10x32xf32, #tpu.memory_space<vmem>>, vector<1x8x8x32xf32>,
    %c0_434 = arith.constant 0 : index
    %c0_435 = arith.constant 0 : index
    %c0_436 = arith.constant 0 : index
    %c0_437 = arith.constant 0 : index
    %353 = vector.load %arg13[%c0_434, %c0_435, %c0_436, %c0_437] : memref<2x10x10x32xf32, #tpu.memory_space<vmem>>, vector<1x8x8x32xf32>
    %354 = vector.shape_cast %353 : vector<1x8x8x32xf32> to vector<8x8x32xf32>
    %c0_438 = arith.constant 0 : index
    %c0_439 = arith.constant 0 : index
    %c1_440 = arith.constant 1 : index
    %c0_441 = arith.constant 0 : index
    %355 = vector.load %arg13[%c0_438, %c0_439, %c1_440, %c0_441] : memref<2x10x10x32xf32, #tpu.memory_space<vmem>>, vector<1x8x8x32xf32>
    %356 = vector.shape_cast %355 : vector<1x8x8x32xf32> to vector<8x8x32xf32>
    %c0_442 = arith.constant 0 : index
    %c0_443 = arith.constant 0 : index
    %c2_444 = arith.constant 2 : index
    %c0_445 = arith.constant 0 : index
    %357 = vector.load %arg13[%c0_442, %c0_443, %c2_444, %c0_445] : memref<2x10x10x32xf32, #tpu.memory_space<vmem>>, vector<1x8x8x32xf32>
    %358 = vector.shape_cast %357 : vector<1x8x8x32xf32> to vector<8x8x32xf32>
    %c0_446 = arith.constant 0 : index
    %c1_447 = arith.constant 1 : index
    %c0_448 = arith.constant 0 : index
    %c0_449 = arith.constant 0 : index
    %359 = vector.load %arg13[%c0_446, %c1_447, %c0_448, %c0_449] : memref<2x10x10x32xf32, #tpu.memory_space<vmem>>, vector<1x8x8x32xf32>
    %360 = vector.shape_cast %359 : vector<1x8x8x32xf32> to vector<8x8x32xf32>
    %c0_450 = arith.constant 0 : index
    %c1_451 = arith.constant 1 : index
    %c1_452 = arith.constant 1 : index
    %c0_453 = arith.constant 0 : index
    %361 = vector.load %arg13[%c0_450, %c1_451, %c1_452, %c0_453] : memref<2x10x10x32xf32, #tpu.memory_space<vmem>>, vector<1x8x8x32xf32>
    %362 = vector.shape_cast %361 : vector<1x8x8x32xf32> to vector<8x8x32xf32>
    %c0_454 = arith.constant 0 : index
    %c1_455 = arith.constant 1 : index
    %c2_456 = arith.constant 2 : index
    %c0_457 = arith.constant 0 : index
    %363 = vector.load %arg13[%c0_454, %c1_455, %c2_456, %c0_457] : memref<2x10x10x32xf32, #tpu.memory_space<vmem>>, vector<1x8x8x32xf32>
    %364 = vector.shape_cast %363 : vector<1x8x8x32xf32> to vector<8x8x32xf32>
    %c0_458 = arith.constant 0 : index
    %c2_459 = arith.constant 2 : index
    %c0_460 = arith.constant 0 : index
    %c0_461 = arith.constant 0 : index
    %365 = vector.load %arg13[%c0_458, %c2_459, %c0_460, %c0_461] : memref<2x10x10x32xf32, #tpu.memory_space<vmem>>, vector<1x8x8x32xf32>
    %366 = vector.shape_cast %365 : vector<1x8x8x32xf32> to vector<8x8x32xf32>
    %c0_462 = arith.constant 0 : index
    %c2_463 = arith.constant 2 : index
    %c1_464 = arith.constant 1 : index
    %c0_465 = arith.constant 0 : index
    %367 = vector.load %arg13[%c0_462, %c2_463, %c1_464, %c0_465] : memref<2x10x10x32xf32, #tpu.memory_space<vmem>>, vector<1x8x8x32xf32>
    %368 = vector.shape_cast %367 : vector<1x8x8x32xf32> to vector<8x8x32xf32>
    %c0_466 = arith.constant 0 : index
    %c2_467 = arith.constant 2 : index
    %c2_468 = arith.constant 2 : index
    %c0_469 = arith.constant 0 : index
    %369 = vector.load %arg13[%c0_466, %c2_467, %c2_468, %c0_469] : memref<2x10x10x32xf32, #tpu.memory_space<vmem>>, vector<1x8x8x32xf32>
    %370 = vector.shape_cast %369 : vector<1x8x8x32xf32> to vector<8x8x32xf32>
    %c0_470 = arith.constant 0 : index
    %c1_471 = arith.constant 1 : index
    %c1_472 = arith.constant 1 : index
    %c0_473 = arith.constant 0 : index
    %371 = vector.load %arg13[%c0_470, %c1_471, %c1_472, %c0_473] : memref<2x10x10x32xf32, #tpu.memory_space<vmem>>, vector<1x8x8x32xf32>
    %372 = vector.shape_cast %371 : vector<1x8x8x32xf32> to vector<8x8x32xf32>
    %373 = vector.shape_cast %372 : vector<8x8x32xf32> to vector<64x32xf32>
    %c4 = arith.constant 4 : index
    %c0_474 = arith.constant 0 : index
    %c0_475 = arith.constant 0 : index
    %374 = vector.load %arg6[%c4, %c0_474, %c0_475] : memref<8x288x32xbf16, #tpu.memory_space<vmem>>, vector<1x288x32xbf16>
    %375 = vector.shape_cast %374 : vector<1x288x32xbf16> to vector<288x32xbf16>
    %c4_476 = arith.constant 4 : index
    %c0_477 = arith.constant 0 : index
    %c0_478 = arith.constant 0 : index
    %376 = vector.load %arg7[%c4_476, %c0_477, %c0_478] : memref<8x1x32xf32, #tpu.memory_space<vmem>>, vector<1x1x32xf32>
    %377 = vector.shape_cast %376 : vector<1x1x32xf32> to vector<1x32xf32>
    %378 = tpu.concatenate %354, %356, %358, %360, %362, %364, %366, %368, %370 in 2 : vector<8x8x32xf32>, vector<8x8x32xf32>, vector<8x8x32xf32>, vector<8x8x32xf32>, vector<8x8x32xf32>, vector<8x8x32xf32>, vector<8x8x32xf32>, vector<8x8x32xf32>, vector<8x8x32xf32> -> vector<8x8x288xf32>
    %379 = vector.shape_cast %378 : vector<8x8x288xf32> to vector<64x288xf32>
    %380 = arith.truncf %379 : vector<64x288xf32> to vector<64x288xbf16>
    %cst_479 = arith.constant dense<0.000000e+00> : vector<64x32xf32>
    %381 = tpu.matmul %380, %375, %cst_479 {dimension_numbers = #tpu.dot_dimension_numbers<[1], [0], [0], [1], [0, 0, 1, 1], [], []>} : vector<64x288xbf16>, vector<288x32xbf16>, vector<64x32xf32> -> vector<64x32xf32>
    %382 = vector.broadcast %377 : vector<1x32xf32> to vector<64x32xf32>
    %383 = arith.addf %381, %382 : vector<64x32xf32>
    %c4_480 = arith.constant 4 : index
    %c0_481 = arith.constant 0 : index
    %c0_482 = arith.constant 0 : index
    %384 = vector.load %arg8[%c4_480, %c0_481, %c0_482] : memref<8x1x32xf32, #tpu.memory_space<vmem>>, vector<1x1x32xf32>
    %385 = vector.shape_cast %384 : vector<1x1x32xf32> to vector<1x32xf32>
    %386 = vector.broadcast %385 : vector<1x32xf32> to vector<64x32xf32>
    %387 = arith.mulf %383, %386 : vector<64x32xf32>
    %388 = arith.addf %387, %373 : vector<64x32xf32>
    %cst_483 = arith.constant 0.000000e+00 : f32
    %389 = vector.broadcast %cst_483 : f32 to vector<64x32xf32>
    %390 = arith.cmpf oge, %388, %389 : vector<64x32xf32>
    %cst_484 = arith.constant 2.000000e-01 : f32
    %391 = vector.broadcast %cst_484 : f32 to vector<64x32xf32>
    %392 = arith.mulf %388, %391 : vector<64x32xf32>
    %393 = arith.select %390, %388, %392 : vector<64x32xi1>, vector<64x32xf32>
    %394 = vector.shape_cast %393 : vector<64x32xf32> to vector<8x8x32xf32>
    %c1_485 = arith.constant 1 : index
    %c1_486 = arith.constant 1 : index
    %c1_487 = arith.constant 1 : index
    %c0_488 = arith.constant 0 : index
    %395 = vector.load %arg13[%c1_485, %c1_486, %c1_487, %c0_488] : memref<2x10x10x32xf32, #tpu.memory_space<vmem>>, vector<1x8x8x32xf32>
    %396 = vector.shape_cast %395 : vector<1x8x8x32xf32> to vector<8x8x32xf32>
    %397 = vector.shape_cast %394 : vector<8x8x32xf32> to vector<1x8x8x32xf32>
    tpu.vector_store %arg13[%c1_485, %c1_486, %c1_487, %c0_488], %397 {strides = array<i32>} : memref<2x10x10x32xf32, #tpu.memory_space<vmem>>, vector<1x8x8x32xf32>,
    %c1_489 = arith.constant 1 : index
    %c0_490 = arith.constant 0 : index
    %c0_491 = arith.constant 0 : index
    %c0_492 = arith.constant 0 : index
    %398 = vector.load %arg13[%c1_489, %c0_490, %c0_491, %c0_492] : memref<2x10x10x32xf32, #tpu.memory_space<vmem>>, vector<1x8x8x32xf32>
    %399 = vector.shape_cast %398 : vector<1x8x8x32xf32> to vector<8x8x32xf32>
    %c1_493 = arith.constant 1 : index
    %c0_494 = arith.constant 0 : index
    %c1_495 = arith.constant 1 : index
    %c0_496 = arith.constant 0 : index
    %400 = vector.load %arg13[%c1_493, %c0_494, %c1_495, %c0_496] : memref<2x10x10x32xf32, #tpu.memory_space<vmem>>, vector<1x8x8x32xf32>
    %401 = vector.shape_cast %400 : vector<1x8x8x32xf32> to vector<8x8x32xf32>
    %c1_497 = arith.constant 1 : index
    %c0_498 = arith.constant 0 : index
    %c2_499 = arith.constant 2 : index
    %c0_500 = arith.constant 0 : index
    %402 = vector.load %arg13[%c1_497, %c0_498, %c2_499, %c0_500] : memref<2x10x10x32xf32, #tpu.memory_space<vmem>>, vector<1x8x8x32xf32>
    %403 = vector.shape_cast %402 : vector<1x8x8x32xf32> to vector<8x8x32xf32>
    %c1_501 = arith.constant 1 : index
    %c1_502 = arith.constant 1 : index
    %c0_503 = arith.constant 0 : index
    %c0_504 = arith.constant 0 : index
    %404 = vector.load %arg13[%c1_501, %c1_502, %c0_503, %c0_504] : memref<2x10x10x32xf32, #tpu.memory_space<vmem>>, vector<1x8x8x32xf32>
    %405 = vector.shape_cast %404 : vector<1x8x8x32xf32> to vector<8x8x32xf32>
    %c1_505 = arith.constant 1 : index
    %c1_506 = arith.constant 1 : index
    %c1_507 = arith.constant 1 : index
    %c0_508 = arith.constant 0 : index
    %406 = vector.load %arg13[%c1_505, %c1_506, %c1_507, %c0_508] : memref<2x10x10x32xf32, #tpu.memory_space<vmem>>, vector<1x8x8x32xf32>
    %407 = vector.shape_cast %406 : vector<1x8x8x32xf32> to vector<8x8x32xf32>
    %c1_509 = arith.constant 1 : index
    %c1_510 = arith.constant 1 : index
    %c2_511 = arith.constant 2 : index
    %c0_512 = arith.constant 0 : index
    %408 = vector.load %arg13[%c1_509, %c1_510, %c2_511, %c0_512] : memref<2x10x10x32xf32, #tpu.memory_space<vmem>>, vector<1x8x8x32xf32>
    %409 = vector.shape_cast %408 : vector<1x8x8x32xf32> to vector<8x8x32xf32>
    %c1_513 = arith.constant 1 : index
    %c2_514 = arith.constant 2 : index
    %c0_515 = arith.constant 0 : index
    %c0_516 = arith.constant 0 : index
    %410 = vector.load %arg13[%c1_513, %c2_514, %c0_515, %c0_516] : memref<2x10x10x32xf32, #tpu.memory_space<vmem>>, vector<1x8x8x32xf32>
    %411 = vector.shape_cast %410 : vector<1x8x8x32xf32> to vector<8x8x32xf32>
    %c1_517 = arith.constant 1 : index
    %c2_518 = arith.constant 2 : index
    %c1_519 = arith.constant 1 : index
    %c0_520 = arith.constant 0 : index
    %412 = vector.load %arg13[%c1_517, %c2_518, %c1_519, %c0_520] : memref<2x10x10x32xf32, #tpu.memory_space<vmem>>, vector<1x8x8x32xf32>
    %413 = vector.shape_cast %412 : vector<1x8x8x32xf32> to vector<8x8x32xf32>
    %c1_521 = arith.constant 1 : index
    %c2_522 = arith.constant 2 : index
    %c2_523 = arith.constant 2 : index
    %c0_524 = arith.constant 0 : index
    %414 = vector.load %arg13[%c1_521, %c2_522, %c2_523, %c0_524] : memref<2x10x10x32xf32, #tpu.memory_space<vmem>>, vector<1x8x8x32xf32>
    %415 = vector.shape_cast %414 : vector<1x8x8x32xf32> to vector<8x8x32xf32>
    %c1_525 = arith.constant 1 : index
    %c1_526 = arith.constant 1 : index
    %c1_527 = arith.constant 1 : index
    %c0_528 = arith.constant 0 : index
    %416 = vector.load %arg13[%c1_525, %c1_526, %c1_527, %c0_528] : memref<2x10x10x32xf32, #tpu.memory_space<vmem>>, vector<1x8x8x32xf32>
    %417 = vector.shape_cast %416 : vector<1x8x8x32xf32> to vector<8x8x32xf32>
    %418 = vector.shape_cast %417 : vector<8x8x32xf32> to vector<64x32xf32>
    %c5 = arith.constant 5 : index
    %c0_529 = arith.constant 0 : index
    %c0_530 = arith.constant 0 : index
    %419 = vector.load %arg6[%c5, %c0_529, %c0_530] : memref<8x288x32xbf16, #tpu.memory_space<vmem>>, vector<1x288x32xbf16>
    %420 = vector.shape_cast %419 : vector<1x288x32xbf16> to vector<288x32xbf16>
    %c5_531 = arith.constant 5 : index
    %c0_532 = arith.constant 0 : index
    %c0_533 = arith.constant 0 : index
    %421 = vector.load %arg7[%c5_531, %c0_532, %c0_533] : memref<8x1x32xf32, #tpu.memory_space<vmem>>, vector<1x1x32xf32>
    %422 = vector.shape_cast %421 : vector<1x1x32xf32> to vector<1x32xf32>
    %423 = tpu.concatenate %399, %401, %403, %405, %407, %409, %411, %413, %415 in 2 : vector<8x8x32xf32>, vector<8x8x32xf32>, vector<8x8x32xf32>, vector<8x8x32xf32>, vector<8x8x32xf32>, vector<8x8x32xf32>, vector<8x8x32xf32>, vector<8x8x32xf32>, vector<8x8x32xf32> -> vector<8x8x288xf32>
    %424 = vector.shape_cast %423 : vector<8x8x288xf32> to vector<64x288xf32>
    %425 = arith.truncf %424 : vector<64x288xf32> to vector<64x288xbf16>
    %cst_534 = arith.constant dense<0.000000e+00> : vector<64x32xf32>
    %426 = tpu.matmul %425, %420, %cst_534 {dimension_numbers = #tpu.dot_dimension_numbers<[1], [0], [0], [1], [0, 0, 1, 1], [], []>} : vector<64x288xbf16>, vector<288x32xbf16>, vector<64x32xf32> -> vector<64x32xf32>
    %427 = vector.broadcast %422 : vector<1x32xf32> to vector<64x32xf32>
    %428 = arith.addf %426, %427 : vector<64x32xf32>
    %c5_535 = arith.constant 5 : index
    %c0_536 = arith.constant 0 : index
    %c0_537 = arith.constant 0 : index
    %429 = vector.load %arg8[%c5_535, %c0_536, %c0_537] : memref<8x1x32xf32, #tpu.memory_space<vmem>>, vector<1x1x32xf32>
    %430 = vector.shape_cast %429 : vector<1x1x32xf32> to vector<1x32xf32>
    %431 = vector.broadcast %430 : vector<1x32xf32> to vector<64x32xf32>
    %432 = arith.mulf %428, %431 : vector<64x32xf32>
    %433 = arith.addf %432, %418 : vector<64x32xf32>
    %cst_538 = arith.constant 0.000000e+00 : f32
    %434 = vector.broadcast %cst_538 : f32 to vector<64x32xf32>
    %435 = arith.cmpf oge, %433, %434 : vector<64x32xf32>
    %cst_539 = arith.constant 2.000000e-01 : f32
    %436 = vector.broadcast %cst_539 : f32 to vector<64x32xf32>
    %437 = arith.mulf %433, %436 : vector<64x32xf32>
    %438 = arith.select %435, %433, %437 : vector<64x32xi1>, vector<64x32xf32>
    %439 = vector.shape_cast %438 : vector<64x32xf32> to vector<8x8x32xf32>
    %c0_540 = arith.constant 0 : index
    %c1_541 = arith.constant 1 : index
    %c1_542 = arith.constant 1 : index
    %c0_543 = arith.constant 0 : index
    %440 = vector.load %arg13[%c0_540, %c1_541, %c1_542, %c0_543] : memref<2x10x10x32xf32, #tpu.memory_space<vmem>>, vector<1x8x8x32xf32>
    %441 = vector.shape_cast %440 : vector<1x8x8x32xf32> to vector<8x8x32xf32>
    %442 = vector.shape_cast %439 : vector<8x8x32xf32> to vector<1x8x8x32xf32>
    tpu.vector_store %arg13[%c0_540, %c1_541, %c1_542, %c0_543], %442 {strides = array<i32>} : memref<2x10x10x32xf32, #tpu.memory_space<vmem>>, vector<1x8x8x32xf32>,
    %c0_544 = arith.constant 0 : index
    %c0_545 = arith.constant 0 : index
    %c0_546 = arith.constant 0 : index
    %c0_547 = arith.constant 0 : index
    %443 = vector.load %arg13[%c0_544, %c0_545, %c0_546, %c0_547] : memref<2x10x10x32xf32, #tpu.memory_space<vmem>>, vector<1x8x8x32xf32>
    %444 = vector.shape_cast %443 : vector<1x8x8x32xf32> to vector<8x8x32xf32>
    %c0_548 = arith.constant 0 : index
    %c0_549 = arith.constant 0 : index
    %c1_550 = arith.constant 1 : index
    %c0_551 = arith.constant 0 : index
    %445 = vector.load %arg13[%c0_548, %c0_549, %c1_550, %c0_551] : memref<2x10x10x32xf32, #tpu.memory_space<vmem>>, vector<1x8x8x32xf32>
    %446 = vector.shape_cast %445 : vector<1x8x8x32xf32> to vector<8x8x32xf32>
    %c0_552 = arith.constant 0 : index
    %c0_553 = arith.constant 0 : index
    %c2_554 = arith.constant 2 : index
    %c0_555 = arith.constant 0 : index
    %447 = vector.load %arg13[%c0_552, %c0_553, %c2_554, %c0_555] : memref<2x10x10x32xf32, #tpu.memory_space<vmem>>, vector<1x8x8x32xf32>
    %448 = vector.shape_cast %447 : vector<1x8x8x32xf32> to vector<8x8x32xf32>
    %c0_556 = arith.constant 0 : index
    %c1_557 = arith.constant 1 : index
    %c0_558 = arith.constant 0 : index
    %c0_559 = arith.constant 0 : index
    %449 = vector.load %arg13[%c0_556, %c1_557, %c0_558, %c0_559] : memref<2x10x10x32xf32, #tpu.memory_space<vmem>>, vector<1x8x8x32xf32>
    %450 = vector.shape_cast %449 : vector<1x8x8x32xf32> to vector<8x8x32xf32>
    %c0_560 = arith.constant 0 : index
    %c1_561 = arith.constant 1 : index
    %c1_562 = arith.constant 1 : index
    %c0_563 = arith.constant 0 : index
    %451 = vector.load %arg13[%c0_560, %c1_561, %c1_562, %c0_563] : memref<2x10x10x32xf32, #tpu.memory_space<vmem>>, vector<1x8x8x32xf32>
    %452 = vector.shape_cast %451 : vector<1x8x8x32xf32> to vector<8x8x32xf32>
    %c0_564 = arith.constant 0 : index
    %c1_565 = arith.constant 1 : index
    %c2_566 = arith.constant 2 : index
    %c0_567 = arith.constant 0 : index
    %453 = vector.load %arg13[%c0_564, %c1_565, %c2_566, %c0_567] : memref<2x10x10x32xf32, #tpu.memory_space<vmem>>, vector<1x8x8x32xf32>
    %454 = vector.shape_cast %453 : vector<1x8x8x32xf32> to vector<8x8x32xf32>
    %c0_568 = arith.constant 0 : index
    %c2_569 = arith.constant 2 : index
    %c0_570 = arith.constant 0 : index
    %c0_571 = arith.constant 0 : index
    %455 = vector.load %arg13[%c0_568, %c2_569, %c0_570, %c0_571] : memref<2x10x10x32xf32, #tpu.memory_space<vmem>>, vector<1x8x8x32xf32>
    %456 = vector.shape_cast %455 : vector<1x8x8x32xf32> to vector<8x8x32xf32>
    %c0_572 = arith.constant 0 : index
    %c2_573 = arith.constant 2 : index
    %c1_574 = arith.constant 1 : index
    %c0_575 = arith.constant 0 : index
    %457 = vector.load %arg13[%c0_572, %c2_573, %c1_574, %c0_575] : memref<2x10x10x32xf32, #tpu.memory_space<vmem>>, vector<1x8x8x32xf32>
    %458 = vector.shape_cast %457 : vector<1x8x8x32xf32> to vector<8x8x32xf32>
    %c0_576 = arith.constant 0 : index
    %c2_577 = arith.constant 2 : index
    %c2_578 = arith.constant 2 : index
    %c0_579 = arith.constant 0 : index
    %459 = vector.load %arg13[%c0_576, %c2_577, %c2_578, %c0_579] : memref<2x10x10x32xf32, #tpu.memory_space<vmem>>, vector<1x8x8x32xf32>
    %460 = vector.shape_cast %459 : vector<1x8x8x32xf32> to vector<8x8x32xf32>
    %c0_580 = arith.constant 0 : index
    %c1_581 = arith.constant 1 : index
    %c1_582 = arith.constant 1 : index
    %c0_583 = arith.constant 0 : index
    %461 = vector.load %arg13[%c0_580, %c1_581, %c1_582, %c0_583] : memref<2x10x10x32xf32, #tpu.memory_space<vmem>>, vector<1x8x8x32xf32>
    %462 = vector.shape_cast %461 : vector<1x8x8x32xf32> to vector<8x8x32xf32>
    %463 = vector.shape_cast %462 : vector<8x8x32xf32> to vector<64x32xf32>
    %c6 = arith.constant 6 : index
    %c0_584 = arith.constant 0 : index
    %c0_585 = arith.constant 0 : index
    %464 = vector.load %arg6[%c6, %c0_584, %c0_585] : memref<8x288x32xbf16, #tpu.memory_space<vmem>>, vector<1x288x32xbf16>
    %465 = vector.shape_cast %464 : vector<1x288x32xbf16> to vector<288x32xbf16>
    %c6_586 = arith.constant 6 : index
    %c0_587 = arith.constant 0 : index
    %c0_588 = arith.constant 0 : index
    %466 = vector.load %arg7[%c6_586, %c0_587, %c0_588] : memref<8x1x32xf32, #tpu.memory_space<vmem>>, vector<1x1x32xf32>
    %467 = vector.shape_cast %466 : vector<1x1x32xf32> to vector<1x32xf32>
    %468 = tpu.concatenate %444, %446, %448, %450, %452, %454, %456, %458, %460 in 2 : vector<8x8x32xf32>, vector<8x8x32xf32>, vector<8x8x32xf32>, vector<8x8x32xf32>, vector<8x8x32xf32>, vector<8x8x32xf32>, vector<8x8x32xf32>, vector<8x8x32xf32>, vector<8x8x32xf32> -> vector<8x8x288xf32>
    %469 = vector.shape_cast %468 : vector<8x8x288xf32> to vector<64x288xf32>
    %470 = arith.truncf %469 : vector<64x288xf32> to vector<64x288xbf16>
    %cst_589 = arith.constant dense<0.000000e+00> : vector<64x32xf32>
    %471 = tpu.matmul %470, %465, %cst_589 {dimension_numbers = #tpu.dot_dimension_numbers<[1], [0], [0], [1], [0, 0, 1, 1], [], []>} : vector<64x288xbf16>, vector<288x32xbf16>, vector<64x32xf32> -> vector<64x32xf32>
    %472 = vector.broadcast %467 : vector<1x32xf32> to vector<64x32xf32>
    %473 = arith.addf %471, %472 : vector<64x32xf32>
    %c6_590 = arith.constant 6 : index
    %c0_591 = arith.constant 0 : index
    %c0_592 = arith.constant 0 : index
    %474 = vector.load %arg8[%c6_590, %c0_591, %c0_592] : memref<8x1x32xf32, #tpu.memory_space<vmem>>, vector<1x1x32xf32>
    %475 = vector.shape_cast %474 : vector<1x1x32xf32> to vector<1x32xf32>
    %476 = vector.broadcast %475 : vector<1x32xf32> to vector<64x32xf32>
    %477 = arith.mulf %473, %476 : vector<64x32xf32>
    %478 = arith.addf %477, %463 : vector<64x32xf32>
    %cst_593 = arith.constant 0.000000e+00 : f32
    %479 = vector.broadcast %cst_593 : f32 to vector<64x32xf32>
    %480 = arith.cmpf oge, %478, %479 : vector<64x32xf32>
    %cst_594 = arith.constant 2.000000e-01 : f32
    %481 = vector.broadcast %cst_594 : f32 to vector<64x32xf32>
    %482 = arith.mulf %478, %481 : vector<64x32xf32>
    %483 = arith.select %480, %478, %482 : vector<64x32xi1>, vector<64x32xf32>
    %484 = vector.shape_cast %483 : vector<64x32xf32> to vector<8x8x32xf32>
    %c1_595 = arith.constant 1 : index
    %c1_596 = arith.constant 1 : index
    %c1_597 = arith.constant 1 : index
    %c0_598 = arith.constant 0 : index
    %485 = vector.load %arg13[%c1_595, %c1_596, %c1_597, %c0_598] : memref<2x10x10x32xf32, #tpu.memory_space<vmem>>, vector<1x8x8x32xf32>
    %486 = vector.shape_cast %485 : vector<1x8x8x32xf32> to vector<8x8x32xf32>
    %487 = vector.shape_cast %484 : vector<8x8x32xf32> to vector<1x8x8x32xf32>
    tpu.vector_store %arg13[%c1_595, %c1_596, %c1_597, %c0_598], %487 {strides = array<i32>} : memref<2x10x10x32xf32, #tpu.memory_space<vmem>>, vector<1x8x8x32xf32>,
    %c1_599 = arith.constant 1 : index
    %c0_600 = arith.constant 0 : index
    %c0_601 = arith.constant 0 : index
    %c0_602 = arith.constant 0 : index
    %488 = vector.load %arg13[%c1_599, %c0_600, %c0_601, %c0_602] : memref<2x10x10x32xf32, #tpu.memory_space<vmem>>, vector<1x8x8x32xf32>
    %489 = vector.shape_cast %488 : vector<1x8x8x32xf32> to vector<8x8x32xf32>
    %c1_603 = arith.constant 1 : index
    %c0_604 = arith.constant 0 : index
    %c1_605 = arith.constant 1 : index
    %c0_606 = arith.constant 0 : index
    %490 = vector.load %arg13[%c1_603, %c0_604, %c1_605, %c0_606] : memref<2x10x10x32xf32, #tpu.memory_space<vmem>>, vector<1x8x8x32xf32>
    %491 = vector.shape_cast %490 : vector<1x8x8x32xf32> to vector<8x8x32xf32>
    %c1_607 = arith.constant 1 : index
    %c0_608 = arith.constant 0 : index
    %c2_609 = arith.constant 2 : index
    %c0_610 = arith.constant 0 : index
    %492 = vector.load %arg13[%c1_607, %c0_608, %c2_609, %c0_610] : memref<2x10x10x32xf32, #tpu.memory_space<vmem>>, vector<1x8x8x32xf32>
    %493 = vector.shape_cast %492 : vector<1x8x8x32xf32> to vector<8x8x32xf32>
    %c1_611 = arith.constant 1 : index
    %c1_612 = arith.constant 1 : index
    %c0_613 = arith.constant 0 : index
    %c0_614 = arith.constant 0 : index
    %494 = vector.load %arg13[%c1_611, %c1_612, %c0_613, %c0_614] : memref<2x10x10x32xf32, #tpu.memory_space<vmem>>, vector<1x8x8x32xf32>
    %495 = vector.shape_cast %494 : vector<1x8x8x32xf32> to vector<8x8x32xf32>
    %c1_615 = arith.constant 1 : index
    %c1_616 = arith.constant 1 : index
    %c1_617 = arith.constant 1 : index
    %c0_618 = arith.constant 0 : index
    %496 = vector.load %arg13[%c1_615, %c1_616, %c1_617, %c0_618] : memref<2x10x10x32xf32, #tpu.memory_space<vmem>>, vector<1x8x8x32xf32>
    %497 = vector.shape_cast %496 : vector<1x8x8x32xf32> to vector<8x8x32xf32>
    %c1_619 = arith.constant 1 : index
    %c1_620 = arith.constant 1 : index
    %c2_621 = arith.constant 2 : index
    %c0_622 = arith.constant 0 : index
    %498 = vector.load %arg13[%c1_619, %c1_620, %c2_621, %c0_622] : memref<2x10x10x32xf32, #tpu.memory_space<vmem>>, vector<1x8x8x32xf32>
    %499 = vector.shape_cast %498 : vector<1x8x8x32xf32> to vector<8x8x32xf32>
    %c1_623 = arith.constant 1 : index
    %c2_624 = arith.constant 2 : index
    %c0_625 = arith.constant 0 : index
    %c0_626 = arith.constant 0 : index
    %500 = vector.load %arg13[%c1_623, %c2_624, %c0_625, %c0_626] : memref<2x10x10x32xf32, #tpu.memory_space<vmem>>, vector<1x8x8x32xf32>
    %501 = vector.shape_cast %500 : vector<1x8x8x32xf32> to vector<8x8x32xf32>
    %c1_627 = arith.constant 1 : index
    %c2_628 = arith.constant 2 : index
    %c1_629 = arith.constant 1 : index
    %c0_630 = arith.constant 0 : index
    %502 = vector.load %arg13[%c1_627, %c2_628, %c1_629, %c0_630] : memref<2x10x10x32xf32, #tpu.memory_space<vmem>>, vector<1x8x8x32xf32>
    %503 = vector.shape_cast %502 : vector<1x8x8x32xf32> to vector<8x8x32xf32>
    %c1_631 = arith.constant 1 : index
    %c2_632 = arith.constant 2 : index
    %c2_633 = arith.constant 2 : index
    %c0_634 = arith.constant 0 : index
    %504 = vector.load %arg13[%c1_631, %c2_632, %c2_633, %c0_634] : memref<2x10x10x32xf32, #tpu.memory_space<vmem>>, vector<1x8x8x32xf32>
    %505 = vector.shape_cast %504 : vector<1x8x8x32xf32> to vector<8x8x32xf32>
    %c1_635 = arith.constant 1 : index
    %c1_636 = arith.constant 1 : index
    %c1_637 = arith.constant 1 : index
    %c0_638 = arith.constant 0 : index
    %506 = vector.load %arg13[%c1_635, %c1_636, %c1_637, %c0_638] : memref<2x10x10x32xf32, #tpu.memory_space<vmem>>, vector<1x8x8x32xf32>
    %507 = vector.shape_cast %506 : vector<1x8x8x32xf32> to vector<8x8x32xf32>
    %508 = vector.shape_cast %507 : vector<8x8x32xf32> to vector<64x32xf32>
    %c7 = arith.constant 7 : index
    %c0_639 = arith.constant 0 : index
    %c0_640 = arith.constant 0 : index
    %509 = vector.load %arg6[%c7, %c0_639, %c0_640] : memref<8x288x32xbf16, #tpu.memory_space<vmem>>, vector<1x288x32xbf16>
    %510 = vector.shape_cast %509 : vector<1x288x32xbf16> to vector<288x32xbf16>
    %c7_641 = arith.constant 7 : index
    %c0_642 = arith.constant 0 : index
    %c0_643 = arith.constant 0 : index
    %511 = vector.load %arg7[%c7_641, %c0_642, %c0_643] : memref<8x1x32xf32, #tpu.memory_space<vmem>>, vector<1x1x32xf32>
    %512 = vector.shape_cast %511 : vector<1x1x32xf32> to vector<1x32xf32>
    %513 = tpu.concatenate %489, %491, %493, %495, %497, %499, %501, %503, %505 in 2 : vector<8x8x32xf32>, vector<8x8x32xf32>, vector<8x8x32xf32>, vector<8x8x32xf32>, vector<8x8x32xf32>, vector<8x8x32xf32>, vector<8x8x32xf32>, vector<8x8x32xf32>, vector<8x8x32xf32> -> vector<8x8x288xf32>
    %514 = vector.shape_cast %513 : vector<8x8x288xf32> to vector<64x288xf32>
    %515 = arith.truncf %514 : vector<64x288xf32> to vector<64x288xbf16>
    %cst_644 = arith.constant dense<0.000000e+00> : vector<64x32xf32>
    %516 = tpu.matmul %515, %510, %cst_644 {dimension_numbers = #tpu.dot_dimension_numbers<[1], [0], [0], [1], [0, 0, 1, 1], [], []>} : vector<64x288xbf16>, vector<288x32xbf16>, vector<64x32xf32> -> vector<64x32xf32>
    %517 = vector.broadcast %512 : vector<1x32xf32> to vector<64x32xf32>
    %518 = arith.addf %516, %517 : vector<64x32xf32>
    %c7_645 = arith.constant 7 : index
    %c0_646 = arith.constant 0 : index
    %c0_647 = arith.constant 0 : index
    %519 = vector.load %arg8[%c7_645, %c0_646, %c0_647] : memref<8x1x32xf32, #tpu.memory_space<vmem>>, vector<1x1x32xf32>
    %520 = vector.shape_cast %519 : vector<1x1x32xf32> to vector<1x32xf32>
    %521 = vector.broadcast %520 : vector<1x32xf32> to vector<64x32xf32>
    %522 = arith.mulf %518, %521 : vector<64x32xf32>
    %523 = arith.addf %522, %508 : vector<64x32xf32>
    %cst_648 = arith.constant 0.000000e+00 : f32
    %524 = vector.broadcast %cst_648 : f32 to vector<64x32xf32>
    %525 = arith.cmpf oge, %523, %524 : vector<64x32xf32>
    %cst_649 = arith.constant 2.000000e-01 : f32
    %526 = vector.broadcast %cst_649 : f32 to vector<64x32xf32>
    %527 = arith.mulf %523, %526 : vector<64x32xf32>
    %528 = arith.select %525, %523, %527 : vector<64x32xi1>, vector<64x32xf32>
    %529 = vector.shape_cast %528 : vector<64x32xf32> to vector<8x8x32xf32>
    %c0_650 = arith.constant 0 : index
    %c1_651 = arith.constant 1 : index
    %c1_652 = arith.constant 1 : index
    %c0_653 = arith.constant 0 : index
    %530 = vector.load %arg13[%c0_650, %c1_651, %c1_652, %c0_653] : memref<2x10x10x32xf32, #tpu.memory_space<vmem>>, vector<1x8x8x32xf32>
    %531 = vector.shape_cast %530 : vector<1x8x8x32xf32> to vector<8x8x32xf32>
    %532 = vector.shape_cast %529 : vector<8x8x32xf32> to vector<1x8x8x32xf32>
    tpu.vector_store %arg13[%c0_650, %c1_651, %c1_652, %c0_653], %532 {strides = array<i32>} : memref<2x10x10x32xf32, #tpu.memory_space<vmem>>, vector<1x8x8x32xf32>,
    %c0_654 = arith.constant 0 : index
    %c0_655 = arith.constant 0 : index
    %c0_656 = arith.constant 0 : index
    %c0_657 = arith.constant 0 : index
    %533 = vector.load %arg13[%c0_654, %c0_655, %c0_656, %c0_657] : memref<2x10x10x32xf32, #tpu.memory_space<vmem>>, vector<1x8x8x32xf32>
    %534 = vector.shape_cast %533 : vector<1x8x8x32xf32> to vector<8x8x32xf32>
    %c0_658 = arith.constant 0 : index
    %c0_659 = arith.constant 0 : index
    %c1_660 = arith.constant 1 : index
    %c0_661 = arith.constant 0 : index
    %535 = vector.load %arg13[%c0_658, %c0_659, %c1_660, %c0_661] : memref<2x10x10x32xf32, #tpu.memory_space<vmem>>, vector<1x8x8x32xf32>
    %536 = vector.shape_cast %535 : vector<1x8x8x32xf32> to vector<8x8x32xf32>
    %c0_662 = arith.constant 0 : index
    %c0_663 = arith.constant 0 : index
    %c2_664 = arith.constant 2 : index
    %c0_665 = arith.constant 0 : index
    %537 = vector.load %arg13[%c0_662, %c0_663, %c2_664, %c0_665] : memref<2x10x10x32xf32, #tpu.memory_space<vmem>>, vector<1x8x8x32xf32>
    %538 = vector.shape_cast %537 : vector<1x8x8x32xf32> to vector<8x8x32xf32>
    %c0_666 = arith.constant 0 : index
    %c1_667 = arith.constant 1 : index
    %c0_668 = arith.constant 0 : index
    %c0_669 = arith.constant 0 : index
    %539 = vector.load %arg13[%c0_666, %c1_667, %c0_668, %c0_669] : memref<2x10x10x32xf32, #tpu.memory_space<vmem>>, vector<1x8x8x32xf32>
    %540 = vector.shape_cast %539 : vector<1x8x8x32xf32> to vector<8x8x32xf32>
    %c0_670 = arith.constant 0 : index
    %c1_671 = arith.constant 1 : index
    %c1_672 = arith.constant 1 : index
    %c0_673 = arith.constant 0 : index
    %541 = vector.load %arg13[%c0_670, %c1_671, %c1_672, %c0_673] : memref<2x10x10x32xf32, #tpu.memory_space<vmem>>, vector<1x8x8x32xf32>
    %542 = vector.shape_cast %541 : vector<1x8x8x32xf32> to vector<8x8x32xf32>
    %c0_674 = arith.constant 0 : index
    %c1_675 = arith.constant 1 : index
    %c2_676 = arith.constant 2 : index
    %c0_677 = arith.constant 0 : index
    %543 = vector.load %arg13[%c0_674, %c1_675, %c2_676, %c0_677] : memref<2x10x10x32xf32, #tpu.memory_space<vmem>>, vector<1x8x8x32xf32>
    %544 = vector.shape_cast %543 : vector<1x8x8x32xf32> to vector<8x8x32xf32>
    %c0_678 = arith.constant 0 : index
    %c2_679 = arith.constant 2 : index
    %c0_680 = arith.constant 0 : index
    %c0_681 = arith.constant 0 : index
    %545 = vector.load %arg13[%c0_678, %c2_679, %c0_680, %c0_681] : memref<2x10x10x32xf32, #tpu.memory_space<vmem>>, vector<1x8x8x32xf32>
    %546 = vector.shape_cast %545 : vector<1x8x8x32xf32> to vector<8x8x32xf32>
    %c0_682 = arith.constant 0 : index
    %c2_683 = arith.constant 2 : index
    %c1_684 = arith.constant 1 : index
    %c0_685 = arith.constant 0 : index
    %547 = vector.load %arg13[%c0_682, %c2_683, %c1_684, %c0_685] : memref<2x10x10x32xf32, #tpu.memory_space<vmem>>, vector<1x8x8x32xf32>
    %548 = vector.shape_cast %547 : vector<1x8x8x32xf32> to vector<8x8x32xf32>
    %c0_686 = arith.constant 0 : index
    %c2_687 = arith.constant 2 : index
    %c2_688 = arith.constant 2 : index
    %c0_689 = arith.constant 0 : index
    %549 = vector.load %arg13[%c0_686, %c2_687, %c2_688, %c0_689] : memref<2x10x10x32xf32, #tpu.memory_space<vmem>>, vector<1x8x8x32xf32>
    %550 = vector.shape_cast %549 : vector<1x8x8x32xf32> to vector<8x8x32xf32>
    %c0_690 = arith.constant 0 : index
    %c0_691 = arith.constant 0 : index
    %551 = vector.load %arg9[%c0_690, %c0_691] : memref<288x256xbf16, #tpu.memory_space<vmem>>, vector<288x256xbf16>
    %c0_692 = arith.constant 0 : index
    %c0_693 = arith.constant 0 : index
    %552 = vector.load %arg10[%c0_692, %c0_693] : memref<1x256xf32, #tpu.memory_space<vmem>>, vector<1x256xf32>
    %553 = tpu.concatenate %534, %536, %538, %540, %542, %544, %546, %548, %550 in 2 : vector<8x8x32xf32>, vector<8x8x32xf32>, vector<8x8x32xf32>, vector<8x8x32xf32>, vector<8x8x32xf32>, vector<8x8x32xf32>, vector<8x8x32xf32>, vector<8x8x32xf32>, vector<8x8x32xf32> -> vector<8x8x288xf32>
    %554 = vector.shape_cast %553 : vector<8x8x288xf32> to vector<64x288xf32>
    %555 = arith.truncf %554 : vector<64x288xf32> to vector<64x288xbf16>
    %cst_694 = arith.constant dense<0.000000e+00> : vector<64x256xf32>
    %556 = tpu.matmul %555, %551, %cst_694 {dimension_numbers = #tpu.dot_dimension_numbers<[1], [0], [0], [1], [0, 0, 1, 1], [], []>} : vector<64x288xbf16>, vector<288x256xbf16>, vector<64x256xf32> -> vector<64x256xf32>
    %557 = vector.broadcast %552 : vector<1x256xf32> to vector<64x256xf32>
    %558 = arith.addf %556, %557 : vector<64x256xf32>
    %559 = vector.shape_cast %558 : vector<64x256xf32> to vector<8x8x256xf32>
    %c0_695 = arith.constant 0 : index
    %c0_696 = arith.constant 0 : index
    %c0_697 = arith.constant 0 : index
    %c0_698 = arith.constant 0 : index
    %560 = vector.load %arg11[%c0_695, %c0_696, %c0_697, %c0_698] : memref<1x8x8x256xf32, #tpu.memory_space<vmem>>, vector<1x8x8x256xf32>
    %561 = vector.shape_cast %560 : vector<1x8x8x256xf32> to vector<8x8x256xf32>
    %562 = vector.shape_cast %559 : vector<8x8x256xf32> to vector<1x8x8x256xf32>
    tpu.vector_store %arg11[%c0_695, %c0_696, %c0_697, %c0_698], %562 {strides = array<i32>} : memref<1x8x8x256xf32, #tpu.memory_space<vmem>>, vector<1x8x8x256xf32>,
    return
  }
  func.func @transform_0(%arg0: i32) -> (i32, i32, i32, i32) {
    %c0_i32 = arith.constant 0 : i32
    %c0_i32_0 = arith.constant 0 : i32
    %c0_i32_1 = arith.constant 0 : i32
    %c0_i32_2 = arith.constant 0 : i32
    return %arg0, %c0_i32, %c0_i32_0, %c0_i32_1 : i32, i32, i32, i32
  }
  func.func @transform_1(%arg0: i32) -> (i32, i32) {
    %c0_i32 = arith.constant 0 : i32
    %c0_i32_0 = arith.constant 0 : i32
    %c0_i32_1 = arith.constant 0 : i32
    return %c0_i32, %c0_i32_0 : i32, i32
  }
  func.func @transform_2(%arg0: i32) -> (i32, i32) {
    %c0_i32 = arith.constant 0 : i32
    %c0_i32_0 = arith.constant 0 : i32
    %c0_i32_1 = arith.constant 0 : i32
    return %c0_i32, %c0_i32_0 : i32, i32
  }
  func.func @transform_3(%arg0: i32) -> (i32, i32) {
    %c0_i32 = arith.constant 0 : i32
    %c0_i32_0 = arith.constant 0 : i32
    %c0_i32_1 = arith.constant 0 : i32
    return %c0_i32, %c0_i32_0 : i32, i32
  }
  func.func @transform_4(%arg0: i32) -> (i32, i32) {
    %c0_i32 = arith.constant 0 : i32
    %c0_i32_0 = arith.constant 0 : i32
    %c0_i32_1 = arith.constant 0 : i32
    return %c0_i32, %c0_i32_0 : i32, i32
  }
  func.func @transform_5(%arg0: i32) -> (i32, i32, i32) {
    %c0_i32 = arith.constant 0 : i32
    %c0_i32_0 = arith.constant 0 : i32
    %c0_i32_1 = arith.constant 0 : i32
    %c0_i32_2 = arith.constant 0 : i32
    return %c0_i32, %c0_i32_0, %c0_i32_1 : i32, i32, i32
  }
  func.func @transform_6(%arg0: i32) -> (i32, i32, i32) {
    %c0_i32 = arith.constant 0 : i32
    %c0_i32_0 = arith.constant 0 : i32
    %c0_i32_1 = arith.constant 0 : i32
    %c0_i32_2 = arith.constant 0 : i32
    return %c0_i32, %c0_i32_0, %c0_i32_1 : i32, i32, i32
  }
  func.func @transform_7(%arg0: i32) -> (i32, i32, i32) {
    %c0_i32 = arith.constant 0 : i32
    %c0_i32_0 = arith.constant 0 : i32
    %c0_i32_1 = arith.constant 0 : i32
    %c0_i32_2 = arith.constant 0 : i32
    return %c0_i32, %c0_i32_0, %c0_i32_1 : i32, i32, i32
  }
  func.func @transform_8(%arg0: i32) -> (i32, i32) {
    %c0_i32 = arith.constant 0 : i32
    %c0_i32_0 = arith.constant 0 : i32
    %c0_i32_1 = arith.constant 0 : i32
    return %c0_i32, %c0_i32_0 : i32, i32
  }
  func.func @transform_9(%arg0: i32) -> (i32, i32) {
    %c0_i32 = arith.constant 0 : i32
    %c0_i32_0 = arith.constant 0 : i32
    %c0_i32_1 = arith.constant 0 : i32
    return %c0_i32, %c0_i32_0 : i32, i32
  }
  func.func @transform_10(%arg0: i32) -> (i32, i32, i32, i32) {
    %c0_i32 = arith.constant 0 : i32
    %c0_i32_0 = arith.constant 0 : i32
    %c0_i32_1 = arith.constant 0 : i32
    %c0_i32_2 = arith.constant 0 : i32
    return %arg0, %c0_i32, %c0_i32_0, %c0_i32_1 : i32, i32, i32, i32
  }
}

</mosaic_0001>

<bundles_post_ra>
// kernel: tile.8
= control target key start
LH: loop header
LB: loop body
LE: loop exit
PB: predicated region body
PF: predicated region fallthrough
CT: control target
= control target key end

     0   :  { %s22_s0 = inlined_call_operand.vmem [shape: f32[64], index: 0, kind: input, shape index: {}]   ;;  %s23_s1 = inlined_call_operand.vmem [shape: f32[4,64], index: 1, kind: output, shape index: {}]  }
   0x1   :  { %v4_v0 = vld [vmem:[%s22_s0] ss:$0 sm:$0xff] }
   0x2   :  { %5 = vst [vmem:[%s23_s1] sm:$0xf] %v4_v0 }

// kernel: tile.9
= control target key start
LH: loop header
LB: loop body
LE: loop exit
PB: predicated region body
PF: predicated region fallthrough
CT: control target
= control target key end

     0   :  { %s7_s8 = smov 3  ;;  %vm9_vm0 = vcmask 523264   ;;  %s34_s9 = smov 64   ;;  %vm16_vm1 = vcmask 1048064   ;;  %s54_s0 = inlined_call_operand.vmem [shape: f32[4,64], index: 0, kind: input, shape index: {}]   ;;  %s55_s1 = inlined_call_operand.vmem [shape: f32[1,256], index: 1, kind: output, shape index: {}]  }
   0x1   :  { %v5_v0 = vld [vmem:[%s54_s0] sm:$0xf]  ;;  %s12_s0 = smov 3 }
   0x2   :  { %6 = vst [vmem:[#allocation1] sm:$0xf] %v5_v0 }
   0x9   :  { %v13_v1 = vld [vmem:[#allocation1 + $0x1] ss:$2 sm:%s12_s0]   ;;  %v8_v2 = vld [vmem:[#allocation1] ss:$2 sm:%s7_s8]  }
   0xa   :  { %14 = vrot.lane.b32.xlu0 %v13_v1, %s34_s9  ;;  %10 = vst.msk [vmem:[#allocation0] ss:$8 sm:$0x3] %vm9_vm0, %v8_v2  }
  0x7c   :  { %v15_v3 = vpop.permute.xlu0 %14  }
  0x7d   :  { %17 = vst.msk [vmem:[#allocation0] ss:$8 sm:$0x3] %vm16_vm1, %v15_v3  }
  0x84   :  { %v22_v4 = vld [vmem:[#allocation0] sm:$0x1]  ;;  %v27_v5 = vld [vmem:[#allocation0 + $0x8] sm:$0x1] }
  0x85   :  { %25 = vst [vmem:[%s55_s1] sm:$0x1] %v22_v4  ;;  %32 = vst [vmem:[%s55_s1 + $0x1] sm:$0x1] %v27_v5 }

// kernel: if_block_forward.1
= control target key start
LH: loop header
LB: loop body
LE: loop exit
PB: predicated region body
PF: predicated region fallthrough
CT: control target
= control target key end

     0   :  { %s12883_s13 = smov 0   ;;  %s16897_s0 = inlined_call_operand.vmem [shape: f32[2,144,9,8], index: 0, kind: input, shape index: {}]   ;;  %s16898_s1 = inlined_call_operand.vmem [shape: bf16[72,16], index: 1, kind: input, shape index: {}]   ;;  %s16899_s2 = inlined_call_operand.vmem [shape: f32[1,16], index: 2, kind: input, shape index: {}]   ;;  %s16900_s3 = inlined_call_operand.vmem [shape: bf16[144,32], index: 3, kind: input, shape index: {}]   ;;  %s16901_s4 = inlined_call_operand.vmem [shape: f32[1,32], index: 4, kind: input, shape index: {}]   ;;  %s16902_s5 = inlined_call_operand.vmem [shape: bf16[8,288,32], index: 5, kind: input, shape index: {}]   ;;  %s16903_s6 = inlined_call_operand.vmem [shape: f32[8,1,32], index: 6, kind: input, shape index: {}]   ;;  %s16904_s7 = inlined_call_operand.vmem [shape: f32[8,1,32], index: 7, kind: input, shape index: {}]   ;;  %s16905_s8 = inlined_call_operand.vmem [shape: bf16[288,256], index: 8, kind: input, shape index: {}]   ;;  %s16906_s9 = inlined_call_operand.vmem [shape: f32[1,256], index: 9, kind: input, shape index: {}]   ;;  %s16907_s10 = inlined_call_operand.vmem [shape: f32[2,8,8,256], index: 10, kind: output, shape index: {}]  }
   0x1 LB: > { %s9309_s14 = sadd.s32 4294967295, %s12813_s13   ;;  %p9313_p0 = scmp.ge.s32.totalorder %s12813_s13, 1  ;;  %s12813_s13 = sphi %s12883_s13, %s20_s13  }
   0x2   : > { %p312_p1 = scmp.lt.s32.totalorder %s12813_s13, 3 }
   0x4   : > { %p313_p2 = pnand %p9313_p0, %p312_p1 }
   0x5   : > { %p350_p3 = scmp.lt.s32.totalorder (!%p313_p2), %s9309_s14, 1  ;;  %s12815_s19 = smov (!%p313_p2), 16  }
   0x6   : > { %316 = sbr.rel (%p313_p2) target bundleno = 4202 (0x106a), region = 60  ;;  %s12816_s20 = smov (!%p313_p2), 8  }
   0x7   : > { %s12817_s21 = smov (!%p313_p2), 24   ;;  %s12818_s22 = smov (!%p313_p2), 32  }
   0x8   : > { %s12819_s23 = smov (!%p313_p2), 40   ;;  %s12820_s24 = smov (!%p313_p2), 48  }
   0x9   : > { %s12821_s25 = smov (!%p313_p2), 56   ;;  %s12822_s26 = smov (!%p313_p2), 64  }
   0xa   : > { %s12826_s29 = smov (!%p313_p2), 80   ;;  %s12827_s12 = smov (!%p313_p2), 112  }
   0xb   : > { %s16909_s14 = smov (!%p350_p3, %s9309_s14), 1  ;;  %vm943_vm0 = vcmask 1043456   ;;  %vm823_vm1 = vcmask 64512   ;;  %vm361_vm2 = vcmask 130048   ;;  %vm840_vm3 = vcmask 195584  }
   0xc   : > { %s10702_s15 = smul.u32 2304, %s16909_s14  ;;  %vm435_vm4 = vcmask 261120   ;;  %vm857_vm5 = vcmask 326656   ;;  %vm866_vm6 = vcmask 392192   ;;  %vm875_vm7 = vcmask 457728  }
   0xd   : > { %vm884_vm8 = vcmask 523264   ;;  %vm930_vm9 = vcmask 588800   ;;  %vm363_vm10 = vcmask 122880  }
   0xe   : > { %s12897_s18 = scalar_lea.vmem %s16897_s0, %s10702_s15 }
   0xf   : > { %v9325_v0 = vld [vmem:[%s12897_s18 + $0x120] sm:$0xff]  ;;  %v9326_v1 = vld [vmem:[%s12897_s18 + $0x130] sm:$0xff] }
  0x10   : > { %v9317_v2 = vld [vmem:[%s12897_s18 + $0x90] sm:$0xff]  ;;  %v10734_v3 = vpack.i.bf16 %v9326_v1, %v9325_v0  ;;  %v9318_v4 = vld [vmem:[%s12897_s18 + $0xa0] sm:$0xff] }
  0x11   : > { %v9327_v5 = vld [vmem:[%s12897_s18 + $0x140] sm:$0xff]  ;;  %v9328_v6 = vld [vmem:[%s12897_s18 + $0x150] sm:$0xff]  ;;  %v10724_v7 = vpack.i.bf16 %v9318_v4, %v9317_v2  ;;  %v12585_v2 = vld [vmem:[%s16898_s1 + $0x18] sm:$0xff]  }
  0x12   : > { %v9319_v8 = vld [vmem:[%s12897_s18 + $0xb0] sm:$0xff]  ;;  %v9320_v9 = vld [vmem:[%s12897_s18 + $0xc0] sm:$0xff]  ;;  %10735 = vrot.lane.b32.xlu1 %v10734_v3, %s12815_s19  ;;  %v10739_v10 = vpack.i.bf16 %v9328_v6, %v9327_v5 }
  0x13   : > { %10725 = vrot.lane.b32.xlu0 %v10724_v7, %s12816_s20  ;;  %v10729_v11 = vpack.i.bf16 %v9320_v9, %v9319_v8  ;;  %v9335_v12 = vld [vmem:[%s12897_s18 + $0x260] sm:$0xff]  ;;  %v9336_v13 = vld [vmem:[%s12897_s18 + $0x270] sm:$0xff] }
  0x14   : > { %v9333_v14 = vld [vmem:[%s12897_s18 + $0x240] sm:$0xff]  ;;  %v9334_v15 = vld [vmem:[%s12897_s18 + $0x250] sm:$0xff]  ;;  %v10749_v16 = vpack.i.bf16 %v9336_v13, %v9335_v12 }
  0x15   : > { %v10744_v17 = vpack.i.bf16 %v9334_v15, %v9333_v14  ;;  %v9343_v18 = vld [vmem:[%s12897_s18 + $0x2f0] sm:$0xff]  ;;  %v9344_v19 = vld [vmem:[%s12897_s18 + $0x300] sm:$0xff] }
  0x16   : > { %10740 = vrot.lane.b32.xlu1 %v10739_v10, %s12815_s19  ;;  %v9341_v20 = vld [vmem:[%s12897_s18 + $0x2d0] sm:$0xff]  ;;  %v9342_v21 = vld [vmem:[%s12897_s18 + $0x2e0] sm:$0xff]  ;;  %v10759_v22 = vpack.i.bf16 %v9344_v19, %v9343_v18 }
  0x17   : > { %10730 = vrot.lane.b32.xlu0 %v10729_v11, %s12816_s20  ;;  %v10754_v23 = vpack.i.bf16 %v9342_v21, %v9341_v20  ;;  %v9351_v24 = vld [vmem:[%s12897_s18 + $0x380] sm:$0xff]  ;;  %v9352_v25 = vld [vmem:[%s12897_s18 + $0x390] sm:$0xff] }
  0x18   : > { %v9349_v26 = vld [vmem:[%s12897_s18 + $0x360] sm:$0xff]  ;;  %v9350_v27 = vld [vmem:[%s12897_s18 + $0x370] sm:$0xff]  ;;  %v12926_v28 = vpack.i.bf16 %v9352_v25, %v9351_v24 }
  0x19   : > { %v12929_v29 = vpack.i.bf16 %v9350_v27, %v9349_v26  ;;  %v9359_v30 = vld [vmem:[%s12897_s18 + $0x4a0] sm:$0xff]  ;;  %v9360_v31 = vld [vmem:[%s12897_s18 + $0x4b0] sm:$0xff] }
  0x1a   : > { %10750 = vrot.lane.b32.xlu1 %v10749_v16, %s12817_s21  ;;  %v9357_v32 = vld [vmem:[%s12897_s18 + $0x480] sm:$0xff]  ;;  %v9358_v33 = vld [vmem:[%s12897_s18 + $0x490] sm:$0xff]  ;;  %v10779_v34 = vpack.i.bf16 %v9360_v31, %v9359_v30  ;;  %v12587_v16 = vld [vmem:[%s16898_s1 + $0x8] sm:$0xff]  }
  0x1b   : > { %10745 = vrot.lane.b32.xlu0 %v10744_v17, %s12817_s21  ;;  %v10774_v35 = vpack.i.bf16 %v9358_v33, %v9357_v32  ;;  %v9367_v36 = vld [vmem:[%s12897_s18 + $0x530] sm:$0xff]  ;;  %v9368_v37 = vld [vmem:[%s12897_s18 + $0x540] sm:$0xff] }
  0x1c   : > { %v9365_v38 = vld [vmem:[%s12897_s18 + $0x510] sm:$0xff]  ;;  %v9366_v39 = vld [vmem:[%s12897_s18 + $0x520] sm:$0xff]  ;;  %v12944_v40 = vpack.i.bf16 %v9368_v37, %v9367_v36 }
  0x1d   : > { %v12947_v41 = vpack.i.bf16 %v9366_v39, %v9365_v38  ;;  %v9375_v42 = vld [vmem:[%s12897_s18 + $0x5c0] sm:$0xff]  ;;  %v9376_v43 = vld [vmem:[%s12897_s18 + $0x5d0] sm:$0xff] }
  0x1e   : > { %10760 = vrot.lane.b32.xlu1 %v10759_v22, %s12818_s22  ;;  %v9373_v44 = vld [vmem:[%s12897_s18 + $0x5a0] sm:$0xff]  ;;  %v9374_v45 = vld [vmem:[%s12897_s18 + $0x5b0] sm:$0xff]  ;;  %v12955_v46 = vpack.i.bf16 %v9376_v43, %v9375_v42 }
  0x1f   : > { %10755 = vrot.lane.b32.xlu0 %v10754_v23, %s12818_s22  ;;  %v12959_v47 = vpack.i.bf16 %v9374_v45, %v9373_v44  ;;  %v9323_v48 = vld [vmem:[%s12897_s18 + $0xf0] sm:$0xff]  ;;  %v9324_v49 = vld [vmem:[%s12897_s18 + $0x100] sm:$0xff] }
  0x20   : > { %v9321_v50 = vld [vmem:[%s12897_s18 + $0xd0] sm:$0xff]  ;;  %v9322_v51 = vld [vmem:[%s12897_s18 + $0xe0] sm:$0xff]  ;;  %v10809_v52 = vpack.i.bf16 %v9324_v49, %v9323_v48 }
  0x21   : > { %v10804_v53 = vpack.i.bf16 %v9322_v51, %v9321_v50  ;;  %v9331_v54 = vld [vmem:[%s12897_s18 + $0x180] sm:$0xff]  ;;  %v9332_v55 = vld [vmem:[%s12897_s18 + $0x190] sm:$0xff] }
  0x22   : > { %10770 = vrot.lane.b32.xlu1 %v12926_v28, %s12819_s23  ;;  %v9329_v56 = vld [vmem:[%s12897_s18 + $0x160] sm:$0xff]  ;;  %v9330_v57 = vld [vmem:[%s12897_s18 + $0x170] sm:$0xff]  ;;  %v10819_v58 = vpack.i.bf16 %v9332_v55, %v9331_v54 }
  0x23   : > { %10765 = vrot.lane.b32.xlu0 %v12929_v29, %s12819_s23  ;;  %v10814_v59 = vpack.i.bf16 %v9330_v57, %v9329_v56  ;;  %v9339_v60 = vld [vmem:[%s12897_s18 + $0x2a0] sm:$0xff]  ;;  %v9340_v61 = vld [vmem:[%s12897_s18 + $0x2b0] sm:$0xff] }
  0x24   : > { %v9337_v62 = vld [vmem:[%s12897_s18 + $0x280] sm:$0xff]  ;;  %v9338_v63 = vld [vmem:[%s12897_s18 + $0x290] sm:$0xff]  ;;  %v10829_v1 = vpack.i.bf16 %v9340_v61, %v9339_v60 }
  0x25   : > { %v12982_v0 = vld [vmem:[%s16898_s1 + $0x20] ss:$0 sps:$4 sm:$0xff]   ;;  %v10824_v3 = vpack.i.bf16 %v9338_v63, %v9337_v62  ;;  %v9347_v4 = vld [vmem:[%s12897_s18 + $0x330] sm:$0xff]  ;;  %v13065_v50 = vld [vmem:[%s12897_s18 + $0x21] sm:$0xff] }
  0x26   : > { %10780 = vrot.lane.b32.xlu1 %v10779_v34, %s12820_s24  ;;  %v9348_v5 = vld [vmem:[%s12897_s18 + $0x340] sm:$0xff]  ;;  %10698 = vmatprep.subr.msk.bf16.mxu0 %vm943_vm0, %v12982_v0  ;;  %v12995_v6 = vsel %vm943_vm0, %v12982_v0, 0  ;;  %v9345_v7 = vld [vmem:[%s12897_s18 + $0x310] sm:$0xff] }
  0x27   : > { %10775 = vrot.lane.b32.xlu0 %v10774_v35, %s12820_s24  ;;  %v9346_v8 = vld [vmem:[%s12897_s18 + $0x320] sm:$0xff]  ;;  %10531 = vmatpush3.bf16.msra.mxu0 %v12995_v6  ;;  %v12586_v9 = vld [vmem:[%s16898_s1 + $0x10] sm:$0xff]   ;;  %v10839_v10 = vpack.i.bf16 %v9348_v5, %v9347_v4 }
  0x28   : > { %10701 = vmatprep.subr.msk.bf16.mxu1 %vm943_vm0, %v12982_v0  ;;  %10532 = vmatprep.subr.bf16.mxu0 %v12585_v2  ;;  %v10834_v11 = vpack.i.bf16 %v9346_v8, %v9345_v7  ;;  %v9355_v12 = vld [vmem:[%s12897_s18 + $0x3c0] sm:$0xff]  ;;  %v9356_v13 = vld [vmem:[%s12897_s18 + $0x3d0] sm:$0xff] }
  0x29   : > { %10585 = vmatpush3.bf16.msra.mxu1 %v12995_v6  ;;  %v9353_v14 = vld [vmem:[%s12897_s18 + $0x3a0] sm:$0xff]  ;;  %v9354_v15 = vld [vmem:[%s12897_s18 + $0x3b0] sm:$0xff]  ;;  %v13016_v17 = vpack.i.bf16 %v9356_v13, %v9355_v12 }
  0x2a   : > { %10790 = vrot.lane.b32.xlu1 %v12944_v40, %s12821_s25  ;;  %10586 = vmatprep.subr.bf16.mxu1 %v12585_v2  ;;  %v13019_v18 = vpack.i.bf16 %v9354_v15, %v9353_v14  ;;  %v9363_v19 = vld [vmem:[%s12897_s18 + $0x4e0] sm:$0xff]  ;;  %v9364_v20 = vld [vmem:[%s12897_s18 + $0x4f0] sm:$0xff] }
  0x2b   : > { %10785 = vrot.lane.b32.xlu0 %v12947_v41, %s12821_s25  ;;  %10533 = vmatpush3.bf16.msra.mxu0 %v12585_v2  ;;  %v9361_v21 = vld [vmem:[%s12897_s18 + $0x4c0] sm:$0xff]  ;;  %v9362_v22 = vld [vmem:[%s12897_s18 + $0x4d0] sm:$0xff]  ;;  %v10859_v26 = vpack.i.bf16 %v9364_v20, %v9363_v19 }
  0x2c   : > { %10534 = vmatprep.subr.bf16.mxu0 %v12586_v9  ;;  %v12588_v23 = vld [vmem:[%s16898_s1] sm:$0xff]   ;;  %v9371_v24 = vld [vmem:[%s12897_s18 + $0x570] sm:$0xff]  ;;  %v10854_v32 = vpack.i.bf16 %v9362_v22, %v9361_v21 }
  0x2d   : > { %10587 = vmatpush3.bf16.msra.mxu1 %v12585_v2  ;;  %v9372_v25 = vld [vmem:[%s12897_s18 + $0x580] sm:$0xff]  ;;  %v9369_v27 = vld [vmem:[%s12897_s18 + $0x550] sm:$0xff] }
  0x2e   : > { %10800 = vrot.lane.b32.xlu1 %v12955_v46, %s12822_s26  ;;  %10588 = vmatprep.subr.bf16.mxu1 %v12586_v9  ;;  %v9370_v30 = vld [vmem:[%s12897_s18 + $0x560] sm:$0xff]  ;;  %v13035_v31 = vld [vmem:[%s12897_s18 + $0x1d0] sm:$0xff]  ;;  %v10869_v37 = vpack.i.bf16 %v9372_v25, %v9371_v24 }
  0x2f   : > { %10795 = vrot.lane.b32.xlu0 %v12959_v47, %s12822_s26  ;;  %10535 = vmatpush3.bf16.msra.mxu0 %v12586_v9  ;;  %v13040_v33 = vld [vmem:[%s12897_s18 + $0x1c0] sm:$0xff]  ;;  %v9380_v35 = vld [vmem:[%s12897_s18 + $0x610] sm:$0xff]  ;;  %v10864_v42 = vpack.i.bf16 %v9370_v30, %v9369_v27 }
  0x30   : > { %10536 = vmatprep.subr.bf16.mxu0 %v12587_v16  ;;  %v9379_v34 = vld [vmem:[%s12897_s18 + $0x600] sm:$0xff]  ;;  %v11179_v36 = vpack.i.bf16 %v13035_v31, %v13040_v33  ;;  %v9378_v39 = vld [vmem:[%s12897_s18 + $0x5f0] sm:$0xff] }
  0x31   : > { %10589 = vmatpush3.bf16.msra.mxu1 %v12586_v9  ;;  %v9377_v38 = vld [vmem:[%s12897_s18 + $0x5e0] sm:$0xff]  ;;  %v13054_v44 = vld [vmem:[%s12897_s18 + $0x1f0] sm:$0xff]  ;;  %v13061_v48 = vpack.i.bf16 %v9380_v35, %v9379_v34 }
  0x32   : > { %10810 = vrot.lane.b32.xlu1 %v10809_v52, %s12816_s20  ;;  %10590 = vmatprep.subr.bf16.mxu1 %v12587_v16  ;;  %v13051_v43 = vld [vmem:[%s12897_s18 + $0x1e0] sm:$0xff]  ;;  %v9399_v49 = vld [vmem:[%s12897_s18 + $0x1b0] sm:$0xff]  ;;  %v13077_v54 = vpack.i.bf16 %v9378_v39, %v9377_v38 }
  0x33   : > { %10805 = vrot.lane.b32.xlu0 %v10804_v53, %s12816_s20  ;;  %10537 = vmatpush3.bf16.msra.mxu0 %v12587_v16  ;;  %v11189_v45 = vpack.i.bf16 %v13054_v44, %v13051_v43  ;;  %v13068_v51 = vld [vmem:[%s12897_s18 + $0x31] sm:$0xff]  ;;  %v13074_v53 = vld [vmem:[%s12897_s18 + $0x41] sm:$0xff]  ;;  %v10889_v57 = vpack.i.bf16 %v13051_v43, %v13035_v31 }
  0x34   : > { %10538 = vmatprep.subr.bf16.mxu0 %v12588_v23  ;;  %v13071_v52 = vld [vmem:[%s12897_s18 + $0x11] sm:$0xff]  ;;  %v11199_v55 = vpack.i.bf16 %v13074_v53, %v13068_v51  ;;  %v10899_v60 = vpack.i.bf16 %v13068_v51, %v13065_v50  ;;  %v9418_v63 = vld [vmem:[%s12897_s18 + $0x420] sm:$0xff] }
  0x35   : > { %10591 = vmatpush3.bf16.msra.mxu1 %v12587_v16  ;;  %v11194_v56 = vpack.i.bf16 %v13065_v50, %v13071_v52  ;;  %v9417_v62 = vld [vmem:[%s12897_s18 + $0x410] sm:$0xff]  ;;  %v9425_v2 = vld [vmem:[%s12897_s18 + $0x261] sm:$0xff] }
  0x36   : > { %10820 = vrot.lane.b32.xlu1 %v10819_v58, %s12815_s19  ;;  %10592 = vmatprep.subr.bf16.mxu1 %v12588_v23  ;;  %v10884_v58 = vpack.i.bf16 %v13040_v33, %v9399_v49  ;;  %v10919_v4 = vpack.i.bf16 %v9418_v63, %v9417_v62  ;;  %v9423_v5 = vld [vmem:[%s12897_s18 + $0x241] sm:$0xff]  ;;  %v9424_v7 = vld [vmem:[%s12897_s18 + $0x251] sm:$0xff] }
  0x37   : > { %10815 = vrot.lane.b32.xlu0 %v10814_v59, %s12815_s19  ;;  %10539 = vmatpush3.bf16.msra.mxu0 %v12588_v23  ;;  %v1061_v59 = vld [vmem:[%s12897_s18 + $0x1] sm:$0xff]  ;;  %v9439_v12 = vld [vmem:[%s12897_s18 + $0x630] sm:$0xff] }
  0x38   : > { %10699 = vmatprep.subr.msk.bf16.mxu0 %vm943_vm0, %v12982_v0  ;;  %v10894_v61 = vpack.i.bf16 %v13071_v52, %v1061_v59  ;;  %v9415_v0 = vld [vmem:[%s12897_s18 + $0x3f0] sm:$0xff]  ;;  %v9449_v13 = vld [vmem:[%s12897_s18 + $0x4a1] sm:$0xff] }
  0x39   : > { %10593 = vmatpush3.bf16.msra.mxu1 %v12588_v23  ;;  %v9450_v16 = vld [vmem:[%s12897_s18 + $0x4b1] sm:$0xff]  ;;  %v9447_v19 = vld [vmem:[%s12897_s18 + $0x481] sm:$0xff] }
  0x3a   : > { %10830 = vrot.lane.b32.xlu1 %v10829_v1, %s12817_s21  ;;  %v9416_v1 = vld [vmem:[%s12897_s18 + $0x400] sm:$0xff]  ;;  %v9448_v20 = vld [vmem:[%s12897_s18 + $0x491] sm:$0xff]  ;;  %v13134_v23 = vpack.i.bf16 %v9450_v16, %v9449_v13 }
  0x3b   : > { %10825 = vrot.lane.b32.xlu0 %v10824_v3, %s12817_s21  ;;  %v9426_v3 = vld [vmem:[%s12897_s18 + $0x271] sm:$0xff]  ;;  %v10914_v8 = vpack.i.bf16 %v9416_v1, %v9415_v0  ;;  %v9406_v22 = vld [vmem:[%s12897_s18 + $0x220] sm:$0xff]  ;;  %v13138_v24 = vpack.i.bf16 %v9448_v20, %v9447_v19 }
  0x3c   : > { %v10929_v9 = vpack.i.bf16 %v9426_v3, %v9425_v2  ;;  %v9405_v21 = vld [vmem:[%s12897_s18 + $0x210] sm:$0xff]  ;;  %v9404_v25 = vld [vmem:[%s12897_s18 + $0x200] sm:$0xff] }
  0x3d   : > { %v1068_v27 = vld [vmem:[%s12897_s18 + $0x71] sm:$0xff]  ;;  %v10969_v30 = vpack.i.bf16 %v9406_v22, %v9405_v21  ;;  %v10964_v34 = vpack.i.bf16 %v9404_v25, %v13054_v44  ;;  %v9422_v39 = vld [vmem:[%s12897_s18 + $0x460] sm:$0xff] }
  0x3e   : > { %10840 = vrot.lane.b32.xlu1 %v10839_v10, %s12818_s22  ;;  %v10924_v10 = vpack.i.bf16 %v9424_v7, %v9423_v5  ;;  %v9421_v38 = vld [vmem:[%s12897_s18 + $0x450] sm:$0xff]  ;;  %v9420_v49 = vld [vmem:[%s12897_s18 + $0x440] sm:$0xff] }
  0x3f   : > { %10835 = vrot.lane.b32.xlu0 %v10834_v11, %s12818_s22  ;;  %v9442_v11 = vld [vmem:[%s12897_s18 + $0x660] sm:$0xff]  ;;  %v10999_v59 = vpack.i.bf16 %v9422_v39, %v9421_v38  ;;  %v9428_v62 = vld [vmem:[%s12897_s18 + $0x291] sm:$0xff] }
  0x40   : > { %v9445_v1 = vld [vmem:[%s12897_s18 + $0x690] sm:$0xff]  ;;  %v9444_v3 = vld [vmem:[%s12897_s18 + $0x680] sm:$0xff] }
  0x41   : > { %v9443_v2 = vld [vmem:[%s12897_s18 + $0x670] sm:$0xff]  ;;  %v9483_v16 = vld [vmem:[%s12897_s18 + $0x6c0] sm:$0xff] }
  0x42   : > { %10850 = vrot.lane.b32.xlu1 %v13016_v17, %s12819_s23  ;;  %v13182_v7 = vpack.i.bf16 %v9444_v3, %v9443_v2  ;;  %v9484_v19 = vld [vmem:[%s12897_s18 + $0x6d0] sm:$0xff]  ;;  %v487_v20 = vld [vmem:[%s12897_s18] sm:$0xff] }
  0x43   : > { %10845 = vrot.lane.b32.xlu0 %v13019_v18, %s12819_s23  ;;  %v13210_v21 = vld [vmem:[%s12897_s18 + $0x10] sm:$0xff]  ;;  %v13228_v38 = vld [vmem:[%s12897_s18 + $0x760] sm:$0xff] }
  0x44   : > { %v13233_v39 = vld [vmem:[%s12897_s18 + $0x6e0] sm:$0xff]  ;;  %v9473_v31 = vld [vmem:[%s12897_s18 + $0x570] sm:$0xff] }
  0x45   : > { %v9474_v33 = vld [vmem:[%s12897_s18 + $0x580] sm:$0xff] }
  0x46   : > { %10860 = vrot.lane.b32.xlu1 %v10859_v26, %s12820_s24  ;;  %v1067_v26 = vld [vmem:[%s12897_s18 + $0x61] sm:$0xff]  ;;  %v11209_v43 = vpack.i.bf16 %v9474_v33, %v9473_v31 }
  0x47   : > { %10855 = vrot.lane.b32.xlu0 %v10854_v32, %s12820_s24  ;;  %v1066_v32 = vld [vmem:[%s12897_s18 + $0x51] sm:$0xff]  ;;  %v10979_v35 = vpack.i.bf16 %v1068_v27, %v1067_v26  ;;  %v13215_v27 = vld [vmem:[%s12897_s18 + $0x20] sm:$0xff] }
  0x48   : > { %v9481_v51 = vld [vmem:[%s12897_s18 + $0x600] sm:$0xff] }
  0x49   : > { %v13558_v50 = vld [vmem:[%s12897_s18 + $0x7a0] sm:$0xff] }
  0x4a   : > { %10870 = vrot.lane.b32.xlu1 %v10869_v37, %s12821_s25  ;;  %v10974_v37 = vpack.i.bf16 %v1066_v32, %v13074_v53  ;;  %v9482_v53 = vld [vmem:[%s12897_s18 + $0x610] sm:$0xff]  ;;  %v13561_v52 = vld [vmem:[%s12897_s18 + $0x720] sm:$0xff] }
  0x4b   : > { %10865 = vrot.lane.b32.xlu0 %v10864_v42, %s12821_s25  ;;  %v9419_v42 = vld [vmem:[%s12897_s18 + $0x430] sm:$0xff] }
  0x4e   : > { %10880 = vrot.lane.b32.xlu1 %v13061_v48, %s12822_s26 }
  0x4f   : > { %10875 = vrot.lane.b32.xlu0 %v13077_v54, %s12822_s26 }
  0x52   : > { %10890 = vrot.lane.b32.xlu1 %v10889_v57, %s12816_s20  ;;  %v9429_v57 = vld [vmem:[%s12897_s18 + $0x2a1] sm:$0xff] }
  0x53   : > { %10885 = vrot.lane.b32.xlu0 %v10884_v58, %s12816_s20  ;;  %v9430_v58 = vld [vmem:[%s12897_s18 + $0x2b1] sm:$0xff] }
  0x54   : > { %v11009_v63 = vpack.i.bf16 %v9430_v58, %v9429_v57  ;;  %v9560_v57 = vld [vmem:[%s12897_s18 + $0x7f0] sm:$0xff] }
  0x56   : > { %10900 = vrot.lane.b32.xlu1 %v10899_v60, %s12815_s19  ;;  %v10994_v60 = vpack.i.bf16 %v9420_v49, %v9419_v42  ;;  %v13236_v42 = vld [vmem:[%s12897_s18 + $0x6f0] sm:$0xff]  ;;  %v9559_v49 = vld [vmem:[%s12897_s18 + $0x7e0] sm:$0xff] }
  0x57   : > { %10895 = vrot.lane.b32.xlu0 %v10894_v61, %s12815_s19  ;;  %v9427_v61 = vld [vmem:[%s12897_s18 + $0x281] sm:$0xff] }
  0x58   : > { %v11004_v0 = vpack.i.bf16 %v9428_v62, %v9427_v61 }
  0x5a   : > { %10910 = vrot.lane.b32.xlu1 %v12926_v28, %s12817_s21  ;;  %v9441_v28 = vld [vmem:[%s12897_s18 + $0x650] sm:$0xff] }
  0x5b   : > { %10905 = vrot.lane.b32.xlu0 %v12929_v29, %s12817_s21  ;;  %v9440_v29 = vld [vmem:[%s12897_s18 + $0x640] sm:$0xff]  ;;  %v13121_v14 = vpack.i.bf16 %v9442_v11, %v9441_v28  ;;  %v9452_v11 = vld [vmem:[%s12897_s18 + $0x4d1] sm:$0xff] }
  0x5c   : > { %v13125_v15 = vpack.i.bf16 %v9440_v29, %v9439_v12  ;;  %v9451_v28 = vld [vmem:[%s12897_s18 + $0x4c1] sm:$0xff] }
  0x5e   : > { %10920 = vrot.lane.b32.xlu1 %v10919_v4, %s12818_s22 }
  0x5f   : > { %10915 = vrot.lane.b32.xlu0 %v10914_v8, %s12818_s22  ;;  %v9453_v8 = vld [vmem:[%s12897_s18 + $0x4e1] sm:$0xff] }
  0x62   : > { %10930 = vrot.lane.b32.xlu1 %v10929_v9, %s12819_s23  ;;  %v9454_v9 = vld [vmem:[%s12897_s18 + $0x4f1] sm:$0xff] }
  0x63   : > { %10925 = vrot.lane.b32.xlu0 %v10924_v10, %s12819_s23 }
  0x66   : > { %10940 = vrot.lane.b32.xlu1 %v12955_v46, %s12820_s24 }
  0x67   : > { %10935 = vrot.lane.b32.xlu0 %v12959_v47, %s12820_s24 }
  0x6a   : > { %10950 = vrot.lane.b32.xlu1 %v13121_v14, %s12821_s25 }
  0x6b   : > { %10945 = vrot.lane.b32.xlu0 %v13125_v15, %s12821_s25 }
  0x6e   : > { %10960 = vrot.lane.b32.xlu1 %v13134_v23, %s12822_s26 }
  0x6f   : > { %10955 = vrot.lane.b32.xlu0 %v13138_v24, %s12822_s26 }
  0x72   : > { %10970 = vrot.lane.b32.xlu1 %v10969_v30, %s12816_s20  ;;  %v13218_v30 = vld [vmem:[%s12897_s18 + $0x30] sm:$0xff] }
  0x73   : > { %10965 = vrot.lane.b32.xlu0 %v10964_v34, %s12816_s20 }
  0x76   : > { %10980 = vrot.lane.b32.xlu1 %v10979_v35, %s12815_s19 }
  0x77   : > { %10975 = vrot.lane.b32.xlu0 %v10974_v37, %s12815_s19  ;;  %v13225_v37 = vld [vmem:[%s12897_s18 + $0x750] sm:$0xff] }
  0x7a   : > { %10990 = vrot.lane.b32.xlu1 %v13016_v17, %s12817_s21  ;;  %v9446_v17 = vld [vmem:[%s12897_s18 + $0x6a0] sm:$0xff] }
  0x7b   : > { %10985 = vrot.lane.b32.xlu0 %v13019_v18, %s12817_s21  ;;  %v13178_v5 = vpack.i.bf16 %v9446_v17, %v9445_v1 }
  0x7e   : > { %11000 = vrot.lane.b32.xlu1 %v10999_v59, %s12818_s22 }
  0x7f   : > { %10995 = vrot.lane.b32.xlu0 %v10994_v60, %s12818_s22  ;;  %v11069_v60 = vpack.i.bf16 %v9484_v19, %v9483_v16 }
  0x82   : > { %11010 = vrot.lane.b32.xlu1 %v11009_v63, %s12819_s23 }
  0x83   : > { %11005 = vrot.lane.b32.xlu0 %v11004_v0, %s12819_s23 }
  0x84   : > { %v13172_v18 = vpop.permute.xlu1 %10735 }
  0x85   : > { %v10726_v4 = vpop.permute.xlu0 %10725  ;;  %v10738_v58 = vunpack.i.h.bf16 %v13172_v18  ;;  %v10737_v59 = vunpack.i.l.bf16 %v13172_v18 }
  0x86   : > { %11020 = vrot.lane.b32.xlu1 %v13061_v48, %s12820_s24  ;;  %v13192_v48 = vpack.i.bf16 %v9454_v9, %v9453_v8  ;;  %v10728_v25 = vunpack.i.h.bf16 %v10726_v4  ;;  %v10727_v26 = vunpack.i.l.bf16 %v10726_v4  ;;  %v11089_v8 = vpack.i.bf16 %v13228_v38, %v13225_v37 }
  0x87   : > { %11015 = vrot.lane.b32.xlu0 %v13077_v54, %s12820_s24  ;;  %v13196_v54 = vpack.i.bf16 %v9452_v11, %v9451_v28  ;;  %v13265_v11 = vpack.i.bf16 %v9560_v57, %v9559_v49 }
  0x88   : > { %v13186_v10 = vpop.permute.xlu1 %10740  ;;  %v824_v61 = vsel %vm823_vm1, %v487_v20, %v10727_v26  ;;  %v825_v62 = vsel %vm823_vm1, %v13210_v21, %v10728_v25 }
  0x89   : > { %v10731_v12 = vpop.permute.xlu0 %10730  ;;  %v10742_v63 = vunpack.i.l.bf16 %v13186_v10  ;;  %v832_v9 = vsel %vm361_vm2, %v824_v61, %v10737_v59 }
  0x8a   : > { %11030 = vrot.lane.b32.xlu1 %v13178_v5, %s12821_s25  ;;  %v10733_v34 = vunpack.i.h.bf16 %v10731_v12  ;;  %v10732_v35 = vunpack.i.l.bf16 %v10731_v12 }
  0x8b   : > { %11025 = vrot.lane.b32.xlu0 %v13182_v7, %s12821_s25 }
  0x8c   : > { %v13198_v29 = vpop.permute.xlu1 %10750  ;;  %v826_v1 = vsel %vm823_vm1, %v13215_v27, %v10732_v35  ;;  %v827_v17 = vsel %vm823_vm1, %v13218_v30, %v10733_v34 }
  0x8d   : > { %v13200_v13 = vpop.permute.xlu0 %10745  ;;  %v10753_v18 = vunpack.i.h.bf16 %v13198_v29  ;;  %v10752_v2 = vunpack.i.l.bf16 %v13198_v29  ;;  %v834_v12 = vsel %vm361_vm2, %v826_v1, %v10742_v63 }
  0x8e   : > { %11040 = vrot.lane.b32.xlu1 %v13192_v48, %s12822_s26  ;;  %v10748_v3 = vunpack.i.h.bf16 %v13200_v13  ;;  %v10747_v4 = vunpack.i.l.bf16 %v13200_v13 }
  0x8f   : > { %11035 = vrot.lane.b32.xlu0 %v13196_v54, %s12822_s26  ;;  %v843_v19 = vsel %vm840_vm3, %v834_v12, %v10752_v2 }
  0x90   : > { %v13212_v22 = vpop.permute.xlu1 %10760  ;;  %v841_v34 = vsel %vm840_vm3, %v832_v9, %v10747_v4 }
  0x91   : > { %v13220_v32 = vpop.permute.xlu0 %10755  ;;  %v10762_v13 = vunpack.i.l.bf16 %v13212_v22 }
  0x92   : > { %11050 = vrot.lane.b32.xlu1 %v12944_v40, %s12816_s20  ;;  %v10758_v25 = vunpack.i.h.bf16 %v13220_v32  ;;  %v10757_v26 = vunpack.i.l.bf16 %v13220_v32 }
  0x93   : > { %11045 = vrot.lane.b32.xlu0 %v12947_v41, %s12816_s20  ;;  %v10743_v41 = vunpack.i.h.bf16 %v13186_v10  ;;  %v833_v10 = vsel %vm361_vm2, %v825_v62, %v10738_v58  ;;  %v851_v58 = vsel %vm435_vm4, %v843_v19, %v10762_v13  ;;  %v9493_v19 = vld [vmem:[%s12897_s18 + $0x770] sm:$0xff] }
  0x94   : > { %v10771_v40 = vpop.permute.xlu1 %10770  ;;  %v842_v35 = vsel %vm840_vm3, %v833_v10, %v10748_v3  ;;  %v849_v62 = vsel %vm435_vm4, %v841_v34, %v10757_v26 }
  0x95   : > { %v10766_v0 = vpop.permute.xlu0 %10765  ;;  %v835_v29 = vsel %vm361_vm2, %v827_v17, %v10743_v41  ;;  %v10773_v37 = vunpack.i.h.bf16 %v10771_v40  ;;  %v10772_v38 = vunpack.i.l.bf16 %v10771_v40  ;;  %v850_v40 = vsel %vm435_vm4, %v842_v35, %v10758_v25 }
  0x96   : > { %11060 = vrot.lane.b32.xlu1 %v13125_v15, %s12816_s20  ;;  %v11084_v15 = vpack.i.bf16 %v13236_v42, %v13233_v39  ;;  %v844_v20 = vsel %vm840_vm3, %v835_v29, %v10753_v18  ;;  %v10767_v39 = vunpack.i.l.bf16 %v10766_v0 }
  0x97   : > { %11055 = vrot.lane.b32.xlu0 %v12959_v47, %s12815_s19  ;;  %v10763_v47 = vunpack.i.h.bf16 %v13212_v22  ;;  %v10768_v22 = vunpack.i.h.bf16 %v10766_v0 }
  0x98   : > { %v10781_v28 = vpop.permute.xlu1 %10780  ;;  %v858_v18 = vsel %vm857_vm5, %v849_v62, %v10767_v39 }
  0x99   : > { %v10776_v16 = vpop.permute.xlu0 %10775  ;;  %v10783_v42 = vunpack.i.h.bf16 %v10781_v28  ;;  %v10782_v49 = vunpack.i.l.bf16 %v10781_v28  ;;  %v852_v32 = vsel %vm435_vm4, %v844_v20, %v10763_v47  ;;  %v859_v2 = vsel %vm857_vm5, %v850_v40, %v10768_v22  ;;  %v9494_v20 = vld [vmem:[%s12897_s18 + $0x780] sm:$0xff] }
  0x9a   : > { %11070 = vrot.lane.b32.xlu1 %v11069_v60, %s12817_s21  ;;  %v10778_v59 = vunpack.i.h.bf16 %v10776_v16  ;;  %v10777_v60 = vunpack.i.l.bf16 %v10776_v16  ;;  %v861_v0 = vsel %vm857_vm5, %v852_v32, %v10773_v37  ;;  %v11104_v32 = vpack.i.bf16 %v9494_v20, %v9493_v19 }
  0x9b   : > { %11065 = vrot.lane.b32.xlu0 %v12955_v46, %s12815_s19  ;;  %v860_v46 = vsel %vm857_vm5, %v851_v58, %v10772_v38  ;;  %v870_v4 = vsel %vm866_vm6, %v861_v0, %v10783_v42  ;;  %v9562_v58 = vld [vmem:[%s12897_s18 + $0x810] sm:$0xff] }
  0x9c   : > { %v10791_v57 = vpop.permute.xlu1 %10790  ;;  %v869_v3 = vsel %vm866_vm6, %v860_v46, %v10782_v49  ;;  %v867_v12 = vsel %vm866_vm6, %v858_v18, %v10777_v60  ;;  %v868_v29 = vsel %vm866_vm6, %v859_v2, %v10778_v59  ;;  %v9567_v49 = vld [vmem:[%s12897_s18 + $0x870] sm:$0xff]  ;;  %v11129_v46 = vpack.i.bf16 %v13215_v27, %v13210_v21 }
  0x9d   : > { %v10786_v61 = vpop.permute.xlu0 %10785  ;;  %v10793_v41 = vunpack.i.h.bf16 %v10791_v57  ;;  %v10792_v63 = vunpack.i.l.bf16 %v10791_v57  ;;  %v9568_v57 = vld [vmem:[%s12897_s18 + $0x880] sm:$0xff]  ;;  %v9569_v0 = vld [vmem:[%s12897_s18 + $0x890] sm:$0xff] }
  0x9e   : > { %11080 = vrot.lane.b32.xlu1 %v13138_v24, %s12815_s19  ;;  %v10788_v1 = vunpack.i.h.bf16 %v10786_v61  ;;  %v10787_v17 = vunpack.i.l.bf16 %v10786_v61  ;;  %v13332_v61 = vld [vmem:[%s16898_s1 + $0x18] sm:$0xff]   ;;  %v13352_v18 = vld [vmem:[%s12897_s18 + $0xb0] sm:$0xff] }
  0x9f   : > { %11075 = vrot.lane.b32.xlu0 %v13121_v14, %s12816_s20  ;;  %v878_v14 = vsel %vm875_vm7, %v869_v3, %v10792_v63  ;;  %v879_v47 = vsel %vm875_vm7, %v870_v4, %v10793_v41  ;;  %v9576_v63 = vld [vmem:[%s12897_s18 + $0x6d1] sm:$0xff]  ;;  %v13361_v3 = vld [vmem:[%s12897_s18 + $0x40] sm:$0xff] }
  0xa0   : > { %v10801_v24 = vpop.permute.xlu1 %10800  ;;  %v876_v34 = vsel %vm875_vm7, %v867_v12, %v10787_v17  ;;  %v877_v35 = vsel %vm875_vm7, %v868_v29, %v10788_v1  ;;  %v9570_v1 = vld [vmem:[%s12897_s18 + $0x8a0] sm:$0xff]  ;;  %v13357_v2 = vld [vmem:[%s16898_s1 + $0x10] sm:$0xff]  }
  0xa1   : > { %v10803_v9 = vunpack.i.h.bf16 %v10801_v24  ;;  %v10802_v10 = vunpack.i.l.bf16 %v10801_v24  ;;  %v10796_v28 = vpop.permute.xlu0 %10795  ;;  %v13349_v17 = vld [vmem:[%s12897_s18 + $0xa0] sm:$0xff]  ;;  %v13367_v27 = vld [vmem:[%s12897_s18 + $0x130] sm:$0xff] }
  0xa2   : > { %v10798_v13 = vunpack.i.h.bf16 %v10796_v28  ;;  %v10797_v16 = vunpack.i.l.bf16 %v10796_v28  ;;  %11090 = vrot.lane.b32.xlu1 %v11089_v8, %s12818_s22  ;;  %v13370_v4 = vld [vmem:[%s12897_s18 + $0x140] sm:$0xff]  ;;  %v13384_v12 = vld [vmem:[%s12897_s18 + $0x150] sm:$0xff] }
  0xa3   : > { %v887_v25 = vsel %vm884_vm8, %v878_v14, %v10802_v10  ;;  %v888_v26 = vsel %vm884_vm8, %v879_v47, %v10803_v9  ;;  %11085 = vrot.lane.b32.xlu0 %v11084_v15, %s12817_s21  ;;  %v9561_v15 = vld [vmem:[%s12897_s18 + $0x800] sm:$0xff]  ;;  %v13376_v9 = vld [vmem:[%s12897_s18 + $0x6f1] sm:$0xff] }
  0xa4   : > { %v13306_v37 = vpop.permute.xlu1 %10810  ;;  %v885_v38 = vsel %vm884_vm8, %v876_v34, %v10797_v16  ;;  %v886_v8 = vsel %vm884_vm8, %v877_v35, %v10798_v13  ;;  %v894_v22 = vpack.c.bf16 %v888_v26, %v887_v25  ;;  %v11114_v62 = vpack.i.bf16 %v9562_v58, %v9561_v15  ;;  %v13373_v24 = vld [vmem:[%s12897_s18 + $0x6e1] sm:$0xff]  ;;  %v13391_v14 = vld [vmem:[%s12897_s18 + $0x70] sm:$0xff] }
  0xa5   : > { %v13310_v39 = vpop.permute.xlu0 %10805  ;;  %v893_v42 = vpack.c.bf16 %v886_v8, %v885_v38  ;;  %v13381_v28 = vld [vmem:[%s12897_s18 + $0xc0] sm:$0xff]  ;;  %v11144_v13 = vpack.i.bf16 %v13361_v3, %v13218_v30  ;;  %v13399_v16 = vld [vmem:[%s16898_s1 + $0x8] sm:$0xff]   ;;  %v10813_v19 = vunpack.i.h.bf16 %v13306_v37  ;;  %v10812_v20 = vunpack.i.l.bf16 %v13306_v37  ;;  %v13405_v25 = vld [vmem:[%s12897_s18 + $0x50] sm:$0xff] }
  0xa6   : > { %11100 = vrot.lane.b32.xlu1 %v13265_v11, %s12817_s21  ;;  %v13388_v29 = vld [vmem:[%s12897_s18 + $0x60] sm:$0xff]  ;;  %v11134_v26 = vpack.i.bf16 %v9570_v1, %v9569_v0  ;;  %v11149_v30 = vpack.i.bf16 %v13352_v18, %v13349_v17  ;;  %v10808_v34 = vunpack.i.h.bf16 %v13310_v39  ;;  %v10807_v35 = vunpack.i.l.bf16 %v13310_v39 }
  0xa7   : > { %11095 = vrot.lane.b32.xlu0 %v13134_v23, %s12815_s19  ;;  %10540 = vmatprep.mubr.msk.bf16.mxu0 %vm930_vm9, %v893_v42  ;;  %v11119_v23 = vpack.i.bf16 %v9568_v57, %v9567_v49  ;;  %v13420_v57 = vpack.i.bf16 %v13370_v4, %v13367_v27  ;;  %v11154_v15 = vpack.i.bf16 %v13376_v9, %v13373_v24 }
  0xa8   : > { %10541 = vmatmul.mubr.msk.bf16.vlgmr.msra.gmra.mxu0 %vm930_vm9, %v894_v22  ;;  %v13322_v59 = vpop.permute.xlu1 %10820  ;;  %v828_v0 = vsel %vm823_vm1, %v13361_v3, %v10807_v35  ;;  %v829_v1 = vsel %vm823_vm1, %v13405_v25, %v10808_v34 }
  0xa9   : > { %v13324_v60 = vpop.permute.xlu0 %10815  ;;  %10549 = vmatpush3.bf16.msra.mxu0 %v12995_v6  ;;  %v10823_v38 = vunpack.i.h.bf16 %v13322_v59  ;;  %v10822_v8 = vunpack.i.l.bf16 %v13322_v59 }
  0xaa   : > { %11110 = vrot.lane.b32.xlu1 %v13265_v11, %s12819_s23  ;;  %10550 = vmatprep.subr.bf16.mxu0 %v13332_v61  ;;  %v9575_v11 = vld [vmem:[%s12897_s18 + $0x6c1] sm:$0xff]  ;;  %v10818_v37 = vunpack.i.h.bf16 %v13324_v60  ;;  %v10817_v42 = vunpack.i.l.bf16 %v13324_v60 }
  0xab   : > { %11105 = vrot.lane.b32.xlu0 %v11104_v32, %s12818_s22  ;;  %v11139_v47 = vpack.i.bf16 %v9576_v63, %v9575_v11  ;;  %v13429_v32 = vld [vmem:[%s12897_s18 + $0xd0] sm:$0xff]  ;;  %v13434_v60 = vld [vmem:[%s12897_s18 + $0x160] sm:$0xff]  ;;  %v831_v11 = vsel %vm823_vm1, %v13391_v14, %v10813_v19 }
  0xac   : > { %v13336_v40 = vpop.permute.xlu1 %10830  ;;  %v11164_v59 = vpack.i.bf16 %v13429_v32, %v13381_v28  ;;  %v839_v18 = vsel %vm361_vm2, %v831_v11, %v10823_v38  ;;  %v836_v9 = vsel %vm361_vm2, %v828_v0, %v10817_v42  ;;  %v12802_v38 = vld [vmem:[%s16898_s1 + $0x20] ss:$0 sps:$4 sm:$0xff]  }
  0xad   : > { %v13338_v41 = vpop.permute.xlu0 %10825  ;;  %10551 = vmatpush3.bf16.msra.mxu0 %v13332_v61  ;;  %v10833_v39 = vunpack.i.h.bf16 %v13336_v40  ;;  %v10832_v58 = vunpack.i.l.bf16 %v13336_v40  ;;  %v830_v40 = vsel %vm823_vm1, %v13388_v29, %v10812_v20 }
  0xae   : > { %11120 = vrot.lane.b32.xlu1 %v11119_v23, %s12818_s22  ;;  %10552 = vmatprep.subr.bf16.mxu0 %v13357_v2  ;;  %v11174_v23 = vpack.i.bf16 %v13434_v60, %v13384_v12  ;;  %v10828_v63 = vunpack.i.h.bf16 %v13338_v41  ;;  %v838_v17 = vsel %vm361_vm2, %v830_v40, %v10822_v8  ;;  %v9471_v60 = vld [vmem:[%s12897_s18 + $0x550] sm:$0xff] }
  0xaf   : > { %11115 = vrot.lane.b32.xlu0 %v11114_v62, %s12817_s21  ;;  %v847_v3 = vsel %vm840_vm3, %v838_v17, %v10832_v58 }
  0xb0   : > { %v13364_v21 = vpop.permute.xlu1 %10840 }
  0xb1   : > { %v13378_v10 = vpop.permute.xlu0 %10835  ;;  %10553 = vmatpush3.bf16.msra.mxu0 %v13357_v2  ;;  %v10843_v19 = vunpack.i.h.bf16 %v13364_v21 }
  0xb2   : > { %11130 = vrot.lane.b32.xlu1 %v11129_v46, %s12820_s24  ;;  %10554 = vmatprep.subr.bf16.mxu0 %v13399_v16  ;;  %v10827_v46 = vunpack.i.l.bf16 %v13338_v41  ;;  %v10842_v41 = vunpack.i.l.bf16 %v13364_v21  ;;  %v10838_v34 = vunpack.i.h.bf16 %v13378_v10  ;;  %v10837_v35 = vunpack.i.l.bf16 %v13378_v10 }
  0xb3   : > { %11125 = vrot.lane.b32.xlu0 %v11114_v62, %s12819_s23  ;;  %v13441_v62 = vld [vmem:[%s16898_s1] sm:$0xff]  }
  0xb4   : > { %v10851_v22 = vpop.permute.xlu1 %10850  ;;  %v845_v21 = vsel %vm840_vm3, %v836_v9, %v10827_v46  ;;  %v855_v11 = vsel %vm435_vm4, %v847_v3, %v10842_v41 }
  0xb5   : > { %v13416_v49 = vpop.permute.xlu0 %10845  ;;  %10555 = vmatpush3.bf16.msra.mxu0 %v13399_v16  ;;  %v10852_v42 = vunpack.i.l.bf16 %v10851_v22 }
  0xb6   : > { %11140 = vrot.lane.b32.xlu1 %v11139_v47, %s12819_s23  ;;  %10556 = vmatprep.subr.bf16.mxu0 %v13441_v62  ;;  %v837_v47 = vsel %vm361_vm2, %v829_v1, %v10818_v37  ;;  %v10853_v37 = vunpack.i.h.bf16 %v10851_v22  ;;  %v10847_v10 = vunpack.i.l.bf16 %v13416_v49 }
  0xb7   : > { %11135 = vrot.lane.b32.xlu0 %v11134_v26, %s12818_s22  ;;  %v848_v26 = vsel %vm840_vm3, %v839_v18, %v10833_v39  ;;  %v846_v8 = vsel %vm840_vm3, %v837_v47, %v10828_v63  ;;  %v10848_v39 = vunpack.i.h.bf16 %v13416_v49  ;;  %v853_v63 = vsel %vm435_vm4, %v845_v21, %v10837_v35 }
  0xb8   : > { %v10861_v24 = vpop.permute.xlu1 %10860  ;;  %v856_v0 = vsel %vm435_vm4, %v848_v26, %v10843_v19  ;;  %v854_v22 = vsel %vm435_vm4, %v846_v8, %v10838_v34  ;;  %v864_v49 = vsel %vm857_vm5, %v855_v11, %v10852_v42  ;;  %v862_v19 = vsel %vm857_vm5, %v853_v63, %v10847_v10 }
  0xb9   : > { %v10856_v20 = vpop.permute.xlu0 %10855  ;;  %10557 = vmatpush3.bf16.msra.mxu0 %v13441_v62  ;;  %v10863_v58 = vunpack.i.h.bf16 %v10861_v24  ;;  %v863_v41 = vsel %vm857_vm5, %v854_v22, %v10848_v39 }
  0xba   : > { %11150 = vrot.lane.b32.xlu1 %v11149_v30, %s12821_s25  ;;  %10700 = vmatprep.subr.msk.bf16.mxu0 %vm943_vm0, %v12802_v38  ;;  %v10862_v30 = vunpack.i.l.bf16 %v10861_v24  ;;  %v10858_v1 = vunpack.i.h.bf16 %v10856_v20  ;;  %v10857_v17 = vunpack.i.l.bf16 %v10856_v20  ;;  %v865_v24 = vsel %vm857_vm5, %v856_v0, %v10853_v37 }
  0xbb   : > { %11145 = vrot.lane.b32.xlu0 %v11144_v13, %s12820_s24  ;;  %v874_v3 = vsel %vm866_vm6, %v865_v24, %v10863_v58  ;;  %v9488_v24 = vld [vmem:[%s12897_s18 + $0x710] sm:$0xff] }
  0xbc   : > { %v10871_v40 = vpop.permute.xlu1 %10870  ;;  %v873_v20 = vsel %vm866_vm6, %v864_v49, %v10862_v30  ;;  %v871_v34 = vsel %vm866_vm6, %v862_v19, %v10857_v17  ;;  %v872_v35 = vsel %vm866_vm6, %v863_v41, %v10858_v1  ;;  %v13508_v17 = vld [vmem:[%s12897_s18 + $0x160] sm:$0xff] }
  0xbd   : > { %v10866_v46 = vpop.permute.xlu0 %10865  ;;  %v10873_v18 = vunpack.i.h.bf16 %v10871_v40  ;;  %v10872_v13 = vunpack.i.l.bf16 %v10871_v40  ;;  %v11184_v28 = vpack.i.bf16 %v13508_v17, %v13384_v12  ;;  %v9487_v49 = vld [vmem:[%s12897_s18 + $0x700] sm:$0xff] }
  0xbe   : > { %11160 = vrot.lane.b32.xlu1 %v13420_v57, %s12820_s24  ;;  %v10868_v9 = vunpack.i.h.bf16 %v10866_v46  ;;  %v10867_v47 = vunpack.i.l.bf16 %v10866_v46  ;;  %v11229_v41 = vpack.i.bf16 %v9488_v24, %v9487_v49 }
  0xbf   : > { %11155 = vrot.lane.b32.xlu0 %v11154_v15, %s12819_s23  ;;  %v882_v37 = vsel %vm875_vm7, %v873_v20, %v10872_v13  ;;  %v883_v15 = vsel %vm875_vm7, %v874_v3, %v10873_v18  ;;  %v9480_v13 = vld [vmem:[%s12897_s18 + $0x5f0] sm:$0xff]  ;;  %v9563_v3 = vld [vmem:[%s12897_s18 + $0x820] sm:$0xff] }
  0xc0   : > { %v10881_v26 = vpop.permute.xlu1 %10880  ;;  %v880_v39 = vsel %vm875_vm7, %v871_v34, %v10867_v47  ;;  %v881_v58 = vsel %vm875_vm7, %v872_v35, %v10868_v9  ;;  %v13567_v20 = vld [vmem:[%s12897_s18 + $0x730] sm:$0xff] }
  0xc1   : > { %v10883_v38 = vunpack.i.h.bf16 %v10881_v26  ;;  %v10882_v21 = vunpack.i.l.bf16 %v10881_v26  ;;  %v10876_v8 = vpop.permute.xlu0 %10875  ;;  %v9564_v26 = vld [vmem:[%s12897_s18 + $0x830] sm:$0xff] }
  0xc2   : > { %v10878_v42 = vunpack.i.h.bf16 %v10876_v8  ;;  %v10877_v10 = vunpack.i.l.bf16 %v10876_v8  ;;  %11170 = vrot.lane.b32.xlu1 %v13420_v57, %s12822_s26 }
  0xc3   : > { %v891_v30 = vsel %vm884_vm8, %v882_v37, %v10882_v21  ;;  %v892_v40 = vsel %vm884_vm8, %v883_v15, %v10883_v38  ;;  %11165 = vrot.lane.b32.xlu0 %v11164_v59, %s12821_s25  ;;  %v9391_v37 = vld [vmem:[%s12897_s18 + $0x120] sm:$0xff] }
  0xc4   : > { %v889_v11 = vsel %vm884_vm8, %v880_v39, %v10877_v10  ;;  %v890_v0 = vsel %vm884_vm8, %v881_v58, %v10878_v42  ;;  %v13505_v57 = vpop.permute.xlu1 %10890  ;;  %v896_v1 = vpack.c.bf16 %v892_v40, %v891_v30  ;;  %v11224_v39 = vpack.i.bf16 %v9482_v53, %v9481_v51 }
  0xc5   : > { %v13510_v46 = vpop.permute.xlu0 %10885  ;;  %v895_v63 = vpack.c.bf16 %v890_v0, %v889_v11  ;;  %v10892_v47 = vunpack.i.l.bf16 %v13505_v57  ;;  %v11244_v11 = vpack.i.bf16 %v13567_v20, %v13561_v52  ;;  %v13580_v0 = vpack.i.bf16 %v9564_v26, %v9563_v3  ;;  %v13656_v20 = vld [vmem:[%s12897_s18 + $0x8b0] sm:$0xff] }
  0xc6   : > { %11180 = vrot.lane.b32.xlu1 %v11179_v36, %s12821_s25  ;;  %v10888_v34 = vunpack.i.h.bf16 %v13510_v46  ;;  %v10887_v35 = vunpack.i.l.bf16 %v13510_v46 }
  0xc7   : > { %11175 = vrot.lane.b32.xlu0 %v11174_v23, %s12820_s24  ;;  %10544 = vmatprep.mubr.msk.bf16.mxu0 %vm930_vm9, %v895_v63  ;;  %v9472_v23 = vld [vmem:[%s12897_s18 + $0x560] sm:$0xff] }
  0xc8   : > { %10545 = vmatmul.mubr.msk.bf16.gmra.mxu0 %vm930_vm9, %v896_v1  ;;  %v10901_v32 = vpop.permute.xlu1 %10900  ;;  %v11204_v44 = vpack.i.bf16 %v9472_v23, %v9471_v60  ;;  %v1377_v1 = vsel %vm823_vm1, %v13370_v4, %v10892_v47 }
  0xc9   : > { %v10896_v59 = vpop.permute.xlu0 %10895  ;;  %v10903_v38 = vunpack.i.h.bf16 %v10901_v32  ;;  %v10902_v21 = vunpack.i.l.bf16 %v10901_v32 }
  0xca   : > { %11190 = vrot.lane.b32.xlu1 %v11189_v45, %s12821_s25  ;;  %v9479_v45 = vld [vmem:[%s12897_s18 + $0x5e0] sm:$0xff]  ;;  %v10898_v15 = vunpack.i.h.bf16 %v10896_v59  ;;  %v10897_v42 = vunpack.i.l.bf16 %v10896_v59 }
  0xcb   : > { %11185 = vrot.lane.b32.xlu0 %v11184_v28, %s12822_s26  ;;  %v11214_v19 = vpack.i.bf16 %v9480_v13, %v9479_v45  ;;  %v1375_v28 = vsel %vm823_vm1, %v9391_v37, %v10887_v35  ;;  %v1385_v32 = vsel %vm361_vm2, %v1377_v1, %v10902_v21 }
  0xcc   : > { %v10911_v36 = vpop.permute.xlu1 %10910 }
  0xcd   : > { %v13533_v22 = vpop.permute.xlu0 %10905  ;;  %v10913_v30 = vunpack.i.h.bf16 %v10911_v36  ;;  %v10912_v40 = vunpack.i.l.bf16 %v10911_v36 }
  0xce   : > { %11200 = vrot.lane.b32.xlu1 %v11199_v55, %s12822_s26  ;;  %v13555_v55 = vld [vmem:[%s12897_s18 + $0x790] sm:$0xff]  ;;  %v10908_v46 = vunpack.i.h.bf16 %v13533_v22  ;;  %v10907_v63 = vunpack.i.l.bf16 %v13533_v22 }
  0xcf   : > { %11195 = vrot.lane.b32.xlu0 %v11194_v56, %s12822_s26  ;;  %v10893_v56 = vunpack.i.h.bf16 %v13505_v57  ;;  %v11249_v58 = vpack.i.bf16 %v13558_v50, %v13555_v55  ;;  %v1393_v23 = vsel %vm840_vm3, %v1385_v32, %v10912_v40 }
  0xd0   : > { %v13544_v18 = vpop.permute.xlu1 %10920 }
  0xd1   : > { %v13549_v9 = vpop.permute.xlu0 %10915  ;;  %v1378_v57 = vsel %vm823_vm1, %v13384_v12, %v10893_v56  ;;  %v1383_v12 = vsel %vm361_vm2, %v1375_v28, %v10897_v42  ;;  %v10923_v33 = vunpack.i.h.bf16 %v13544_v18  ;;  %v10922_v36 = vunpack.i.l.bf16 %v13544_v18 }
  0xd2   : > { %11210 = vrot.lane.b32.xlu1 %v11209_v43, %s12816_s20  ;;  %v1386_v59 = vsel %vm361_vm2, %v1378_v57, %v10903_v38  ;;  %v10918_v22 = vunpack.i.h.bf16 %v13549_v9  ;;  %v10917_v43 = vunpack.i.l.bf16 %v13549_v9 }
  0xd3   : > { %11205 = vrot.lane.b32.xlu0 %v11204_v44, %s12816_s20  ;;  %v1391_v44 = vsel %vm840_vm3, %v1383_v12, %v10907_v63  ;;  %v1401_v47 = vsel %vm435_vm4, %v1393_v23, %v10922_v36  ;;  %v13641_v36 = vld [vmem:[%s12897_s18 + $0x7b0] sm:$0xff] }
  0xd4   : > { %v10931_v8 = vpop.permute.xlu1 %10930  ;;  %v1399_v26 = vsel %vm435_vm4, %v1391_v44, %v10917_v43  ;;  %v13665_v43 = vld [vmem:[%s12897_s18 + $0x840] sm:$0xff]  ;;  %v9566_v44 = vld [vmem:[%s12897_s18 + $0x850] sm:$0xff] }
  0xd5   : > { %v10926_v10 = vpop.permute.xlu0 %10925  ;;  %v10933_v13 = vunpack.i.h.bf16 %v10931_v8  ;;  %v10932_v49 = vunpack.i.l.bf16 %v10931_v8 }
  0xd6   : > { %11220 = vrot.lane.b32.xlu1 %v13182_v7, %s12816_s20  ;;  %v1376_v7 = vsel %vm823_vm1, %v13367_v27, %v10888_v34  ;;  %v1394_v27 = vsel %vm840_vm3, %v1386_v59, %v10913_v30  ;;  %v10928_v18 = vunpack.i.h.bf16 %v10926_v10  ;;  %v10927_v24 = vunpack.i.l.bf16 %v10926_v10 }
  0xd7   : > { %11215 = vrot.lane.b32.xlu0 %v11214_v19, %s12815_s19  ;;  %v1384_v4 = vsel %vm361_vm2, %v1376_v7, %v10898_v15  ;;  %v1402_v19 = vsel %vm435_vm4, %v1394_v27, %v10923_v33  ;;  %v1409_v21 = vsel %vm857_vm5, %v1401_v47, %v10932_v49  ;;  %v13804_v47 = vld [vmem:[%s12897_s18 + $0xe0] sm:$0xff] }
  0xd8   : > { %v10941_v31 = vpop.permute.xlu1 %10940  ;;  %v1392_v45 = vsel %vm840_vm3, %v1384_v4, %v10908_v46  ;;  %v1410_v8 = vsel %vm857_vm5, %v1402_v19, %v10933_v13  ;;  %v1407_v42 = vsel %vm857_vm5, %v1399_v26, %v10927_v24  ;;  %v11274_v13 = vpack.i.bf16 %v9566_v44, %v13665_v43  ;;  %v9579_v24 = vld [vmem:[%s12897_s18 + $0x701] sm:$0xff] }
  0xd9   : > { %v10936_v60 = vpop.permute.xlu0 %10935  ;;  %v10943_v51 = vunpack.i.h.bf16 %v10941_v31  ;;  %v10942_v53 = vunpack.i.l.bf16 %v10941_v31  ;;  %v1400_v34 = vsel %vm435_vm4, %v1392_v45, %v10918_v22 }
  0xda   : > { %11230 = vrot.lane.b32.xlu1 %v11229_v41, %s12817_s21  ;;  %v10938_v9 = vunpack.i.h.bf16 %v10936_v60  ;;  %v10937_v3 = vunpack.i.l.bf16 %v10936_v60  ;;  %v1408_v10 = vsel %vm857_vm5, %v1400_v34, %v10928_v18  ;;  %v13644_v60 = vld [vmem:[%s12897_s18 + $0x7c0] sm:$0xff]  ;;  %v11289_v18 = vpack.i.bf16 %v13388_v29, %v13405_v25  ;;  %v9396_v29 = vld [vmem:[%s12897_s18 + $0x170] sm:$0xff] }
  0xdb   : > { %11225 = vrot.lane.b32.xlu0 %v11224_v39, %s12815_s19  ;;  %v1417_v39 = vsel %vm866_vm6, %v1409_v21, %v10942_v53  ;;  %v1418_v30 = vsel %vm866_vm6, %v1410_v8, %v10943_v51  ;;  %v11264_v52 = vpack.i.bf16 %v13644_v60, %v13641_v36  ;;  %v9580_v51 = vld [vmem:[%s12897_s18 + $0x711] sm:$0xff]  ;;  %v13826_v21 = vld [vmem:[%s12897_s18 + $0x100] sm:$0xff] }
  0xdc   : > { %v10951_v56 = vpop.permute.xlu1 %10950  ;;  %v1416_v57 = vsel %vm866_vm6, %v1408_v10, %v10938_v9  ;;  %v9573_v53 = vld [vmem:[%s12897_s18 + $0x8d0] sm:$0xff]  ;;  %v13810_v9 = vld [vmem:[%s12897_s18 + $0x80] sm:$0xff]  ;;  %v11299_v26 = vpack.i.bf16 %v9580_v51, %v9579_v24 }
  0xdd   : > { %v10946_v41 = vpop.permute.xlu0 %10945  ;;  %v10953_v35 = vunpack.i.h.bf16 %v10951_v56  ;;  %v10952_v38 = vunpack.i.l.bf16 %v10951_v56  ;;  %v9574_v56 = vld [vmem:[%s12897_s18 + $0x8e0] sm:$0xff]  ;;  %v13829_v8 = vld [vmem:[%s12897_s18 + $0x110] sm:$0xff] }
  0xde   : > { %11240 = vrot.lane.b32.xlu1 %v13196_v54, %s12815_s19  ;;  %v10948_v37 = vunpack.i.h.bf16 %v10946_v41  ;;  %v10947_v15 = vunpack.i.l.bf16 %v10946_v41  ;;  %v1415_v54 = vsel %vm866_vm6, %v1407_v42, %v10937_v3  ;;  %v9397_v3 = vld [vmem:[%s12897_s18 + $0x180] sm:$0xff]  ;;  %v11294_v34 = vpack.i.bf16 %v9574_v56, %v9573_v53 }
  0xdf   : > { %11235 = vrot.lane.b32.xlu0 %v13178_v5, %s12816_s20  ;;  %v1425_v5 = vsel %vm875_vm7, %v1417_v39, %v10952_v38  ;;  %v1426_v7 = vsel %vm875_vm7, %v1418_v30, %v10953_v35  ;;  %v13817_v41 = vld [vmem:[%s12897_s18 + $0x721] sm:$0xff]  ;;  %v13823_v38 = vld [vmem:[%s12897_s18 + $0x731] sm:$0xff]  ;;  %v13837_v42 = vpack.i.bf16 %v9397_v3, %v9396_v29  ;;  %s12825_s20 = smov 96  }
  0xe0   : > { %v10961_v40 = vpop.permute.xlu1 %10960  ;;  %v1423_v59 = vsel %vm875_vm7, %v1415_v54, %v10947_v15  ;;  %v1424_v31 = vsel %vm875_vm7, %v1416_v57, %v10948_v37  ;;  %v11304_v15 = vpack.i.bf16 %v13810_v9, %v13391_v14  ;;  %v13840_v10 = vld [vmem:[%s12897_s18 + $0x200] sm:$0xff]  ;;  %v13843_v39 = vld [vmem:[%s12897_s18 + $0x210] sm:$0xff] }
  0xe1   : > { %v10963_v1 = vunpack.i.h.bf16 %v10961_v40  ;;  %v10962_v46 = vunpack.i.l.bf16 %v10961_v40  ;;  %v10956_v63 = vpop.permute.xlu0 %10955  ;;  %v9590_v30 = vld [vmem:[%s12897_s18 + $0x1a0] sm:$0xff]  ;;  %v9398_v40 = vld [vmem:[%s12897_s18 + $0x190] sm:$0xff] }
  0xe2   : > { %v10958_v28 = vunpack.i.h.bf16 %v10956_v63  ;;  %v10957_v32 = vunpack.i.l.bf16 %v10956_v63  ;;  %11250 = vrot.lane.b32.xlu1 %v11249_v58, %s12818_s22 }
  0xe3   : > { %v1433_v12 = vsel %vm884_vm8, %v1425_v5, %v10962_v46  ;;  %v1434_v4 = vsel %vm884_vm8, %v1426_v7, %v10963_v1  ;;  %11245 = vrot.lane.b32.xlu0 %v11244_v11, %s12817_s21  ;;  %v13659_v11 = vld [vmem:[%s12897_s18 + $0x8c0] sm:$0xff] }
  0xe4   : > { %v1440_v33 = vpack.c.bf16 %v1434_v4, %v1433_v12  ;;  %v1431_v55 = vsel %vm884_vm8, %v1423_v59, %v10957_v32  ;;  %v1432_v50 = vsel %vm884_vm8, %v1424_v31, %v10958_v28  ;;  %v13638_v58 = vpop.permute.xlu1 %10970  ;;  %v11314_v28 = vpack.i.bf16 %v13823_v38, %v13817_v41 }
  0xe5   : > { %v13646_v23 = vpop.permute.xlu0 %10965  ;;  %v1439_v27 = vpack.c.bf16 %v1432_v50, %v1431_v55  ;;  %v10973_v37 = vunpack.i.h.bf16 %v13638_v58  ;;  %v11324_v32 = vpack.i.bf16 %v13829_v8, %v13826_v21  ;;  %v11339_v12 = vpack.i.bf16 %v13843_v39, %v13840_v10  ;;  %v9605_v8 = vld [vmem:[%s12897_s18 + $0x71] sm:$0xff] }
  0xe6   : > { %11260 = vrot.lane.b32.xlu1 %v13580_v0, %s12817_s21  ;;  %v10968_v54 = vunpack.i.h.bf16 %v13646_v23  ;;  %v10967_v57 = vunpack.i.l.bf16 %v13646_v23  ;;  %v13863_v4 = vpack.i.bf16 %v9590_v30, %v9398_v40 }
  0xe7   : > { %11255 = vrot.lane.b32.xlu0 %v13192_v48, %s12815_s19  ;;  %10558 = vmatprep.mubr.msk.bf16.mxu0 %vm930_vm9, %v1439_v27  ;;  %v12823_v48 = vmov 0.0  }
  0xe8   : > { %10559 = vmatmul.mubr.msk.bf16.vlgmr.msra.gmra.mxu0 %vm930_vm9, %v1440_v33  ;;  %v13662_v22 = vpop.permute.xlu1 %10980  ;;  %367 = vst.msk [vmem:[#allocation2 + $0x20] sm:$0xff] %vm361_vm2, %v12823_v48  ;;  %362 = vst.msk [vmem:[#allocation2] sm:$0xff] %vm361_vm2, %v12823_v48  ;;  %v1382_v33 = vsel %vm823_vm1, %v9398_v40, %v10973_v37  ;;  %v1379_v36 = vsel %vm823_vm1, %v13508_v17, %v10967_v57 }
  0xe9   : > { %v13668_v45 = vpop.permute.xlu0 %10975  ;;  %10567 = vmatpush3.bf16.msra.mxu0 %v12995_v6  ;;  %365 = vst.msk [vmem:[#allocation2 + $0x10] sm:$0xff] %vm361_vm2, %v12823_v48  ;;  %369 = vst.msk [vmem:[#allocation2 + $0x30] sm:$0xff] %vm361_vm2, %v12823_v48  ;;  %v11279_v6 = vpack.i.bf16 %v13659_v11, %v13656_v20  ;;  %v10983_v1 = vunpack.i.h.bf16 %v13662_v22  ;;  %v10982_v46 = vunpack.i.l.bf16 %v13662_v22 }
  0xea   : > { %371 = vst.msk [vmem:[#allocation2 + $0x40] sm:$0xff] %vm361_vm2, %v12823_v48  ;;  %373 = vst.msk [vmem:[#allocation2 + $0x50] sm:$0xff] %vm361_vm2, %v12823_v48  ;;  %11270 = vrot.lane.b32.xlu1 %v13580_v0, %s12819_s23  ;;  %10568 = vmatprep.subr.bf16.mxu0 %v13332_v61  ;;  %v10978_v5 = vunpack.i.h.bf16 %v13668_v45  ;;  %v10977_v14 = vunpack.i.l.bf16 %v13668_v45 }
  0xeb   : > { %375 = vst.msk [vmem:[#allocation2 + $0x60] sm:$0xff] %vm361_vm2, %v12823_v48  ;;  %377 = vst.msk [vmem:[#allocation2 + $0x70] sm:$0xff] %vm361_vm2, %v12823_v48  ;;  %11265 = vrot.lane.b32.xlu0 %v11264_v52, %s12818_s22  ;;  %v1390_v23 = vsel %vm361_vm2, %v1382_v33, %v10983_v1 }
  0xec   : > { %381 = vst.msk [vmem:[#allocation2 + $0x90] sm:$0xff] %vm361_vm2, %v12823_v48  ;;  %383 = vst.msk [vmem:[#allocation2 + $0xa0] sm:$0xff] %vm361_vm2, %v12823_v48  ;;  %v13789_v49 = vpop.permute.xlu1 %10990  ;;  %v1387_v52 = vsel %vm361_vm2, %v1379_v36, %v10977_v14 }
  0xed   : > { %385 = vst.msk [vmem:[#allocation2 + $0xb0] sm:$0xff] %vm361_vm2, %v12823_v48  ;;  %387 = vst.msk [vmem:[#allocation2 + $0xc0] sm:$0xff] %vm361_vm2, %v12823_v48  ;;  %v13791_v0 = vpop.permute.xlu0 %10985  ;;  %10569 = vmatpush3.bf16.msra.mxu0 %v13332_v61  ;;  %v9520_v61 = vld [vmem:[%s12897_s18 + $0xf0] sm:$0xff]  ;;  %v10993_v59 = vunpack.i.h.bf16 %v13789_v49  ;;  %v10992_v31 = vunpack.i.l.bf16 %v13789_v49 }
  0xee   : > { %389 = vst.msk [vmem:[#allocation2 + $0xd0] sm:$0xff] %vm361_vm2, %v12823_v48  ;;  %391 = vst.msk [vmem:[#allocation2 + $0xe0] sm:$0xff] %vm361_vm2, %v12823_v48  ;;  %11280 = vrot.lane.b32.xlu1 %v11279_v6, %s12818_s22  ;;  %10570 = vmatprep.subr.bf16.mxu0 %v13357_v2  ;;  %v11309_v35 = vpack.i.bf16 %v9520_v61, %v13804_v47  ;;  %v10988_v50 = vunpack.i.h.bf16 %v13791_v0 }
  0xef   : > { %393 = vst.msk [vmem:[#allocation2 + $0xf0] sm:$0xff] %vm361_vm2, %v12823_v48  ;;  %395 = vst.msk [vmem:[#allocation2 + $0x100] sm:$0xff] %vm361_vm2, %v12823_v48  ;;  %11275 = vrot.lane.b32.xlu0 %v11274_v13, %s12817_s21  ;;  %v1398_v17 = vsel %vm840_vm3, %v1390_v23, %v10993_v59 }
  0xf0   : > { %399 = vst.msk [vmem:[#allocation2 + $0x120] sm:$0xff] %vm361_vm2, %v12823_v48  ;;  %401 = vst.msk [vmem:[#allocation2 + $0x130] sm:$0xff] %vm361_vm2, %v12823_v48  ;;  %v13807_v19 = vpop.permute.xlu1 %11000 }
  0xf1   : > { %403 = vst.msk [vmem:[#allocation2 + $0x140] sm:$0xff] %vm361_vm2, %v12823_v48  ;;  %405 = vst.msk [vmem:[#allocation2 + $0x150] sm:$0xff] %vm361_vm2, %v12823_v48  ;;  %v13814_v25 = vpop.permute.xlu0 %10995  ;;  %10571 = vmatpush3.bf16.msra.mxu0 %v13357_v2  ;;  %v10972_v2 = vunpack.i.l.bf16 %v13638_v58  ;;  %v1380_v58 = vsel %vm823_vm1, %v9396_v29, %v10968_v54  ;;  %v11003_v11 = vunpack.i.h.bf16 %v13807_v19  ;;  %v11002_v22 = vunpack.i.l.bf16 %v13807_v19 }
  0xf2   : > { %407 = vst.msk [vmem:[#allocation2 + $0x160] sm:$0xff] %vm361_vm2, %v12823_v48  ;;  %409 = vst.msk [vmem:[#allocation2 + $0x170] sm:$0xff] %vm361_vm2, %v12823_v48  ;;  %11290 = vrot.lane.b32.xlu1 %v11289_v18, %s12820_s24  ;;  %10572 = vmatprep.subr.bf16.mxu0 %v13399_v16  ;;  %v1388_v20 = vsel %vm361_vm2, %v1380_v58, %v10978_v5  ;;  %v10998_v45 = vunpack.i.h.bf16 %v13814_v25  ;;  %v10997_v6 = vunpack.i.l.bf16 %v13814_v25  ;;  %v9598_v58 = vld [vmem:[%s12897_s18 + $0x230] sm:$0xff] }
  0xf3   : > { %411 = vst.msk [vmem:[#allocation2 + $0x180] sm:$0xff] %vm361_vm2, %v12823_v48  ;;  %413 = vst.msk [vmem:[#allocation2 + $0x190] sm:$0xff] %vm361_vm2, %v12823_v48  ;;  %11285 = vrot.lane.b32.xlu0 %v11274_v13, %s12819_s23  ;;  %v1381_v55 = vsel %vm823_vm1, %v9397_v3, %v10972_v2  ;;  %v1396_v49 = vsel %vm840_vm3, %v1388_v20, %v10988_v50  ;;  %v1406_v61 = vsel %vm435_vm4, %v1398_v17, %v11003_v11  ;;  %v9603_v11 = vld [vmem:[%s12897_s18 + $0x51] sm:$0xff] }
  0xf4   : > { %415 = vst.msk [vmem:[#allocation2 + $0x1a0] sm:$0xff] %vm361_vm2, %v12823_v48  ;;  %417 = vst.msk [vmem:[#allocation2 + $0x1b0] sm:$0xff] %vm361_vm2, %v12823_v48  ;;  %v11011_v63 = vpop.permute.xlu1 %11010  ;;  %v1389_v60 = vsel %vm361_vm2, %v1381_v55, %v10982_v46  ;;  %v1404_v25 = vsel %vm435_vm4, %v1396_v49, %v10998_v45 }
  0xf5   : > { %419 = vst.msk [vmem:[#allocation2 + $0x1c0] sm:$0xff] %vm361_vm2, %v12823_v48  ;;  %421 = vst.msk [vmem:[#allocation2 + $0x1d0] sm:$0xff] %vm361_vm2, %v12823_v48  ;;  %v11006_v7 = vpop.permute.xlu0 %11005  ;;  %10573 = vmatpush3.bf16.msra.mxu0 %v13399_v16  ;;  %v10987_v16 = vunpack.i.l.bf16 %v13791_v0  ;;  %v1397_v44 = vsel %vm840_vm3, %v1389_v60, %v10992_v31  ;;  %v11013_v0 = vunpack.i.h.bf16 %v11011_v63  ;;  %v11012_v18 = vunpack.i.l.bf16 %v11011_v63 }
  0xf6   : > { %423 = vst.msk [vmem:[#allocation2 + $0x1e0] sm:$0xff] %vm361_vm2, %v12823_v48  ;;  %425 = vst.msk [vmem:[#allocation2 + $0x1f0] sm:$0xff] %vm361_vm2, %v12823_v48  ;;  %11300 = vrot.lane.b32.xlu1 %v11299_v26, %s12819_s23  ;;  %10574 = vmatprep.subr.bf16.mxu0 %v13441_v62  ;;  %v11008_v24 = vunpack.i.h.bf16 %v11006_v7  ;;  %v1405_v47 = vsel %vm435_vm4, %v1397_v44, %v11002_v22  ;;  %v9604_v22 = vld [vmem:[%s12897_s18 + $0x61] sm:$0xff] }
  0xf7   : > { %427 = vst.msk [vmem:[#allocation2 + $0x200] sm:$0xff] %vm361_vm2, %v12823_v48  ;;  %429 = vst.msk [vmem:[#allocation2 + $0x210] sm:$0xff] %vm361_vm2, %v12823_v48  ;;  %11295 = vrot.lane.b32.xlu0 %v11294_v34, %s12818_s22  ;;  %v1395_v13 = vsel %vm840_vm3, %v1387_v52, %v10987_v16  ;;  %v1413_v34 = vsel %vm857_vm5, %v1405_v47, %v11012_v18  ;;  %v9597_v16 = vld [vmem:[%s12897_s18 + $0x220] sm:$0xff]  ;;  %v11354_v39 = vpack.i.bf16 %v9604_v22, %v9603_v11  ;;  %v9462_v47 = vld [vmem:[%s12897_s18 + $0x4b0] sm:$0xff] }
  0xf8   : > { %431 = vst.msk [vmem:[#allocation2 + $0x220] sm:$0xff] %vm361_vm2, %v12823_v48  ;;  %433 = vst.msk [vmem:[#allocation2 + $0x230] sm:$0xff] %vm361_vm2, %v12823_v48  ;;  %v11021_v27 = vpop.permute.xlu1 %11020  ;;  %v1403_v29 = vsel %vm435_vm4, %v1395_v13, %v10997_v6  ;;  %v11349_v21 = vpack.i.bf16 %v9598_v58, %v9597_v16 }
  0xf9   : > { %436 = vst.msk [vmem:[#allocation3] sm:$0xff] %vm435_vm4, %v12823_v48  ;;  %439 = vst.msk [vmem:[#allocation3 + $0x10] sm:$0xff] %vm435_vm4, %v12823_v48  ;;  %v11016_v43 = vpop.permute.xlu0 %11015  ;;  %10575 = vmatpush3.bf16.msra.mxu0 %v13441_v62  ;;  %v11007_v62 = vunpack.i.l.bf16 %v11006_v7  ;;  %v11023_v51 = vunpack.i.h.bf16 %v11021_v27  ;;  %v11022_v53 = vunpack.i.l.bf16 %v11021_v27 }
  0xfa   : > { %441 = vst.msk [vmem:[#allocation3 + $0x20] sm:$0xff] %vm435_vm4, %v12823_v48  ;;  %443 = vst.msk [vmem:[#allocation3 + $0x30] sm:$0xff] %vm435_vm4, %v12823_v48  ;;  %11310 = vrot.lane.b32.xlu1 %v11309_v35, %s12821_s25  ;;  %v11018_v19 = vunpack.i.h.bf16 %v11016_v43  ;;  %v11017_v9 = vunpack.i.l.bf16 %v11016_v43  ;;  %v1414_v35 = vsel %vm857_vm5, %v1406_v61, %v11013_v0 }
  0xfb   : > { %445 = vst.msk [vmem:[#allocation3 + $0x40] sm:$0xff] %vm435_vm4, %v12823_v48  ;;  %447 = vst.msk [vmem:[#allocation3 + $0x50] sm:$0xff] %vm435_vm4, %v12823_v48  ;;  %11305 = vrot.lane.b32.xlu0 %v11304_v15, %s12820_s24  ;;  %v1411_v2 = vsel %vm857_vm5, %v1403_v29, %v11007_v62  ;;  %v1412_v15 = vsel %vm857_vm5, %v1404_v25, %v11008_v24  ;;  %v1421_v30 = vsel %vm866_vm6, %v1413_v34, %v11022_v53  ;;  %v9536_v34 = vld [vmem:[%s12897_s18 + $0x5b0] sm:$0xff] }
  0xfc   : > { %449 = vst.msk [vmem:[#allocation3 + $0x60] sm:$0xff] %vm435_vm4, %v12823_v48  ;;  %451 = vst.msk [vmem:[#allocation3 + $0x70] sm:$0xff] %vm435_vm4, %v12823_v48  ;;  %v11031_v56 = vpop.permute.xlu1 %11030  ;;  %v1422_v40 = vsel %vm866_vm6, %v1414_v35, %v11023_v51  ;;  %v1419_v57 = vsel %vm866_vm6, %v1411_v2, %v11017_v9  ;;  %v1420_v1 = vsel %vm866_vm6, %v1412_v15, %v11018_v19  ;;  %v9459_v9 = vld [vmem:[%s12897_s18 + $0x480] sm:$0xff] }
  0xfd   : > { %453 = vst.msk [vmem:[#allocation3 + $0x80] sm:$0xff] %vm435_vm4, %v12823_v48  ;;  %455 = vst.msk [vmem:[#allocation3 + $0x90] sm:$0xff] %vm435_vm4, %v12823_v48  ;;  %v11026_v3 = vpop.permute.xlu0 %11025  ;;  %v11033_v41 = vunpack.i.h.bf16 %v11031_v56  ;;  %v11032_v26 = vunpack.i.l.bf16 %v11031_v56  ;;  %v9461_v56 = vld [vmem:[%s12897_s18 + $0x4a0] sm:$0xff] }
  0xfe   : > { %457 = vst.msk [vmem:[#allocation3 + $0xa0] sm:$0xff] %vm435_vm4, %v12823_v48  ;;  %459 = vst.msk [vmem:[#allocation3 + $0xb0] sm:$0xff] %vm435_vm4, %v12823_v48  ;;  %11320 = vrot.lane.b32.xlu1 %v13837_v42, %s12820_s24  ;;  %v11028_v38 = vunpack.i.h.bf16 %v11026_v3  ;;  %v11027_v37 = vunpack.i.l.bf16 %v11026_v3  ;;  %v9460_v3 = vld [vmem:[%s12897_s18 + $0x490] sm:$0xff] }
  0xff   : > { %461 = vst.msk [vmem:[#allocation3 + $0xc0] sm:$0xff] %vm435_vm4, %v12823_v48  ;;  %463 = vst.msk [vmem:[#allocation3 + $0xd0] sm:$0xff] %vm435_vm4, %v12823_v48  ;;  %11315 = vrot.lane.b32.xlu0 %v11314_v28, %s12819_s23  ;;  %v1429_v14 = vsel %vm875_vm7, %v1421_v30, %v11032_v26  ;;  %v1430_v7 = vsel %vm875_vm7, %v1422_v40, %v11033_v41  ;;  %v9535_v26 = vld [vmem:[%s12897_s18 + $0x5a0] sm:$0xff] }
 0x100   : > { %465 = vst.msk [vmem:[#allocation3 + $0xe0] sm:$0xff] %vm435_vm4, %v12823_v48  ;;  %467 = vst.msk [vmem:[#allocation3 + $0xf0] sm:$0xff] %vm435_vm4, %v12823_v48  ;;  %v11041_v54 = vpop.permute.xlu1 %11040  ;;  %v1427_v31 = vsel %vm875_vm7, %v1419_v57, %v11027_v37  ;;  %v1428_v33 = vsel %vm875_vm7, %v1420_v1, %v11028_v38 }
 0x101   : > { %469 = vst.msk [vmem:[#allocation3 + $0x100] sm:$0xff] %vm435_vm4, %v12823_v48  ;;  %471 = vst.msk [vmem:[#allocation3 + $0x110] sm:$0xff] %vm435_vm4, %v12823_v48  ;;  %v11043_v46 = vunpack.i.h.bf16 %v11041_v54  ;;  %v11042_v63 = vunpack.i.l.bf16 %v11041_v54  ;;  %v11036_v5 = vpop.permute.xlu0 %11035 }
 0x102   : > { %473 = vst.msk [vmem:[#allocation3 + $0x120] sm:$0xff] %vm435_vm4, %v12823_v48  ;;  %475 = vst.msk [vmem:[#allocation3 + $0x130] sm:$0xff] %vm435_vm4, %v12823_v48  ;;  %v11038_v28 = vunpack.i.h.bf16 %v11036_v5  ;;  %v11037_v59 = vunpack.i.l.bf16 %v11036_v5  ;;  %11330 = vrot.lane.b32.xlu1 %v13837_v42, %s12822_s26 }
 0x103   : > { %v1437_v55 = vsel %vm884_vm8, %v1429_v14, %v11042_v63  ;;  %v1438_v50 = vsel %vm884_vm8, %v1430_v7, %v11043_v46  ;;  %11325 = vrot.lane.b32.xlu0 %v11324_v32, %s12821_s25  ;;  %v9606_v32 = vld [vmem:[%s12897_s18 + $0x81] sm:$0xff]  ;;  %386 = vst.msk [vmem:[#allocation2 + $0xb8] sm:$0x1] %vm363_vm10, %v12823_v48  ;;  %382 = vst.msk [vmem:[#allocation2 + $0x98] sm:$0x1] %vm363_vm10, %v12823_v48 }
 0x104   : > { %v1435_v42 = vsel %vm884_vm8, %v1427_v31, %v11037_v59  ;;  %v1436_v36 = vsel %vm884_vm8, %v1428_v33, %v11038_v28  ;;  %v13920_v60 = vpop.permute.xlu1 %11050  ;;  %v1442_v23 = vpack.c.bf16 %v1438_v50, %v1437_v55  ;;  %v11359_v10 = vpack.i.bf16 %v9606_v32, %v9605_v8  ;;  %384 = vst.msk [vmem:[#allocation2 + $0xa8] sm:$0x1] %vm363_vm10, %v12823_v48 }
 0x105   : > { %v13922_v27 = vpop.permute.xlu0 %11045  ;;  %v1441_v52 = vpack.c.bf16 %v1436_v36, %v1435_v42  ;;  %388 = vst.msk [vmem:[#allocation2 + $0xc8] sm:$0x1] %vm363_vm10, %v12823_v48  ;;  %390 = vst.msk [vmem:[#allocation2 + $0xd8] sm:$0x1] %vm363_vm10, %v12823_v48  ;;  %v11053_v51 = vunpack.i.h.bf16 %v13920_v60  ;;  %v11052_v53 = vunpack.i.l.bf16 %v13920_v60  ;;  %v9537_v42 = vld [vmem:[%s12897_s18 + $0x5c0] sm:$0xff]  ;;  %v9538_v36 = vld [vmem:[%s12897_s18 + $0x5d0] sm:$0xff] }
 0x106   : > { %11340 = vrot.lane.b32.xlu1 %v11339_v12, %s12821_s25  ;;  %392 = vst.msk [vmem:[#allocation2 + $0xe8] sm:$0x1] %vm363_vm10, %v12823_v48  ;;  %394 = vst.msk [vmem:[#allocation2 + $0xf8] sm:$0x1] %vm363_vm10, %v12823_v48  ;;  %v11048_v61 = vunpack.i.h.bf16 %v13922_v27  ;;  %v11047_v19 = vunpack.i.l.bf16 %v13922_v27 }
 0x107   : > { %11335 = vrot.lane.b32.xlu0 %v13863_v4, %s12820_s24  ;;  %10562 = vmatprep.mubr.msk.bf16.mxu0 %vm930_vm9, %v1441_v52  ;;  %396 = vst.msk [vmem:[#allocation2 + $0x108] sm:$0x1] %vm363_vm10, %v12823_v48  ;;  %418 = vst.msk [vmem:[#allocation2 + $0x1b8] sm:$0x1] %vm363_vm10, %v12823_v48  ;;  %v1890_v2 = vsel %vm823_vm1, %v9462_v47, %v11053_v51  ;;  %v1889_v15 = vsel %vm823_vm1, %v9461_v56, %v11052_v53 }
 0x108   : > { %10563 = vmatmul.mubr.msk.bf16.gmra.mxu0 %vm930_vm9, %v1442_v23  ;;  %v13934_v20 = vpop.permute.xlu1 %11060  ;;  %420 = vst.msk [vmem:[#allocation2 + $0x1c8] sm:$0x1] %vm363_vm10, %v12823_v48  ;;  %422 = vst.msk [vmem:[#allocation2 + $0x1d8] sm:$0x1] %vm363_vm10, %v12823_v48  ;;  %v1888_v54 = vsel %vm823_vm1, %v9460_v3, %v11048_v61  ;;  %v1887_v57 = vsel %vm823_vm1, %v9459_v9, %v11047_v19 }
 0x109   : > { %v13938_v43 = vpop.permute.xlu0 %11055  ;;  %424 = vst.msk [vmem:[#allocation2 + $0x1e8] sm:$0x1] %vm363_vm10, %v12823_v48  ;;  %426 = vst.msk [vmem:[#allocation2 + $0x1f8] sm:$0x1] %vm363_vm10, %v12823_v48  ;;  %v11063_v29 = vunpack.i.h.bf16 %v13934_v20  ;;  %v11062_v25 = vunpack.i.l.bf16 %v13934_v20 }
 0x10a   : > { %11350 = vrot.lane.b32.xlu1 %v11349_v21, %s12821_s25  ;;  %428 = vst.msk [vmem:[#allocation2 + $0x208] sm:$0x1] %vm363_vm10, %v12823_v48  ;;  %430 = vst.msk [vmem:[#allocation2 + $0x218] sm:$0x1] %vm363_vm10, %v12823_v48  ;;  %v11058_v35 = vunpack.i.h.bf16 %v13938_v43  ;;  %v11057_v38 = vunpack.i.l.bf16 %v13938_v43 }
 0x10b   : > { %11345 = vrot.lane.b32.xlu0 %v13863_v4, %s12822_s26  ;;  %432 = vst.msk [vmem:[#allocation2 + $0x228] sm:$0x1] %vm363_vm10, %v12823_v48  ;;  %434 = vst.msk [vmem:[#allocation2 + $0x238] sm:$0x1] %vm363_vm10, %v12823_v48  ;;  %v2396_v63 = vsel %vm823_vm1, %v9536_v34, %v11063_v29  ;;  %v2395_v5 = vsel %vm823_vm1, %v9535_v26, %v11062_v25 }
 0x10c   : > { %v13943_v12 = vpop.permute.xlu1 %11070  ;;  %v1895_v59 = vsel %vm361_vm2, %v1887_v57, %v11057_v38  ;;  %v1896_v31 = vsel %vm361_vm2, %v1888_v54, %v11058_v35 }
 0x10d   : > { %v13945_v44 = vpop.permute.xlu0 %11065  ;;  %v11073_v30 = vunpack.i.h.bf16 %v13943_v12  ;;  %v11072_v40 = vunpack.i.l.bf16 %v13943_v12 }
 0x10e   : > { %11360 = vrot.lane.b32.xlu1 %v11359_v10, %s12822_s26  ;;  %v11068_v1 = vunpack.i.h.bf16 %v13945_v44  ;;  %v11067_v46 = vunpack.i.l.bf16 %v13945_v44 }
 0x10f   : > { %11355 = vrot.lane.b32.xlu0 %v11354_v39, %s12822_s26  ;;  %v1903_v16 = vsel %vm840_vm3, %v1895_v59, %v11072_v40  ;;  %v1904_v58 = vsel %vm840_vm3, %v1896_v31, %v11073_v30 }
 0x110   : > { %v13949_v17 = vpop.permute.xlu1 %11080  ;;  %v1898_v27 = vsel %vm361_vm2, %v1890_v2, %v11068_v1  ;;  %v1897_v52 = vsel %vm361_vm2, %v1889_v15, %v11067_v46 }
 0x111   : > { %v13951_v45 = vpop.permute.xlu0 %11075  ;;  %v11083_v14 = vunpack.i.h.bf16 %v13949_v17  ;;  %v11082_v7 = vunpack.i.l.bf16 %v13949_v17 }
 0x112   : > { %v11078_v33 = vunpack.i.h.bf16 %v13951_v45  ;;  %v11077_v55 = vunpack.i.l.bf16 %v13951_v45 }
 0x113   : > { %v2403_v32 = vsel %vm361_vm2, %v2395_v5, %v11082_v7  ;;  %v2404_v20 = vsel %vm361_vm2, %v2396_v63, %v11083_v14 }
 0x114   : > { %v13953_v6 = vpop.permute.xlu1 %11090  ;;  %v2398_v10 = vsel %vm823_vm1, %v9538_v36, %v11078_v33  ;;  %v2397_v39 = vsel %vm823_vm1, %v9537_v42, %v11077_v55 }
 0x115   : > { %v13955_v13 = vpop.permute.xlu0 %11085  ;;  %v11093_v60 = vunpack.i.h.bf16 %v13953_v6  ;;  %v11092_v23 = vunpack.i.l.bf16 %v13953_v6 }
 0x116   : > { %v11088_v21 = vunpack.i.h.bf16 %v13955_v13  ;;  %v11087_v8 = vunpack.i.l.bf16 %v13955_v13 }
 0x117   : > { %v1911_v45 = vsel %vm435_vm4, %v1903_v16, %v11092_v23  ;;  %v1912_v6 = vsel %vm435_vm4, %v1904_v58, %v11093_v60 }
 0x118   : > { %v13991_v4 = vpop.permute.xlu1 %11100  ;;  %v1906_v53 = vsel %vm840_vm3, %v1898_v27, %v11088_v21 }
 0x119   : > { %v13993_v49 = vpop.permute.xlu0 %11095  ;;  %v11103_v11 = vunpack.i.h.bf16 %v13991_v4  ;;  %v11102_v22 = vunpack.i.l.bf16 %v13991_v4  ;;  %v1905_v4 = vsel %vm840_vm3, %v1897_v52, %v11087_v8 }
 0x11a   : > { %v11098_v12 = vunpack.i.h.bf16 %v13993_v49  ;;  %v11097_v44 = vunpack.i.l.bf16 %v13993_v49 }
 0x11b   : > { %v2411_v49 = vsel %vm840_vm3, %v2403_v32, %v11102_v22  ;;  %v2412_v61 = vsel %vm840_vm3, %v2404_v20, %v11103_v11 }
 0x11c   : > { %v13995_v0 = vpop.permute.xlu1 %11110  ;;  %v2405_v29 = vsel %vm361_vm2, %v2397_v39, %v11097_v44 }
 0x11d   : > { %v13997_v18 = vpop.permute.xlu0 %11105  ;;  %v11113_v13 = vunpack.i.h.bf16 %v13995_v0  ;;  %v11112_v51 = vunpack.i.l.bf16 %v13995_v0  ;;  %v2406_v0 = vsel %vm361_vm2, %v2398_v10, %v11098_v12 }
 0x11e   : > { %v11108_v56 = vunpack.i.h.bf16 %v13997_v18  ;;  %v11107_v47 = vunpack.i.l.bf16 %v13997_v18 }
 0x11f   : > { %v1919_v18 = vsel %vm857_vm5, %v1911_v45, %v11112_v51  ;;  %v1920_v35 = vsel %vm857_vm5, %v1912_v6, %v11113_v13 }
 0x120   : > { %v13999_v24 = vpop.permute.xlu1 %11120  ;;  %v1913_v15 = vsel %vm435_vm4, %v1905_v4, %v11107_v47 }
 0x121   : > { %v14001_v62 = vpop.permute.xlu0 %11115  ;;  %v11123_v19 = vunpack.i.h.bf16 %v13999_v24  ;;  %v11122_v9 = vunpack.i.l.bf16 %v13999_v24  ;;  %v1914_v24 = vsel %vm435_vm4, %v1906_v53, %v11108_v56 }
 0x122   : > { %v11118_v30 = vunpack.i.h.bf16 %v14001_v62  ;;  %v11117_v40 = vunpack.i.l.bf16 %v14001_v62 }
 0x123   : > { %v2419_v54 = vsel %vm435_vm4, %v2411_v49, %v11122_v9 }
 0x124   : > { %v14013_v41 = vpop.permute.xlu1 %11130  ;;  %v2413_v36 = vsel %vm840_vm3, %v2405_v29, %v11117_v40  ;;  %v2414_v52 = vsel %vm840_vm3, %v2406_v0, %v11118_v30 }
 0x125   : > { %v14019_v37 = vpop.permute.xlu0 %11125  ;;  %v11133_v25 = vunpack.i.h.bf16 %v14013_v41  ;;  %v11132_v26 = vunpack.i.l.bf16 %v14013_v41  ;;  %v2420_v41 = vsel %vm435_vm4, %v2412_v61, %v11123_v19 }
 0x126   : > { %v11128_v57 = vunpack.i.h.bf16 %v14019_v37  ;;  %v11127_v1 = vunpack.i.l.bf16 %v14019_v37 }
 0x127   : > { %v1927_v63 = vsel %vm866_vm6, %v1919_v18, %v11132_v26  ;;  %v1928_v5 = vsel %vm866_vm6, %v1920_v35, %v11133_v25 }
 0x128   : > { %v14033_v28 = vpop.permute.xlu1 %11140  ;;  %v1922_v11 = vsel %vm857_vm5, %v1914_v24, %v11128_v57 }
 0x129   : > { %v14039_v50 = vpop.permute.xlu0 %11135  ;;  %v11143_v31 = vunpack.i.h.bf16 %v14033_v28  ;;  %v11142_v62 = vunpack.i.l.bf16 %v14033_v28 }
 0x12a   : > { %v11138_v16 = vunpack.i.h.bf16 %v14039_v50  ;;  %v11137_v37 = vunpack.i.l.bf16 %v14039_v50  ;;  %v1921_v50 = vsel %vm857_vm5, %v1913_v15, %v11127_v1 }
 0x12b   : > { %v2427_v22 = vsel %vm857_vm5, %v2419_v54, %v11142_v62 }
 0x12c   : > { %v11151_v43 = vpop.permute.xlu1 %11150  ;;  %v2421_v10 = vsel %vm435_vm4, %v2413_v36, %v11137_v37  ;;  %v2422_v39 = vsel %vm435_vm4, %v2414_v52, %v11138_v16 }
 0x12d   : > { %v14059_v17 = vpop.permute.xlu0 %11145  ;;  %v11153_v38 = vunpack.i.h.bf16 %v11151_v43  ;;  %v11152_v2 = vunpack.i.l.bf16 %v11151_v43  ;;  %v2428_v43 = vsel %vm857_vm5, %v2420_v41, %v11143_v31 }
 0x12e   : > { %v11148_v60 = vunpack.i.h.bf16 %v14059_v17  ;;  %v11147_v23 = vunpack.i.l.bf16 %v14059_v17 }
 0x12f   : > { %v1935_v33 = vsel %vm875_vm7, %v1927_v63, %v11152_v2  ;;  %v1936_v55 = vsel %vm875_vm7, %v1928_v5, %v11153_v38 }
 0x130   : > { %v11161_v3 = vpop.permute.xlu1 %11160  ;;  %v1929_v17 = vsel %vm866_vm6, %v1921_v50, %v11147_v23  ;;  %v1930_v45 = vsel %vm866_vm6, %v1922_v11, %v11148_v60 }
 0x131   : > { %v14077_v34 = vpop.permute.xlu0 %11155  ;;  %v11163_v21 = vunpack.i.h.bf16 %v11161_v3  ;;  %v11162_v8 = vunpack.i.l.bf16 %v11161_v3 }
 0x132   : > { %v11157_v32 = vunpack.i.l.bf16 %v14077_v34  ;;  %v11158_v6 = vunpack.i.h.bf16 %v14077_v34 }
 0x133   : > { %v2435_v47 = vsel %vm866_vm6, %v2427_v22, %v11162_v8  ;;  %v2436_v49 = vsel %vm866_vm6, %v2428_v43, %v11163_v21  ;;  %v9465_v22 = vld [vmem:[%s12897_s18 + $0x4e0] sm:$0xff]  ;;  %v9466_v43 = vld [vmem:[%s12897_s18 + $0x4f0] sm:$0xff] }
 0x134   : > { %v11171_v46 = vpop.permute.xlu1 %11170  ;;  %v2429_v4 = vsel %vm857_vm5, %v2421_v10, %v11157_v32  ;;  %v2430_v34 = vsel %vm857_vm5, %v2422_v39, %v11158_v6  ;;  %v9464_v10 = vld [vmem:[%s12897_s18 + $0x4d0] sm:$0xff] }
 0x135   : > { %v11173_v14 = vunpack.i.h.bf16 %v11171_v46  ;;  %v11172_v7 = vunpack.i.l.bf16 %v11171_v46  ;;  %v11166_v59 = vpop.permute.xlu0 %11165 }
 0x136   : > { %v11168_v12 = vunpack.i.h.bf16 %v11166_v59  ;;  %v11167_v44 = vunpack.i.l.bf16 %v11166_v59 }
 0x137   : > { %v1943_v58 = vsel %vm884_vm8, %v1935_v33, %v11172_v7  ;;  %v1944_v42 = vsel %vm884_vm8, %v1936_v55, %v11173_v14 }
 0x138   : > { %v11181_v27 = vpop.permute.xlu1 %11180  ;;  %v1951_v28 = vpack.c.bf16 %v1944_v42, %v1943_v58  ;;  %v1937_v29 = vsel %vm875_vm7, %v1929_v17, %v11167_v44  ;;  %v1938_v0 = vsel %vm875_vm7, %v1930_v45, %v11168_v12  ;;  %v9463_v44 = vld [vmem:[%s12897_s18 + $0x4c0] sm:$0xff] }
 0x139   : > { %v11176_v20 = vpop.permute.xlu0 %11175  ;;  %v11183_v25 = vunpack.i.h.bf16 %v11181_v27  ;;  %v11182_v26 = vunpack.i.l.bf16 %v11181_v27 }
 0x13a   : > { %10576 = vmatprep.mubr.msk.bf16.mxu0 %vm930_vm9, %v1951_v28  ;;  %v11177_v13 = vunpack.i.l.bf16 %v11176_v20  ;;  %v11178_v53 = vunpack.i.h.bf16 %v11176_v20 }
 0x13b   : > { %v2443_v14 = vsel %vm875_vm7, %v2435_v47, %v11182_v26  ;;  %v2444_v7 = vsel %vm875_vm7, %v2436_v49, %v11183_v25 }
 0x13c   : > { %v11191_v51 = vpop.permute.xlu1 %11190  ;;  %v2437_v18 = vsel %vm866_vm6, %v2429_v4, %v11177_v13  ;;  %v2438_v15 = vsel %vm866_vm6, %v2430_v34, %v11178_v53 }
 0x13d   : > { %v11186_v56 = vpop.permute.xlu0 %11185  ;;  %v11193_v61 = vunpack.i.h.bf16 %v11191_v51  ;;  %v11192_v19 = vunpack.i.l.bf16 %v11191_v51 }
 0x13e   : > { %v11188_v9 = vunpack.i.h.bf16 %v11186_v56  ;;  %v11187_v3 = vunpack.i.l.bf16 %v11186_v56 }
 0x13f   : > { %v2445_v41 = vsel %vm875_vm7, %v2437_v18, %v11192_v19  ;;  %v2446_v57 = vsel %vm875_vm7, %v2438_v15, %v11193_v61  ;;  %v12803_v19 = vld [vmem:[%s12897_s18 + $0x5f0] sm:$0xff] }
 0x140   : > { %v1945_v35 = vsel %vm884_vm8, %v1937_v29, %v11187_v3  ;;  %v1946_v38 = vsel %vm884_vm8, %v1938_v0, %v11188_v9  ;;  %v11201_v2 = vpop.permute.xlu1 %11200  ;;  %v12804_v0 = vld [vmem:[%s12897_s18 + $0x5e0] sm:$0xff] }
 0x141   : > { %v1952_v24 = vpack.c.bf16 %v1946_v38, %v1945_v35  ;;  %v11203_v30 = vunpack.i.h.bf16 %v11201_v2  ;;  %v11202_v40 = vunpack.i.l.bf16 %v11201_v2  ;;  %v11196_v54 = vpop.permute.xlu0 %11195 }
 0x142   : > { %v11198_v1 = vunpack.i.h.bf16 %v11196_v54  ;;  %v11197_v46 = vunpack.i.l.bf16 %v11196_v54 }
 0x143   : > { %v2453_v63 = vsel %vm884_vm8, %v2445_v41, %v11202_v40  ;;  %v2454_v5 = vsel %vm884_vm8, %v2446_v57, %v11203_v30  ;;  %10577 = vmatmul.mubr.msk.bf16.vlgmr.msra.gmra.mxu0 %vm930_vm9, %v1952_v24 }
 0x144   : > { %v11211_v59 = vpop.permute.xlu1 %11210  ;;  %v2451_v31 = vsel %vm884_vm8, %v2443_v14, %v11197_v46  ;;  %v2452_v62 = vsel %vm884_vm8, %v2444_v7, %v11198_v1  ;;  %v2460_v33 = vpack.c.bf16 %v2454_v5, %v2453_v63  ;;  %v14177_v1 = vld [vmem:[%s16899_s2] ss:$0 sm:$0xff] }
 0x145   : > { %v11206_v55 = vpop.permute.xlu0 %11205  ;;  %v2459_v16 = vpack.c.bf16 %v2452_v62, %v2451_v31  ;;  %v11213_v20 = vunpack.i.h.bf16 %v11211_v59  ;;  %v11212_v50 = vunpack.i.l.bf16 %v11211_v59 }
 0x146   : > { %v11208_v11 = vunpack.i.h.bf16 %v11206_v55  ;;  %v11207_v39 = vunpack.i.l.bf16 %v11206_v55 }
 0x147   : > { %10594 = vmatprep.mubr.msk.bf16.mxu1 %vm930_vm9, %v2459_v16  ;;  %v1894_v53 = vsel %vm823_vm1, %v9466_v43, %v11213_v20  ;;  %v1893_v56 = vsel %vm823_vm1, %v9465_v22, %v11212_v50  ;;  %v12805_v16 = vld [vmem:[%s12897_s18 + $0x610] sm:$0xff] }
 0x148   : > { %10595 = vmatmul.mubr.msk.bf16.vlgmr.msra.gmra.mxu1 %vm930_vm9, %v2460_v33  ;;  %v11221_v37 = vpop.permute.xlu1 %11220  ;;  %v1892_v47 = vsel %vm823_vm1, %v9464_v10, %v11208_v11  ;;  %v1891_v61 = vsel %vm823_vm1, %v9463_v44, %v11207_v39 }
 0x149   : > { %v11216_v58 = vpop.permute.xlu0 %11215  ;;  %v11223_v12 = vunpack.i.h.bf16 %v11221_v37  ;;  %v11222_v17 = vunpack.i.l.bf16 %v11221_v37 }
 0x14a   : > { %v11217_v45 = vunpack.i.l.bf16 %v11216_v58  ;;  %v11218_v13 = vunpack.i.h.bf16 %v11216_v58  ;;  %v12806_v58 = vld [vmem:[%s12897_s18 + $0x600] sm:$0xff] }
 0x14b   : > { %v2400_v9 = vsel %vm823_vm1, %v12803_v19, %v11223_v12  ;;  %v2399_v25 = vsel %vm823_vm1, %v12804_v0, %v11222_v17 }
 0x14c   : > { %v11231_v42 = vpop.permute.xlu1 %11230  ;;  %v1899_v26 = vsel %vm361_vm2, %v1891_v61, %v11217_v45  ;;  %v1900_v38 = vsel %vm361_vm2, %v1892_v47, %v11218_v13 }
 0x14d   : > { %v11226_v36 = vpop.permute.xlu0 %11225  ;;  %v11232_v51 = vunpack.i.l.bf16 %v11231_v42  ;;  %v11233_v49 = vunpack.i.h.bf16 %v11231_v42 }
 0x14e   : > { %v11228_v3 = vunpack.i.h.bf16 %v11226_v36  ;;  %v11227_v29 = vunpack.i.l.bf16 %v11226_v36 }
 0x14f   : > { %v1907_v2 = vsel %vm840_vm3, %v1899_v26, %v11232_v51  ;;  %v1908_v40 = vsel %vm840_vm3, %v1900_v38, %v11233_v49 }
 0x150   : > { %v11241_v60 = vpop.permute.xlu1 %11240  ;;  %v1902_v46 = vsel %vm361_vm2, %v1894_v53, %v11228_v3  ;;  %v1901_v63 = vsel %vm361_vm2, %v1893_v56, %v11227_v29 }
 0x151   : > { %v11236_v23 = vpop.permute.xlu0 %11235  ;;  %v11243_v34 = vunpack.i.h.bf16 %v11241_v60  ;;  %v11242_v18 = vunpack.i.l.bf16 %v11241_v60 }
 0x152   : > { %v11238_v15 = vunpack.i.h.bf16 %v11236_v23  ;;  %v11237_v24 = vunpack.i.l.bf16 %v11236_v23 }
 0x153   : > { %v2407_v7 = vsel %vm361_vm2, %v2399_v25, %v11242_v18  ;;  %v2408_v59 = vsel %vm361_vm2, %v2400_v9, %v11243_v34 }
 0x154   : > { %v14135_v27 = vpop.permute.xlu1 %11250  ;;  %v2402_v37 = vsel %vm823_vm1, %v12805_v16, %v11238_v15  ;;  %v2401_v42 = vsel %vm823_vm1, %v12806_v58, %v11237_v24 }
 0x155   : > { %v14137_v28 = vpop.permute.xlu0 %11245  ;;  %v11253_v54 = vunpack.i.h.bf16 %v14135_v27  ;;  %v11252_v41 = vunpack.i.l.bf16 %v14135_v27 }
 0x156   : > { %v11247_v57 = vunpack.i.l.bf16 %v14137_v28  ;;  %v11248_v5 = vunpack.i.h.bf16 %v14137_v28 }
 0x157   : > { %v1915_v27 = vsel %vm435_vm4, %v1907_v2, %v11252_v41  ;;  %v1916_v28 = vsel %vm435_vm4, %v1908_v40, %v11253_v54 }
 0x158   : > { %v14139_v52 = vpop.permute.xlu1 %11260  ;;  %v1910_v11 = vsel %vm840_vm3, %v1902_v46, %v11248_v5 }
 0x159   : > { %v14141_v21 = vpop.permute.xlu0 %11255  ;;  %v11262_v14 = vunpack.i.l.bf16 %v14139_v52  ;;  %v11263_v31 = vunpack.i.h.bf16 %v14139_v52  ;;  %v1909_v52 = vsel %vm840_vm3, %v1901_v63, %v11247_v57 }
 0x15a   : > { %v11257_v62 = vunpack.i.l.bf16 %v14141_v21  ;;  %v11258_v36 = vunpack.i.h.bf16 %v14141_v21 }
 0x15b   : > { %v2415_v22 = vsel %vm840_vm3, %v2407_v7, %v11262_v14  ;;  %v2416_v21 = vsel %vm840_vm3, %v2408_v59, %v11263_v31 }
 0x15c   : > { %v14143_v8 = vpop.permute.xlu1 %11270  ;;  %v2409_v10 = vsel %vm361_vm2, %v2401_v42, %v11257_v62  ;;  %v2410_v45 = vsel %vm361_vm2, %v2402_v37, %v11258_v36 }
 0x15d   : > { %v14145_v32 = vpop.permute.xlu0 %11265  ;;  %v11272_v20 = vunpack.i.l.bf16 %v14143_v8  ;;  %v11273_v39 = vunpack.i.h.bf16 %v14143_v8 }
 0x15e   : > { %v11267_v13 = vunpack.i.l.bf16 %v14145_v32  ;;  %v11268_v49 = vunpack.i.h.bf16 %v14145_v32 }
 0x15f   : > { %v1923_v47 = vsel %vm857_vm5, %v1915_v27, %v11272_v20  ;;  %v1924_v29 = vsel %vm857_vm5, %v1916_v28, %v11273_v39 }
 0x160   : > { %v14151_v6 = vpop.permute.xlu1 %11280  ;;  %v1917_v32 = vsel %vm435_vm4, %v1909_v52, %v11267_v13  ;;  %v1918_v54 = vsel %vm435_vm4, %v1910_v11, %v11268_v49 }
 0x161   : > { %v14153_v4 = vpop.permute.xlu0 %11275  ;;  %v11283_v19 = vunpack.i.h.bf16 %v14151_v6  ;;  %v11282_v9 = vunpack.i.l.bf16 %v14151_v6 }
 0x162   : > { %v11277_v0 = vunpack.i.l.bf16 %v14153_v4  ;;  %v11278_v46 = vunpack.i.h.bf16 %v14153_v4 }
 0x163   : > { %v2423_v41 = vsel %vm435_vm4, %v2415_v22, %v11282_v9  ;;  %v2424_v57 = vsel %vm435_vm4, %v2416_v21, %v11283_v19 }
 0x164   : > { %v14164_v35 = vpop.permute.xlu1 %11290  ;;  %v2418_v28 = vsel %vm840_vm3, %v2410_v45, %v11278_v46 }
 0x165   : > { %v14168_v30 = vpop.permute.xlu0 %11285  ;;  %v11293_v18 = vunpack.i.h.bf16 %v14164_v35  ;;  %v11292_v38 = vunpack.i.l.bf16 %v14164_v35  ;;  %v2417_v35 = vsel %vm840_vm3, %v2409_v10, %v11277_v0 }
 0x166   : > { %v11288_v63 = vunpack.i.h.bf16 %v14168_v30  ;;  %v11287_v5 = vunpack.i.l.bf16 %v14168_v30 }
 0x167   : > { %v1931_v59 = vsel %vm866_vm6, %v1923_v47, %v11292_v38  ;;  %v1932_v31 = vsel %vm866_vm6, %v1924_v29, %v11293_v18 }
 0x168   : > { %v10542_v33 = vpop.f32.mrf.mxu0  ;;  %v14187_v55 = vpop.permute.xlu1 %11300  ;;  %v1925_v11 = vsel %vm857_vm5, %v1917_v32, %v11287_v5 }
 0x169   : > { %v990_v60 = vadd.f32 %v10542_v33, %v14177_v1  ;;  %v14195_v23 = vpop.permute.xlu0 %11295  ;;  %v11303_v37 = vunpack.i.h.bf16 %v14187_v55  ;;  %v11302_v4 = vunpack.i.l.bf16 %v14187_v55 }
 0x16a   : > { %v981_v50 = vpop.f32.mrf.mxu0  ;;  %v11298_v30 = vunpack.i.h.bf16 %v14195_v23  ;;  %v11297_v36 = vunpack.i.l.bf16 %v14195_v23 }
 0x16b   : > { %vm1014_vm11 = vcmp.ge.f32.partialorder %v990_v60, 0.0  ;;  %v1022_v43 = vmul.f32 0.2, %v990_v60  ;;  %v982_v12 = vadd.f32 %v14177_v1, %v981_v50 }
 0x16c   : > { %v10543_v44 = vpop.f32.mrf.mxu0  ;;  %v11311_v17 = vpop.permute.xlu1 %11310  ;;  %v2425_v13 = vsel %vm435_vm4, %v2417_v35, %v11297_v36 }
 0x16d   : > { %v1030_v51 = vsel %vm1014_vm11, %v990_v60, %v1022_v43  ;;  %v993_v53 = vadd.f32 %v10543_v44, %v14177_v1  ;;  %v14210_v56 = vpop.permute.xlu0 %11305  ;;  %vm1012_vm12 = vcmp.ge.f32.partialorder %v982_v12, 0.0  ;;  %v1020_v8 = vmul.f32 0.2, %v982_v12 }
 0x16e   : > { %1038 = vst.msk [vmem:[#allocation2 + $0x20] sm:$0xff] %vm361_vm2, %v1030_v51  ;;  %v984_v61 = vpop.f32.mrf.mxu0  ;;  %v11313_v15 = vunpack.i.h.bf16 %v11311_v17  ;;  %v11312_v24 = vunpack.i.l.bf16 %v11311_v17  ;;  %v11308_v52 = vunpack.i.h.bf16 %v14210_v56  ;;  %v11307_v20 = vunpack.i.l.bf16 %v14210_v56 }
 0x16f   : > { %vm1015_vm13 = vcmp.ge.f32.partialorder %v993_v53, 0.0  ;;  %v1023_v3 = vmul.f32 0.2, %v993_v53  ;;  %v1028_v25 = vsel %vm1012_vm12, %v982_v12, %v1020_v8  ;;  %v985_v26 = vadd.f32 %v14177_v1, %v984_v61 }
 0x170   : > { %v14220_v34 = vpop.permute.xlu1 %11320  ;;  %1036 = vst.msk [vmem:[#allocation2] sm:$0xff] %vm361_vm2, %v1028_v25  ;;  %v1939_v58 = vsel %vm875_vm7, %v1931_v59, %v11312_v24  ;;  %v1940_v42 = vsel %vm875_vm7, %v1932_v31, %v11313_v15  ;;  %v1926_v12 = vsel %vm857_vm5, %v1918_v54, %v11288_v63  ;;  %v2431_v44 = vsel %vm857_vm5, %v2423_v41, %v11302_v4 }
 0x171   : > { %v1031_v6 = vsel %vm1015_vm13, %v993_v53, %v1023_v3  ;;  %v14226_v2 = vpop.permute.xlu0 %11315  ;;  %vm1013_vm14 = vcmp.ge.f32.partialorder %v985_v26, 0.0  ;;  %v1021_v40 = vmul.f32 0.2, %v985_v26  ;;  %v11323_v22 = vunpack.i.h.bf16 %v14220_v34 }
 0x172   : > { %1039 = vst.msk [vmem:[#allocation2 + $0x30] sm:$0xff] %vm361_vm2, %v1031_v6  ;;  %v11322_v43 = vunpack.i.l.bf16 %v14220_v34  ;;  %v11317_v23 = vunpack.i.l.bf16 %v14226_v2  ;;  %v2432_v17 = vsel %vm857_vm5, %v2424_v57, %v11303_v37  ;;  %v2426_v51 = vsel %vm435_vm4, %v2418_v28, %v11298_v30 }
 0x173   : > { %v1029_v14 = vsel %vm1013_vm14, %v985_v26, %v1021_v40  ;;  %v1933_v47 = vsel %vm866_vm6, %v1925_v11, %v11307_v20  ;;  %v1934_v49 = vsel %vm866_vm6, %v1926_v12, %v11308_v52  ;;  %v11318_v8 = vunpack.i.h.bf16 %v14226_v2 }
 0x174   : > { %v11331_v7 = vpop.permute.xlu1 %11330  ;;  %1037 = vst.msk [vmem:[#allocation2 + $0x10] sm:$0xff] %vm361_vm2, %v1029_v14  ;;  %v2439_v9 = vsel %vm866_vm6, %v2431_v44, %v11322_v43  ;;  %v2440_v3 = vsel %vm866_vm6, %v2432_v17, %v11323_v22  ;;  %v2433_v29 = vsel %vm857_vm5, %v2425_v13, %v11317_v23 }
 0x175   : > { %v11333_v62 = vunpack.i.h.bf16 %v11331_v7  ;;  %v11332_v33 = vunpack.i.l.bf16 %v11331_v7  ;;  %v11326_v16 = vpop.permute.xlu0 %11325  ;;  %v2609_v10 = vld [vmem:[#allocation2 + $0x20] sm:$0xff]  ;;  %v2434_v24 = vsel %vm857_vm5, %v2426_v51, %v11318_v8 }
 0x176   : > { %v11328_v53 = vunpack.i.h.bf16 %v11326_v16  ;;  %v11327_v56 = vunpack.i.l.bf16 %v11326_v16 }
 0x177   : > { %v1947_v60 = vsel %vm884_vm8, %v1939_v58, %v11332_v33  ;;  %v1948_v27 = vsel %vm884_vm8, %v1940_v42, %v11333_v62 }
 0x178   : > { %v11341_v50 = vpop.permute.xlu1 %11340  ;;  %v1953_v55 = vpack.c.bf16 %v1948_v27, %v1947_v60  ;;  %v1941_v38 = vsel %vm875_vm7, %v1933_v47, %v11327_v56  ;;  %v1942_v6 = vsel %vm875_vm7, %v1934_v49, %v11328_v53 }
 0x179   : > { %v11336_v21 = vpop.permute.xlu0 %11335  ;;  %v2610_v39 = vld [vmem:[#allocation2 + $0x30] sm:$0xff]  ;;  %v11343_v2 = vunpack.i.h.bf16 %v11341_v50  ;;  %v11342_v15 = vunpack.i.l.bf16 %v11341_v50 }
 0x17a   : > { %10580 = vmatprep.mubr.msk.bf16.mxu0 %vm930_vm9, %v1953_v55  ;;  %v11369_v45 = vpack.i.bf16 %v2610_v39, %v2609_v10  ;;  %v11337_v61 = vunpack.i.l.bf16 %v11336_v21  ;;  %v11338_v0 = vunpack.i.h.bf16 %v11336_v21 }
 0x17b   : > { %v2447_v33 = vsel %vm875_vm7, %v2439_v9, %v11342_v15  ;;  %v2448_v16 = vsel %vm875_vm7, %v2440_v3, %v11343_v2 }
 0x17c   : > { %11370 = vrot.lane.b32.xlu0 %v11369_v45, %s12822_s26  ;;  %v11351_v19 = vpop.permute.xlu1 %11350  ;;  %v2441_v40 = vsel %vm866_vm6, %v2433_v29, %v11337_v61  ;;  %v2442_v46 = vsel %vm866_vm6, %v2434_v24, %v11338_v0 }
 0x17d   : > { %v11346_v25 = vpop.permute.xlu0 %11345  ;;  %v11353_v26 = vunpack.i.h.bf16 %v11351_v19  ;;  %v11352_v34 = vunpack.i.l.bf16 %v11351_v19 }
 0x17e   : > { %v11348_v32 = vunpack.i.h.bf16 %v11346_v25  ;;  %v11347_v18 = vunpack.i.l.bf16 %v11346_v25 }
 0x17f   : > { %v2449_v7 = vsel %vm875_vm7, %v2441_v40, %v11352_v34  ;;  %v2450_v59 = vsel %vm875_vm7, %v2442_v46, %v11353_v26 }
 0x180   : > { %v1949_v54 = vsel %vm884_vm8, %v1941_v38, %v11347_v18  ;;  %v1950_v41 = vsel %vm884_vm8, %v1942_v6, %v11348_v32  ;;  %v11361_v57 = vpop.permute.xlu1 %11360 }
 0x181   : > { %v11363_v35 = vunpack.i.h.bf16 %v11361_v57  ;;  %v11362_v63 = vunpack.i.l.bf16 %v11361_v57  ;;  %v11356_v5 = vpop.permute.xlu0 %11355  ;;  %v1954_v14 = vpack.c.bf16 %v1950_v41, %v1949_v54 }
 0x182   : > { %v11358_v31 = vunpack.i.h.bf16 %v11356_v5  ;;  %v11357_v62 = vunpack.i.l.bf16 %v11356_v5  ;;  %v12589_v5 = vld [vmem:[%s16900_s3 + $0x38] sm:$0xff]  }
 0x183   : > { %v2457_v37 = vsel %vm884_vm8, %v2449_v7, %v11362_v63  ;;  %v2458_v4 = vsel %vm884_vm8, %v2450_v59, %v11363_v35  ;;  %10581 = vmatmul.mubr.msk.bf16.gmra.mxu0 %vm930_vm9, %v1954_v14  ;;  %v12824_v7 = vmov 0  }
 0x184   : > { %v2456_v58 = vsel %vm884_vm8, %v2448_v16, %v11358_v31  ;;  %v2455_v42 = vsel %vm884_vm8, %v2447_v33, %v11357_v62  ;;  %v2462_v30 = vpack.c.bf16 %v2458_v4, %v2457_v37  ;;  %3029 = vmatprep.subr.bf16.mxu0 %v12824_v7 }
 0x185   : > { %v2461_v36 = vpack.c.bf16 %v2456_v58, %v2455_v42  ;;  %3030 = vmatpush1.bf16.msra.mxu0 %v12589_v5  ;;  %v12596_v5 = vld [vmem:[%s16900_s3] sm:$0xff]  }
 0x186   : > { %3031 = vmatprep.subr.bf16.mxu0 %v12824_v7 }
 0x187   : > { %10598 = vmatprep.mubr.msk.bf16.mxu1 %vm930_vm9, %v2461_v36 }
 0x188   : > { %v10546_v60 = vpop.f32.mrf.mxu0  ;;  %10599 = vmatmul.mubr.msk.bf16.gmra.mxu1 %vm930_vm9, %v2462_v30 }
 0x189   : > { %v1006_v27 = vadd.f32 %v10546_v60, %v14177_v1 }
 0x18a   : > { %v997_v28 = vpop.f32.mrf.mxu0 }
 0x18b   : > { %vm1018_vm15 = vcmp.ge.f32.partialorder %v1006_v27, 0.0  ;;  %v1026_v52 = vmul.f32 0.2, %v1006_v27  ;;  %v998_v20 = vadd.f32 %v14177_v1, %v997_v28 }
 0x18c   : > { %v10547_v50 = vpop.f32.mrf.mxu0 }
 0x18d   : > { %v1034_v55 = vsel %vm1018_vm15, %v1006_v27, %v1026_v52  ;;  %vm1016_vm0 = vcmp.ge.f32.partialorder %v998_v20, 0.0  ;;  %v1024_v11 = vmul.f32 0.2, %v998_v20  ;;  %v1009_v22 = vadd.f32 %v10547_v50, %v14177_v1 }
 0x18e   : > { %1042 = vst.msk [vmem:[#allocation2 + $0x60] sm:$0xff] %vm361_vm2, %v1034_v55  ;;  %v1000_v43 = vpop.f32.mrf.mxu0 }
 0x18f   : > { %v1032_v23 = vsel %vm1016_vm0, %v998_v20, %v1024_v11  ;;  %vm1019_vm1 = vcmp.ge.f32.partialorder %v1009_v22, 0.0  ;;  %v1027_v21 = vmul.f32 0.2, %v1009_v22  ;;  %v1001_v10 = vadd.f32 %v14177_v1, %v1000_v43  ;;  %v12590_v43 = vld [vmem:[%s16900_s3 + $0x30] sm:$0xff]  }
 0x190   : > { %1040 = vst.msk [vmem:[#allocation2 + $0x40] sm:$0xff] %vm361_vm2, %v1032_v23  ;;  %3032 = vmatpush1.bf16.msra.mxu0 %v12590_v43 }
 0x191   : > { %v1035_v39 = vsel %vm1019_vm1, %v1009_v22, %v1027_v21  ;;  %vm1017_vm3 = vcmp.ge.f32.partialorder %v1001_v10, 0.0  ;;  %v1025_v12 = vmul.f32 0.2, %v1001_v10  ;;  %3033 = vmatprep.subr.bf16.mxu0 %v12824_v7 }
 0x192   : > { %1043 = vst.msk [vmem:[#allocation2 + $0x70] sm:$0xff] %vm361_vm2, %v1035_v39 }
 0x193   : > { %v1033_v44 = vsel %vm1017_vm3, %v1001_v10, %v1025_v12 }
 0x194   : > { %1041 = vst.msk [vmem:[#allocation2 + $0x50] sm:$0xff] %vm361_vm2, %v1033_v44 }
 0x1a8   : > { %v10560_v17 = vpop.f32.mrf.mxu0 }
 0x1a9   : > { %v1498_v45 = vadd.f32 %v10560_v17, %v14177_v1 }
 0x1aa   : > { %v1489_v13 = vpop.f32.mrf.mxu0 }
 0x1ab   : > { %vm1522_vm5 = vcmp.ge.f32.partialorder %v1498_v45, 0.0  ;;  %v1530_v51 = vmul.f32 0.2, %v1498_v45  ;;  %v1490_v53 = vadd.f32 %v14177_v1, %v1489_v13  ;;  %v12591_v13 = vld [vmem:[%s16900_s3 + $0x28] sm:$0xff]  }
 0x1ac   : > { %v10561_v56 = vpop.f32.mrf.mxu0  ;;  %3034 = vmatpush1.bf16.msra.mxu0 %v12591_v13 }
 0x1ad   : > { %v1538_v47 = vsel %vm1522_vm5, %v1498_v45, %v1530_v51  ;;  %vm1520_vm7 = vcmp.ge.f32.partialorder %v1490_v53, 0.0  ;;  %v1528_v49 = vmul.f32 0.2, %v1490_v53  ;;  %v1501_v8 = vadd.f32 %v10561_v56, %v14177_v1  ;;  %3035 = vmatprep.subr.bf16.mxu0 %v12824_v7 }
 0x1ae   : > { %1547 = vst.msk [vmem:[#allocation2 + $0xb1] sm:$0xff] %vm361_vm2, %v1538_v47  ;;  %v1492_v61 = vpop.f32.mrf.mxu0  ;;  %v12592_v47 = vld [vmem:[%s16900_s3 + $0x20] sm:$0xff]  }
 0x1af   : > { %v1536_v19 = vsel %vm1520_vm7, %v1490_v53, %v1528_v49  ;;  %vm1523_vm9 = vcmp.ge.f32.partialorder %v1501_v8, 0.0  ;;  %v1531_v9 = vmul.f32 0.2, %v1501_v8  ;;  %v1493_v3 = vadd.f32 %v14177_v1, %v1492_v61  ;;  %v2591_v49 = vld [vmem:[#allocation2 + $0x1b1] sm:$0xff] }
 0x1b0   : > { %1545 = vst.msk [vmem:[#allocation2 + $0x91] sm:$0xff] %vm361_vm2, %v1536_v19  ;;  %3036 = vmatpush1.bf16.msra.mxu0 %v12592_v47  ;;  %v12593_v61 = vld [vmem:[%s16900_s3 + $0x18] sm:$0xff]  }
 0x1b1   : > { %v1539_v29 = vsel %vm1523_vm9, %v1501_v8, %v1531_v9  ;;  %vm1521_vm10 = vcmp.ge.f32.partialorder %v1493_v3, 0.0  ;;  %v1529_v0 = vmul.f32 0.2, %v1493_v3  ;;  %3037 = vmatprep.subr.bf16.mxu0 %v12824_v7 }
 0x1b2   : > { %1548 = vst.msk [vmem:[#allocation2 + $0xc1] sm:$0xff] %vm361_vm2, %v1539_v29 }
 0x1b3   : > { %v1537_v25 = vsel %vm1521_vm10, %v1493_v3, %v1529_v0  ;;  %v2608_v3 = vld [vmem:[#allocation2 + $0x10] sm:$0xff] }
 0x1b4   : > { %1546 = vst.msk [vmem:[#allocation2 + $0xa1] sm:$0xff] %vm361_vm2, %v1537_v25  ;;  %3038 = vmatpush1.bf16.msra.mxu0 %v12593_v61 }
 0x1b5   : > { %3039 = vmatprep.subr.bf16.mxu0 %v12824_v7 }
 0x1c8   : > { %v10564_v26 = vpop.f32.mrf.mxu0 }
 0x1c9   : > { %v1514_v34 = vadd.f32 %v10564_v26, %v14177_v1 }
 0x1ca   : > { %v1505_v32 = vpop.f32.mrf.mxu0 }
 0x1cb   : > { %vm1526_vm11 = vcmp.ge.f32.partialorder %v1514_v34, 0.0  ;;  %v1534_v18 = vmul.f32 0.2, %v1514_v34  ;;  %v1506_v38 = vadd.f32 %v14177_v1, %v1505_v32 }
 0x1cc   : > { %v10565_v6 = vpop.f32.mrf.mxu0 }
 0x1cd   : > { %v1542_v2 = vsel %vm1526_vm11, %v1514_v34, %v1534_v18  ;;  %vm1524_vm12 = vcmp.ge.f32.partialorder %v1506_v38, 0.0  ;;  %v1532_v15 = vmul.f32 0.2, %v1506_v38  ;;  %v1517_v24 = vadd.f32 %v10565_v6, %v14177_v1  ;;  %v2607_v18 = vld [vmem:[#allocation2] sm:$0xff] }
 0x1ce   : > { %1551 = vst.msk [vmem:[#allocation2 + $0xf1] sm:$0xff] %vm361_vm2, %v1542_v2  ;;  %v1508_v40 = vpop.f32.mrf.mxu0  ;;  %v11379_v2 = vpack.i.bf16 %v2608_v3, %v2607_v18 }
 0x1cf   : > { %v1540_v54 = vsel %vm1524_vm12, %v1506_v38, %v1532_v15  ;;  %vm1527_vm13 = vcmp.ge.f32.partialorder %v1517_v24, 0.0  ;;  %v1535_v41 = vmul.f32 0.2, %v1517_v24  ;;  %v1509_v57 = vadd.f32 %v14177_v1, %v1508_v40  ;;  %v12594_v38 = vld [vmem:[%s16900_s3 + $0x10] sm:$0xff]  }
 0x1d0   : > { %1549 = vst.msk [vmem:[#allocation2 + $0xd1] sm:$0xff] %vm361_vm2, %v1540_v54  ;;  %v2600_v54 = vld [vmem:[#allocation2 + $0xa0] sm:$0xff]  ;;  %3040 = vmatpush1.bf16.msra.mxu0 %v12594_v38 }
 0x1d1   : > { %v1543_v46 = vsel %vm1527_vm13, %v1517_v24, %v1535_v41  ;;  %vm1525_vm14 = vcmp.ge.f32.partialorder %v1509_v57, 0.0  ;;  %v1533_v35 = vmul.f32 0.2, %v1509_v57  ;;  %3041 = vmatprep.subr.bf16.mxu0 %v12824_v7 }
 0x1d2   : > { %1552 = vst.msk [vmem:[#allocation2 + $0x101] sm:$0xff] %vm361_vm2, %v1543_v46  ;;  %v2599_v46 = vld [vmem:[#allocation2 + $0x90] sm:$0xff] }
 0x1d3   : > { %v1541_v63 = vsel %vm1525_vm14, %v1509_v57, %v1533_v35  ;;  %v12595_v57 = vld [vmem:[%s16900_s3 + $0x8] sm:$0xff]   ;;  %v11409_v35 = vpack.i.bf16 %v2600_v54, %v2599_v46  ;;  %v2602_v46 = vld [vmem:[#allocation2 + $0xc0] sm:$0xff] }
 0x1d4   : > { %1550 = vst.msk [vmem:[#allocation2 + $0xe1] sm:$0xff] %vm361_vm2, %v1541_v63  ;;  %v2616_v63 = vld [vmem:[#allocation2 + $0xa1] sm:$0xff]  ;;  %3042 = vmatpush1.bf16.msra.mxu0 %v12595_v57 }
 0x1d5   : > { %3043 = vmatprep.subr.bf16.mxu0 %v12824_v7 }
 0x1d8   : > { %3044 = vmatpush1.bf16.msra.mxu0 %v12596_v5  ;;  %v2601_v5 = vld [vmem:[#allocation2 + $0xb0] sm:$0xff] }
 0x1d9   : > { %3059 = vmatprep.subr.bf16.mxu0 %v12824_v7 }
 0x203   : > { %v10578_v14 = vpop.f32.mrf.mxu0 }
 0x204   : > { %v2010_v59 = vadd.f32 %v10578_v14, %v14177_v1  ;;  %v2615_v14 = vld [vmem:[#allocation2 + $0x91] sm:$0xff] }
 0x205   : > { %v2001_v31 = vpop.f32.mrf.mxu0 }
 0x206   : > { %vm2034_vm15 = vcmp.ge.f32.partialorder %v2010_v59, 0.0  ;;  %v2042_v62 = vmul.f32 0.2, %v2010_v59  ;;  %v2002_v33 = vadd.f32 %v14177_v1, %v2001_v31  ;;  %v2583_v31 = vld [vmem:[#allocation2 + $0x120] sm:$0xff] }
 0x207   : > { %v10579_v16 = vpop.f32.mrf.mxu0 }
 0x208   : > { %v2050_v37 = vsel %vm2034_vm15, %v2010_v59, %v2042_v62  ;;  %vm2032_vm0 = vcmp.ge.f32.partialorder %v2002_v33, 0.0  ;;  %v2040_v4 = vmul.f32 0.2, %v2002_v33  ;;  %v2013_v58 = vadd.f32 %v10579_v16, %v14177_v1  ;;  %v10596_v42 = vpop.f32.mrf.mxu1 }
 0x209   : > { %2059 = vst.msk [vmem:[#allocation2 + $0x150] sm:$0xff] %vm361_vm2, %v2050_v37  ;;  %v2518_v30 = vadd.f32 %v10596_v42, %v14177_v1  ;;  %v2004_v36 = vpop.f32.mrf.mxu0  ;;  %v11414_v59 = vpack.i.bf16 %v2616_v63, %v2615_v14  ;;  %v2604_v37 = vld [vmem:[#allocation2 + $0xe0] sm:$0xff] }
 0x20a   : > { %v2048_v60 = vsel %vm2032_vm0, %v2002_v33, %v2040_v4  ;;  %vm2035_vm1 = vcmp.ge.f32.partialorder %v2013_v58, 0.0  ;;  %v2043_v27 = vmul.f32 0.2, %v2013_v58  ;;  %v2005_v28 = vadd.f32 %v14177_v1, %v2004_v36  ;;  %v2509_v52 = vpop.f32.mrf.mxu1  ;;  %v12597_v33 = vld [vmem:[%s16900_s3 + $0x40] sm:$0xff]   ;;  %v2603_v4 = vld [vmem:[#allocation2 + $0xd0] sm:$0xff] }
 0x20b   : > { %2057 = vst.msk [vmem:[#allocation2 + $0x130] sm:$0xff] %vm361_vm2, %v2048_v60  ;;  %vm2542_vm3 = vcmp.ge.f32.partialorder %v2518_v30, 0.0  ;;  %v2550_v20 = vmul.f32 0.2, %v2518_v30  ;;  %v2510_v50 = vadd.f32 %v14177_v1, %v2509_v52  ;;  %3060 = vmatpush2.bf16.msra.mxu0 %v12597_v33  ;;  %v2620_v36 = vld [vmem:[#allocation2 + $0xe1] sm:$0xff]  ;;  %v2619_v60 = vld [vmem:[#allocation2 + $0xd1] sm:$0xff] }
 0x20c   : > { %v2051_v55 = vsel %vm2035_vm1, %v2013_v58, %v2043_v27  ;;  %vm2033_vm5 = vcmp.ge.f32.partialorder %v2005_v28, 0.0  ;;  %v2041_v11 = vmul.f32 0.2, %v2005_v28  ;;  %v10597_v22 = vpop.f32.mrf.mxu1  ;;  %v11424_v58 = vpack.i.bf16 %v2604_v37, %v2603_v4  ;;  %v2618_v33 = vld [vmem:[#allocation2 + $0xc1] sm:$0xff] }
 0x20d   : > { %2060 = vst.msk [vmem:[#allocation2 + $0x160] sm:$0xff] %vm361_vm2, %v2051_v55  ;;  %v2558_v23 = vsel %vm2542_vm3, %v2518_v30, %v2550_v20  ;;  %vm2540_vm7 = vcmp.ge.f32.partialorder %v2510_v50, 0.0  ;;  %v2548_v21 = vmul.f32 0.2, %v2510_v50  ;;  %v2521_v10 = vadd.f32 %v10597_v22, %v14177_v1 }
 0x20e   : > { %2567 = vst.msk [vmem:[#allocation2 + $0x1e1] sm:$0xff] %vm361_vm2, %v2558_v23  ;;  %v2049_v39 = vsel %vm2033_vm5, %v2005_v28, %v2041_v11  ;;  %v2512_v12 = vpop.f32.mrf.mxu1  ;;  %v11449_v27 = vpack.i.bf16 %v2620_v36, %v2619_v60  ;;  %vm437_vm5 = vcmask 254976  }
 0x20f   : > { %2058 = vst.msk [vmem:[#allocation2 + $0x140] sm:$0xff] %vm361_vm2, %v2049_v39  ;;  %v2556_v44 = vsel %vm2540_vm7, %v2510_v50, %v2548_v21  ;;  %vm2543_vm9 = vcmp.ge.f32.partialorder %v2521_v10, 0.0  ;;  %v2551_v17 = vmul.f32 0.2, %v2521_v10  ;;  %v2513_v45 = vadd.f32 %v14177_v1, %v2512_v12 }
 0x210   : > { %2565 = vst.msk [vmem:[#allocation2 + $0x1c1] sm:$0xff] %vm361_vm2, %v2556_v44  ;;  %v2633_v36 = vld [vmem:[#allocation2 + $0x150] sm:$0xff]  ;;  %vm2922_vm7 = vcmask 654336  }
 0x211   : > { %v2559_v51 = vsel %vm2543_vm9, %v2521_v10, %v2551_v17  ;;  %vm2541_vm10 = vcmp.ge.f32.partialorder %v2513_v45, 0.0  ;;  %v2549_v53 = vmul.f32 0.2, %v2513_v45  ;;  %440 = vst.msk [vmem:[#allocation3 + $0x18] sm:$0x3] %vm437_vm5, %v12823_v48  ;;  %vm2931_vm9 = vcmask 785408  }
 0x212   : > { %2568 = vst.msk [vmem:[#allocation2 + $0x1f1] sm:$0xff] %vm361_vm2, %v2559_v51  ;;  %v2584_v62 = vld [vmem:[#allocation2 + $0x130] sm:$0xff] }
 0x213   : > { %v2557_v56 = vsel %vm2541_vm10, %v2513_v45, %v2549_v53  ;;  %v11419_v16 = vpack.i.bf16 %v2584_v62, %v2583_v31  ;;  %438 = vst.msk [vmem:[#allocation3 + $0x8] sm:$0x3] %vm437_vm5, %v12823_v48  ;;  %442 = vst.msk [vmem:[#allocation3 + $0x28] sm:$0x3] %vm437_vm5, %v12823_v48  ;;  %vm2940_vm10 = vcmask 916480  }
 0x214   : > { %2566 = vst.msk [vmem:[#allocation2 + $0x1d1] sm:$0xff] %vm361_vm2, %v2557_v56 }
 0x215   : > { %v14345_v9 = vld [vmem:[#allocation2 + $0x1e0] sm:$0xff]  ;;  %444 = vst.msk [vmem:[#allocation3 + $0x38] sm:$0x3] %vm437_vm5, %v12823_v48  ;;  %446 = vst.msk [vmem:[#allocation3 + $0x48] sm:$0x3] %vm437_vm5, %v12823_v48 }
 0x216   : > { %v14349_v0 = vld [vmem:[#allocation2 + $0x1e1] sm:$0xff]  ;;  %448 = vst.msk [vmem:[#allocation3 + $0x58] sm:$0x3] %vm437_vm5, %v12823_v48  ;;  %450 = vst.msk [vmem:[#allocation3 + $0x68] sm:$0x3] %vm437_vm5, %v12823_v48 }
 0x217   : > { %v2592_v8 = vld [vmem:[#allocation2 + $0x1c1] sm:$0xff]  ;;  %452 = vst.msk [vmem:[#allocation3 + $0x78] sm:$0x3] %vm437_vm5, %v12823_v48  ;;  %454 = vst.msk [vmem:[#allocation3 + $0x88] sm:$0x3] %vm437_vm5, %v12823_v48 }
 0x218   : > { %v11364_v19 = vpack.i.bf16 %v2592_v8, %v2591_v49  ;;  %v14368_v40 = vld [vmem:[#allocation2 + $0x1c0] sm:$0xff]  ;;  %456 = vst.msk [vmem:[#allocation3 + $0x98] sm:$0x3] %vm437_vm5, %v12823_v48  ;;  %458 = vst.msk [vmem:[#allocation3 + $0xa8] sm:$0x3] %vm437_vm5, %v12823_v48 }
 0x219   : > { %v14347_v29 = vld [vmem:[#allocation2 + $0x1f0] sm:$0xff]  ;;  %v14389_v42 = vld [vmem:[#allocation2 + $0x140] sm:$0xff]  ;;  %460 = vst.msk [vmem:[#allocation3 + $0xb8] sm:$0x3] %vm437_vm5, %v12823_v48  ;;  %462 = vst.msk [vmem:[#allocation3 + $0xc8] sm:$0x3] %vm437_vm5, %v12823_v48 }
 0x21a   : > { %v14351_v25 = vld [vmem:[#allocation2 + $0x1f1] sm:$0xff]  ;;  %11365 = vrot.lane.b32.xlu1 %v11364_v19, %s12818_s22  ;;  %v11374_v26 = vpack.i.bf16 %v14347_v29, %v14345_v9  ;;  %v11434_v30 = vpack.i.bf16 %v14389_v42, %v2584_v62  ;;  %464 = vst.msk [vmem:[#allocation3 + $0xd8] sm:$0x3] %vm437_vm5, %v12823_v48  ;;  %466 = vst.msk [vmem:[#allocation3 + $0xe8] sm:$0x3] %vm437_vm5, %v12823_v48 }
 0x21b   : > { %v2952_v34 = vpack.c.bf16 %v14351_v25, %v14349_v0  ;;  %v2640_v32 = vld [vmem:[#allocation2 + $0x1d1] sm:$0xff]  ;;  %468 = vst.msk [vmem:[#allocation3 + $0xf8] sm:$0x3] %vm437_vm5, %v12823_v48  ;;  %470 = vst.msk [vmem:[#allocation3 + $0x108] sm:$0x3] %vm437_vm5, %v12823_v48 }
 0x21c   : > { %11375 = vrot.lane.b32.xlu0 %v11374_v26, %s12825_s20  ;;  %v2950_v6 = vpack.c.bf16 %v2640_v32, %v2592_v8  ;;  %v14363_v15 = vld [vmem:[#allocation2 + $0x1d0] sm:$0xff]  ;;  %v11389_v24 = vpack.i.bf16 %v14349_v0, %v2640_v32  ;;  %472 = vst.msk [vmem:[#allocation3 + $0x118] sm:$0x3] %vm437_vm5, %v12823_v48  ;;  %474 = vst.msk [vmem:[#allocation3 + $0x128] sm:$0x3] %vm437_vm5, %v12823_v48 }
 0x21d   : > { %v11384_v41 = vpack.i.bf16 %v14363_v15, %v14368_v40  ;;  %476 = vst.msk [vmem:[#allocation3 + $0x138] sm:$0x3] %vm437_vm5, %v12823_v48 }
 0x21e   : > { %9621 = vmatprep.mubr.msk.bf16.mxu0 %vm361_vm2, %v2950_v6  ;;  %11380 = vrot.lane.b32.xlu1 %v11379_v2, %s12822_s26  ;;  %v2587_v2 = vld [vmem:[#allocation2 + $0x160] sm:$0xff] }
 0x220   : > { %11390 = vrot.lane.b32.xlu0 %v11389_v24, %s12818_s22 }
 0x222   : > { %11385 = vrot.lane.b32.xlu1 %v11384_v41, %s12825_s20 }
 0x224   : > { %11410 = vrot.lane.b32.xlu0 %v11409_v35, %s12820_s24 }
 0x228   : > { %11415 = vrot.lane.b32.xlu0 %v11414_v59, %s12826_s29  ;;  %v11399_v59 = vpack.i.bf16 %v2602_v46, %v2601_v5 }
 0x22c   : > { %11420 = vrot.lane.b32.xlu0 %v11419_v16, %s12815_s19  ;;  %v2617_v16 = vld [vmem:[#allocation2 + $0xb1] sm:$0xff] }
 0x22d   : > { %v11404_v4 = vpack.i.bf16 %v2618_v33, %v2617_v16 }
 0x230   : > { %11425 = vrot.lane.b32.xlu0 %v11424_v58, %s12820_s24  ;;  %v2614_v58 = vld [vmem:[#allocation2 + $0x70] sm:$0xff] }
 0x234   : > { %11435 = vrot.lane.b32.xlu0 %v11434_v30, %s12827_s12  ;;  %v2613_v30 = vld [vmem:[#allocation2 + $0x60] sm:$0xff] }
 0x235   : > { %v11479_v60 = vpack.i.bf16 %v2614_v58, %v2613_v30 }
 0x238   : > { %11450 = vrot.lane.b32.xlu0 %v11449_v27, %s12826_s29  ;;  %v11429_v27 = vpack.i.bf16 %v2587_v2, %v2633_v36 }
 0x243   : > { %v10582_v28 = vpop.f32.mrf.mxu0 }
 0x244   : > { %v2026_v52 = vadd.f32 %v10582_v28, %v14177_v1 }
 0x245   : > { %v2017_v20 = vpop.f32.mrf.mxu0 }
 0x246   : > { %vm2038_vm11 = vcmp.ge.f32.partialorder %v2026_v52, 0.0  ;;  %v2046_v50 = vmul.f32 0.2, %v2026_v52  ;;  %v2018_v55 = vadd.f32 %v14177_v1, %v2017_v20 }
 0x247   : > { %v10583_v11 = vpop.f32.mrf.mxu0 }
 0x248   : > { %v2054_v22 = vsel %vm2038_vm11, %v2026_v52, %v2046_v50  ;;  %vm2036_vm12 = vcmp.ge.f32.partialorder %v2018_v55, 0.0  ;;  %v2044_v43 = vmul.f32 0.2, %v2018_v55  ;;  %v2029_v23 = vadd.f32 %v10583_v11, %v14177_v1  ;;  %v10600_v21 = vpop.f32.mrf.mxu1  ;;  %v2611_v11 = vld [vmem:[#allocation2 + $0x40] sm:$0xff] }
 0x249   : > { %2063 = vst.msk [vmem:[#allocation2 + $0x190] sm:$0xff] %vm361_vm2, %v2054_v22  ;;  %v2534_v10 = vadd.f32 %v10600_v21, %v14177_v1  ;;  %v2020_v39 = vpop.f32.mrf.mxu0  ;;  %v11439_v50 = vpack.i.bf16 %v2633_v36, %v14389_v42  ;;  %v2605_v42 = vld [vmem:[#allocation2 + $0xf0] sm:$0xff] }
 0x24a   : > { %v2052_v12 = vsel %vm2036_vm12, %v2018_v55, %v2044_v43  ;;  %vm2039_vm13 = vcmp.ge.f32.partialorder %v2029_v23, 0.0  ;;  %v2047_v44 = vmul.f32 0.2, %v2029_v23  ;;  %v2021_v17 = vadd.f32 %v14177_v1, %v2020_v39  ;;  %v2525_v45 = vpop.f32.mrf.mxu1  ;;  %v2612_v55 = vld [vmem:[#allocation2 + $0x50] sm:$0xff] }
 0x24b   : > { %2061 = vst.msk [vmem:[#allocation2 + $0x170] sm:$0xff] %vm361_vm2, %v2052_v12  ;;  %vm2546_vm14 = vcmp.ge.f32.partialorder %v2534_v10, 0.0  ;;  %v2554_v13 = vmul.f32 0.2, %v2534_v10  ;;  %v2526_v51 = vadd.f32 %v14177_v1, %v2525_v45  ;;  %v11444_v22 = vpack.i.bf16 %v2612_v55, %v2611_v11  ;;  %v2621_v45 = vld [vmem:[#allocation2 + $0xf1] sm:$0xff] }
 0x24c   : > { %v2055_v53 = vsel %vm2039_vm13, %v2029_v23, %v2047_v44  ;;  %vm2037_vm15 = vcmp.ge.f32.partialorder %v2021_v17, 0.0  ;;  %v2045_v56 = vmul.f32 0.2, %v2021_v17  ;;  %v10601_v47 = vpop.f32.mrf.mxu1 }
 0x24d   : > { %2064 = vst.msk [vmem:[#allocation2 + $0x1a0] sm:$0xff] %vm361_vm2, %v2055_v53  ;;  %v2562_v49 = vsel %vm2546_vm14, %v2534_v10, %v2554_v13  ;;  %vm2544_vm0 = vcmp.ge.f32.partialorder %v2526_v51, 0.0  ;;  %v2552_v8 = vmul.f32 0.2, %v2526_v51  ;;  %v2537_v61 = vadd.f32 %v10601_v47, %v14177_v1  ;;  %v2606_v10 = vld [vmem:[#allocation2 + $0x100] sm:$0xff] }
 0x24e   : > { %2571 = vst.msk [vmem:[#allocation2 + $0x221] sm:$0xff] %vm361_vm2, %v2562_v49  ;;  %v2053_v19 = vsel %vm2037_vm15, %v2021_v17, %v2045_v56  ;;  %v2528_v3 = vpop.f32.mrf.mxu1  ;;  %v11469_v39 = vpack.i.bf16 %v2606_v10, %v2605_v42  ;;  %v2622_v17 = vld [vmem:[#allocation2 + $0x101] sm:$0xff]  ;;  %v14489_v56 = vpop.permute.xlu0 %11370 }
 0x24f   : > { %2062 = vst.msk [vmem:[#allocation2 + $0x180] sm:$0xff] %vm361_vm2, %v2053_v19  ;;  %v2560_v26 = vsel %vm2544_vm0, %v2526_v51, %v2552_v8  ;;  %vm2547_vm1 = vcmp.ge.f32.partialorder %v2537_v61, 0.0  ;;  %v2555_v32 = vmul.f32 0.2, %v2537_v61  ;;  %v2529_v18 = vadd.f32 %v14177_v1, %v2528_v3 }
 0x250   : > { %2569 = vst.msk [vmem:[#allocation2 + $0x201] sm:$0xff] %vm361_vm2, %v2560_v26  ;;  %v2590_v12 = vld [vmem:[#allocation2 + $0x190] sm:$0xff]  ;;  %v11489_v13 = vpack.i.bf16 %v2622_v17, %v2621_v45 }
 0x251   : > { %v2563_v38 = vsel %vm2547_vm1, %v2537_v61, %v2555_v32  ;;  %vm2545_vm3 = vcmp.ge.f32.partialorder %v2529_v18, 0.0  ;;  %v2553_v6 = vmul.f32 0.2, %v2529_v18  ;;  %v2574_v26 = vld [vmem:[#allocation2 + $0x1b0] sm:$0xff] }
 0x252   : > { %2572 = vst.msk [vmem:[#allocation2 + $0x231] sm:$0xff] %vm361_vm2, %v2563_v38  ;;  %v2588_v24 = vld [vmem:[#allocation2 + $0x170] sm:$0xff] }
 0x253   : > { %v2561_v54 = vsel %vm2545_vm3, %v2529_v18, %v2553_v6  ;;  %v11459_v41 = vpack.i.bf16 %v2588_v24, %v2587_v2 }
 0x254   : > { %2570 = vst.msk [vmem:[#allocation2 + $0x211] sm:$0xff] %vm361_vm2, %v2561_v54  ;;  %v2638_v51 = vld [vmem:[#allocation2 + $0x1a0] sm:$0xff] }
 0x255   : > { %11460 = vrot.lane.b32.xlu0 %v11459_v41, %s12815_s19  ;;  %v14419_v63 = vld [vmem:[#allocation2 + $0x221] sm:$0xff]  ;;  %v11499_v53 = vpack.i.bf16 %v2638_v51, %v2590_v12 }
 0x256   : > { %v2636_v62 = vld [vmem:[#allocation2 + $0x180] sm:$0xff] }
 0x257   : > { %v14412_v57 = vld [vmem:[#allocation2 + $0x201] sm:$0xff]  ;;  %v11474_v37 = vpack.i.bf16 %v2636_v62, %v2588_v24  ;;  %v11484_v44 = vpack.i.bf16 %v2590_v12, %v2636_v62 }
 0x258   : > { %v11394_v1 = vpack.i.bf16 %v14412_v57, %v14351_v25  ;;  %v14431_v52 = vld [vmem:[#allocation2 + $0x220] sm:$0xff] }
 0x259   : > { %v2630_v28 = vld [vmem:[#allocation2 + $0x230] sm:$0xff]  ;;  %v14440_v23 = vld [vmem:[#allocation2 + $0x200] sm:$0xff] }
 0x25a   : > { %11395 = vrot.lane.b32.xlu1 %v11394_v1, %s12818_s22  ;;  %v11494_v20 = vpack.i.bf16 %v2630_v28, %v14431_v52 }
 0x25b   : > { %v14417_v35 = vld [vmem:[#allocation2 + $0x211] sm:$0xff] }
 0x25c   : > { %v11464_v14 = vpack.i.bf16 %v14419_v63, %v14417_v35  ;;  %v2954_v31 = vpack.c.bf16 %v14417_v35, %v14412_v57  ;;  %v14437_v43 = vld [vmem:[#allocation2 + $0x210] sm:$0xff] }
 0x25d   : > { %v11454_v21 = vpack.i.bf16 %v14437_v43, %v14440_v23 }
 0x25e   : > { %11465 = vrot.lane.b32.xlu0 %v11464_v14, %s12818_s22  ;;  %11400 = vrot.lane.b32.xlu1 %v11399_v59, %s12820_s24 }
 0x262   : > { %11475 = vrot.lane.b32.xlu0 %v11474_v37, %s12827_s12  ;;  %11405 = vrot.lane.b32.xlu1 %v11404_v4, %s12826_s29 }
 0x266   : > { %11480 = vrot.lane.b32.xlu0 %v11479_v60, %s12822_s26  ;;  %11430 = vrot.lane.b32.xlu1 %v11429_v27, %s12827_s12 }
 0x26a   : > { %11495 = vrot.lane.b32.xlu0 %v11494_v20, %s12825_s20  ;;  %11440 = vrot.lane.b32.xlu1 %v11439_v50, %s12815_s19 }
 0x26e   : > { %11445 = vrot.lane.b32.xlu1 %v11444_v22, %s12822_s26 }
 0x272   : > { %11455 = vrot.lane.b32.xlu1 %v11454_v21, %s12825_s20 }
 0x276   : > { %11470 = vrot.lane.b32.xlu1 %v11469_v39, %s12820_s24 }
 0x27a   : > { %11485 = vrot.lane.b32.xlu1 %v11484_v44, %s12815_s19 }
 0x27e   : > { %11490 = vrot.lane.b32.xlu1 %v11489_v13, %s12826_s29 }
 0x282   : > { %11500 = vrot.lane.b32.xlu1 %v11499_v53, %s12827_s12 }
 0x28c   : > { %v11366_v61 = vpop.permute.xlu1 %11365 }
 0x28d   : > { %v11368_v38 = vunpack.i.h.bf16 %v11366_v61  ;;  %v11367_v6 = vunpack.i.l.bf16 %v11366_v61  ;;  %v11373_v61 = vunpack.i.h.bf16 %v14489_v56 }
 0x28e   : > { %v14491_v47 = vpop.permute.xlu0 %11375 }
 0x28f   : > { %v11377_v0 = vunpack.i.l.bf16 %v14491_v47 }
 0x290   : > { %v11381_v3 = vpop.permute.xlu1 %11380 }
 0x291   : > { %v11383_v1 = vunpack.i.h.bf16 %v11381_v3  ;;  %v11382_v46 = vunpack.i.l.bf16 %v11381_v3  ;;  %v11378_v3 = vunpack.i.h.bf16 %v14491_v47 }
 0x292   : > { %v14493_v49 = vpop.permute.xlu0 %11390 }
 0x293   : > { %v11393_v25 = vunpack.i.h.bf16 %v14493_v49 }
 0x294   : > { %v11386_v62 = vpop.permute.xlu1 %11385 }
 0x295   : > { %v11388_v60 = vunpack.i.h.bf16 %v11386_v62  ;;  %v11387_v27 = vunpack.i.l.bf16 %v11386_v62 }
 0x296   : > { %v11411_v8 = vpop.permute.xlu0 %11410 }
 0x297   : > { %v11413_v2 = vunpack.i.h.bf16 %v11411_v8  ;;  %v11412_v24 = vunpack.i.l.bf16 %v11411_v8 }
 0x29a   : > { %v11416_v19 = vpop.permute.xlu0 %11415 }
 0x29b   : > { %v11418_v33 = vunpack.i.h.bf16 %v11416_v19  ;;  %v11417_v16 = vunpack.i.l.bf16 %v11416_v19  ;;  %v11372_v19 = vunpack.i.l.bf16 %v14489_v56 }
 0x29e   : > { %v11421_v32 = vpop.permute.xlu0 %11420 }
 0x29f   : > { %v11423_v48 = vunpack.i.h.bf16 %v11421_v32  ;;  %v11422_v18 = vunpack.i.l.bf16 %v11421_v32 }
 0x2a1   : > { %v2891_v54 = vsel %vm361_vm2, %v14368_v40, %v11423_v48  ;;  %v2890_v41 = vsel %vm361_vm2, %v2574_v26, %v11422_v18 }
 0x2a2   : > { %v2899_v5 = vsel %vm435_vm4, %v2891_v54, %v11368_v38  ;;  %v2898_v14 = vsel %vm435_vm4, %v2890_v41, %v11367_v6  ;;  %v14500_v59 = vpop.permute.xlu0 %11425 }
 0x2a3   : > { %v2906_v37 = vsel %vm866_vm6, %v2898_v14, %v11412_v24  ;;  %v2907_v4 = vsel %vm866_vm6, %v2899_v5, %v11413_v2  ;;  %v11428_v26 = vunpack.i.h.bf16 %v14500_v59  ;;  %v11427_v32 = vunpack.i.l.bf16 %v14500_v59 }
 0x2a4   : > { %v2914_v58 = vsel %vm884_vm8, %v2906_v37, %v11382_v46  ;;  %v2915_v40 = vsel %vm884_vm8, %v2907_v4, %v11383_v1 }
 0x2a5   : > { %v2923_v30 = vsel %vm2922_vm7, %v2914_v58, %v11417_v16  ;;  %v2924_v36 = vsel %vm2922_vm7, %v2915_v40, %v11418_v33 }
 0x2a6   : > { %v11436_v28 = vpop.permute.xlu0 %11435  ;;  %v2932_v55 = vsel %vm2931_vm9, %v2923_v30, %v11387_v27  ;;  %v2933_v11 = vsel %vm2931_vm9, %v2924_v36, %v11388_v60 }
 0x2a7   : > { %v11438_v20 = vunpack.i.h.bf16 %v11436_v28  ;;  %v11437_v50 = vunpack.i.l.bf16 %v11436_v28 }
 0x2a9   : > { %v2941_v22 = vsel %vm2940_vm10, %v2932_v55, %v11437_v50  ;;  %v2942_v21 = vsel %vm2940_vm10, %v2933_v11, %v11438_v20 }
 0x2aa   : > { %v2949_v10 = vpack.c.bf16 %v2942_v21, %v2941_v22  ;;  %v11451_v12 = vpop.permute.xlu0 %11450 }
 0x2ab   : > { %v11453_v2 = vunpack.i.h.bf16 %v11451_v12  ;;  %v11452_v24 = vunpack.i.l.bf16 %v11451_v12 }
 0x2ac   : > { %3062 = vmatmul.mubr.bf16.vlgmr.msra.gmra.mxu0 %v2949_v10 }
 0x2ad   : > { %9622 = vmatprep.mubr.msk.bf16.mxu0 %vm361_vm2, %v2952_v34  ;;  %v11392_v34 = vunpack.i.l.bf16 %v14493_v49 }
 0x2c7   : > { %v11461_v17 = vpop.permute.xlu0 %11460 }
 0x2c8   : > { %v11463_v13 = vunpack.i.h.bf16 %v11461_v17  ;;  %v11462_v51 = vunpack.i.l.bf16 %v11461_v17 }
 0x2ca   : > { %v2895_v18 = vsel %vm361_vm2, %v14440_v23, %v11463_v13  ;;  %v2894_v38 = vsel %vm361_vm2, %v14347_v29, %v11462_v51 }
 0x2cc   : > { %v11396_v42 = vpop.permute.xlu1 %11395 }
 0x2cd   : > { %v11398_v53 = vunpack.i.h.bf16 %v11396_v42  ;;  %v11397_v8 = vunpack.i.l.bf16 %v11396_v42 }
 0x2cf   : > { %v2903_v47 = vsel %vm435_vm4, %v2895_v18, %v11398_v53  ;;  %v2902_v54 = vsel %vm435_vm4, %v2894_v38, %v11397_v8 }
 0x2d0   : > { %v11401_v39 = vpop.permute.xlu1 %11400  ;;  %v11466_v49 = vpop.permute.xlu0 %11465  ;;  %v2910_v58 = vsel %vm866_vm6, %v2902_v54, %v11427_v32 }
 0x2d1   : > { %v11403_v41 = vunpack.i.h.bf16 %v11401_v39  ;;  %v11402_v1 = vunpack.i.l.bf16 %v11401_v39  ;;  %v11468_v32 = vunpack.i.h.bf16 %v11466_v49 }
 0x2d4   : > { %v11406_v44 = vpop.permute.xlu1 %11405  ;;  %v11476_v22 = vpop.permute.xlu0 %11475 }
 0x2d5   : > { %v11408_v5 = vunpack.i.h.bf16 %v11406_v44  ;;  %v11407_v14 = vunpack.i.l.bf16 %v11406_v44  ;;  %v11478_v53 = vunpack.i.h.bf16 %v11476_v22  ;;  %v11477_v8 = vunpack.i.l.bf16 %v11476_v22  ;;  %v3135_v22 = vld [vmem:[#allocation3 + $0x1] sm:$0xff] }
 0x2d8   : > { %v11431_v45 = vpop.permute.xlu1 %11430 }
 0x2d9   : > { %v11433_v30 = vunpack.i.h.bf16 %v11431_v45  ;;  %v11432_v36 = vunpack.i.l.bf16 %v11431_v45 }
 0x2dc   : > { %v11441_v48 = vpop.permute.xlu1 %11440 }
 0x2dd   : > { %v11443_v56 = vunpack.i.h.bf16 %v11441_v48  ;;  %v11442_v6 = vunpack.i.l.bf16 %v11441_v48  ;;  %v11467_v48 = vunpack.i.l.bf16 %v11466_v49 }
 0x2df   : > { %v2893_v46 = vsel %vm361_vm2, %v14345_v9, %v11443_v56  ;;  %v2892_v23 = vsel %vm361_vm2, %v14363_v15, %v11442_v6  ;;  %v2911_v9 = vsel %vm866_vm6, %v2903_v47, %v11428_v26 }
 0x2e0   : > { %v2901_v29 = vsel %vm435_vm4, %v2893_v46, %v11393_v25  ;;  %v2900_v59 = vsel %vm435_vm4, %v2892_v23, %v11392_v34  ;;  %v11446_v62 = vpop.permute.xlu1 %11445 }
 0x2e1   : > { %v2908_v33 = vsel %vm866_vm6, %v2900_v59, %v11402_v1  ;;  %v2909_v16 = vsel %vm866_vm6, %v2901_v29, %v11403_v41  ;;  %v11448_v37 = vunpack.i.h.bf16 %v11446_v62  ;;  %v11447_v4 = vunpack.i.l.bf16 %v11446_v62 }
 0x2e2   : > { %v2916_v40 = vsel %vm884_vm8, %v2908_v33, %v11372_v19  ;;  %v2917_v15 = vsel %vm884_vm8, %v2909_v16, %v11373_v61  ;;  %v11481_v61 = vpop.permute.xlu0 %11480 }
 0x2e3   : > { %v2925_v60 = vsel %vm2922_vm7, %v2916_v40, %v11407_v14  ;;  %v2926_v27 = vsel %vm2922_vm7, %v2917_v15, %v11408_v5  ;;  %v2918_v28 = vsel %vm884_vm8, %v2910_v58, %v11447_v4  ;;  %v2919_v20 = vsel %vm884_vm8, %v2911_v9, %v11448_v37  ;;  %v14581_v40 = vld [vmem:[%s16901_s4] ss:$0 sm:$0xff] }
 0x2e4   : > { %v11456_v50 = vpop.permute.xlu1 %11455  ;;  %v2934_v55 = vsel %vm2931_vm9, %v2925_v60, %v11377_v0  ;;  %v2935_v11 = vsel %vm2931_vm9, %v2926_v27, %v11378_v3  ;;  %v2927_v44 = vsel %vm2922_vm7, %v2918_v28, %v11452_v24  ;;  %v2928_v17 = vsel %vm2922_vm7, %v2919_v20, %v11453_v2  ;;  %v2646_v0 = vld [vmem:[#allocation2 + $0x231] sm:$0xff] }
 0x2e5   : > { %v11458_v21 = vunpack.i.h.bf16 %v11456_v50  ;;  %v11457_v10 = vunpack.i.l.bf16 %v11456_v50  ;;  %v2943_v42 = vsel %vm2940_vm10, %v2934_v55, %v11432_v36  ;;  %v2944_v39 = vsel %vm2940_vm10, %v2935_v11, %v11433_v30 }
 0x2e6   : > { %v2951_v12 = vpack.c.bf16 %v2944_v39, %v2943_v42  ;;  %v2956_v38 = vpack.c.bf16 %v2646_v0, %v14419_v63  ;;  %v11482_v2 = vunpack.i.l.bf16 %v11481_v61  ;;  %v11496_v49 = vpop.permute.xlu0 %11495  ;;  %v12598_v42 = vld [vmem:[%s16902_s5 + $0x78] sm:$0xff]  }
 0x2e7   : > { %v2936_v13 = vsel %vm2931_vm9, %v2927_v44, %v11457_v10  ;;  %v2937_v51 = vsel %vm2931_vm9, %v2928_v17, %v11458_v21  ;;  %v11498_v14 = vunpack.i.h.bf16 %v11496_v49  ;;  %v11497_v29 = vunpack.i.l.bf16 %v11496_v49  ;;  %v12599_v39 = vld [vmem:[%s16902_s5 + $0x38] sm:$0xff]   ;;  %v3143_v17 = vld [vmem:[#allocation3 + $0x2] sm:$0xff]  ;;  %10162 = vmatprep.subr.bf16.mxu1 %v12598_v42 }
 0x2e8   : > { %v11471_v45 = vpop.permute.xlu1 %11470  ;;  %3070 = vmatmul.mubr.bf16.gmra.mxu0 %v2951_v12  ;;  %v2945_v19 = vsel %vm2940_vm10, %v2936_v13, %v11477_v8  ;;  %v2946_v3 = vsel %vm2940_vm10, %v2937_v51, %v11478_v53  ;;  %v12600_v12 = vld [vmem:[%s16902_s5 + $0x70] sm:$0xff]   ;;  %10163 = vmatpush3.bf16.msra.mxu1 %v12599_v39  ;;  %v12602_v8 = vld [vmem:[%s16902_s5 + $0x68] sm:$0xff]  }
 0x2e9   : > { %9623 = vmatprep.mubr.msk.bf16.mxu0 %vm361_vm2, %v2954_v31  ;;  %v2953_v18 = vpack.c.bf16 %v2946_v3, %v2945_v19  ;;  %v11473_v56 = vunpack.i.h.bf16 %v11471_v45  ;;  %v11472_v6 = vunpack.i.l.bf16 %v11471_v45  ;;  %v11483_v31 = vunpack.i.h.bf16 %v11481_v61  ;;  %v12601_v13 = vld [vmem:[%s16902_s5 + $0x30] sm:$0xff]   ;;  %10164 = vmatprep.subr.bf16.mxu1 %v12600_v12  ;;  %v12603_v3 = vld [vmem:[%s16902_s5 + $0x28] sm:$0xff]  }
 0x2ec   : > { %v11486_v25 = vpop.permute.xlu1 %11485  ;;  %10165 = vmatpush3.bf16.msra.mxu1 %v12601_v13 }
 0x2ed   : > { %v11488_v34 = vunpack.i.h.bf16 %v11486_v25  ;;  %v11487_v26 = vunpack.i.l.bf16 %v11486_v25  ;;  %10166 = vmatprep.subr.bf16.mxu1 %v12602_v8  ;;  %v12604_v25 = vld [vmem:[%s16902_s5 + $0x60] sm:$0xff]  }
 0x2ef   : > { %v2897_v57 = vsel %vm361_vm2, %v14431_v52, %v11488_v34  ;;  %v2896_v35 = vsel %vm361_vm2, %v14437_v43, %v11487_v26  ;;  %v12605_v34 = vld [vmem:[%s16902_s5 + $0x20] sm:$0xff]   ;;  %v12606_v26 = vld [vmem:[%s16902_s5 + $0x58] sm:$0xff]  }
 0x2f0   : > { %v2905_v24 = vsel %vm435_vm4, %v2897_v57, %v11468_v32  ;;  %v2904_v47 = vsel %vm435_vm4, %v2896_v35, %v11467_v48  ;;  %v11491_v54 = vpop.permute.xlu1 %11490  ;;  %3078 = vmatmul.mubr.bf16.gmra.mxu0 %v2953_v18  ;;  %10167 = vmatpush3.bf16.msra.mxu1 %v12603_v3  ;;  %v12607_v32 = vld [vmem:[%s16902_s5 + $0x18] sm:$0xff]   ;;  %v12608_v48 = vld [vmem:[%s16902_s5 + $0x50] sm:$0xff]  }
 0x2f1   : > { %v11493_v41 = vunpack.i.h.bf16 %v11491_v54  ;;  %v11492_v1 = vunpack.i.l.bf16 %v11491_v54  ;;  %v2912_v63 = vsel %vm866_vm6, %v2904_v47, %v11472_v6  ;;  %v2913_v46 = vsel %vm866_vm6, %v2905_v24, %v11473_v56  ;;  %9624 = vmatprep.mubr.msk.bf16.mxu0 %vm361_vm2, %v2956_v38  ;;  %10168 = vmatprep.subr.bf16.mxu1 %v12604_v25  ;;  %v12609_v18 = vld [vmem:[%s16902_s5 + $0x10] sm:$0xff]   ;;  %v12611_v47 = vld [vmem:[%s16902_s5 + $0x8] sm:$0xff]  }
 0x2f2   : > { %v2920_v52 = vsel %vm884_vm8, %v2912_v63, %v11482_v2  ;;  %v2921_v43 = vsel %vm884_vm8, %v2913_v46, %v11483_v31  ;;  %v12610_v31 = vld [vmem:[%s16902_s5 + $0x48] sm:$0xff]  }
 0x2f3   : > { %v2929_v23 = vsel %vm2922_vm7, %v2920_v52, %v11492_v1  ;;  %v2930_v5 = vsel %vm2922_vm7, %v2921_v43, %v11493_v41  ;;  %v12612_v41 = vld [vmem:[%s16902_s5 + $0x40] sm:$0xff]  }
 0x2f4   : > { %v11501_v59 = vpop.permute.xlu1 %11500  ;;  %v2938_v16 = vsel %vm2931_vm9, %v2929_v23, %v11497_v29  ;;  %v2939_v37 = vsel %vm2931_vm9, %v2930_v5, %v11498_v14  ;;  %10169 = vmatpush3.bf16.msra.mxu1 %v12605_v34  ;;  %v12613_v1 = vld [vmem:[%s16902_s5] sm:$0xff]  }
 0x2f5   : > { %v11503_v62 = vunpack.i.h.bf16 %v11501_v59  ;;  %v11502_v33 = vunpack.i.l.bf16 %v11501_v59  ;;  %10170 = vmatprep.subr.bf16.mxu1 %v12606_v26 }
 0x2f7   : > { %v2947_v4 = vsel %vm2940_vm10, %v2938_v16, %v11502_v33  ;;  %v2948_v58 = vsel %vm2940_vm10, %v2939_v37, %v11503_v62 }
 0x2f8   : > { %v2955_v9 = vpack.c.bf16 %v2948_v58, %v2947_v4  ;;  %10171 = vmatpush3.bf16.msra.mxu1 %v12607_v32 }
 0x2f9   : > { %10172 = vmatprep.subr.bf16.mxu1 %v12608_v48 }
 0x2fa   : > { %3086 = vmatmul.mubr.bf16.gmra.mxu0 %v2955_v9 }
 0x2fc   : > { %10173 = vmatpush3.bf16.msra.mxu1 %v12609_v18 }
 0x2fd   : > { %10174 = vmatprep.subr.bf16.mxu1 %v12610_v31 }
 0x300   : > { %10175 = vmatpush3.bf16.msra.mxu1 %v12611_v47 }
 0x301   : > { %10176 = vmatprep.subr.bf16.mxu1 %v12612_v41 }
 0x304   : > { %10177 = vmatpush3.bf16.msra.mxu1 %v12613_v1  ;;  %v3191_v1 = vld [vmem:[#allocation3 + $0x91] sm:$0xff] }
 0x36c   : > { %v3063_v15 = vpop.f32.mrf.mxu0 }
 0x36d   : > { %v3064_v30 = vadd.f32 %v14581_v40, %v3063_v15 }
 0x36e   : > { %v3065_v36 = vpop.f32.mrf.mxu0 }
 0x36f   : > { %vm3094_vm2 = vcmp.ge.f32.partialorder %v3064_v30, 0.0  ;;  %v3102_v60 = vmul.f32 0.2, %v3064_v30 }
 0x370   : > { %v3066_v27 = vpop.f32.mrf.mxu0 }
 0x371   : > { %v3110_v28 = vsel %vm3094_vm2, %v3064_v30, %v3102_v60  ;;  %v3067_v20 = vadd.f32 %v14581_v40, %v3066_v27 }
 0x372   : > { %3119 = vst.msk [vmem:[#allocation3 + $0x11] sm:$0xff] %vm435_vm4, %v3110_v28  ;;  %v3068_v50 = vpop.f32.mrf.mxu0 }
 0x373   : > { %vm3095_vm6 = vcmp.ge.f32.partialorder %v3067_v20, 0.0  ;;  %v3103_v55 = vmul.f32 0.2, %v3067_v20 }
 0x375   : > { %v3111_v11 = vsel %vm3095_vm6, %v3067_v20, %v3103_v55 }
 0x376   : > { %3120 = vst.msk [vmem:[#allocation3 + $0x21] sm:$0xff] %vm435_vm4, %v3111_v11 }
 0x379   : > { %v14587_v21 = vld [vmem:[#allocation3 + $0x11] sm:$0xff] }
 0x37a   : > { %v11504_v10 = vpack.i.bf16 %v14587_v21, %v3135_v22  ;;  %v3167_v44 = vld [vmem:[#allocation3 + $0x12] sm:$0xff] }
 0x37b   : > { %v11509_v53 = vpack.i.bf16 %v3167_v44, %v3143_v17  ;;  %v14613_v19 = vld [vmem:[#allocation3 + $0x10] sm:$0xff] }
 0x37c   : > { %11505 = vrot.lane.b32.xlu1 %v11504_v10, %s12818_s22 }
 0x37d   : > { %v14600_v45 = vld [vmem:[#allocation3 + $0x22] sm:$0xff] }
 0x37e   : > { %v11514_v51 = vpack.i.bf16 %v14600_v45, %v3167_v44  ;;  %v14609_v61 = vld [vmem:[#allocation3 + $0x20] sm:$0xff] }
 0x37f   : > { %v11519_v0 = vpack.i.bf16 %v14609_v61, %v14613_v19  ;;  %v14659_v62 = vld [vmem:[#allocation3 + $0x21] sm:$0xff] }
 0x380   : > { %11515 = vrot.lane.b32.xlu0 %v11514_v51, %s12818_s22  ;;  %11510 = vrot.lane.b32.xlu1 %v11509_v53, %s12822_s26  ;;  %v14703_v53 = vld [vmem:[%s16902_s5 + $0x88] sm:$0xff]  }
 0x381   : > { %10602 = vmatprep.subr.bf16.mxu1 %v14703_v53 }
 0x384   : > { %11520 = vrot.lane.b32.xlu1 %v11519_v0, %s12825_s20 }
 0x3a8   : > { %v3071_v38 = vpop.f32.mrf.mxu0 }
 0x3a9   : > { %v3072_v56 = vadd.f32 %v14581_v40, %v3071_v38 }
 0x3aa   : > { %v3073_v6 = vpop.f32.mrf.mxu0 }
 0x3ab   : > { %vm3096_vm11 = vcmp.ge.f32.partialorder %v3072_v56, 0.0  ;;  %v3104_v57 = vmul.f32 0.2, %v3072_v56 }
 0x3ac   : > { %v3074_v35 = vpop.f32.mrf.mxu0 }
 0x3ad   : > { %v3112_v2 = vsel %vm3096_vm11, %v3072_v56, %v3104_v57  ;;  %v3075_v24 = vadd.f32 %v14581_v40, %v3074_v35 }
 0x3ae   : > { %3121 = vst.msk [vmem:[#allocation3 + $0x31] sm:$0xff] %vm435_vm4, %v3112_v2  ;;  %v3076_v54 = vpop.f32.mrf.mxu0 }
 0x3af   : > { %vm3097_vm12 = vcmp.ge.f32.partialorder %v3075_v24, 0.0  ;;  %v3105_v49 = vmul.f32 0.2, %v3075_v24  ;;  %v3183_v54 = vld [vmem:[#allocation3 + $0x90] sm:$0xff] }
 0x3b0   : > { %v3079_v63 = vpop.f32.mrf.mxu0 }
 0x3b1   : > { %v3113_v46 = vsel %vm3097_vm12, %v3075_v24, %v3105_v49  ;;  %v3080_v52 = vadd.f32 %v14581_v40, %v3079_v63 }
 0x3b2   : > { %3122 = vst.msk [vmem:[#allocation3 + $0x41] sm:$0xff] %vm435_vm4, %v3113_v46  ;;  %v3081_v43 = vpop.f32.mrf.mxu0 }
 0x3b3   : > { %vm3098_vm13 = vcmp.ge.f32.partialorder %v3080_v52, 0.0  ;;  %v3106_v23 = vmul.f32 0.2, %v3080_v52 }
 0x3b4   : > { %v3082_v5 = vpop.f32.mrf.mxu0 }
 0x3b5   : > { %v3114_v14 = vsel %vm3098_vm13, %v3080_v52, %v3106_v23  ;;  %v3083_v29 = vadd.f32 %v14581_v40, %v3082_v5  ;;  %v14657_v59 = vld [vmem:[#allocation3 + $0x30] sm:$0xff] }
 0x3b6   : > { %v14661_v33 = vld [vmem:[#allocation3 + $0x31] sm:$0xff]  ;;  %3123 = vst.msk [vmem:[#allocation3 + $0x51] sm:$0xff] %vm435_vm4, %v3114_v14  ;;  %v3084_v16 = vpop.f32.mrf.mxu0  ;;  %v11524_v37 = vpack.i.bf16 %v14657_v59, %v14609_v61 }
 0x3b7   : > { %v11534_v4 = vpack.i.bf16 %v14661_v33, %v14659_v62  ;;  %vm3099_vm14 = vcmp.ge.f32.partialorder %v3083_v29, 0.0  ;;  %v3107_v58 = vmul.f32 0.2, %v3083_v29  ;;  %v14668_v9 = vld [vmem:[#allocation3 + $0x32] sm:$0xff] }
 0x3b8   : > { %11525 = vrot.lane.b32.xlu0 %v11524_v37, %s12822_s26  ;;  %v11539_v36 = vpack.i.bf16 %v14668_v9, %v14600_v45 }
 0x3b9   : > { %11535 = vrot.lane.b32.xlu1 %v11534_v4, %s12818_s22  ;;  %v3115_v15 = vsel %vm3099_vm14, %v3083_v29, %v3107_v58  ;;  %v14676_v27 = vld [vmem:[#allocation3 + $0x42] sm:$0xff] }
 0x3ba   : > { %3124 = vst.msk [vmem:[#allocation3 + $0x61] sm:$0xff] %vm435_vm4, %v3115_v15  ;;  %v3087_v30 = vpop.f32.mrf.mxu0  ;;  %v14678_v28 = vld [vmem:[#allocation3 + $0x40] sm:$0xff]  ;;  %v11544_v11 = vpack.i.bf16 %v14676_v27, %v14668_v9 }
 0x3bb   : > { %v3088_v60 = vadd.f32 %v14581_v40, %v3087_v30  ;;  %v11549_v22 = vpack.i.bf16 %v14678_v28, %v14657_v59  ;;  %v14694_v13 = vld [vmem:[#allocation3 + $0x41] sm:$0xff] }
 0x3bc   : > { %v3089_v20 = vpop.f32.mrf.mxu0  ;;  %11530 = vrot.lane.b32.xlu0 %v11534_v4, %s12825_s20  ;;  %v3127_v58 = vld [vmem:[#allocation3] sm:$0xff] }
 0x3bd   : > { %11540 = vrot.lane.b32.xlu1 %v11539_v36, %s12822_s26  ;;  %vm3100_vm15 = vcmp.ge.f32.partialorder %v3088_v60, 0.0  ;;  %v3108_v50 = vmul.f32 0.2, %v3088_v60  ;;  %v14687_v39 = vld [vmem:[#allocation3 + $0x50] sm:$0xff] }
 0x3be   : > { %v3090_v55 = vpop.f32.mrf.mxu0  ;;  %v14689_v12 = vld [vmem:[#allocation3 + $0x51] sm:$0xff]  ;;  %v11554_v51 = vpack.i.bf16 %v14687_v39, %v14678_v28 }
 0x3bf   : > { %v3116_v10 = vsel %vm3100_vm15, %v3088_v60, %v3108_v50  ;;  %v3091_v42 = vadd.f32 %v14581_v40, %v3090_v55  ;;  %v11564_v40 = vpack.i.bf16 %v14689_v12, %v14694_v13  ;;  %v14705_v3 = vld [vmem:[#allocation3 + $0x52] sm:$0xff] }
 0x3c0   : > { %3125 = vst.msk [vmem:[#allocation3 + $0x71] sm:$0xff] %vm435_vm4, %v3116_v10  ;;  %v3092_v44 = vpop.f32.mrf.mxu0  ;;  %11545 = vrot.lane.b32.xlu0 %v11544_v11, %s12818_s22  ;;  %v11569_v0 = vpack.i.bf16 %v14705_v3, %v14676_v27 }
 0x3c1   : > { %11550 = vrot.lane.b32.xlu1 %v11549_v22, %s12825_s20  ;;  %vm3101_vm0 = vcmp.ge.f32.partialorder %v3091_v42, 0.0  ;;  %v3109_v17 = vmul.f32 0.2, %v3091_v42  ;;  %v14713_v25 = vld [vmem:[#allocation3 + $0x62] sm:$0xff] }
 0x3c2   : > { %v14715_v34 = vld [vmem:[#allocation3 + $0x60] sm:$0xff]  ;;  %v11574_v26 = vpack.i.bf16 %v14713_v25, %v14705_v3 }
 0x3c3   : > { %v3117_v8 = vsel %vm3101_vm0, %v3091_v42, %v3109_v17  ;;  %v11579_v32 = vpack.i.bf16 %v14715_v34, %v14687_v39  ;;  %v14729_v38 = vld [vmem:[#allocation3 + $0x61] sm:$0xff] }
 0x3c4   : > { %3126 = vst.msk [vmem:[#allocation3 + $0x81] sm:$0xff] %vm435_vm4, %v3117_v8  ;;  %11555 = vrot.lane.b32.xlu0 %v11554_v51, %s12822_s26 }
 0x3c5   : > { %11565 = vrot.lane.b32.xlu1 %v11564_v40, %s12818_s22 }
 0x3c7   : > { %v14723_v48 = vld [vmem:[#allocation3 + $0x70] sm:$0xff] }
 0x3c8   : > { %11560 = vrot.lane.b32.xlu0 %v11564_v40, %s12825_s20  ;;  %v14725_v18 = vld [vmem:[#allocation3 + $0x71] sm:$0xff]  ;;  %v11584_v56 = vpack.i.bf16 %v14723_v48, %v14715_v34 }
 0x3c9   : > { %11570 = vrot.lane.b32.xlu1 %v11569_v0, %s12822_s26  ;;  %v11594_v6 = vpack.i.bf16 %v14725_v18, %v14729_v38  ;;  %v14735_v57 = vld [vmem:[#allocation3 + $0x72] sm:$0xff] }
 0x3ca   : > { %v11599_v35 = vpack.i.bf16 %v14735_v57, %v14713_v25 }
 0x3cb   : > { %v14741_v31 = vld [vmem:[#allocation3 + $0x82] sm:$0xff] }
 0x3cc   : > { %11575 = vrot.lane.b32.xlu0 %v11574_v26, %s12818_s22  ;;  %v3158_v2 = vld [vmem:[#allocation3 + $0x80] sm:$0xff]  ;;  %v11604_v24 = vpack.i.bf16 %v14741_v31, %v14735_v57 }
 0x3cd   : > { %11580 = vrot.lane.b32.xlu1 %v11579_v32, %s12825_s20  ;;  %v11619_v47 = vpack.i.bf16 %v3158_v2, %v14723_v48  ;;  %v11609_v49 = vpack.i.bf16 %v3183_v54, %v3158_v2  ;;  %v14750_v41 = vld [vmem:[#allocation3 + $0x81] sm:$0xff] }
 0x3ce   : > { %v11614_v63 = vpack.i.bf16 %v3191_v1, %v14750_v41  ;;  %v12615_v54 = vld [vmem:[%s16902_s5 + $0x80] sm:$0xff]  }
 0x3d0   : > { %11585 = vrot.lane.b32.xlu0 %v11584_v56, %s12822_s26 }
 0x3d1   : > { %11595 = vrot.lane.b32.xlu1 %v11594_v6, %s12818_s22 }
 0x3d4   : > { %11590 = vrot.lane.b32.xlu0 %v11594_v6, %s12825_s20 }
 0x3d5   : > { %11600 = vrot.lane.b32.xlu1 %v11599_v35, %s12822_s26 }
 0x3d8   : > { %11605 = vrot.lane.b32.xlu0 %v11604_v24, %s12818_s22 }
 0x3d9   : > { %11620 = vrot.lane.b32.xlu1 %v11619_v47, %s12825_s20 }
 0x3dc   : > { %11610 = vrot.lane.b32.xlu0 %v11609_v49, %s12822_s26 }
 0x3e0   : > { %11615 = vrot.lane.b32.xlu0 %v11614_v63, %s12825_s20 }
 0x3ee   : > { %v11506_v46 = vpop.permute.xlu1 %11505 }
 0x3ef   : > { %v11508_v5 = vunpack.i.h.bf16 %v11506_v46  ;;  %v11507_v14 = vunpack.i.l.bf16 %v11506_v46 }
 0x3f1   : > { %v3429_v55 = vsel %vm435_vm4, %v3127_v58, %v11507_v14  ;;  %v3430_v11 = vsel %vm435_vm4, %v14613_v19, %v11508_v5 }
 0x3f2   : > { %v11511_v52 = vpop.permute.xlu1 %11510  ;;  %v11516_v43 = vpop.permute.xlu0 %11515 }
 0x3f3   : > { %v11518_v29 = vunpack.i.h.bf16 %v11516_v43  ;;  %v11517_v16 = vunpack.i.l.bf16 %v11516_v43  ;;  %v11513_v15 = vunpack.i.h.bf16 %v11511_v52  ;;  %v11512_v30 = vunpack.i.l.bf16 %v11511_v52 }
 0x3f5   : > { %v3454_v22 = vsel %vm435_vm4, %v14659_v62, %v11518_v29  ;;  %v3453_v10 = vsel %vm435_vm4, %v14587_v21, %v11517_v16  ;;  %v3437_v17 = vsel %vm884_vm8, %v3429_v55, %v11512_v30  ;;  %v3438_v51 = vsel %vm884_vm8, %v3430_v11, %v11513_v15 }
 0x3f6   : > { %v11521_v23 = vpop.permute.xlu1 %11520 }
 0x3f7   : > { %v11523_v36 = vunpack.i.h.bf16 %v11521_v23  ;;  %v11522_v60 = vunpack.i.l.bf16 %v11521_v23 }
 0x3f9   : > { %v3445_v0 = vsel %vm2931_vm9, %v3437_v17, %v11522_v60  ;;  %v3446_v26 = vsel %vm2931_vm9, %v3438_v51, %v11523_v36 }
 0x3fa   : > { %v3477_v47 = vpack.c.bf16 %v3446_v26, %v3445_v0 }
 0x42a   : > { %v11526_v37 = vpop.permute.xlu0 %11525 }
 0x42b   : > { %v11536_v4 = vpop.permute.xlu1 %11535  ;;  %v11528_v20 = vunpack.i.h.bf16 %v11526_v37  ;;  %v11527_v50 = vunpack.i.l.bf16 %v11526_v37 }
 0x42c   : > { %v11538_v49 = vunpack.i.h.bf16 %v11536_v4  ;;  %v11537_v1 = vunpack.i.l.bf16 %v11536_v4 }
 0x42d   : > { %v3461_v19 = vsel %vm884_vm8, %v3453_v10, %v11527_v50  ;;  %v3462_v32 = vsel %vm884_vm8, %v3454_v22, %v11528_v20 }
 0x42e   : > { %v11531_v42 = vpop.permute.xlu0 %11530  ;;  %v3432_v58 = vsel %vm435_vm4, %v14657_v59, %v11538_v49  ;;  %v3431_v4 = vsel %vm435_vm4, %v14609_v61, %v11537_v1 }
 0x42f   : > { %v11541_v44 = vpop.permute.xlu1 %11540  ;;  %v11533_v40 = vunpack.i.h.bf16 %v11531_v42  ;;  %v11532_v8 = vunpack.i.l.bf16 %v11531_v42 }
 0x430   : > { %v11543_v63 = vunpack.i.h.bf16 %v11541_v44  ;;  %v11542_v46 = vunpack.i.l.bf16 %v11541_v44 }
 0x431   : > { %v3469_v56 = vsel %vm2931_vm9, %v3461_v19, %v11532_v8  ;;  %v3470_v6 = vsel %vm2931_vm9, %v3462_v32, %v11533_v40 }
 0x432   : > { %v11546_v35 = vpop.permute.xlu0 %11545  ;;  %v3478_v24 = vpack.c.bf16 %v3470_v6, %v3469_v56  ;;  %v3439_v36 = vsel %vm884_vm8, %v3431_v4, %v11542_v46  ;;  %v3440_v60 = vsel %vm884_vm8, %v3432_v58, %v11543_v63 }
 0x433   : > { %v11551_v2 = vpop.permute.xlu1 %11550  ;;  %v11548_v23 = vunpack.i.h.bf16 %v11546_v35  ;;  %v11547_v5 = vunpack.i.l.bf16 %v11546_v35 }
 0x434   : > { %3647 = vmatprep.mubr.bf16.mxu1 %v3478_v24  ;;  %v11553_v14 = vunpack.i.h.bf16 %v11551_v2  ;;  %v11552_v29 = vunpack.i.l.bf16 %v11551_v2 }
 0x435   : > { %3648 = vmatmul.mubr.bf16.vlgmr.msra.gmra.mxu1 %v3477_v47  ;;  %v3455_v20 = vsel %vm435_vm4, %v14661_v33, %v11547_v5 }
 0x436   : > { %v11556_v52 = vpop.permute.xlu0 %11555  ;;  %10603 = vmatpush3.bf16.msra.mxu1 %v14703_v53  ;;  %v3456_v53 = vsel %vm435_vm4, %v14694_v13, %v11548_v23  ;;  %v3447_v61 = vsel %vm2931_vm9, %v3439_v36, %v11552_v29  ;;  %v3448_v22 = vsel %vm2931_vm9, %v3440_v60, %v11553_v14 }
 0x437   : > { %v11566_v43 = vpop.permute.xlu1 %11565  ;;  %10604 = vmatprep.subr.bf16.mxu1 %v12615_v54  ;;  %v11558_v16 = vunpack.i.h.bf16 %v11556_v52  ;;  %v11557_v37 = vunpack.i.l.bf16 %v11556_v52  ;;  %v3480_v40 = vpack.c.bf16 %v3448_v22, %v3447_v61 }
 0x438   : > { %v11568_v8 = vunpack.i.h.bf16 %v11566_v43  ;;  %v11567_v0 = vunpack.i.l.bf16 %v11566_v43 }
 0x439   : > { %v3463_v59 = vsel %vm884_vm8, %v3455_v20, %v11557_v37  ;;  %v3464_v11 = vsel %vm884_vm8, %v3456_v53, %v11558_v16 }
 0x43a   : > { %v11561_v15 = vpop.permute.xlu0 %11560  ;;  %10605 = vmatpush3.bf16.msra.mxu1 %v12615_v54  ;;  %v3434_v49 = vsel %vm435_vm4, %v14687_v39, %v11568_v8  ;;  %v3433_v1 = vsel %vm435_vm4, %v14678_v28, %v11567_v0 }
 0x43b   : > { %v11571_v30 = vpop.permute.xlu1 %11570  ;;  %v11563_v50 = vunpack.i.h.bf16 %v11561_v15  ;;  %v11562_v55 = vunpack.i.l.bf16 %v11561_v15 }
 0x43c   : > { %v11573_v26 = vunpack.i.h.bf16 %v11571_v30  ;;  %v11572_v19 = vunpack.i.l.bf16 %v11571_v30 }
 0x43d   : > { %v3471_v10 = vsel %vm2931_vm9, %v3463_v59, %v11562_v55  ;;  %v3472_v42 = vsel %vm2931_vm9, %v3464_v11, %v11563_v50 }
 0x43e   : > { %v11576_v44 = vpop.permute.xlu0 %11575  ;;  %v3481_v51 = vpack.c.bf16 %v3472_v42, %v3471_v10  ;;  %v3441_v46 = vsel %vm884_vm8, %v3433_v1, %v11572_v19  ;;  %v3442_v52 = vsel %vm884_vm8, %v3434_v49, %v11573_v26  ;;  %v3479_v49 = vpack.c.bf16 %v14668_v9, %v14600_v45  ;;  %v12616_v45 = vld [vmem:[%s16902_s5 + $0x118] sm:$0xff]   ;;  %v12617_v9 = vld [vmem:[%s16902_s5 + $0x110] sm:$0xff]  }
 0x43f   : > { %v11581_v17 = vpop.permute.xlu1 %11580  ;;  %v11578_v6 = vunpack.i.h.bf16 %v11576_v44  ;;  %v11577_v35 = vunpack.i.l.bf16 %v11576_v44  ;;  %v3482_v1 = vpack.c.bf16 %v14705_v3, %v14676_v27  ;;  %10614 = vmatprep.subr.bf16.mxu1 %v12616_v45  ;;  %v12618_v27 = vld [vmem:[%s16902_s5 + $0x108] sm:$0xff]  }
 0x440   : > { %3655 = vmatprep.mubr.bf16.mxu1 %v3481_v51  ;;  %v11583_v2 = vunpack.i.h.bf16 %v11581_v17  ;;  %v11582_v24 = vunpack.i.l.bf16 %v11581_v17  ;;  %v12619_v3 = vld [vmem:[%s16902_s5 + $0xc8] sm:$0xff]   ;;  %10208 = vmatprep.subr.bf16.mxu0 %v12618_v27  ;;  %v12624_v27 = vld [vmem:[%s16902_s5 + $0xf0] sm:$0xff]  }
 0x441   : > { %3656 = vmatmul.mubr.bf16.gmra.mxu1 %v3480_v40  ;;  %v3458_v43 = vsel %vm435_vm4, %v14729_v38, %v11578_v6  ;;  %v3457_v23 = vsel %vm435_vm4, %v14689_v12, %v11577_v35  ;;  %10209 = vmatpush3.bf16.msra.mxu0 %v12619_v3 }
 0x442   : > { %v11586_v32 = vpop.permute.xlu0 %11585  ;;  %v3449_v28 = vsel %vm2931_vm9, %v3441_v46, %v11582_v24  ;;  %v3450_v37 = vsel %vm2931_vm9, %v3442_v52, %v11583_v2  ;;  %v3199_v46 = vld [vmem:[#allocation3 + $0x92] sm:$0xff] }
 0x443   : > { %v11596_v56 = vpop.permute.xlu1 %11595  ;;  %v11588_v47 = vunpack.i.h.bf16 %v11586_v32  ;;  %v11587_v54 = vunpack.i.l.bf16 %v11586_v32  ;;  %v3483_v36 = vpack.c.bf16 %v3450_v37, %v3449_v28  ;;  %v3488_v52 = vpack.c.bf16 %v3199_v46, %v14741_v31  ;;  %v12622_v31 = vld [vmem:[%s16902_s5 + $0xf8] sm:$0xff]  }
 0x444   : > { %v11598_v60 = vunpack.i.h.bf16 %v11596_v56  ;;  %v11597_v53 = vunpack.i.l.bf16 %v11596_v56 }
 0x445   : > { %v3465_v16 = vsel %vm884_vm8, %v3457_v23, %v11587_v54  ;;  %v3466_v39 = vsel %vm884_vm8, %v3458_v43, %v11588_v47  ;;  %v12623_v43 = vld [vmem:[%s16902_s5 + $0xb8] sm:$0xff]  }
 0x446   : > { %v11591_v63 = vpop.permute.xlu0 %11590  ;;  %v3436_v17 = vsel %vm435_vm4, %v14723_v48, %v11598_v60  ;;  %v3435_v51 = vsel %vm435_vm4, %v14715_v34, %v11597_v53 }
 0x447   : > { %v11593_v5 = vunpack.i.h.bf16 %v11591_v63  ;;  %v11592_v14 = vunpack.i.l.bf16 %v11591_v63  ;;  %v11601_v29 = vpop.permute.xlu1 %11600  ;;  %v3485_v63 = vpack.c.bf16 %v14735_v57, %v14713_v25  ;;  %v12620_v25 = vld [vmem:[%s16902_s5 + $0x100] sm:$0xff]  }
 0x448   : > { %v11603_v50 = vunpack.i.h.bf16 %v11601_v29  ;;  %v11602_v55 = vunpack.i.l.bf16 %v11601_v29  ;;  %v12621_v57 = vld [vmem:[%s16902_s5 + $0xc0] sm:$0xff]   ;;  %10210 = vmatprep.subr.bf16.mxu0 %v12620_v25 }
 0x449   : > { %v3473_v58 = vsel %vm2931_vm9, %v3465_v16, %v11592_v14  ;;  %v3474_v4 = vsel %vm2931_vm9, %v3466_v39, %v11593_v5  ;;  %10211 = vmatpush3.bf16.msra.mxu0 %v12621_v57 }
 0x44a   : > { %v11606_v15 = vpop.permute.xlu0 %11605  ;;  %v3484_v30 = vpack.c.bf16 %v3474_v4, %v3473_v58  ;;  %v3443_v8 = vsel %vm884_vm8, %v3435_v51, %v11602_v55  ;;  %v3444_v0 = vsel %vm884_vm8, %v3436_v17, %v11603_v50  ;;  %10212 = vmatprep.subr.bf16.mxu0 %v12622_v31  ;;  %v12625_v31 = vld [vmem:[%s16902_s5 + $0xb0] sm:$0xff]  }
 0x44b   : > { %v11621_v20 = vpop.permute.xlu1 %11620  ;;  %v11608_v11 = vunpack.i.h.bf16 %v11606_v15  ;;  %v11607_v61 = vunpack.i.l.bf16 %v11606_v15 }
 0x44c   : > { %3663 = vmatprep.mubr.bf16.mxu1 %v3484_v30  ;;  %v11623_v22 = vunpack.i.h.bf16 %v11621_v20  ;;  %v11622_v10 = vunpack.i.l.bf16 %v11621_v20 }
 0x44d   : > { %3664 = vmatmul.mubr.bf16.gmra.mxu1 %v3483_v36  ;;  %v3460_v26 = vsel %vm435_vm4, %v14750_v41, %v11608_v11  ;;  %v3459_v19 = vsel %vm435_vm4, %v14725_v18, %v11607_v61  ;;  %10213 = vmatpush3.bf16.msra.mxu0 %v12623_v43 }
 0x44e   : > { %v11611_v59 = vpop.permute.xlu0 %11610  ;;  %v3451_v35 = vsel %vm2931_vm9, %v3443_v8, %v11622_v10  ;;  %v3452_v34 = vsel %vm2931_vm9, %v3444_v0, %v11623_v22  ;;  %v14863_v10 = vld [vmem:[%s16904_s7] ss:$0 sm:$0xff]  ;;  %10214 = vmatprep.subr.bf16.mxu0 %v12624_v27 }
 0x44f   : > { %v11613_v42 = vunpack.i.h.bf16 %v11611_v59  ;;  %v11612_v44 = vunpack.i.l.bf16 %v11611_v59  ;;  %v3486_v54 = vpack.c.bf16 %v3452_v34, %v3451_v35  ;;  %v9625_v59 = vld [vmem:[%s16903_s6] ss:$0 sm:$0xff] }
 0x451   : > { %v3467_v6 = vsel %vm884_vm8, %v3459_v19, %v11612_v44  ;;  %v3468_v48 = vsel %vm884_vm8, %v3460_v26, %v11613_v42  ;;  %10215 = vmatpush3.bf16.msra.mxu0 %v12625_v31 }
 0x452   : > { %v11616_v40 = vpop.permute.xlu0 %11615 }
 0x453   : > { %v11618_v32 = vunpack.i.h.bf16 %v11616_v40  ;;  %v11617_v56 = vunpack.i.l.bf16 %v11616_v40 }
 0x455   : > { %v3475_v2 = vsel %vm2931_vm9, %v3467_v6, %v11617_v56  ;;  %v3476_v24 = vsel %vm2931_vm9, %v3468_v48, %v11618_v32 }
 0x456   : > { %v3487_v47 = vpack.c.bf16 %v3476_v24, %v3475_v2 }
 0x458   : > { %3671 = vmatprep.mubr.bf16.mxu1 %v3487_v47 }
 0x459   : > { %3672 = vmatmul.mubr.bf16.gmra.mxu1 %v3486_v54 }
 0x45a   : > { %10606 = vmatprep.mubr.msk.bf16.mxu1 %vm435_vm4, %v3479_v49 }
 0x461   : > { %10607 = vmatmul.mubr.msk.bf16.vlgmr.msra.gmra.mxu1 %vm435_vm4, %v3482_v1 }
 0x462   : > { %10610 = vmatprep.mubr.msk.bf16.mxu1 %vm435_vm4, %v3485_v63  ;;  %10615 = vmatpush3.bf16.msra.mxu1 %v12616_v45 }
 0x463   : > { %10616 = vmatprep.subr.bf16.mxu1 %v12617_v9 }
 0x466   : > { %10617 = vmatpush3.bf16.msra.mxu1 %v12617_v9 }
 0x469   : > { %10611 = vmatmul.mubr.msk.bf16.gmra.mxu1 %vm435_vm4, %v3488_v52 }
 0x4f5   : > { %v10178_v23 = vpop.f32.mrf.mxu1 }
 0x4f7   : > { %v10179_v5 = vpop.f32.mrf.mxu1 }
 0x4f8   : > { %v10180_v50 = vadd.f32 %v10179_v5, %v10178_v23 }
 0x4f9   : > { %v10181_v14 = vpop.f32.mrf.mxu1 }
 0x4fa   : > { %v3650_v44 = vadd.f32 %v10180_v50, %v9625_v59 }
 0x4fb   : > { %v10182_v29 = vpop.f32.mrf.mxu1 }
 0x4fc   : > { %v10183_v17 = vadd.f32 %v10182_v29, %v10181_v14 }
 0x4fe   : > { %v3653_v34 = vadd.f32 %v10183_v17, %v9625_v59 }
 0x501   : > { %v10184_v16 = vpop.f32.mrf.mxu1 }
 0x503   : > { %v10185_v39 = vpop.f32.mrf.mxu1 }
 0x504   : > { %v10186_v53 = vadd.f32 %v10185_v39, %v10184_v16 }
 0x505   : > { %v10187_v28 = vpop.f32.mrf.mxu1 }
 0x506   : > { %v3658_v61 = vadd.f32 %v10186_v53, %v9625_v59 }
 0x507   : > { %v10188_v37 = vpop.f32.mrf.mxu1 }
 0x508   : > { %v10189_v11 = vadd.f32 %v10188_v37, %v10187_v28 }
 0x50a   : > { %v3661_v0 = vadd.f32 %v10189_v11, %v9625_v59  ;;  %v3810_v11 = vld [vmem:[#allocation3 + $0xa1] sm:$0xff] }
 0x50d   : > { %v10190_v58 = vpop.f32.mrf.mxu1 }
 0x50f   : > { %v10191_v4 = vpop.f32.mrf.mxu1 }
 0x510   : > { %v10192_v26 = vadd.f32 %v10191_v4, %v10190_v58  ;;  %v12626_v58 = vld [vmem:[%s16902_s5 + $0xe8] sm:$0xff]  }
 0x511   : > { %v10193_v15 = vpop.f32.mrf.mxu1  ;;  %10216 = vmatprep.subr.bf16.mxu0 %v12626_v58 }
 0x512   : > { %v3666_v52 = vadd.f32 %v10192_v26, %v9625_v59 }
 0x513   : > { %v10194_v30 = vpop.f32.mrf.mxu1 }
 0x514   : > { %v10195_v49 = vadd.f32 %v10194_v30, %v10193_v15  ;;  %v12627_v30 = vld [vmem:[%s16902_s5 + $0xa8] sm:$0xff]  }
 0x515   : > { %10217 = vmatpush3.bf16.msra.mxu0 %v12627_v30 }
 0x516   : > { %v3669_v37 = vadd.f32 %v10195_v49, %v9625_v59 }
 0x519   : > { %v10196_v36 = vpop.f32.mrf.mxu1 }
 0x51b   : > { %v10197_v60 = vpop.f32.mrf.mxu1 }
 0x51c   : > { %v10198_v19 = vadd.f32 %v10197_v60, %v10196_v36 }
 0x51d   : > { %v10199_v20 = vpop.f32.mrf.mxu1 }
 0x51e   : > { %v3674_v63 = vadd.f32 %v10198_v19, %v9625_v59 }
 0x51f   : > { %v10200_v55 = vpop.f32.mrf.mxu1 }
 0x520   : > { %v10201_v35 = vadd.f32 %v10200_v55, %v10199_v20 }
 0x521   : > { %v10608_v22 = vpop.f32.mrf.mxu1 }
 0x522   : > { %v3723_v42 = vadd.f32 %v10608_v22, %v3658_v61  ;;  %v3677_v57 = vadd.f32 %v10201_v35, %v9625_v59  ;;  %v12629_v22 = vld [vmem:[%s16902_s5 + $0xa0] sm:$0xff]  }
 0x523   : > { %v3714_v51 = vpop.f32.mrf.mxu1 }
 0x524   : > { %v3754_v40 = vmul.f32 %v14863_v10, %v3723_v42  ;;  %v3715_v8 = vadd.f32 %v3714_v51, %v3650_v44  ;;  %v3818_v51 = vld [vmem:[#allocation3 + $0xa2] sm:$0xff] }
 0x525   : > { %v10609_v32 = vpop.f32.mrf.mxu1 }
 0x526   : > { %v3762_v56 = vadd.f32 %v3754_v40, %v14661_v33  ;;  %v3752_v6 = vmul.f32 %v14863_v10, %v3715_v8  ;;  %v3726_v48 = vadd.f32 %v10609_v32, %v3661_v0  ;;  %v12630_v32 = vld [vmem:[%s16902_s5 + $0xd8] sm:$0xff]  }
 0x527   : > { %v3717_v2 = vpop.f32.mrf.mxu1 }
 0x528   : > { %vm3770_vm1 = vcmp.ge.f32.partialorder %v3762_v56, 0.0  ;;  %v3778_v24 = vmul.f32 0.2, %v3762_v56  ;;  %v3760_v47 = vadd.f32 %v3752_v6, %v14587_v21  ;;  %v3755_v54 = vmul.f32 %v14863_v10, %v3726_v48 }
 0x529   : > { %v3718_v1 = vadd.f32 %v3717_v2, %v3653_v34  ;;  %v10612_v46 = vpop.f32.mrf.mxu1 }
 0x52a   : > { %v3786_v45 = vsel %vm3770_vm1, %v3762_v56, %v3778_v24  ;;  %vm3768_vm3 = vcmp.ge.f32.partialorder %v3760_v47, 0.0  ;;  %v3776_v33 = vmul.f32 0.2, %v3760_v47  ;;  %v3763_v9 = vadd.f32 %v3755_v54, %v14694_v13  ;;  %v12631_v56 = vld [vmem:[%s16902_s5 + $0x98] sm:$0xff]   ;;  %v12632_v24 = vld [vmem:[%s16902_s5 + $0xd0] sm:$0xff]  }
 0x52b   : > { %3795 = vst.msk [vmem:[#allocation3 + $0xd1] sm:$0xff] %vm435_vm4, %v3786_v45  ;;  %v3753_v21 = vmul.f32 %v14863_v10, %v3718_v1  ;;  %v3739_v3 = vadd.f32 %v10612_v46, %v3674_v63  ;;  %v3730_v25 = vpop.f32.mrf.mxu1 }
 0x52c   : > { %v3784_v43 = vsel %vm3768_vm3, %v3760_v47, %v3776_v33  ;;  %vm3771_vm5 = vcmp.ge.f32.partialorder %v3763_v9, 0.0  ;;  %v3779_v23 = vmul.f32 0.2, %v3763_v9  ;;  %v3731_v5 = vadd.f32 %v3730_v25, %v3666_v52  ;;  %v12633_v52 = vld [vmem:[%s16902_s5 + $0x90] sm:$0xff]  }
 0x52d   : > { %3793 = vst.msk [vmem:[#allocation3 + $0xb1] sm:$0xff] %vm435_vm4, %v3784_v43  ;;  %v3761_v13 = vadd.f32 %v3753_v21, %v14659_v62  ;;  %v3758_v14 = vmul.f32 %v14863_v10, %v3739_v3  ;;  %v10613_v29 = vpop.f32.mrf.mxu1  ;;  %v3874_v43 = vld [vmem:[#allocation3 + $0x132] sm:$0xff] }
 0x52e   : > { %v3787_v16 = vsel %vm3771_vm5, %v3763_v9, %v3779_v23  ;;  %v3756_v39 = vmul.f32 %v14863_v10, %v3731_v5  ;;  %v3742_v28 = vadd.f32 %v10613_v29, %v3677_v57 }
 0x52f   : > { %3796 = vst.msk [vmem:[#allocation3 + $0xe1] sm:$0xff] %vm435_vm4, %v3787_v16  ;;  %vm3769_vm7 = vcmp.ge.f32.partialorder %v3761_v13, 0.0  ;;  %v3777_v4 = vmul.f32 0.2, %v3761_v13  ;;  %v3766_v15 = vadd.f32 %v3758_v14, %v14725_v18  ;;  %v3733_v62 = vpop.f32.mrf.mxu1 }
 0x530   : > { %v3764_v36 = vadd.f32 %v3756_v39, %v14689_v12  ;;  %v3759_v60 = vmul.f32 %v14863_v10, %v3742_v28  ;;  %v3734_v53 = vadd.f32 %v3733_v62, %v3669_v37  ;;  %v12628_v12 = vld [vmem:[%s16902_s5 + $0xe0] sm:$0xff]  }
 0x531   : > { %v3785_v20 = vsel %vm3769_vm7, %v3761_v13, %v3777_v4  ;;  %vm3774_vm10 = vcmp.ge.f32.partialorder %v3766_v15, 0.0  ;;  %v3782_v50 = vmul.f32 0.2, %v3766_v15  ;;  %10218 = vmatprep.subr.bf16.mxu0 %v12628_v12 }
 0x532   : > { %3794 = vst.msk [vmem:[#allocation3 + $0xc1] sm:$0xff] %vm435_vm4, %v3785_v20  ;;  %vm3772_vm2 = vcmp.ge.f32.partialorder %v3764_v36, 0.0  ;;  %v3780_v55 = vmul.f32 0.2, %v3764_v36  ;;  %v3767_v18 = vadd.f32 %v3759_v60, %v14750_v41  ;;  %v3757_v59 = vmul.f32 %v14863_v10, %v3734_v53  ;;  %v3844_v0 = vld [vmem:[#allocation3 + $0xd2] sm:$0xff]  ;;  %10219 = vmatpush3.bf16.msra.mxu0 %v12629_v22 }
 0x533   : > { %v3790_v61 = vsel %vm3774_vm10, %v3766_v15, %v3782_v50  ;;  %10220 = vmatprep.subr.bf16.mxu0 %v12630_v32  ;;  %v14928_v49 = vld [vmem:[#allocation3 + $0xd0] sm:$0xff] }
 0x534   : > { %3799 = vst.msk [vmem:[#allocation3 + $0x111] sm:$0xff] %vm435_vm4, %v3790_v61  ;;  %v3788_v42 = vsel %vm3772_vm2, %v3764_v36, %v3780_v55  ;;  %vm3775_vm6 = vcmp.ge.f32.partialorder %v3767_v18, 0.0  ;;  %v3783_v44 = vmul.f32 0.2, %v3767_v18  ;;  %v3765_v17 = vadd.f32 %v3757_v59, %v14729_v38  ;;  %v14904_v41 = vld [vmem:[#allocation3 + $0xb1] sm:$0xff] }
 0x535   : > { %3797 = vst.msk [vmem:[#allocation3 + $0xf1] sm:$0xff] %vm435_vm4, %v3788_v42  ;;  %v11624_v10 = vpack.i.bf16 %v14904_v41, %v3810_v11  ;;  %v3819_v19 = vld [vmem:[#allocation3 + $0xb2] sm:$0xff] }
 0x536   : > { %v3791_v40 = vsel %vm3775_vm6, %v3767_v18, %v3783_v44  ;;  %vm3773_vm11 = vcmp.ge.f32.partialorder %v3765_v17, 0.0  ;;  %v3781_v8 = vmul.f32 0.2, %v3765_v17  ;;  %v14908_v26 = vld [vmem:[#allocation3 + $0xe2] sm:$0xff]  ;;  %v11629_v35 = vpack.i.bf16 %v3819_v19, %v3818_v51  ;;  %10221 = vmatpush3.bf16.msra.mxu0 %v12631_v56  ;;  %v14943_v33 = vld [vmem:[#allocation3 + $0xb0] sm:$0xff] }
 0x537   : > { %3800 = vst.msk [vmem:[#allocation3 + $0x121] sm:$0xff] %vm435_vm4, %v3791_v40  ;;  %11625 = vrot.lane.b32.xlu1 %v11624_v10, %s12818_s22  ;;  %v11634_v38 = vpack.i.bf16 %v14908_v26, %v3844_v0  ;;  %v14921_v2 = vld [vmem:[#allocation3 + $0xe0] sm:$0xff]  ;;  %10222 = vmatprep.subr.bf16.mxu0 %v12632_v24  ;;  %v14950_v57 = vld [vmem:[#allocation3 + $0xd1] sm:$0xff] }
 0x538   : > { %v3789_v6 = vsel %vm3773_vm11, %v3765_v17, %v3781_v8  ;;  %v11639_v46 = vpack.i.bf16 %v14921_v2, %v14928_v49  ;;  %v14966_v39 = vld [vmem:[#allocation3 + $0xe1] sm:$0xff]  ;;  %v3858_v55 = vld [vmem:[#allocation3 + $0x130] sm:$0xff] }
 0x539   : > { %3798 = vst.msk [vmem:[#allocation3 + $0x101] sm:$0xff] %vm435_vm4, %v3789_v6  ;;  %11635 = vrot.lane.b32.xlu0 %v11634_v38, %s12818_s22  ;;  %v3867_v48 = vld [vmem:[#allocation3 + $0xc2] sm:$0xff]  ;;  %v3866_v61 = vld [vmem:[#allocation3 + $0x131] sm:$0xff] }
 0x53a   : > { %v4156_v34 = vpack.c.bf16 %v3844_v0, %v3867_v48  ;;  %v11644_v47 = vpack.i.bf16 %v3867_v48, %v3819_v19  ;;  %v14930_v1 = vld [vmem:[#allocation3 + $0xc0] sm:$0xff]  ;;  %10223 = vmatpush3.bf16.msra.mxu0 %v12633_v52  ;;  %v11669_v16 = vpack.i.bf16 %v3844_v0, %v3867_v48 }
 0x53b   : > { %11630 = vrot.lane.b32.xlu1 %v11629_v35, %s12822_s26  ;;  %v11649_v45 = vpack.i.bf16 %v14928_v49, %v14930_v1  ;;  %v3872_v27 = vld [vmem:[#allocation3 + $0x112] sm:$0xff]  ;;  %v14945_v21 = vld [vmem:[#allocation3 + $0xc1] sm:$0xff]  ;;  %v11659_v25 = vpack.i.bf16 %v14930_v1, %v14943_v33 }
 0x53c   : > { %10618 = vmatprep.mubr.msk.bf16.mxu1 %vm435_vm4, %v4156_v34  ;;  %v3870_v54 = vld [vmem:[#allocation3 + $0xf2] sm:$0xff]  ;;  %v11654_v23 = vpack.i.bf16 %v14950_v57, %v14945_v21  ;;  %v3802_v0 = vld [vmem:[#allocation3 + $0xa0] sm:$0xff] }
 0x53d   : > { %11645 = vrot.lane.b32.xlu0 %v11644_v47, %s12818_s22  ;;  %v4159_v63 = vpack.c.bf16 %v3870_v54, %v14908_v26  ;;  %v14956_v5 = vld [vmem:[#allocation3 + $0xf0] sm:$0xff]  ;;  %v11689_v58 = vpack.i.bf16 %v3870_v54, %v14908_v26 }
 0x53e   : > { %v3873_v31 = vld [vmem:[#allocation3 + $0x122] sm:$0xff]  ;;  %v11674_v14 = vpack.i.bf16 %v14956_v5, %v14921_v2  ;;  %v14963_v29 = vld [vmem:[#allocation3 + $0xf1] sm:$0xff] }
 0x53f   : > { %10619 = vmatmul.mubr.msk.bf16.vlgmr.msra.gmra.mxu1 %vm435_vm4, %v4159_v63  ;;  %11640 = vrot.lane.b32.xlu1 %v11639_v46, %s12825_s20  ;;  %v4165_v13 = vpack.c.bf16 %v3874_v43, %v3873_v31  ;;  %v11679_v28 = vpack.i.bf16 %v14963_v29, %v14966_v39  ;;  %v11694_v37 = vpack.i.bf16 %v3873_v31, %v3872_v27  ;;  %v14981_v30 = vld [vmem:[#allocation3 + $0x110] sm:$0xff]  ;;  %v3857_v50 = vld [vmem:[#allocation3 + $0x120] sm:$0xff] }
 0x540   : > { %v3871_v9 = vld [vmem:[#allocation3 + $0x102] sm:$0xff]  ;;  %v14988_v53 = vld [vmem:[#allocation3 + $0x111] sm:$0xff]  ;;  %v11714_v59 = vpack.i.bf16 %v3858_v55, %v3857_v50  ;;  %v11739_v12 = vpack.i.bf16 %v3857_v50, %v14981_v30 }
 0x541   : > { %11650 = vrot.lane.b32.xlu0 %v11649_v45, %s12822_s26  ;;  %v4162_v3 = vpack.c.bf16 %v3872_v27, %v3871_v9  ;;  %v14975_v4 = vld [vmem:[#allocation3 + $0x100] sm:$0xff]  ;;  %v11699_v15 = vpack.i.bf16 %v3871_v9, %v3870_v54  ;;  %v11734_v18 = vpack.i.bf16 %v3872_v27, %v3871_v9 }
 0x542   : > { %v11724_v62 = vpack.i.bf16 %v14975_v4, %v14956_v5  ;;  %v14983_v36 = vld [vmem:[#allocation3 + $0x101] sm:$0xff]  ;;  %v11704_v60 = vpack.i.bf16 %v14981_v30, %v14975_v4 }
 0x543   : > { %10622 = vmatprep.mubr.msk.bf16.mxu1 %vm435_vm4, %v4162_v3  ;;  %11660 = vrot.lane.b32.xlu1 %v11659_v25, %s12825_s20  ;;  %v11729_v20 = vpack.i.bf16 %v14988_v53, %v14983_v36  ;;  %v14996_v11 = vld [vmem:[#allocation3 + $0x121] sm:$0xff] }
 0x544   : > { %v11719_v22 = vpack.i.bf16 %v3866_v61, %v14996_v11 }
 0x545   : > { %11655 = vrot.lane.b32.xlu0 %v11654_v23, %s12825_s20 }
 0x547   : > { %10623 = vmatmul.mubr.msk.bf16.gmra.mxu1 %vm435_vm4, %v4165_v13  ;;  %11665 = vrot.lane.b32.xlu1 %v11654_v23, %s12818_s22 }
 0x549   : > { %11675 = vrot.lane.b32.xlu0 %v11674_v14, %s12822_s26 }
 0x54b   : > { %11670 = vrot.lane.b32.xlu1 %v11669_v16, %s12822_s26 }
 0x54d   : > { %11680 = vrot.lane.b32.xlu0 %v11679_v28, %s12825_s20 }
 0x54f   : > { %11685 = vrot.lane.b32.xlu1 %v11679_v28, %s12818_s22 }
 0x551   : > { %11695 = vrot.lane.b32.xlu0 %v11694_v37, %s12818_s22 }
 0x553   : > { %11690 = vrot.lane.b32.xlu1 %v11689_v58, %s12822_s26 }
 0x555   : > { %11700 = vrot.lane.b32.xlu0 %v11699_v15, %s12818_s22 }
 0x557   : > { %11725 = vrot.lane.b32.xlu1 %v11724_v62, %s12825_s20 }
 0x559   : > { %11705 = vrot.lane.b32.xlu0 %v11704_v60, %s12822_s26 }
 0x55b   : > { %11730 = vrot.lane.b32.xlu1 %v11729_v20, %s12818_s22 }
 0x55d   : > { %11710 = vrot.lane.b32.xlu0 %v11729_v20, %s12825_s20 }
 0x55f   : > { %11735 = vrot.lane.b32.xlu1 %v11734_v18, %s12822_s26 }
 0x561   : > { %11715 = vrot.lane.b32.xlu0 %v11714_v59, %s12822_s26 }
 0x563   : > { %11740 = vrot.lane.b32.xlu1 %v11739_v12, %s12825_s20 }
 0x565   : > { %11720 = vrot.lane.b32.xlu0 %v11719_v22, %s12825_s20 }
 0x5a9   : > { %v11626_v42 = vpop.permute.xlu1 %11625 }
 0x5aa   : > { %v11628_v40 = vunpack.i.h.bf16 %v11626_v42  ;;  %v11627_v8 = vunpack.i.l.bf16 %v11626_v42 }
 0x5ab   : > { %v11636_v44 = vpop.permute.xlu0 %11635 }
 0x5ac   : > { %v4106_v34 = vsel %vm435_vm4, %v3802_v0, %v11627_v8  ;;  %v4107_v24 = vsel %vm435_vm4, %v14943_v33, %v11628_v40  ;;  %v11638_v13 = vunpack.i.h.bf16 %v11636_v44  ;;  %v11637_v14 = vunpack.i.l.bf16 %v11636_v44 }
 0x5ad   : > { %v11631_v17 = vpop.permute.xlu1 %11630 }
 0x5ae   : > { %v11633_v26 = vunpack.i.h.bf16 %v11631_v17  ;;  %v11632_v19 = vunpack.i.l.bf16 %v11631_v17  ;;  %v4133_v18 = vsel %vm435_vm4, %v14966_v39, %v11638_v13  ;;  %v4132_v59 = vsel %vm435_vm4, %v14950_v57, %v11637_v14 }
 0x5af   : > { %v11646_v10 = vpop.permute.xlu0 %11645 }
 0x5b0   : > { %v11648_v32 = vunpack.i.h.bf16 %v11646_v10  ;;  %v11647_v56 = vunpack.i.l.bf16 %v11646_v10  ;;  %v4114_v63 = vsel %vm884_vm8, %v4106_v34, %v11632_v19  ;;  %v4115_v46 = vsel %vm884_vm8, %v4107_v24, %v11633_v26 }
 0x5b1   : > { %v11641_v51 = vpop.permute.xlu1 %11640 }
 0x5b2   : > { %v4131_v45 = vsel %vm435_vm4, %v14945_v21, %v11648_v32  ;;  %v4130_v9 = vsel %vm435_vm4, %v14904_v41, %v11647_v56  ;;  %v11643_v22 = vunpack.i.h.bf16 %v11641_v51  ;;  %v11642_v42 = vunpack.i.l.bf16 %v11641_v51 }
 0x5b3   : > { %v11651_v38 = vpop.permute.xlu0 %11650 }
 0x5b4   : > { %v11653_v6 = vunpack.i.h.bf16 %v11651_v38  ;;  %v11652_v48 = vunpack.i.l.bf16 %v11651_v38 }
 0x5b5   : > { %v11661_v35 = vpop.permute.xlu1 %11660 }
 0x5b6   : > { %v11663_v47 = vunpack.i.h.bf16 %v11661_v35  ;;  %v11662_v54 = vunpack.i.l.bf16 %v11661_v35  ;;  %v4138_v43 = vsel %vm884_vm8, %v4130_v9, %v11652_v48  ;;  %v4139_v23 = vsel %vm884_vm8, %v4131_v45, %v11653_v6 }
 0x5b7   : > { %v11656_v52 = vpop.permute.xlu0 %11655 }
 0x5b8   : > { %v11658_v27 = vunpack.i.h.bf16 %v11656_v52  ;;  %v11657_v3 = vunpack.i.l.bf16 %v11656_v52  ;;  %v4122_v25 = vsel %vm2931_vm9, %v4114_v63, %v11662_v54  ;;  %v4123_v31 = vsel %vm2931_vm9, %v4115_v46, %v11663_v47 }
 0x5b9   : > { %v11666_v33 = vpop.permute.xlu1 %11665  ;;  %v4154_v60 = vpack.c.bf16 %v4123_v31, %v4122_v25 }
 0x5ba   : > { %v4146_v16 = vsel %vm2931_vm9, %v4138_v43, %v11657_v3  ;;  %v4147_v28 = vsel %vm2931_vm9, %v4139_v23, %v11658_v27  ;;  %v11668_v37 = vunpack.i.h.bf16 %v11666_v33  ;;  %v11667_v58 = vunpack.i.l.bf16 %v11666_v33 }
 0x5bb   : > { %v11676_v15 = vpop.permute.xlu0 %11675  ;;  %v4155_v62 = vpack.c.bf16 %v4147_v28, %v4146_v16 }
 0x5bc   : > { %v11678_v20 = vunpack.i.h.bf16 %v11676_v15  ;;  %v11677_v50 = vunpack.i.l.bf16 %v11676_v15  ;;  %v4109_v44 = vsel %vm435_vm4, %v14928_v49, %v11668_v37  ;;  %v4108_v17 = vsel %vm435_vm4, %v14930_v1, %v11667_v58 }
 0x5bd   : > { %4324 = vmatprep.mubr.bf16.mxu0 %v4155_v62  ;;  %v11671_v55 = vpop.permute.xlu1 %11670 }
 0x5be   : > { %v11673_v61 = vunpack.i.h.bf16 %v11671_v55  ;;  %v11672_v12 = vunpack.i.l.bf16 %v11671_v55  ;;  %4325 = vmatmul.mubr.bf16.vlgmr.msra.gmra.mxu0 %v4154_v60  ;;  %v4140_v38 = vsel %vm884_vm8, %v4132_v59, %v11677_v50  ;;  %v4141_v32 = vsel %vm884_vm8, %v4133_v18, %v11678_v20 }
 0x5bf   : > { %v11681_v10 = vpop.permute.xlu0 %11680 }
 0x5c0   : > { %v11683_v40 = vunpack.i.h.bf16 %v11681_v10  ;;  %v11682_v8 = vunpack.i.l.bf16 %v11681_v10  ;;  %v4116_v0 = vsel %vm884_vm8, %v4108_v17, %v11672_v12  ;;  %v4117_v26 = vsel %vm884_vm8, %v4109_v44, %v11673_v61 }
 0x5c1   : > { %v11686_v19 = vpop.permute.xlu1 %11685  ;;  %v4124_v51 = vsel %vm2931_vm9, %v4116_v0, %v11642_v42  ;;  %v4125_v56 = vsel %vm2931_vm9, %v4117_v26, %v11643_v22 }
 0x5c2   : > { %v4148_v49 = vsel %vm2931_vm9, %v4140_v38, %v11682_v8  ;;  %v4149_v1 = vsel %vm2931_vm9, %v4141_v32, %v11683_v40  ;;  %v4157_v35 = vpack.c.bf16 %v4125_v56, %v4124_v51  ;;  %v11688_v54 = vunpack.i.h.bf16 %v11686_v19 }
 0x5c3   : > { %v11696_v6 = vpop.permute.xlu0 %11695  ;;  %v4158_v48 = vpack.c.bf16 %v4149_v1, %v4148_v49  ;;  %v11687_v63 = vunpack.i.l.bf16 %v11686_v19 }
 0x5c4   : > { %v4111_v23 = vsel %vm435_vm4, %v14956_v5, %v11688_v54  ;;  %v11698_v55 = vunpack.i.h.bf16 %v11696_v6  ;;  %v11697_v61 = vunpack.i.l.bf16 %v11696_v6 }
 0x5c5   : > { %v11691_v34 = vpop.permute.xlu1 %11690  ;;  %4332 = vmatprep.mubr.bf16.mxu0 %v4158_v48  ;;  %v4110_v13 = vsel %vm435_vm4, %v14921_v2, %v11687_v63 }
 0x5c6   : > { %4333 = vmatmul.mubr.bf16.gmra.mxu0 %v4157_v35  ;;  %v11693_v46 = vunpack.i.h.bf16 %v11691_v34  ;;  %v11692_v52 = vunpack.i.l.bf16 %v11691_v34  ;;  %v4137_v32 = vsel %vm435_vm4, %v14996_v11, %v11698_v55  ;;  %v4136_v51 = vsel %vm435_vm4, %v14988_v53, %v11697_v61 }
 0x5c7   : > { %v11701_v24 = vpop.permute.xlu0 %11700 }
 0x5c8   : > { %v11703_v9 = vunpack.i.h.bf16 %v11701_v24  ;;  %v11702_v27 = vunpack.i.l.bf16 %v11701_v24  ;;  %v4118_v16 = vsel %vm884_vm8, %v4110_v13, %v11692_v52  ;;  %v4119_v28 = vsel %vm884_vm8, %v4111_v23, %v11693_v46  ;;  %v12642_v23 = vld [vmem:[%s16902_s5 + $0x180] sm:$0xff]  }
 0x5c9   : > { %v11726_v47 = vpop.permute.xlu1 %11725  ;;  %v12643_v13 = vld [vmem:[%s16902_s5 + $0x140] sm:$0xff]  }
 0x5ca   : > { %v11728_v3 = vunpack.i.h.bf16 %v11726_v47  ;;  %v11727_v25 = vunpack.i.l.bf16 %v11726_v47  ;;  %v4135_v37 = vsel %vm435_vm4, %v14983_v36, %v11703_v9  ;;  %v4134_v58 = vsel %vm435_vm4, %v14963_v29, %v11702_v27  ;;  %v12635_v9 = vld [vmem:[%s16902_s5 + $0x1a0] sm:$0xff]   ;;  %v12636_v27 = vld [vmem:[%s16902_s5 + $0x198] sm:$0xff]  }
 0x5cb   : > { %v11706_v45 = vpop.permute.xlu0 %11705  ;;  %10254 = vmatprep.subr.bf16.mxu0 %v12636_v27  ;;  %v12649_v27 = vld [vmem:[%s16902_s5 + $0x128] sm:$0xff]  }
 0x5cc   : > { %v11708_v31 = vunpack.i.h.bf16 %v11706_v45  ;;  %v11707_v33 = vunpack.i.l.bf16 %v11706_v45  ;;  %v4126_v2 = vsel %vm2931_vm9, %v4118_v16, %v11727_v25  ;;  %v4127_v50 = vsel %vm2931_vm9, %v4119_v28, %v11728_v3  ;;  %v12634_v45 = vld [vmem:[%s16902_s5 + $0x1a8] sm:$0xff]   ;;  %v12637_v3 = vld [vmem:[%s16902_s5 + $0x158] sm:$0xff]   ;;  %v12638_v25 = vld [vmem:[%s16902_s5 + $0x190] sm:$0xff]  }
 0x5cd   : > { %v11731_v43 = vpop.permute.xlu1 %11730  ;;  %v4160_v40 = vpack.c.bf16 %v4127_v50, %v4126_v2  ;;  %10626 = vmatprep.subr.bf16.mxu1 %v12634_v45  ;;  %10255 = vmatpush3.bf16.msra.mxu0 %v12637_v3 }
 0x5ce   : > { %v4142_v20 = vsel %vm884_vm8, %v4134_v58, %v11707_v33  ;;  %v4143_v5 = vsel %vm884_vm8, %v4135_v37, %v11708_v31  ;;  %v11733_v12 = vunpack.i.h.bf16 %v11731_v43  ;;  %v11732_v22 = vunpack.i.l.bf16 %v11731_v43  ;;  %10627 = vmatpush3.bf16.msra.mxu1 %v12634_v45  ;;  %v12639_v31 = vld [vmem:[%s16902_s5 + $0x150] sm:$0xff]   ;;  %10256 = vmatprep.subr.bf16.mxu0 %v12638_v25  ;;  %v12640_v33 = vld [vmem:[%s16902_s5 + $0x188] sm:$0xff]   ;;  %v15099_v37 = vld [vmem:[%s16903_s6 + $0x1] ss:$0 sm:$0xff] }
 0x5cf   : > { %v11711_v14 = vpop.permute.xlu0 %11710  ;;  %10628 = vmatprep.subr.bf16.mxu1 %v12635_v9  ;;  %v12641_v43 = vld [vmem:[%s16902_s5 + $0x148] sm:$0xff]  }
 0x5d0   : > { %v11713_v15 = vunpack.i.h.bf16 %v11711_v14  ;;  %v11712_v62 = vunpack.i.l.bf16 %v11711_v14  ;;  %v4113_v56 = vsel %vm435_vm4, %v14981_v30, %v11733_v12  ;;  %v4112_v49 = vsel %vm435_vm4, %v14975_v4, %v11732_v22 }
 0x5d1   : > { %v11736_v60 = vpop.permute.xlu1 %11735  ;;  %10257 = vmatpush3.bf16.msra.mxu0 %v12639_v31  ;;  %v4494_v31 = vld [vmem:[#allocation3 + $0x2] sm:$0xff] }
 0x5d2   : > { %v4150_v18 = vsel %vm2931_vm9, %v4142_v20, %v11712_v62  ;;  %v4151_v59 = vsel %vm2931_vm9, %v4143_v5, %v11713_v15  ;;  %v11738_v17 = vunpack.i.h.bf16 %v11736_v60  ;;  %v11737_v10 = vunpack.i.l.bf16 %v11736_v60  ;;  %10629 = vmatpush3.bf16.msra.mxu1 %v12635_v9  ;;  %10258 = vmatprep.subr.bf16.mxu0 %v12640_v33  ;;  %v15105_v5 = vld [vmem:[%s16904_s7 + $0x1] ss:$0 sm:$0xff]  ;;  %v12648_v9 = vld [vmem:[%s16902_s5 + $0x168] sm:$0xff]  }
 0x5d3   : > { %v11716_v42 = vpop.permute.xlu0 %11715  ;;  %v4161_v44 = vpack.c.bf16 %v4151_v59, %v4150_v18 }
 0x5d4   : > { %v11718_v8 = vunpack.i.h.bf16 %v11716_v42  ;;  %v11717_v0 = vunpack.i.l.bf16 %v11716_v42  ;;  %v4120_v35 = vsel %vm884_vm8, %v4112_v49, %v11737_v10  ;;  %v4121_v34 = vsel %vm884_vm8, %v4113_v56, %v11738_v17  ;;  %v12644_v56 = vld [vmem:[%s16902_s5 + $0x178] sm:$0xff]  }
 0x5d5   : > { %v11741_v26 = vpop.permute.xlu1 %11740  ;;  %4340 = vmatprep.mubr.bf16.mxu0 %v4161_v44  ;;  %10259 = vmatpush3.bf16.msra.mxu0 %v12641_v43 }
 0x5d6   : > { %v11743_v19 = vunpack.i.h.bf16 %v11741_v26  ;;  %v11742_v38 = vunpack.i.l.bf16 %v11741_v26  ;;  %4341 = vmatmul.mubr.bf16.gmra.mxu0 %v4160_v40  ;;  %v4144_v24 = vsel %vm884_vm8, %v4136_v51, %v11717_v0  ;;  %v4145_v47 = vsel %vm884_vm8, %v4137_v32, %v11718_v8  ;;  %10260 = vmatprep.subr.bf16.mxu0 %v12642_v23 }
 0x5d7   : > { %v11721_v1 = vpop.permute.xlu0 %11720 }
 0x5d8   : > { %v11723_v6 = vunpack.i.h.bf16 %v11721_v1  ;;  %v11722_v48 = vunpack.i.l.bf16 %v11721_v1  ;;  %v4128_v54 = vsel %vm2931_vm9, %v4120_v35, %v11742_v38  ;;  %v4129_v63 = vsel %vm2931_vm9, %v4121_v34, %v11743_v19  ;;  %v12646_v34 = vld [vmem:[%s16902_s5 + $0x170] sm:$0xff]  }
 0x5d9   : > { %v4163_v52 = vpack.c.bf16 %v4129_v63, %v4128_v54  ;;  %10261 = vmatpush3.bf16.msra.mxu0 %v12643_v13  ;;  %v4486_v63 = vld [vmem:[#allocation3 + $0x1] sm:$0xff] }
 0x5da   : > { %v4152_v30 = vsel %vm2931_vm9, %v4144_v24, %v11722_v48  ;;  %v4153_v46 = vsel %vm2931_vm9, %v4145_v47, %v11723_v6  ;;  %10262 = vmatprep.subr.bf16.mxu0 %v12644_v56  ;;  %v12647_v24 = vld [vmem:[%s16902_s5 + $0x130] sm:$0xff]  }
 0x5db   : > { %v4164_v4 = vpack.c.bf16 %v4153_v46, %v4152_v30 }
 0x5dd   : > { %4348 = vmatprep.mubr.bf16.mxu0 %v4164_v4 }
 0x5de   : > { %4349 = vmatmul.mubr.bf16.gmra.mxu0 %v4163_v52 }
 0x5ff   : > { %v10620_v14 = vpop.f32.mrf.mxu1 }
 0x601   : > { %v4391_v28 = vpop.f32.mrf.mxu1 }
 0x603   : > { %v10621_v20 = vpop.f32.mrf.mxu1 }
 0x605   : > { %v4394_v12 = vpop.f32.mrf.mxu1 }
 0x607   : > { %v15131_v30 = vpop.f32.mrf.mxu1 }
 0x67e   : > { %v10224_v16 = vpop.f32.mrf.mxu0 }
 0x680   : > { %v10225_v58 = vpop.f32.mrf.mxu0 }
 0x681   : > { %v10226_v15 = vadd.f32 %v10225_v58, %v10224_v16  ;;  %v12650_v58 = vld [vmem:[%s16902_s5 + $0x160] sm:$0xff]  }
 0x682   : > { %v10227_v62 = vpop.f32.mrf.mxu0 }
 0x683   : > { %v4327_v60 = vadd.f32 %v10226_v15, %v15099_v37  ;;  %v12651_v15 = vld [vmem:[%s16902_s5 + $0x120] sm:$0xff]  }
 0x684   : > { %v10228_v2 = vpop.f32.mrf.mxu0 }
 0x685   : > { %v4392_v50 = vadd.f32 %v4391_v28, %v4327_v60  ;;  %v10229_v55 = vadd.f32 %v10228_v2, %v10227_v62 }
 0x686   : > { %v10230_v18 = vpop.f32.mrf.mxu0 }
 0x687   : > { %v4430_v59 = vmul.f32 %v15105_v5, %v4392_v50  ;;  %v4330_v61 = vadd.f32 %v10229_v55, %v15099_v37 }
 0x688   : > { %v10231_v22 = vpop.f32.mrf.mxu0 }
 0x689   : > { %v4438_v42 = vadd.f32 %v4430_v59, %v14904_v41  ;;  %v4395_v44 = vadd.f32 %v4394_v12, %v4330_v61  ;;  %v10232_v17 = vadd.f32 %v10231_v22, %v10230_v18  ;;  %v12645_v41 = vld [vmem:[%s16902_s5 + $0x138] sm:$0xff]  }
 0x68a   : > { %v10233_v10 = vpop.f32.mrf.mxu0  ;;  %10263 = vmatpush3.bf16.msra.mxu0 %v12645_v41 }
 0x68b   : > { %vm4446_vm12 = vcmp.ge.f32.partialorder %v4438_v42, 0.0  ;;  %v4454_v40 = vmul.f32 0.2, %v4438_v42  ;;  %v4431_v8 = vmul.f32 %v15105_v5, %v4395_v44  ;;  %v4335_v0 = vadd.f32 %v10232_v17, %v15099_v37  ;;  %10264 = vmatprep.subr.bf16.mxu0 %v12646_v34 }
 0x68c   : > { %v10234_v26 = vpop.f32.mrf.mxu0 }
 0x68d   : > { %v4462_v19 = vsel %vm4446_vm12, %v4438_v42, %v4454_v40  ;;  %v4439_v38 = vadd.f32 %v4431_v8, %v14945_v21  ;;  %v4400_v32 = vadd.f32 %v10620_v14, %v4335_v0  ;;  %v10235_v51 = vadd.f32 %v10234_v26, %v10233_v10 }
 0x68e   : > { %4470 = vst.msk [vmem:[#allocation3 + $0x11] sm:$0xff] %vm435_vm4, %v4462_v19  ;;  %10265 = vmatpush3.bf16.msra.mxu0 %v12647_v24 }
 0x68f   : > { %vm4447_vm13 = vcmp.ge.f32.partialorder %v4439_v38, 0.0  ;;  %v4455_v49 = vmul.f32 0.2, %v4439_v38  ;;  %v4432_v1 = vmul.f32 %v15105_v5, %v4400_v32  ;;  %v4338_v6 = vadd.f32 %v10235_v51, %v15099_v37  ;;  %10266 = vmatprep.subr.bf16.mxu0 %v12648_v9 }
 0x691   : > { %v4463_v21 = vsel %vm4447_vm13, %v4439_v38, %v4455_v49  ;;  %v4440_v48 = vadd.f32 %v4432_v1, %v14950_v57  ;;  %v4403_v35 = vadd.f32 %v10621_v20, %v4338_v6 }
 0x692   : > { %4471 = vst.msk [vmem:[#allocation3 + $0x21] sm:$0xff] %vm435_vm4, %v4463_v21  ;;  %10267 = vmatpush3.bf16.msra.mxu0 %v12649_v27 }
 0x693   : > { %vm4448_vm14 = vcmp.ge.f32.partialorder %v4440_v48, 0.0  ;;  %v4456_v47 = vmul.f32 0.2, %v4440_v48  ;;  %v4433_v54 = vmul.f32 %v15105_v5, %v4403_v35  ;;  %10268 = vmatprep.subr.bf16.mxu0 %v12650_v58 }
 0x695   : > { %v4464_v57 = vsel %vm4448_vm14, %v4440_v48, %v4456_v47  ;;  %v4441_v46 = vadd.f32 %v4433_v54, %v14966_v39  ;;  %v15134_v4 = vld [vmem:[#allocation3 + $0x11] sm:$0xff]  ;;  %v4407_v39 = vpop.f32.mrf.mxu1 }
 0x696   : > { %4472 = vst.msk [vmem:[#allocation3 + $0x31] sm:$0xff] %vm435_vm4, %v4464_v57  ;;  %v10236_v52 = vpop.f32.mrf.mxu0  ;;  %v11744_v45 = vpack.i.bf16 %v15134_v4, %v4486_v63  ;;  %v4518_v25 = vld [vmem:[#allocation3 + $0x12] sm:$0xff]  ;;  %10269 = vmatpush3.bf16.msra.mxu0 %v12651_v15 }
 0x697   : > { %vm4449_vm15 = vcmp.ge.f32.partialorder %v4441_v46, 0.0  ;;  %v4457_v3 = vmul.f32 0.2, %v4441_v46  ;;  %v11749_v28 = vpack.i.bf16 %v4518_v25, %v4494_v31  ;;  %v10625_v60 = vpop.f32.mrf.mxu1  ;;  %v15165_v42 = vld [vmem:[#allocation3 + $0x10] sm:$0xff] }
 0x698   : > { %v10237_v33 = vpop.f32.mrf.mxu0  ;;  %11745 = vrot.lane.b32.xlu1 %v11744_v45, %s12818_s22 }
 0x699   : > { %v4465_v43 = vsel %vm4449_vm15, %v4441_v46, %v4457_v3  ;;  %v10238_v23 = vadd.f32 %v10237_v33, %v10236_v52  ;;  %v15145_v13 = vld [vmem:[#allocation3 + $0x22] sm:$0xff]  ;;  %v4410_v8 = vpop.f32.mrf.mxu1 }
 0x69a   : > { %4473 = vst.msk [vmem:[#allocation3 + $0x41] sm:$0xff] %vm435_vm4, %v4465_v43  ;;  %v10239_v14 = vpop.f32.mrf.mxu0  ;;  %v11754_v16 = vpack.i.bf16 %v15145_v13, %v4518_v25  ;;  %v15158_v2 = vld [vmem:[#allocation3 + $0x20] sm:$0xff] }
 0x69b   : > { %v4343_v62 = vadd.f32 %v10238_v23, %v15099_v37  ;;  %v11759_v10 = vpack.i.bf16 %v15158_v2, %v15165_v42  ;;  %v15177_v32 = vld [vmem:[#allocation3 + $0x21] sm:$0xff] }
 0x69c   : > { %v10240_v20 = vpop.f32.mrf.mxu0  ;;  %11755 = vrot.lane.b32.xlu0 %v11754_v16, %s12818_s22  ;;  %11750 = vrot.lane.b32.xlu1 %v11749_v28, %s12822_s26 }
 0x69d   : > { %v4408_v50 = vadd.f32 %v4407_v39, %v4343_v62  ;;  %v10241_v55 = vadd.f32 %v10240_v20, %v10239_v14  ;;  %v4543_v18 = vld [vmem:[#allocation3 + $0x32] sm:$0xff] }
 0x69e   : > { %v15160_v59 = vld [vmem:[#allocation3 + $0x30] sm:$0xff]  ;;  %v10242_v61 = vpop.f32.mrf.mxu0  ;;  %v4831_v12 = vpack.c.bf16 %v4543_v18, %v15145_v13  ;;  %v11779_v47 = vpack.i.bf16 %v4543_v18, %v15145_v13 }
 0x69f   : > { %v11764_v22 = vpack.i.bf16 %v15160_v59, %v15158_v2  ;;  %v4434_v44 = vmul.f32 %v15105_v5, %v4408_v50  ;;  %v4346_v17 = vadd.f32 %v10241_v55, %v15099_v37  ;;  %v15171_v40 = vld [vmem:[#allocation3 + $0x31] sm:$0xff] }
 0x6a0   : > { %v10243_v0 = vpop.f32.mrf.mxu0  ;;  %10630 = vmatprep.mubr.msk.bf16.mxu1 %vm435_vm4, %v4831_v12  ;;  %11760 = vrot.lane.b32.xlu1 %v11759_v10, %s12825_s20  ;;  %v11769_v56 = vpack.i.bf16 %v15171_v40, %v15177_v32 }
 0x6a1   : > { %11765 = vrot.lane.b32.xlu0 %v11764_v22, %s12822_s26  ;;  %v4442_v26 = vadd.f32 %v4434_v44, %v14963_v29  ;;  %v4411_v19 = vadd.f32 %v4410_v8, %v4346_v17  ;;  %v10244_v38 = vadd.f32 %v10243_v0, %v10242_v61  ;;  %v4521_v6 = vld [vmem:[#allocation3 + $0x42] sm:$0xff]  ;;  %v4533_v0 = vld [vmem:[#allocation3 + $0x90] sm:$0xff] }
 0x6a2   : > { %v10245_v51 = vpop.f32.mrf.mxu0  ;;  %v11784_v24 = vpack.i.bf16 %v4521_v6, %v4543_v18  ;;  %v15192_v46 = vld [vmem:[#allocation3 + $0x40] sm:$0xff] }
 0x6a3   : > { %vm4450_vm0 = vcmp.ge.f32.partialorder %v4442_v26, 0.0  ;;  %v4458_v41 = vmul.f32 0.2, %v4442_v26  ;;  %v4435_v49 = vmul.f32 %v15105_v5, %v4411_v19  ;;  %v4351_v1 = vadd.f32 %v10244_v38, %v15099_v37  ;;  %v4541_v38 = vld [vmem:[#allocation3 + $0x91] sm:$0xff] }
 0x6a4   : > { %v10246_v21 = vpop.f32.mrf.mxu0  ;;  %11775 = vrot.lane.b32.xlu1 %v11769_v56, %s12818_s22  ;;  %v11789_v27 = vpack.i.bf16 %v15192_v46, %v15160_v59 }
 0x6a5   : > { %11770 = vrot.lane.b32.xlu0 %v11769_v56, %s12825_s20  ;;  %v4466_v29 = vsel %vm4450_vm0, %v4442_v26, %v4458_v41  ;;  %v4443_v48 = vadd.f32 %v4435_v49, %v14983_v36  ;;  %v4416_v35 = vadd.f32 %v15131_v30, %v4351_v1  ;;  %v10247_v34 = vadd.f32 %v10246_v21, %v10245_v51 }
 0x6a6   : > { %4474 = vst.msk [vmem:[#allocation3 + $0x51] sm:$0xff] %vm435_vm4, %v4466_v29 }
 0x6a7   : > { %vm4451_vm1 = vcmp.ge.f32.partialorder %v4443_v48, 0.0  ;;  %v4459_v54 = vmul.f32 0.2, %v4443_v48  ;;  %v4436_v63 = vmul.f32 %v15105_v5, %v4416_v35  ;;  %v4354_v57 = vadd.f32 %v10247_v34, %v15099_v37  ;;  %v15200_v37 = vld [vmem:[#allocation3 + $0x41] sm:$0xff] }
 0x6a8   : > { %11780 = vrot.lane.b32.xlu1 %v11779_v47, %s12822_s26  ;;  %v4478_v35 = vld [vmem:[#allocation3] sm:$0xff] }
 0x6a9   : > { %11785 = vrot.lane.b32.xlu0 %v11784_v24, %s12818_s22  ;;  %v4467_v36 = vsel %vm4451_vm1, %v4443_v48, %v4459_v54  ;;  %v4444_v30 = vadd.f32 %v4436_v63, %v14988_v53  ;;  %v4419_v52 = vadd.f32 %v10625_v60, %v4354_v57  ;;  %v4549_v60 = vld [vmem:[#allocation3 + $0x92] sm:$0xff] }
 0x6aa   : > { %4475 = vst.msk [vmem:[#allocation3 + $0x61] sm:$0xff] %vm435_vm4, %v4467_v36 }
 0x6ab   : > { %vm4452_vm3 = vcmp.ge.f32.partialorder %v4444_v30, 0.0  ;;  %v4460_v45 = vmul.f32 0.2, %v4444_v30  ;;  %v4437_v9 = vmul.f32 %v15105_v5, %v4419_v52 }
 0x6ac   : > { %11790 = vrot.lane.b32.xlu1 %v11789_v27, %s12825_s20 }
 0x6ad   : > { %v4468_v3 = vsel %vm4452_vm3, %v4444_v30, %v4460_v45  ;;  %v4445_v25 = vadd.f32 %v4437_v9, %v14996_v11  ;;  %v4545_v53 = vld [vmem:[#allocation3 + $0x52] sm:$0xff] }
 0x6ae   : > { %v15204_v31 = vld [vmem:[#allocation3 + $0x50] sm:$0xff]  ;;  %4476 = vst.msk [vmem:[#allocation3 + $0x71] sm:$0xff] %vm435_vm4, %v4468_v3  ;;  %v4834_v33 = vpack.c.bf16 %v4545_v53, %v4521_v6  ;;  %v11809_v13 = vpack.i.bf16 %v4545_v53, %v4521_v6 }
 0x6af   : > { %v15206_v39 = vld [vmem:[#allocation3 + $0x51] sm:$0xff]  ;;  %v11794_v5 = vpack.i.bf16 %v15204_v31, %v15192_v46  ;;  %vm4453_vm5 = vcmp.ge.f32.partialorder %v4445_v25, 0.0  ;;  %v4461_v23 = vmul.f32 0.2, %v4445_v25 }
 0x6b0   : > { %v11804_v43 = vpack.i.bf16 %v15206_v39, %v15200_v37  ;;  %10631 = vmatmul.mubr.msk.bf16.vlgmr.msra.gmra.mxu1 %vm435_vm4, %v4834_v33 }
 0x6b1   : > { %11795 = vrot.lane.b32.xlu0 %v11794_v5, %s12822_s26  ;;  %v4469_v11 = vsel %vm4453_vm5, %v4445_v25, %v4461_v23  ;;  %v4546_v14 = vld [vmem:[#allocation3 + $0x62] sm:$0xff] }
 0x6b2   : > { %11805 = vrot.lane.b32.xlu1 %v11804_v43, %s12818_s22  ;;  %4477 = vst.msk [vmem:[#allocation3 + $0x81] sm:$0xff] %vm435_vm4, %v4469_v11  ;;  %v15218_v16 = vld [vmem:[#allocation3 + $0x60] sm:$0xff]  ;;  %v11814_v15 = vpack.i.bf16 %v4546_v14, %v4545_v53 }
 0x6b3   : > { %v11819_v62 = vpack.i.bf16 %v15218_v16, %v15204_v31  ;;  %v15232_v12 = vld [vmem:[#allocation3 + $0x61] sm:$0xff] }
 0x6b5   : > { %11800 = vrot.lane.b32.xlu0 %v11804_v43, %s12825_s20  ;;  %v4547_v28 = vld [vmem:[#allocation3 + $0x72] sm:$0xff] }
 0x6b6   : > { %11810 = vrot.lane.b32.xlu1 %v11809_v13, %s12822_s26  ;;  %v4837_v58 = vpack.c.bf16 %v4547_v28, %v4546_v14  ;;  %v15223_v20 = vld [vmem:[#allocation3 + $0x70] sm:$0xff]  ;;  %v11839_v44 = vpack.i.bf16 %v4547_v28, %v4546_v14 }
 0x6b7   : > { %v15227_v50 = vld [vmem:[#allocation3 + $0x71] sm:$0xff]  ;;  %v11824_v61 = vpack.i.bf16 %v15223_v20, %v15218_v16 }
 0x6b8   : > { %10634 = vmatprep.mubr.msk.bf16.mxu1 %vm435_vm4, %v4837_v58  ;;  %v11834_v22 = vpack.i.bf16 %v15227_v50, %v15232_v12 }
 0x6b9   : > { %11815 = vrot.lane.b32.xlu0 %v11814_v15, %s12818_s22  ;;  %v4548_v55 = vld [vmem:[#allocation3 + $0x82] sm:$0xff] }
 0x6ba   : > { %11820 = vrot.lane.b32.xlu1 %v11819_v62, %s12825_s20  ;;  %v4840_v18 = vpack.c.bf16 %v4549_v60, %v4548_v55  ;;  %v4509_v17 = vld [vmem:[#allocation3 + $0x80] sm:$0xff]  ;;  %v11844_v10 = vpack.i.bf16 %v4548_v55, %v4547_v28 }
 0x6bb   : > { %v11859_v8 = vpack.i.bf16 %v4509_v17, %v15223_v20  ;;  %v11849_v26 = vpack.i.bf16 %v4533_v0, %v4509_v17  ;;  %v15244_v19 = vld [vmem:[#allocation3 + $0x81] sm:$0xff] }
 0x6bc   : > { %10635 = vmatmul.mubr.msk.bf16.gmra.mxu1 %vm435_vm4, %v4840_v18  ;;  %v11854_v51 = vpack.i.bf16 %v4541_v38, %v15244_v19 }
 0x6bd   : > { %11825 = vrot.lane.b32.xlu0 %v11824_v61, %s12822_s26 }
 0x6be   : > { %11835 = vrot.lane.b32.xlu1 %v11834_v22, %s12818_s22 }
 0x6c1   : > { %11830 = vrot.lane.b32.xlu0 %v11834_v22, %s12825_s20 }
 0x6c2   : > { %11840 = vrot.lane.b32.xlu1 %v11839_v44, %s12822_s26 }
 0x6c5   : > { %11845 = vrot.lane.b32.xlu0 %v11844_v10, %s12818_s22 }
 0x6c6   : > { %11860 = vrot.lane.b32.xlu1 %v11859_v8, %s12825_s20 }
 0x6c9   : > { %11850 = vrot.lane.b32.xlu0 %v11849_v26, %s12822_s26 }
 0x6cd   : > { %11855 = vrot.lane.b32.xlu0 %v11854_v51, %s12825_s20 }
 0x70a   : > { %v11746_v56 = vpop.permute.xlu1 %11745 }
 0x70b   : > { %v11748_v1 = vunpack.i.h.bf16 %v11746_v56  ;;  %v11747_v6 = vunpack.i.l.bf16 %v11746_v56 }
 0x70d   : > { %v4781_v30 = vsel %vm435_vm4, %v4478_v35, %v11747_v6  ;;  %v4782_v52 = vsel %vm435_vm4, %v15165_v42, %v11748_v1 }
 0x70e   : > { %v11756_v41 = vpop.permute.xlu0 %11755  ;;  %v11751_v49 = vpop.permute.xlu1 %11750 }
 0x70f   : > { %v11758_v21 = vunpack.i.h.bf16 %v11756_v41  ;;  %v11757_v29 = vunpack.i.l.bf16 %v11756_v41  ;;  %v11753_v34 = vunpack.i.h.bf16 %v11751_v49  ;;  %v11752_v24 = vunpack.i.l.bf16 %v11751_v49 }
 0x711   : > { %v4806_v45 = vsel %vm435_vm4, %v15177_v32, %v11758_v21  ;;  %v4805_v9 = vsel %vm435_vm4, %v15134_v4, %v11757_v29  ;;  %v4789_v3 = vsel %vm884_vm8, %v4781_v30, %v11752_v24  ;;  %v4790_v25 = vsel %vm884_vm8, %v4782_v52, %v11753_v34 }
 0x712   : > { %v11761_v47 = vpop.permute.xlu1 %11760 }
 0x713   : > { %v11766_v48 = vpop.permute.xlu0 %11765  ;;  %v11763_v57 = vunpack.i.h.bf16 %v11761_v47  ;;  %v11762_v36 = vunpack.i.l.bf16 %v11761_v47 }
 0x714   : > { %v11768_v54 = vunpack.i.h.bf16 %v11766_v48  ;;  %v11767_v63 = vunpack.i.l.bf16 %v11766_v48 }
 0x715   : > { %v4797_v43 = vsel %vm2931_vm9, %v4789_v3, %v11762_v36  ;;  %v4798_v23 = vsel %vm2931_vm9, %v4790_v25, %v11763_v57 }
 0x716   : > { %v11776_v5 = vpop.permute.xlu1 %11775  ;;  %v4813_v42 = vsel %vm884_vm8, %v4805_v9, %v11767_v63  ;;  %v4814_v11 = vsel %vm884_vm8, %v4806_v45, %v11768_v54  ;;  %v4829_v58 = vpack.c.bf16 %v4798_v23, %v4797_v43 }
 0x717   : > { %v11771_v27 = vpop.permute.xlu0 %11770  ;;  %v11778_v55 = vunpack.i.h.bf16 %v11776_v5  ;;  %v11777_v18 = vunpack.i.l.bf16 %v11776_v5 }
 0x718   : > { %v11773_v53 = vunpack.i.h.bf16 %v11771_v27  ;;  %v11772_v33 = vunpack.i.l.bf16 %v11771_v27 }
 0x719   : > { %v4784_v56 = vsel %vm435_vm4, %v15160_v59, %v11778_v55  ;;  %v4783_v41 = vsel %vm435_vm4, %v15158_v2, %v11777_v18 }
 0x71a   : > { %v4821_v13 = vsel %vm2931_vm9, %v4813_v42, %v11772_v33  ;;  %v4822_v14 = vsel %vm2931_vm9, %v4814_v11, %v11773_v53  ;;  %v11781_v15 = vpop.permute.xlu1 %11780 }
 0x71b   : > { %v4830_v28 = vpack.c.bf16 %v4822_v14, %v4821_v13  ;;  %v11786_v62 = vpop.permute.xlu0 %11785  ;;  %v11783_v17 = vunpack.i.h.bf16 %v11781_v15  ;;  %v11782_v10 = vunpack.i.l.bf16 %v11781_v15 }
 0x71c   : > { %v11788_v61 = vunpack.i.h.bf16 %v11786_v62  ;;  %v11787_v22 = vunpack.i.l.bf16 %v11786_v62 }
 0x71d   : > { %4999 = vmatprep.mubr.bf16.mxu0 %v4830_v28  ;;  %v4791_v35 = vsel %vm884_vm8, %v4783_v41, %v11782_v10  ;;  %v4792_v34 = vsel %vm884_vm8, %v4784_v56, %v11783_v17 }
 0x71e   : > { %5000 = vmatmul.mubr.bf16.vlgmr.msra.gmra.mxu0 %v4829_v58  ;;  %v11791_v60 = vpop.permute.xlu1 %11790  ;;  %v4808_v49 = vsel %vm435_vm4, %v15200_v37, %v11788_v61  ;;  %v4807_v1 = vsel %vm435_vm4, %v15171_v40, %v11787_v22 }
 0x71f   : > { %v11793_v0 = vunpack.i.h.bf16 %v11791_v60  ;;  %v11792_v26 = vunpack.i.l.bf16 %v11791_v60 }
 0x721   : > { %v4799_v2 = vsel %vm2931_vm9, %v4791_v35, %v11792_v26  ;;  %v4800_v47 = vsel %vm2931_vm9, %v4792_v34, %v11793_v0 }
 0x722   : > { %v4832_v52 = vpack.c.bf16 %v4800_v47, %v4799_v2 }
 0x723   : > { %v11796_v44 = vpop.permute.xlu0 %11795 }
 0x724   : > { %v11806_v8 = vpop.permute.xlu1 %11805  ;;  %v11798_v38 = vunpack.i.h.bf16 %v11796_v44  ;;  %v11797_v51 = vunpack.i.l.bf16 %v11796_v44 }
 0x725   : > { %v11808_v45 = vunpack.i.h.bf16 %v11806_v8  ;;  %v11807_v9 = vunpack.i.l.bf16 %v11806_v8 }
 0x726   : > { %v4815_v24 = vsel %vm884_vm8, %v4807_v1, %v11797_v51  ;;  %v4816_v59 = vsel %vm884_vm8, %v4808_v49, %v11798_v38 }
 0x727   : > { %v11801_v6 = vpop.permute.xlu0 %11800  ;;  %v4786_v13 = vsel %vm435_vm4, %v15204_v31, %v11808_v45  ;;  %v4785_v14 = vsel %vm435_vm4, %v15192_v46, %v11807_v9 }
 0x728   : > { %v11803_v21 = vunpack.i.h.bf16 %v11801_v6  ;;  %v11802_v29 = vunpack.i.l.bf16 %v11801_v6  ;;  %v11811_v48 = vpop.permute.xlu1 %11810 }
 0x729   : > { %v11813_v27 = vunpack.i.h.bf16 %v11811_v48  ;;  %v11812_v3 = vunpack.i.l.bf16 %v11811_v48 }
 0x72a   : > { %v4823_v54 = vsel %vm2931_vm9, %v4815_v24, %v11802_v29  ;;  %v4824_v63 = vsel %vm2931_vm9, %v4816_v59, %v11803_v21 }
 0x72b   : > { %v11816_v57 = vpop.permute.xlu0 %11815  ;;  %v4833_v36 = vpack.c.bf16 %v4824_v63, %v4823_v54  ;;  %v4793_v58 = vsel %vm884_vm8, %v4785_v14, %v11812_v3  ;;  %v4794_v15 = vsel %vm884_vm8, %v4786_v13, %v11813_v27 }
 0x72c   : > { %v11821_v30 = vpop.permute.xlu1 %11820  ;;  %v11818_v53 = vunpack.i.h.bf16 %v11816_v57  ;;  %v11817_v33 = vunpack.i.l.bf16 %v11816_v57 }
 0x72d   : > { %5007 = vmatprep.mubr.bf16.mxu0 %v4833_v36  ;;  %v11823_v43 = vunpack.i.h.bf16 %v11821_v30  ;;  %v11822_v23 = vunpack.i.l.bf16 %v11821_v30 }
 0x72e   : > { %5008 = vmatmul.mubr.bf16.gmra.mxu0 %v4832_v52  ;;  %v4810_v62 = vsel %vm435_vm4, %v15232_v12, %v11818_v53  ;;  %v4809_v60 = vsel %vm435_vm4, %v15206_v39, %v11817_v33  ;;  %v12652_v53 = vld [vmem:[%s16902_s5 + $0x238] sm:$0xff]   ;;  %v12653_v33 = vld [vmem:[%s16902_s5 + $0x230] sm:$0xff]  }
 0x72f   : > { %v11826_v25 = vpop.permute.xlu0 %11825  ;;  %v4801_v46 = vsel %vm2931_vm9, %v4793_v58, %v11822_v23  ;;  %v4802_v44 = vsel %vm2931_vm9, %v4794_v15, %v11823_v43  ;;  %10638 = vmatprep.subr.bf16.mxu0 %v12652_v53  ;;  %v12655_v43 = vld [vmem:[%s16902_s5 + $0x1e8] sm:$0xff]   ;;  %v12656_v23 = vld [vmem:[%s16902_s5 + $0x220] sm:$0xff]  }
 0x730   : > { %v11836_v5 = vpop.permute.xlu1 %11835  ;;  %v11828_v42 = vunpack.i.h.bf16 %v11826_v25  ;;  %v11827_v11 = vunpack.i.l.bf16 %v11826_v25  ;;  %v4835_v26 = vpack.c.bf16 %v4802_v44, %v4801_v46  ;;  %10639 = vmatpush3.bf16.msra.mxu0 %v12652_v53 }
 0x731   : > { %v11838_v38 = vunpack.i.h.bf16 %v11836_v5  ;;  %v11837_v51 = vunpack.i.l.bf16 %v11836_v5  ;;  %10640 = vmatprep.subr.bf16.mxu0 %v12653_v33  ;;  %v12654_v5 = vld [vmem:[%s16902_s5 + $0x228] sm:$0xff]  }
 0x732   : > { %v4817_v22 = vsel %vm884_vm8, %v4809_v60, %v11827_v11  ;;  %v4818_v31 = vsel %vm884_vm8, %v4810_v62, %v11828_v42  ;;  %10300 = vmatprep.subr.bf16.mxu1 %v12654_v5  ;;  %v12657_v42 = vld [vmem:[%s16902_s5 + $0x1e0] sm:$0xff]  }
 0x733   : > { %v11831_v28 = vpop.permute.xlu0 %11830  ;;  %v4788_v24 = vsel %vm435_vm4, %v15223_v20, %v11838_v38  ;;  %v4787_v59 = vsel %vm435_vm4, %v15218_v16, %v11837_v51  ;;  %10301 = vmatpush3.bf16.msra.mxu1 %v12655_v43 }
 0x734   : > { %v11833_v55 = vunpack.i.h.bf16 %v11831_v28  ;;  %v11832_v18 = vunpack.i.l.bf16 %v11831_v28  ;;  %v11841_v61 = vpop.permute.xlu1 %11840  ;;  %10641 = vmatpush3.bf16.msra.mxu0 %v12653_v33  ;;  %10302 = vmatprep.subr.bf16.mxu1 %v12656_v23  ;;  %v15333_v28 = vld [vmem:[%s16903_s6 + $0x2] ss:$0 sm:$0xff] }
 0x735   : > { %v11843_v41 = vunpack.i.h.bf16 %v11841_v61  ;;  %v11842_v49 = vunpack.i.l.bf16 %v11841_v61 }
 0x736   : > { %v4825_v17 = vsel %vm2931_vm9, %v4817_v22, %v11832_v18  ;;  %v4826_v10 = vsel %vm2931_vm9, %v4818_v31, %v11833_v55  ;;  %v15339_v18 = vld [vmem:[%s16904_s7 + $0x2] ss:$0 sm:$0xff] }
 0x737   : > { %v11846_v8 = vpop.permute.xlu0 %11845  ;;  %v4836_v0 = vpack.c.bf16 %v4826_v10, %v4825_v17  ;;  %v4795_v47 = vsel %vm884_vm8, %v4787_v59, %v11842_v49  ;;  %v4796_v54 = vsel %vm884_vm8, %v4788_v24, %v11843_v41  ;;  %10303 = vmatpush3.bf16.msra.mxu1 %v12657_v42  ;;  %v12659_v41 = vld [vmem:[%s16902_s5 + $0x1d8] sm:$0xff]  }
 0x738   : > { %v11861_v56 = vpop.permute.xlu1 %11860  ;;  %v11848_v6 = vunpack.i.h.bf16 %v11846_v8  ;;  %v11847_v21 = vunpack.i.l.bf16 %v11846_v8 }
 0x739   : > { %5015 = vmatprep.mubr.bf16.mxu0 %v4836_v0  ;;  %v11863_v29 = vunpack.i.h.bf16 %v11861_v56  ;;  %v11862_v48 = vunpack.i.l.bf16 %v11861_v56  ;;  %v12658_v56 = vld [vmem:[%s16902_s5 + $0x218] sm:$0xff]  }
 0x73a   : > { %5016 = vmatmul.mubr.bf16.gmra.mxu0 %v4835_v26  ;;  %v4812_v63 = vsel %vm435_vm4, %v15244_v19, %v11848_v6  ;;  %v4811_v57 = vsel %vm435_vm4, %v15227_v50, %v11847_v21  ;;  %10304 = vmatprep.subr.bf16.mxu1 %v12658_v56 }
 0x73b   : > { %v11851_v1 = vpop.permute.xlu0 %11850  ;;  %v4803_v45 = vsel %vm2931_vm9, %v4795_v47, %v11862_v48  ;;  %v4804_v16 = vsel %vm2931_vm9, %v4796_v54, %v11863_v29  ;;  %10305 = vmatpush3.bf16.msra.mxu1 %v12659_v41  ;;  %v12661_v29 = vld [vmem:[%s16902_s5 + $0x1d0] sm:$0xff]  }
 0x73c   : > { %v11853_v35 = vunpack.i.h.bf16 %v11851_v1  ;;  %v11852_v34 = vunpack.i.l.bf16 %v11851_v1  ;;  %v4838_v25 = vpack.c.bf16 %v4804_v16, %v4803_v45  ;;  %v5169_v45 = vld [vmem:[#allocation3 + $0xa2] sm:$0xff] }
 0x73e   : > { %v4819_v52 = vsel %vm884_vm8, %v4811_v57, %v11852_v34  ;;  %v4820_v20 = vsel %vm884_vm8, %v4812_v63, %v11853_v35  ;;  %v5161_v34 = vld [vmem:[#allocation3 + $0xa1] sm:$0xff] }
 0x73f   : > { %v11856_v2 = vpop.permute.xlu0 %11855  ;;  %v12662_v63 = vld [vmem:[%s16902_s5 + $0x208] sm:$0xff]  }
 0x740   : > { %v11858_v36 = vunpack.i.h.bf16 %v11856_v2  ;;  %v11857_v30 = vunpack.i.l.bf16 %v11856_v2  ;;  %v12663_v57 = vld [vmem:[%s16902_s5 + $0x1c8] sm:$0xff]  }
 0x742   : > { %v4827_v9 = vsel %vm2931_vm9, %v4819_v52, %v11857_v30  ;;  %v4828_v27 = vsel %vm2931_vm9, %v4820_v20, %v11858_v36  ;;  %v12664_v36 = vld [vmem:[%s16902_s5 + $0x200] sm:$0xff]  }
 0x743   : > { %v4839_v3 = vpack.c.bf16 %v4828_v27, %v4827_v9 }
 0x745   : > { %5023 = vmatprep.mubr.bf16.mxu0 %v4839_v3 }
 0x746   : > { %5024 = vmatmul.mubr.bf16.gmra.mxu0 %v4838_v25  ;;  %v12665_v25 = vld [vmem:[%s16902_s5 + $0x1c0] sm:$0xff]  }
 0x770   : > { %v10632_v11 = vpop.f32.mrf.mxu1 }
 0x772   : > { %v5066_v14 = vpop.f32.mrf.mxu1 }
 0x774   : > { %v10633_v55 = vpop.f32.mrf.mxu1 }
 0x776   : > { %v5069_v17 = vpop.f32.mrf.mxu1 }
 0x77c   : > { %v15375_v16 = vpop.f32.mrf.mxu1 }
 0x7de   : > { %v10270_v13 = vpop.f32.mrf.mxu0 }
 0x7e0   : > { %v10271_v58 = vpop.f32.mrf.mxu0 }
 0x7e1   : > { %v10272_v15 = vadd.f32 %v10271_v58, %v10270_v13 }
 0x7e2   : > { %v10273_v62 = vpop.f32.mrf.mxu0 }
 0x7e3   : > { %v5002_v60 = vadd.f32 %v10272_v15, %v15333_v28 }
 0x7e4   : > { %v10274_v61 = vpop.f32.mrf.mxu0 }
 0x7e5   : > { %v5067_v22 = vadd.f32 %v5066_v14, %v5002_v60  ;;  %v10275_v31 = vadd.f32 %v10274_v61, %v10273_v62  ;;  %v12666_v62 = vld [vmem:[%s16902_s5 + $0x1f8] sm:$0xff]  }
 0x7e6   : > { %v12667_v61 = vld [vmem:[%s16902_s5 + $0x1b8] sm:$0xff]  }
 0x7e7   : > { %v5105_v46 = vmul.f32 %v15339_v18, %v5067_v22  ;;  %v5005_v44 = vadd.f32 %v10275_v31, %v15333_v28 }
 0x7e9   : > { %v5113_v10 = vadd.f32 %v5105_v46, %v15134_v4  ;;  %v5070_v8 = vadd.f32 %v5069_v17, %v5005_v44  ;;  %v12668_v44 = vld [vmem:[%s16902_s5 + $0x1f0] sm:$0xff]  }
 0x7eb   : > { %vm5121_vm7 = vcmp.ge.f32.partialorder %v5113_v10, 0.0  ;;  %v5129_v0 = vmul.f32 0.2, %v5113_v10  ;;  %v5106_v26 = vmul.f32 %v15339_v18, %v5070_v8 }
 0x7ed   : > { %v5137_v38 = vsel %vm5121_vm7, %v5113_v10, %v5129_v0  ;;  %v5114_v51 = vadd.f32 %v5106_v26, %v15177_v32  ;;  %v12660_v32 = vld [vmem:[%s16902_s5 + $0x210] sm:$0xff]  }
 0x7ee   : > { %5145 = vst.msk [vmem:[#allocation3 + $0xb1] sm:$0xff] %vm435_vm4, %v5137_v38  ;;  %v10276_v49 = vpop.f32.mrf.mxu0  ;;  %10306 = vmatprep.subr.bf16.mxu1 %v12660_v32  ;;  %v12669_v0 = vld [vmem:[%s16902_s5 + $0x1b0] sm:$0xff]  }
 0x7ef   : > { %vm5122_vm10 = vcmp.ge.f32.partialorder %v5114_v51, 0.0  ;;  %v5130_v4 = vmul.f32 0.2, %v5114_v51  ;;  %10307 = vmatpush3.bf16.msra.mxu1 %v12661_v29 }
 0x7f0   : > { %v10277_v1 = vpop.f32.mrf.mxu0  ;;  %10308 = vmatprep.subr.bf16.mxu1 %v12662_v63 }
 0x7f1   : > { %v5138_v6 = vsel %vm5122_vm10, %v5114_v51, %v5130_v4  ;;  %v10278_v21 = vadd.f32 %v10277_v1, %v10276_v49 }
 0x7f2   : > { %5146 = vst.msk [vmem:[#allocation3 + $0xc1] sm:$0xff] %vm435_vm4, %v5138_v6  ;;  %v10279_v48 = vpop.f32.mrf.mxu0 }
 0x7f3   : > { %v5010_v35 = vadd.f32 %v10278_v21, %v15333_v28  ;;  %10309 = vmatpush3.bf16.msra.mxu1 %v12663_v57 }
 0x7f4   : > { %v10280_v24 = vpop.f32.mrf.mxu0  ;;  %10310 = vmatprep.subr.bf16.mxu1 %v12664_v36 }
 0x7f5   : > { %v5075_v59 = vadd.f32 %v10632_v11, %v5010_v35  ;;  %v10281_v2 = vadd.f32 %v10280_v24, %v10279_v48  ;;  %v15361_v47 = vld [vmem:[#allocation3 + $0xb1] sm:$0xff] }
 0x7f6   : > { %v11864_v54 = vpack.i.bf16 %v15361_v47, %v5161_v34  ;;  %v5193_v20 = vld [vmem:[#allocation3 + $0xb2] sm:$0xff] }
 0x7f7   : > { %v5107_v30 = vmul.f32 %v15339_v18, %v5075_v59  ;;  %v5013_v52 = vadd.f32 %v10281_v2, %v15333_v28  ;;  %v11869_v5 = vpack.i.bf16 %v5193_v20, %v5169_v45  ;;  %v15391_v15 = vld [vmem:[#allocation3 + $0xb0] sm:$0xff]  ;;  %10311 = vmatpush3.bf16.msra.mxu1 %v12665_v25 }
 0x7f8   : > { %11865 = vrot.lane.b32.xlu1 %v11864_v54, %s12818_s22  ;;  %10312 = vmatprep.subr.bf16.mxu1 %v12666_v62 }
 0x7f9   : > { %v5115_v9 = vadd.f32 %v5107_v30, %v15171_v40  ;;  %v5078_v27 = vadd.f32 %v10633_v55, %v5013_v52  ;;  %v15379_v3 = vld [vmem:[#allocation3 + $0xc2] sm:$0xff]  ;;  %v5082_v40 = vpop.f32.mrf.mxu1 }
 0x7fa   : > { %v10282_v53 = vpop.f32.mrf.mxu0  ;;  %v11874_v33 = vpack.i.bf16 %v15379_v3, %v5193_v20  ;;  %v15386_v42 = vld [vmem:[#allocation3 + $0xc0] sm:$0xff] }
 0x7fb   : > { %vm5123_vm2 = vcmp.ge.f32.partialorder %v5115_v9, 0.0  ;;  %v5131_v43 = vmul.f32 0.2, %v5115_v9  ;;  %v5108_v23 = vmul.f32 %v15339_v18, %v5078_v27  ;;  %v11879_v55 = vpack.i.bf16 %v15386_v42, %v15391_v15  ;;  %v10637_v31 = vpop.f32.mrf.mxu1  ;;  %10313 = vmatpush3.bf16.msra.mxu1 %v12667_v61  ;;  %v15413_v56 = vld [vmem:[#allocation3 + $0xc1] sm:$0xff] }
 0x7fc   : > { %v10283_v11 = vpop.f32.mrf.mxu0  ;;  %11875 = vrot.lane.b32.xlu0 %v11874_v33, %s12818_s22  ;;  %11870 = vrot.lane.b32.xlu1 %v11869_v5, %s12822_s26 }
 0x7fd   : > { %v5139_v13 = vsel %vm5123_vm2, %v5115_v9, %v5131_v43  ;;  %v5116_v14 = vadd.f32 %v5108_v23, %v15200_v37  ;;  %v10284_v58 = vadd.f32 %v10283_v11, %v10282_v53  ;;  %10314 = vmatprep.subr.bf16.mxu1 %v12668_v44  ;;  %v5085_v51 = vpop.f32.mrf.mxu1 }
 0x7fe   : > { %5147 = vst.msk [vmem:[#allocation3 + $0xd1] sm:$0xff] %vm435_vm4, %v5139_v13  ;;  %v10285_v60 = vpop.f32.mrf.mxu0 }
 0x7ff   : > { %vm5124_vm6 = vcmp.ge.f32.partialorder %v5116_v14, 0.0  ;;  %v5132_v37 = vmul.f32 0.2, %v5116_v14  ;;  %v5018_v22 = vadd.f32 %v10284_v58, %v15333_v28  ;;  %10315 = vmatpush3.bf16.msra.mxu1 %v12669_v0 }
 0x800   : > { %v10286_v46 = vpop.f32.mrf.mxu0  ;;  %11880 = vrot.lane.b32.xlu1 %v11879_v55, %s12825_s20 }
 0x801   : > { %v5140_v17 = vsel %vm5124_vm6, %v5116_v14, %v5132_v37  ;;  %v5083_v10 = vadd.f32 %v5082_v40, %v5018_v22  ;;  %v10287_v8 = vadd.f32 %v10286_v46, %v10285_v60 }
 0x802   : > { %5148 = vst.msk [vmem:[#allocation3 + $0xe1] sm:$0xff] %vm435_vm4, %v5140_v17 }
 0x803   : > { %v5109_v26 = vmul.f32 %v15339_v18, %v5083_v10  ;;  %v5021_v38 = vadd.f32 %v10287_v8, %v15333_v28 }
 0x805   : > { %v5117_v41 = vadd.f32 %v5109_v26, %v15206_v39  ;;  %v5086_v49 = vadd.f32 %v5085_v51, %v5021_v38  ;;  %v5218_v4 = vld [vmem:[#allocation3 + $0xd2] sm:$0xff] }
 0x806   : > { %v15416_v1 = vld [vmem:[#allocation3 + $0xd0] sm:$0xff]  ;;  %v10288_v21 = vpop.f32.mrf.mxu0  ;;  %v5506_v32 = vpack.c.bf16 %v5218_v4, %v15379_v3  ;;  %v11899_v36 = vpack.i.bf16 %v5218_v4, %v15379_v3 }
 0x807   : > { %v15418_v6 = vld [vmem:[#allocation3 + $0xd1] sm:$0xff]  ;;  %v11884_v29 = vpack.i.bf16 %v15416_v1, %v15386_v42  ;;  %vm5125_vm11 = vcmp.ge.f32.partialorder %v5117_v41, 0.0  ;;  %v5133_v35 = vmul.f32 0.2, %v5117_v41  ;;  %v5110_v39 = vmul.f32 %v15339_v18, %v5086_v49 }
 0x808   : > { %v11894_v48 = vpack.i.bf16 %v15418_v6, %v15413_v56  ;;  %v10289_v34 = vpop.f32.mrf.mxu0  ;;  %10642 = vmatprep.mubr.msk.bf16.mxu0 %vm435_vm4, %v5506_v32  ;;  %v5224_v26 = vld [vmem:[#allocation3 + $0x132] sm:$0xff] }
 0x809   : > { %11885 = vrot.lane.b32.xlu0 %v11884_v29, %s12822_s26  ;;  %v5141_v24 = vsel %vm5125_vm11, %v5117_v41, %v5133_v35  ;;  %v5118_v59 = vadd.f32 %v5110_v39, %v15232_v12  ;;  %v10290_v2 = vadd.f32 %v10289_v34, %v10288_v21  ;;  %v5196_v30 = vld [vmem:[#allocation3 + $0xe2] sm:$0xff]  ;;  %v5208_v32 = vld [vmem:[#allocation3 + $0x130] sm:$0xff] }
 0x80a   : > { %11895 = vrot.lane.b32.xlu1 %v11894_v48, %s12818_s22  ;;  %5149 = vst.msk [vmem:[#allocation3 + $0xf1] sm:$0xff] %vm435_vm4, %v5141_v24  ;;  %v10291_v54 = vpop.f32.mrf.mxu0  ;;  %v15434_v20 = vld [vmem:[#allocation3 + $0xe0] sm:$0xff]  ;;  %v11904_v27 = vpack.i.bf16 %v5196_v30, %v5218_v4  ;;  %v5216_v35 = vld [vmem:[#allocation3 + $0x131] sm:$0xff] }
 0x80b   : > { %vm5126_vm12 = vcmp.ge.f32.partialorder %v5118_v59, 0.0  ;;  %v5134_v63 = vmul.f32 0.2, %v5118_v59  ;;  %v5026_v57 = vadd.f32 %v10290_v2, %v15333_v28  ;;  %v11909_v3 = vpack.i.bf16 %v15434_v20, %v15416_v1  ;;  %v15444_v33 = vld [vmem:[#allocation3 + $0xe1] sm:$0xff] }
 0x80c   : > { %v10292_v52 = vpop.f32.mrf.mxu0 }
 0x80d   : > { %11890 = vrot.lane.b32.xlu0 %v11894_v48, %s12825_s20  ;;  %v5142_v45 = vsel %vm5126_vm12, %v5118_v59, %v5134_v63  ;;  %v5091_v12 = vadd.f32 %v15375_v16, %v5026_v57  ;;  %v10293_v9 = vadd.f32 %v10292_v52, %v10291_v54  ;;  %v5153_v52 = vld [vmem:[#allocation3 + $0xa0] sm:$0xff] }
 0x80e   : > { %11900 = vrot.lane.b32.xlu1 %v11899_v36, %s12822_s26  ;;  %5150 = vst.msk [vmem:[#allocation3 + $0x101] sm:$0xff] %vm435_vm4, %v5142_v45 }
 0x80f   : > { %v5111_v25 = vmul.f32 %v15339_v18, %v5091_v12  ;;  %v5029_v53 = vadd.f32 %v10293_v9, %v15333_v28 }
 0x811   : > { %11905 = vrot.lane.b32.xlu0 %v11904_v27, %s12818_s22  ;;  %v5119_v5 = vadd.f32 %v5111_v25, %v15227_v50  ;;  %v5094_v16 = vadd.f32 %v10637_v31, %v5029_v53  ;;  %v5220_v43 = vld [vmem:[#allocation3 + $0xf2] sm:$0xff] }
 0x812   : > { %11910 = vrot.lane.b32.xlu1 %v11909_v3, %s12825_s20  ;;  %v15448_v23 = vld [vmem:[#allocation3 + $0xf0] sm:$0xff]  ;;  %v5509_v11 = vpack.c.bf16 %v5220_v43, %v5196_v30  ;;  %v11929_v55 = vpack.i.bf16 %v5220_v43, %v5196_v30 }
 0x813   : > { %v15450_v40 = vld [vmem:[#allocation3 + $0xf1] sm:$0xff]  ;;  %v11914_v28 = vpack.i.bf16 %v15448_v23, %v15434_v20  ;;  %vm5127_vm13 = vcmp.ge.f32.partialorder %v5119_v5, 0.0  ;;  %v5135_v14 = vmul.f32 0.2, %v5119_v5  ;;  %v5112_v58 = vmul.f32 %v15339_v18, %v5094_v16 }
 0x814   : > { %v11924_v13 = vpack.i.bf16 %v15450_v40, %v15444_v33  ;;  %10643 = vmatmul.mubr.msk.bf16.vlgmr.msra.gmra.mxu0 %vm435_vm4, %v5509_v11 }
 0x815   : > { %11915 = vrot.lane.b32.xlu0 %v11914_v28, %s12822_s26  ;;  %v5143_v50 = vsel %vm5127_vm13, %v5119_v5, %v5135_v14  ;;  %v5120_v62 = vadd.f32 %v5112_v58, %v15244_v19  ;;  %v5198_v61 = vld [vmem:[#allocation3 + $0x102] sm:$0xff] }
 0x816   : > { %11925 = vrot.lane.b32.xlu1 %v11924_v13, %s12818_s22  ;;  %5151 = vst.msk [vmem:[#allocation3 + $0x111] sm:$0xff] %vm435_vm4, %v5143_v50  ;;  %v15463_v37 = vld [vmem:[#allocation3 + $0x100] sm:$0xff]  ;;  %v11934_v22 = vpack.i.bf16 %v5198_v61, %v5220_v43 }
 0x817   : > { %vm5128_vm14 = vcmp.ge.f32.partialorder %v5120_v62, 0.0  ;;  %v5136_v60 = vmul.f32 0.2, %v5120_v62  ;;  %v11939_v19 = vpack.i.bf16 %v15463_v37, %v15448_v23  ;;  %v15470_v31 = vld [vmem:[#allocation3 + $0x101] sm:$0xff] }
 0x819   : > { %11920 = vrot.lane.b32.xlu0 %v11924_v13, %s12825_s20  ;;  %v5144_v18 = vsel %vm5128_vm14, %v5120_v62, %v5136_v60 }
 0x81a   : > { %11930 = vrot.lane.b32.xlu1 %v11929_v55, %s12822_s26  ;;  %5152 = vst.msk [vmem:[#allocation3 + $0x121] sm:$0xff] %vm435_vm4, %v5144_v18 }
 0x81d   : > { %11935 = vrot.lane.b32.xlu0 %v11934_v22, %s12818_s22  ;;  %v5222_v46 = vld [vmem:[#allocation3 + $0x112] sm:$0xff] }
 0x81e   : > { %11940 = vrot.lane.b32.xlu1 %v11939_v19, %s12825_s20  ;;  %v15473_v44 = vld [vmem:[#allocation3 + $0x110] sm:$0xff]  ;;  %v5512_v10 = vpack.c.bf16 %v5222_v46, %v5198_v61  ;;  %v11959_v41 = vpack.i.bf16 %v5222_v46, %v5198_v61 }
 0x81f   : > { %v15475_v17 = vld [vmem:[#allocation3 + $0x111] sm:$0xff]  ;;  %v11944_v8 = vpack.i.bf16 %v15473_v44, %v15463_v37 }
 0x820   : > { %v11954_v0 = vpack.i.bf16 %v15475_v17, %v15470_v31  ;;  %10646 = vmatprep.mubr.msk.bf16.mxu0 %vm435_vm4, %v5512_v10 }
 0x821   : > { %11945 = vrot.lane.b32.xlu0 %v11944_v8, %s12822_s26  ;;  %v5223_v38 = vld [vmem:[#allocation3 + $0x122] sm:$0xff] }
 0x822   : > { %11955 = vrot.lane.b32.xlu1 %v11954_v0, %s12818_s22  ;;  %v5515_v51 = vpack.c.bf16 %v5224_v26, %v5223_v38  ;;  %v5184_v49 = vld [vmem:[#allocation3 + $0x120] sm:$0xff]  ;;  %v11964_v4 = vpack.i.bf16 %v5223_v38, %v5222_v46 }
 0x823   : > { %v11979_v21 = vpack.i.bf16 %v5184_v49, %v15473_v44  ;;  %v11969_v29 = vpack.i.bf16 %v5208_v32, %v5184_v49  ;;  %v15490_v48 = vld [vmem:[#allocation3 + $0x121] sm:$0xff] }
 0x824   : > { %10647 = vmatmul.mubr.msk.bf16.gmra.mxu0 %vm435_vm4, %v5515_v51  ;;  %v11974_v39 = vpack.i.bf16 %v5216_v35, %v15490_v48 }
 0x825   : > { %11950 = vrot.lane.b32.xlu0 %v11954_v0, %s12825_s20 }
 0x826   : > { %11960 = vrot.lane.b32.xlu1 %v11959_v41, %s12822_s26 }
 0x829   : > { %11965 = vrot.lane.b32.xlu0 %v11964_v4, %s12818_s22 }
 0x82a   : > { %11980 = vrot.lane.b32.xlu1 %v11979_v21, %s12825_s20 }
 0x82d   : > { %11970 = vrot.lane.b32.xlu0 %v11969_v29, %s12822_s26 }
 0x831   : > { %11975 = vrot.lane.b32.xlu0 %v11974_v39, %s12825_s20 }
 0x86a   : > { %v11866_v34 = vpop.permute.xlu1 %11865 }
 0x86b   : > { %v11868_v54 = vunpack.i.h.bf16 %v11866_v34  ;;  %v11867_v63 = vunpack.i.l.bf16 %v11866_v34 }
 0x86d   : > { %v5456_v5 = vsel %vm435_vm4, %v5153_v52, %v11867_v63  ;;  %v5457_v16 = vsel %vm435_vm4, %v15391_v15, %v11868_v54 }
 0x86e   : > { %v11871_v24 = vpop.permute.xlu1 %11870  ;;  %v11876_v59 = vpop.permute.xlu0 %11875 }
 0x86f   : > { %v11878_v57 = vunpack.i.h.bf16 %v11876_v59  ;;  %v11877_v36 = vunpack.i.l.bf16 %v11876_v59  ;;  %v11873_v45 = vunpack.i.h.bf16 %v11871_v24  ;;  %v11872_v12 = vunpack.i.l.bf16 %v11871_v24 }
 0x871   : > { %v5481_v43 = vsel %vm435_vm4, %v15413_v56, %v11878_v57  ;;  %v5480_v11 = vsel %vm435_vm4, %v15361_v47, %v11877_v36  ;;  %v5464_v13 = vsel %vm884_vm8, %v5456_v5, %v11872_v12  ;;  %v5465_v14 = vsel %vm884_vm8, %v5457_v16, %v11873_v45 }
 0x872   : > { %v11881_v2 = vpop.permute.xlu1 %11880 }
 0x873   : > { %v11883_v27 = vunpack.i.h.bf16 %v11881_v2  ;;  %v11882_v25 = vunpack.i.l.bf16 %v11881_v2 }
 0x875   : > { %v5472_v60 = vsel %vm2931_vm9, %v5464_v13, %v11882_v25  ;;  %v5473_v55 = vsel %vm2931_vm9, %v5465_v14, %v11883_v27 }
 0x876   : > { %v5504_v10 = vpack.c.bf16 %v5473_v55, %v5472_v60 }
 0x87b   : > { %v11886_v30 = vpop.permute.xlu0 %11885 }
 0x87c   : > { %v11896_v9 = vpop.permute.xlu1 %11895  ;;  %v11888_v53 = vunpack.i.h.bf16 %v11886_v30  ;;  %v11887_v3 = vunpack.i.l.bf16 %v11886_v30 }
 0x87d   : > { %v11898_v0 = vunpack.i.h.bf16 %v11896_v9  ;;  %v11897_v26 = vunpack.i.l.bf16 %v11896_v9 }
 0x87e   : > { %v5488_v15 = vsel %vm884_vm8, %v5480_v11, %v11887_v3  ;;  %v5489_v61 = vsel %vm884_vm8, %v5481_v43, %v11888_v53 }
 0x87f   : > { %v11891_v28 = vpop.permute.xlu0 %11890  ;;  %v5459_v34 = vsel %vm435_vm4, %v15416_v1, %v11898_v0  ;;  %v5458_v24 = vsel %vm435_vm4, %v15386_v42, %v11897_v26 }
 0x880   : > { %v11893_v58 = vunpack.i.h.bf16 %v11891_v28  ;;  %v11892_v50 = vunpack.i.l.bf16 %v11891_v28  ;;  %v11901_v62 = vpop.permute.xlu1 %11900 }
 0x881   : > { %v11903_v38 = vunpack.i.h.bf16 %v11901_v62  ;;  %v11902_v51 = vunpack.i.l.bf16 %v11901_v62 }
 0x882   : > { %v5496_v18 = vsel %vm2931_vm9, %v5488_v15, %v11892_v50  ;;  %v5497_v22 = vsel %vm2931_vm9, %v5489_v61, %v11893_v58 }
 0x883   : > { %v11906_v19 = vpop.permute.xlu0 %11905  ;;  %v5505_v46 = vpack.c.bf16 %v5497_v22, %v5496_v18  ;;  %v5466_v2 = vsel %vm884_vm8, %v5458_v24, %v11902_v51  ;;  %v5467_v54 = vsel %vm884_vm8, %v5459_v34, %v11903_v38 }
 0x884   : > { %v11911_v8 = vpop.permute.xlu1 %11910  ;;  %v11908_v49 = vunpack.i.h.bf16 %v11906_v19  ;;  %v11907_v4 = vunpack.i.l.bf16 %v11906_v19 }
 0x885   : > { %5674 = vmatprep.mubr.bf16.mxu1 %v5505_v46  ;;  %v11913_v32 = vunpack.i.h.bf16 %v11911_v8  ;;  %v11912_v29 = vunpack.i.l.bf16 %v11911_v8 }
 0x886   : > { %5675 = vmatmul.mubr.bf16.vlgmr.msra.gmra.mxu1 %v5504_v10  ;;  %v5483_v63 = vsel %vm435_vm4, %v15444_v33, %v11908_v49  ;;  %v5482_v57 = vsel %vm435_vm4, %v15418_v6, %v11907_v4 }
 0x887   : > { %v11916_v41 = vpop.permute.xlu0 %11915  ;;  %v5474_v42 = vsel %vm2931_vm9, %v5466_v2, %v11912_v29  ;;  %v5475_v12 = vsel %vm2931_vm9, %v5467_v54, %v11913_v32 }
 0x888   : > { %v11926_v21 = vpop.permute.xlu1 %11925  ;;  %v11918_v35 = vunpack.i.h.bf16 %v11916_v41  ;;  %v11917_v39 = vunpack.i.l.bf16 %v11916_v41  ;;  %v5507_v5 = vpack.c.bf16 %v5475_v12, %v5474_v42 }
 0x889   : > { %v11928_v16 = vunpack.i.h.bf16 %v11926_v21  ;;  %v11927_v43 = vunpack.i.l.bf16 %v11926_v21 }
 0x88a   : > { %v5490_v45 = vsel %vm884_vm8, %v5482_v57, %v11917_v39  ;;  %v5491_v1 = vsel %vm884_vm8, %v5483_v63, %v11918_v35 }
 0x88b   : > { %v11921_v59 = vpop.permute.xlu0 %11920  ;;  %v5461_v61 = vsel %vm435_vm4, %v15448_v23, %v11928_v16  ;;  %v5460_v18 = vsel %vm435_vm4, %v15434_v20, %v11927_v43 }
 0x88c   : > { %v11923_v36 = vunpack.i.h.bf16 %v11921_v59  ;;  %v11922_v30 = vunpack.i.l.bf16 %v11921_v59  ;;  %v11931_v52 = vpop.permute.xlu1 %11930 }
 0x88d   : > { %v11933_v11 = vunpack.i.h.bf16 %v11931_v52  ;;  %v11932_v28 = vunpack.i.l.bf16 %v11931_v52 }
 0x88e   : > { %v5498_v9 = vsel %vm2931_vm9, %v5490_v45, %v11922_v30  ;;  %v5499_v27 = vsel %vm2931_vm9, %v5491_v1, %v11923_v36 }
 0x88f   : > { %v11936_v25 = vpop.permute.xlu0 %11935  ;;  %v5508_v53 = vpack.c.bf16 %v5499_v27, %v5498_v9  ;;  %v5468_v19 = vsel %vm884_vm8, %v5460_v18, %v11932_v28  ;;  %v5469_v46 = vsel %vm884_vm8, %v5461_v61, %v11933_v11  ;;  %v12677_v61 = vld [vmem:[%s16902_s5 + $0x268] sm:$0xff]  }
 0x890   : > { %v11941_v3 = vpop.permute.xlu1 %11940  ;;  %v11938_v14 = vunpack.i.h.bf16 %v11936_v25  ;;  %v11937_v58 = vunpack.i.l.bf16 %v11936_v25 }
 0x891   : > { %5682 = vmatprep.mubr.bf16.mxu1 %v5508_v53  ;;  %v11943_v62 = vunpack.i.h.bf16 %v11941_v3  ;;  %v11942_v60 = vunpack.i.l.bf16 %v11941_v3 }
 0x892   : > { %5683 = vmatmul.mubr.bf16.gmra.mxu1 %v5507_v5  ;;  %v5485_v10 = vsel %vm435_vm4, %v15470_v31, %v11938_v14  ;;  %v5484_v8 = vsel %vm435_vm4, %v15450_v40, %v11937_v58  ;;  %v12670_v14 = vld [vmem:[%s16902_s5 + $0x2c8] sm:$0xff]   ;;  %v12671_v58 = vld [vmem:[%s16902_s5 + $0x2c0] sm:$0xff]  }
 0x893   : > { %v11946_v13 = vpop.permute.xlu0 %11945  ;;  %v5476_v20 = vsel %vm2931_vm9, %v5468_v19, %v11942_v60  ;;  %v5477_v41 = vsel %vm2931_vm9, %v5469_v46, %v11943_v62  ;;  %10650 = vmatprep.subr.bf16.mxu0 %v12670_v14  ;;  %v12673_v62 = vld [vmem:[%s16902_s5 + $0x278] sm:$0xff]   ;;  %v12674_v60 = vld [vmem:[%s16902_s5 + $0x2b0] sm:$0xff]   ;;  %v15585_v46 = vld [vmem:[%s16903_s6 + $0x3] ss:$0 sm:$0xff] }
 0x894   : > { %v11956_v50 = vpop.permute.xlu1 %11955  ;;  %v11948_v55 = vunpack.i.h.bf16 %v11946_v13  ;;  %v11947_v15 = vunpack.i.l.bf16 %v11946_v13  ;;  %v5510_v29 = vpack.c.bf16 %v5477_v41, %v5476_v20  ;;  %10651 = vmatpush3.bf16.msra.mxu0 %v12670_v14 }
 0x895   : > { %v11958_v35 = vunpack.i.h.bf16 %v11956_v50  ;;  %v11957_v39 = vunpack.i.l.bf16 %v11956_v50  ;;  %10652 = vmatprep.subr.bf16.mxu0 %v12671_v58  ;;  %v12672_v50 = vld [vmem:[%s16902_s5 + $0x2b8] sm:$0xff]  }
 0x896   : > { %v5492_v51 = vsel %vm884_vm8, %v5484_v8, %v11947_v15  ;;  %v5493_v23 = vsel %vm884_vm8, %v5485_v10, %v11948_v55  ;;  %10346 = vmatprep.subr.bf16.mxu1 %v12672_v50  ;;  %v12675_v55 = vld [vmem:[%s16902_s5 + $0x270] sm:$0xff]   ;;  %v12676_v15 = vld [vmem:[%s16902_s5 + $0x2a8] sm:$0xff]  }
 0x897   : > { %v11951_v22 = vpop.permute.xlu0 %11950  ;;  %v5463_v45 = vsel %vm435_vm4, %v15473_v44, %v11958_v35  ;;  %v5462_v1 = vsel %vm435_vm4, %v15463_v37, %v11957_v39  ;;  %10347 = vmatpush3.bf16.msra.mxu1 %v12673_v62 }
 0x898   : > { %v11953_v0 = vunpack.i.h.bf16 %v11951_v22  ;;  %v11952_v26 = vunpack.i.l.bf16 %v11951_v22  ;;  %v11961_v38 = vpop.permute.xlu1 %11960  ;;  %10653 = vmatpush3.bf16.msra.mxu0 %v12671_v58  ;;  %10348 = vmatprep.subr.bf16.mxu1 %v12674_v60 }
 0x899   : > { %v11963_v24 = vunpack.i.h.bf16 %v11961_v38  ;;  %v11962_v59 = vunpack.i.l.bf16 %v11961_v38 }
 0x89a   : > { %v5500_v49 = vsel %vm2931_vm9, %v5492_v51, %v11952_v26  ;;  %v5501_v4 = vsel %vm2931_vm9, %v5493_v23, %v11953_v0  ;;  %v15591_v51 = vld [vmem:[%s16904_s7 + $0x3] ss:$0 sm:$0xff] }
 0x89b   : > { %v11966_v21 = vpop.permute.xlu0 %11965  ;;  %v5511_v32 = vpack.c.bf16 %v5501_v4, %v5500_v49  ;;  %v5470_v12 = vsel %vm884_vm8, %v5462_v1, %v11962_v59  ;;  %v5471_v9 = vsel %vm884_vm8, %v5463_v45, %v11963_v24  ;;  %10349 = vmatpush3.bf16.msra.mxu1 %v12675_v55 }
 0x89c   : > { %v11981_v34 = vpop.permute.xlu1 %11980  ;;  %v11968_v54 = vunpack.i.h.bf16 %v11966_v21  ;;  %v11967_v63 = vunpack.i.l.bf16 %v11966_v21  ;;  %10350 = vmatprep.subr.bf16.mxu1 %v12676_v15 }
 0x89d   : > { %5690 = vmatprep.mubr.bf16.mxu1 %v5511_v32  ;;  %v11983_v57 = vunpack.i.h.bf16 %v11981_v34  ;;  %v11982_v36 = vunpack.i.l.bf16 %v11981_v34 }
 0x89e   : > { %5691 = vmatmul.mubr.bf16.gmra.mxu1 %v5510_v29  ;;  %v5487_v27 = vsel %vm435_vm4, %v15490_v48, %v11968_v54  ;;  %v5486_v25 = vsel %vm435_vm4, %v15475_v17, %v11967_v63  ;;  %v12678_v63 = vld [vmem:[%s16902_s5 + $0x2a0] sm:$0xff]  }
 0x89f   : > { %v11971_v2 = vpop.permute.xlu0 %11970  ;;  %v5478_v16 = vsel %vm2931_vm9, %v5470_v12, %v11982_v36  ;;  %v5479_v37 = vsel %vm2931_vm9, %v5471_v9, %v11983_v57  ;;  %10351 = vmatpush3.bf16.msra.mxu1 %v12677_v61  ;;  %v12679_v57 = vld [vmem:[%s16902_s5 + $0x260] sm:$0xff]   ;;  %v12681_v12 = vld [vmem:[%s16902_s5 + $0x258] sm:$0xff]  }
 0x8a0   : > { %v11973_v30 = vunpack.i.h.bf16 %v11971_v2  ;;  %v11972_v52 = vunpack.i.l.bf16 %v11971_v2  ;;  %v5513_v13 = vpack.c.bf16 %v5479_v37, %v5478_v16  ;;  %10352 = vmatprep.subr.bf16.mxu1 %v12678_v63 }
 0x8a2   : > { %v5494_v5 = vsel %vm884_vm8, %v5486_v25, %v11972_v52  ;;  %v5495_v44 = vsel %vm884_vm8, %v5487_v27, %v11973_v30  ;;  %v5836_v25 = vld [vmem:[#allocation3 + $0x1] sm:$0xff] }
 0x8a3   : > { %v11976_v42 = vpop.permute.xlu0 %11975  ;;  %10353 = vmatpush3.bf16.msra.mxu1 %v12679_v57 }
 0x8a4   : > { %v11978_v53 = vunpack.i.h.bf16 %v11976_v42  ;;  %v11977_v3 = vunpack.i.l.bf16 %v11976_v42  ;;  %v12680_v42 = vld [vmem:[%s16902_s5 + $0x298] sm:$0xff]  }
 0x8a5   : > { %10354 = vmatprep.subr.bf16.mxu1 %v12680_v42 }
 0x8a6   : > { %v5502_v43 = vsel %vm2931_vm9, %v5494_v5, %v11977_v3  ;;  %v5503_v11 = vsel %vm2931_vm9, %v5495_v44, %v11978_v53 }
 0x8a7   : > { %v5514_v28 = vpack.c.bf16 %v5503_v11, %v5502_v43  ;;  %10355 = vmatpush3.bf16.msra.mxu1 %v12681_v12  ;;  %v12682_v43 = vld [vmem:[%s16902_s5 + $0x290] sm:$0xff]  }
 0x8a8   : > { %v12683_v11 = vld [vmem:[%s16902_s5 + $0x250] sm:$0xff]   ;;  %10356 = vmatprep.subr.bf16.mxu1 %v12682_v43 }
 0x8a9   : > { %5698 = vmatprep.mubr.bf16.mxu1 %v5514_v28 }
 0x8aa   : > { %5699 = vmatmul.mubr.bf16.gmra.mxu1 %v5513_v13 }
 0x8ab   : > { %10357 = vmatpush3.bf16.msra.mxu1 %v12683_v11 }
 0x8d4   : > { %v10644_v18 = vpop.f32.mrf.mxu0 }
 0x8d6   : > { %v5741_v19 = vpop.f32.mrf.mxu0 }
 0x8d8   : > { %v10645_v38 = vpop.f32.mrf.mxu0 }
 0x8da   : > { %v5744_v21 = vpop.f32.mrf.mxu0 }
 0x8e4   : > { %v15615_v53 = vpop.f32.mrf.mxu0 }
 0x8e6   : > { %v5757_v58 = vpop.f32.mrf.mxu0 }
 0x946   : > { %v10316_v22 = vpop.f32.mrf.mxu1 }
 0x948   : > { %v10317_v10 = vpop.f32.mrf.mxu1 }
 0x949   : > { %v10318_v8 = vadd.f32 %v10317_v10, %v10316_v22  ;;  %v12685_v10 = vld [vmem:[%s16902_s5 + $0x248] sm:$0xff]  }
 0x94a   : > { %v10319_v0 = vpop.f32.mrf.mxu1 }
 0x94b   : > { %v5677_v26 = vadd.f32 %v10318_v8, %v15585_v46 }
 0x94c   : > { %v10320_v23 = vpop.f32.mrf.mxu1 }
 0x94d   : > { %v5742_v20 = vadd.f32 %v5741_v19, %v5677_v26  ;;  %v10321_v41 = vadd.f32 %v10320_v23, %v10319_v0  ;;  %v12684_v19 = vld [vmem:[%s16902_s5 + $0x288] sm:$0xff]   ;;  %v10649_v26 = vpop.f32.mrf.mxu0  ;;  %v12686_v23 = vld [vmem:[%s16902_s5 + $0x280] sm:$0xff]  }
 0x94e   : > { %10358 = vmatprep.subr.bf16.mxu1 %v12684_v19 }
 0x94f   : > { %v5780_v49 = vmul.f32 %v15591_v51, %v5742_v20  ;;  %v5680_v4 = vadd.f32 %v10321_v41, %v15585_v46  ;;  %10359 = vmatpush3.bf16.msra.mxu1 %v12685_v10 }
 0x950   : > { %10360 = vmatprep.subr.bf16.mxu1 %v12686_v23 }
 0x951   : > { %v5788_v32 = vadd.f32 %v5780_v49, %v15361_v47  ;;  %v5745_v29 = vadd.f32 %v5744_v21, %v5680_v4 }
 0x952   : > { %v10322_v35 = vpop.f32.mrf.mxu1 }
 0x953   : > { %vm5796_vm15 = vcmp.ge.f32.partialorder %v5788_v32, 0.0  ;;  %v5804_v39 = vmul.f32 0.2, %v5788_v32  ;;  %v5781_v34 = vmul.f32 %v15591_v51, %v5745_v29 }
 0x954   : > { %v10323_v24 = vpop.f32.mrf.mxu1 }
 0x955   : > { %v5812_v59 = vsel %vm5796_vm15, %v5788_v32, %v5804_v39  ;;  %v5789_v2 = vadd.f32 %v5781_v34, %v15413_v56  ;;  %v10324_v54 = vadd.f32 %v10323_v24, %v10322_v35  ;;  %v12687_v32 = vld [vmem:[%s16902_s5 + $0x240] sm:$0xff]   ;;  %v5760_v39 = vpop.f32.mrf.mxu0 }
 0x956   : > { %5820 = vst.msk [vmem:[#allocation3 + $0x11] sm:$0xff] %vm435_vm4, %v5812_v59  ;;  %v10325_v47 = vpop.f32.mrf.mxu1  ;;  %10361 = vmatpush3.bf16.msra.mxu1 %v12687_v32 }
 0x957   : > { %vm5797_vm0 = vcmp.ge.f32.partialorder %v5789_v2, 0.0  ;;  %v5805_v36 = vmul.f32 0.2, %v5789_v2  ;;  %v5685_v30 = vadd.f32 %v10324_v54, %v15585_v46 }
 0x958   : > { %v10326_v52 = vpop.f32.mrf.mxu1 }
 0x959   : > { %v5813_v56 = vsel %vm5797_vm0, %v5789_v2, %v5805_v36  ;;  %v5750_v45 = vadd.f32 %v10644_v18, %v5685_v30  ;;  %v10327_v1 = vadd.f32 %v10326_v52, %v10325_v47 }
 0x95a   : > { %5821 = vst.msk [vmem:[#allocation3 + $0x21] sm:$0xff] %vm435_vm4, %v5813_v56 }
 0x95b   : > { %v5782_v9 = vmul.f32 %v15591_v51, %v5750_v45  ;;  %v5688_v27 = vadd.f32 %v10327_v1, %v15585_v46 }
 0x95d   : > { %v5790_v3 = vadd.f32 %v5782_v9, %v15418_v6  ;;  %v5753_v5 = vadd.f32 %v10645_v38, %v5688_v27  ;;  %v15618_v44 = vld [vmem:[#allocation3 + $0x11] sm:$0xff]  ;;  %v5844_v6 = vld [vmem:[#allocation3 + $0x2] sm:$0xff] }
 0x95e   : > { %v10328_v16 = vpop.f32.mrf.mxu1  ;;  %v11984_v37 = vpack.i.bf16 %v15618_v44, %v5836_v25  ;;  %v5868_v14 = vld [vmem:[#allocation3 + $0x12] sm:$0xff] }
 0x95f   : > { %vm5798_vm1 = vcmp.ge.f32.partialorder %v5790_v3, 0.0  ;;  %v5806_v28 = vmul.f32 0.2, %v5790_v3  ;;  %v5783_v13 = vmul.f32 %v15591_v51, %v5753_v5  ;;  %v11989_v22 = vpack.i.bf16 %v5868_v14, %v5844_v6  ;;  %v15648_v4 = vld [vmem:[#allocation3 + $0x10] sm:$0xff] }
 0x960   : > { %v10329_v50 = vpop.f32.mrf.mxu1  ;;  %11985 = vrot.lane.b32.xlu1 %v11984_v37, %s12818_s22 }
 0x961   : > { %v5814_v62 = vsel %vm5798_vm1, %v5790_v3, %v5806_v28  ;;  %v5791_v60 = vadd.f32 %v5783_v13, %v15444_v33  ;;  %v10330_v55 = vadd.f32 %v10329_v50, %v10328_v16  ;;  %v15630_v15 = vld [vmem:[#allocation3 + $0x22] sm:$0xff] }
 0x962   : > { %5822 = vst.msk [vmem:[#allocation3 + $0x31] sm:$0xff] %vm435_vm4, %v5814_v62  ;;  %v10331_v61 = vpop.f32.mrf.mxu1  ;;  %v11994_v18 = vpack.i.bf16 %v15630_v15, %v5868_v14  ;;  %v15641_v0 = vld [vmem:[#allocation3 + $0x20] sm:$0xff] }
 0x963   : > { %vm5799_vm3 = vcmp.ge.f32.partialorder %v5791_v60, 0.0  ;;  %v5807_v33 = vmul.f32 0.2, %v5791_v60  ;;  %v5693_v8 = vadd.f32 %v10330_v55, %v15585_v46  ;;  %v11999_v21 = vpack.i.bf16 %v15641_v0, %v15648_v4  ;;  %v15659_v34 = vld [vmem:[#allocation3 + $0x21] sm:$0xff] }
 0x964   : > { %v10332_v38 = vpop.f32.mrf.mxu1  ;;  %11995 = vrot.lane.b32.xlu0 %v11994_v18, %s12818_s22  ;;  %11990 = vrot.lane.b32.xlu1 %v11989_v22, %s12822_s26 }
 0x965   : > { %v5815_v20 = vsel %vm5799_vm3, %v5791_v60, %v5807_v33  ;;  %v5758_v41 = vadd.f32 %v5757_v58, %v5693_v8  ;;  %v10333_v49 = vadd.f32 %v10332_v38, %v10331_v61 }
 0x966   : > { %5823 = vst.msk [vmem:[#allocation3 + $0x41] sm:$0xff] %vm435_vm4, %v5815_v20 }
 0x967   : > { %v5784_v29 = vmul.f32 %v15591_v51, %v5758_v41  ;;  %v5696_v35 = vadd.f32 %v10333_v49, %v15585_v46 }
 0x968   : > { %12000 = vrot.lane.b32.xlu1 %v11999_v21, %s12825_s20 }
 0x969   : > { %v5792_v24 = vadd.f32 %v5784_v29, %v15450_v40  ;;  %v5761_v59 = vadd.f32 %v5760_v39, %v5696_v35  ;;  %v5893_v2 = vld [vmem:[#allocation3 + $0x32] sm:$0xff] }
 0x96a   : > { %v15662_v54 = vld [vmem:[#allocation3 + $0x30] sm:$0xff]  ;;  %v10334_v57 = vpop.f32.mrf.mxu1  ;;  %v6181_v47 = vpack.c.bf16 %v5893_v2, %v15630_v15  ;;  %v12019_v25 = vpack.i.bf16 %v5893_v2, %v15630_v15 }
 0x96b   : > { %v15664_v63 = vld [vmem:[#allocation3 + $0x31] sm:$0xff]  ;;  %v12004_v36 = vpack.i.bf16 %v15662_v54, %v15641_v0  ;;  %vm5800_vm5 = vcmp.ge.f32.partialorder %v5792_v24, 0.0  ;;  %v5808_v52 = vmul.f32 0.2, %v5792_v24  ;;  %v5785_v40 = vmul.f32 %v15591_v51, %v5761_v59 }
 0x96c   : > { %v12014_v30 = vpack.i.bf16 %v15664_v63, %v15659_v34  ;;  %v10335_v56 = vpop.f32.mrf.mxu1  ;;  %10654 = vmatprep.mubr.msk.bf16.mxu0 %vm435_vm4, %v6181_v47  ;;  %v5899_v29 = vld [vmem:[#allocation3 + $0x92] sm:$0xff] }
 0x96d   : > { %12005 = vrot.lane.b32.xlu0 %v12004_v36, %s12822_s26  ;;  %v5816_v45 = vsel %vm5800_vm5, %v5792_v24, %v5808_v52  ;;  %v5793_v1 = vadd.f32 %v5785_v40, %v15470_v31  ;;  %v10336_v42 = vadd.f32 %v10335_v56, %v10334_v57  ;;  %v5871_v3 = vld [vmem:[#allocation3 + $0x42] sm:$0xff]  ;;  %v5883_v47 = vld [vmem:[#allocation3 + $0x90] sm:$0xff] }
 0x96e   : > { %12015 = vrot.lane.b32.xlu1 %v12014_v30, %s12818_s22  ;;  %5824 = vst.msk [vmem:[#allocation3 + $0x51] sm:$0xff] %vm435_vm4, %v5816_v45  ;;  %v10337_v12 = vpop.f32.mrf.mxu1  ;;  %v15680_v16 = vld [vmem:[#allocation3 + $0x40] sm:$0xff]  ;;  %v12024_v11 = vpack.i.bf16 %v5871_v3, %v5893_v2  ;;  %v5891_v52 = vld [vmem:[#allocation3 + $0x91] sm:$0xff] }
 0x96f   : > { %vm5801_vm7 = vcmp.ge.f32.partialorder %v5793_v1, 0.0  ;;  %v5809_v9 = vmul.f32 0.2, %v5793_v1  ;;  %v5701_v27 = vadd.f32 %v10336_v42, %v15585_v46  ;;  %v12029_v14 = vpack.i.bf16 %v15680_v16, %v15662_v54  ;;  %v15690_v6 = vld [vmem:[#allocation3 + $0x41] sm:$0xff] }
 0x970   : > { %v10338_v5 = vpop.f32.mrf.mxu1 }
 0x971   : > { %12010 = vrot.lane.b32.xlu0 %v12014_v30, %s12825_s20  ;;  %v5817_v37 = vsel %vm5801_vm7, %v5793_v1, %v5809_v9  ;;  %v5766_v31 = vadd.f32 %v15615_v53, %v5701_v27  ;;  %v10339_v43 = vadd.f32 %v10338_v5, %v10337_v12  ;;  %v5828_v5 = vld [vmem:[#allocation3] sm:$0xff] }
 0x972   : > { %12020 = vrot.lane.b32.xlu1 %v12019_v25, %s12822_s26  ;;  %5825 = vst.msk [vmem:[#allocation3 + $0x61] sm:$0xff] %vm435_vm4, %v5817_v37 }
 0x973   : > { %v5786_v28 = vmul.f32 %v15591_v51, %v5766_v31  ;;  %v5704_v13 = vadd.f32 %v10339_v43, %v15585_v46 }
 0x975   : > { %12025 = vrot.lane.b32.xlu0 %v12024_v11, %s12818_s22  ;;  %v5794_v58 = vadd.f32 %v5786_v28, %v15475_v17  ;;  %v5769_v53 = vadd.f32 %v10649_v26, %v5704_v13  ;;  %v5895_v50 = vld [vmem:[#allocation3 + $0x52] sm:$0xff] }
 0x976   : > { %12030 = vrot.lane.b32.xlu1 %v12029_v14, %s12825_s20  ;;  %v15694_v62 = vld [vmem:[#allocation3 + $0x50] sm:$0xff]  ;;  %v6184_v55 = vpack.c.bf16 %v5895_v50, %v5871_v3  ;;  %v12049_v10 = vpack.i.bf16 %v5895_v50, %v5871_v3 }
 0x977   : > { %v15696_v60 = vld [vmem:[#allocation3 + $0x51] sm:$0xff]  ;;  %v12034_v46 = vpack.i.bf16 %v15694_v62, %v15680_v16  ;;  %vm5802_vm10 = vcmp.ge.f32.partialorder %v5794_v58, 0.0  ;;  %v5810_v61 = vmul.f32 0.2, %v5794_v58  ;;  %v5787_v18 = vmul.f32 %v15591_v51, %v5769_v53 }
 0x978   : > { %v12044_v15 = vpack.i.bf16 %v15696_v60, %v15690_v6  ;;  %10655 = vmatmul.mubr.msk.bf16.vlgmr.msra.gmra.mxu0 %vm435_vm4, %v6184_v55 }
 0x979   : > { %12035 = vrot.lane.b32.xlu0 %v12034_v46, %s12822_s26  ;;  %v5818_v17 = vsel %vm5802_vm10, %v5794_v58, %v5810_v61  ;;  %v5795_v22 = vadd.f32 %v5787_v18, %v15490_v48  ;;  %v5873_v33 = vld [vmem:[#allocation3 + $0x62] sm:$0xff] }
 0x97a   : > { %12045 = vrot.lane.b32.xlu1 %v12044_v15, %s12818_s22  ;;  %5826 = vst.msk [vmem:[#allocation3 + $0x71] sm:$0xff] %vm435_vm4, %v5818_v17  ;;  %v15709_v8 = vld [vmem:[#allocation3 + $0x60] sm:$0xff]  ;;  %v12054_v26 = vpack.i.bf16 %v5873_v33, %v5895_v50 }
 0x97b   : > { %vm5803_vm2 = vcmp.ge.f32.partialorder %v5795_v22, 0.0  ;;  %v5811_v19 = vmul.f32 0.2, %v5795_v22  ;;  %v12059_v48 = vpack.i.bf16 %v15709_v8, %v15694_v62  ;;  %v15716_v38 = vld [vmem:[#allocation3 + $0x61] sm:$0xff] }
 0x97d   : > { %12040 = vrot.lane.b32.xlu0 %v12044_v15, %s12825_s20  ;;  %v5819_v51 = vsel %vm5803_vm2, %v5795_v22, %v5811_v19 }
 0x97e   : > { %12050 = vrot.lane.b32.xlu1 %v12049_v10, %s12822_s26  ;;  %5827 = vst.msk [vmem:[#allocation3 + $0x81] sm:$0xff] %vm435_vm4, %v5819_v51 }
 0x981   : > { %12055 = vrot.lane.b32.xlu0 %v12054_v26, %s12818_s22  ;;  %v5897_v23 = vld [vmem:[#allocation3 + $0x72] sm:$0xff] }
 0x982   : > { %12060 = vrot.lane.b32.xlu1 %v12059_v48, %s12825_s20  ;;  %v15719_v20 = vld [vmem:[#allocation3 + $0x70] sm:$0xff]  ;;  %v6187_v49 = vpack.c.bf16 %v5897_v23, %v5873_v33  ;;  %v12079_v24 = vpack.i.bf16 %v5897_v23, %v5873_v33 }
 0x983   : > { %v15721_v41 = vld [vmem:[#allocation3 + $0x71] sm:$0xff]  ;;  %v12064_v21 = vpack.i.bf16 %v15719_v20, %v15709_v8 }
 0x984   : > { %v12074_v32 = vpack.i.bf16 %v15721_v41, %v15716_v38  ;;  %10658 = vmatprep.mubr.msk.bf16.mxu0 %vm435_vm4, %v6187_v49 }
 0x985   : > { %12065 = vrot.lane.b32.xlu0 %v12064_v21, %s12822_s26  ;;  %v5898_v35 = vld [vmem:[#allocation3 + $0x82] sm:$0xff] }
 0x986   : > { %12075 = vrot.lane.b32.xlu1 %v12074_v32, %s12818_s22  ;;  %v6190_v39 = vpack.c.bf16 %v5899_v29, %v5898_v35  ;;  %v5859_v59 = vld [vmem:[#allocation3 + $0x80] sm:$0xff]  ;;  %v12084_v2 = vpack.i.bf16 %v5898_v35, %v5897_v23 }
 0x987   : > { %v12099_v57 = vpack.i.bf16 %v5859_v59, %v15719_v20  ;;  %v12089_v36 = vpack.i.bf16 %v5883_v47, %v5859_v59  ;;  %v15736_v30 = vld [vmem:[#allocation3 + $0x81] sm:$0xff] }
 0x988   : > { %10659 = vmatmul.mubr.msk.bf16.gmra.mxu0 %vm435_vm4, %v6190_v39  ;;  %v12094_v40 = vpack.i.bf16 %v5891_v52, %v15736_v30 }
 0x989   : > { %12070 = vrot.lane.b32.xlu0 %v12074_v32, %s12825_s20 }
 0x98a   : > { %12080 = vrot.lane.b32.xlu1 %v12079_v24, %s12822_s26 }
 0x98d   : > { %12085 = vrot.lane.b32.xlu0 %v12084_v2, %s12818_s22 }
 0x98e   : > { %12100 = vrot.lane.b32.xlu1 %v12099_v57, %s12825_s20 }
 0x991   : > { %12090 = vrot.lane.b32.xlu0 %v12089_v36, %s12822_s26 }
 0x995   : > { %12095 = vrot.lane.b32.xlu0 %v12094_v40, %s12825_s20 }
 0x9d2   : > { %v11986_v56 = vpop.permute.xlu1 %11985 }
 0x9d3   : > { %v11988_v12 = vunpack.i.h.bf16 %v11986_v56  ;;  %v11987_v9 = vunpack.i.l.bf16 %v11986_v56 }
 0x9d5   : > { %v6131_v58 = vsel %vm435_vm4, %v5828_v5, %v11987_v9  ;;  %v6132_v53 = vsel %vm435_vm4, %v15648_v4, %v11988_v12 }
 0x9d6   : > { %v11991_v45 = vpop.permute.xlu1 %11990  ;;  %v11996_v1 = vpop.permute.xlu0 %11995 }
 0x9d7   : > { %v11998_v27 = vunpack.i.h.bf16 %v11996_v1  ;;  %v11997_v25 = vunpack.i.l.bf16 %v11996_v1  ;;  %v11993_v37 = vunpack.i.h.bf16 %v11991_v45  ;;  %v11992_v31 = vunpack.i.l.bf16 %v11991_v45 }
 0x9d9   : > { %v6156_v50 = vsel %vm435_vm4, %v15659_v34, %v11998_v27  ;;  %v6155_v55 = vsel %vm435_vm4, %v15618_v44, %v11997_v25  ;;  %v6139_v15 = vsel %vm884_vm8, %v6131_v58, %v11992_v31  ;;  %v6140_v61 = vsel %vm884_vm8, %v6132_v53, %v11993_v37 }
 0x9da   : > { %v12001_v42 = vpop.permute.xlu1 %12000 }
 0x9db   : > { %v12003_v11 = vunpack.i.h.bf16 %v12001_v42  ;;  %v12002_v28 = vunpack.i.l.bf16 %v12001_v42 }
 0x9dd   : > { %v6147_v19 = vsel %vm2931_vm9, %v6139_v15, %v12002_v28  ;;  %v6148_v10 = vsel %vm2931_vm9, %v6140_v61, %v12003_v11 }
 0x9de   : > { %v6179_v49 = vpack.c.bf16 %v6148_v10, %v6147_v19 }
 0x9df   : > { %v12006_v3 = vpop.permute.xlu0 %12005 }
 0x9e0   : > { %v12016_v43 = vpop.permute.xlu1 %12015  ;;  %v12008_v13 = vunpack.i.h.bf16 %v12006_v3  ;;  %v12007_v14 = vunpack.i.l.bf16 %v12006_v3 }
 0x9e1   : > { %v12018_v32 = vunpack.i.h.bf16 %v12016_v43  ;;  %v12017_v29 = vunpack.i.l.bf16 %v12016_v43 }
 0x9e2   : > { %v6163_v4 = vsel %vm884_vm8, %v6155_v55, %v12007_v14  ;;  %v6164_v33 = vsel %vm884_vm8, %v6156_v50, %v12008_v13 }
 0x9e3   : > { %v12011_v46 = vpop.permute.xlu0 %12010  ;;  %v6134_v56 = vsel %vm435_vm4, %v15662_v54, %v12018_v32  ;;  %v6133_v45 = vsel %vm435_vm4, %v15641_v0, %v12017_v29 }
 0x9e4   : > { %v12013_v18 = vunpack.i.h.bf16 %v12011_v46  ;;  %v12012_v17 = vunpack.i.l.bf16 %v12011_v46  ;;  %v12021_v22 = vpop.permute.xlu1 %12020 }
 0x9e5   : > { %v12023_v35 = vunpack.i.h.bf16 %v12021_v22  ;;  %v12022_v39 = vunpack.i.l.bf16 %v12021_v22 }
 0x9e6   : > { %v6171_v51 = vsel %vm2931_vm9, %v6163_v4, %v12012_v17  ;;  %v6172_v26 = vsel %vm2931_vm9, %v6164_v33, %v12013_v18 }
 0x9e7   : > { %v12026_v48 = vpop.permute.xlu0 %12025  ;;  %v6180_v23 = vpack.c.bf16 %v6172_v26, %v6171_v51  ;;  %v6141_v42 = vsel %vm884_vm8, %v6133_v45, %v12022_v39  ;;  %v6142_v12 = vsel %vm884_vm8, %v6134_v56, %v12023_v35 }
 0x9e8   : > { %v12031_v21 = vpop.permute.xlu1 %12030  ;;  %v12028_v59 = vunpack.i.h.bf16 %v12026_v48  ;;  %v12027_v2 = vunpack.i.l.bf16 %v12026_v48 }
 0x9e9   : > { %6349 = vmatprep.mubr.bf16.mxu1 %v6180_v23  ;;  %v12033_v47 = vunpack.i.h.bf16 %v12031_v21  ;;  %v12032_v36 = vunpack.i.l.bf16 %v12031_v21 }
 0x9ea   : > { %6350 = vmatmul.mubr.bf16.vlgmr.msra.gmra.mxu1 %v6179_v49  ;;  %v6158_v9 = vsel %vm435_vm4, %v15690_v6, %v12028_v59  ;;  %v6157_v27 = vsel %vm435_vm4, %v15664_v63, %v12027_v2 }
 0x9eb   : > { %v12036_v24 = vpop.permute.xlu0 %12035  ;;  %v6149_v0 = vsel %vm2931_vm9, %v6141_v42, %v12032_v36  ;;  %v6150_v31 = vsel %vm2931_vm9, %v6142_v12, %v12033_v47 }
 0x9ec   : > { %v12046_v57 = vpop.permute.xlu1 %12045  ;;  %v12038_v52 = vunpack.i.h.bf16 %v12036_v24  ;;  %v12037_v40 = vunpack.i.l.bf16 %v12036_v24  ;;  %v6182_v58 = vpack.c.bf16 %v6150_v31, %v6149_v0 }
 0x9ed   : > { %v12048_v53 = vunpack.i.h.bf16 %v12046_v57  ;;  %v12047_v50 = vunpack.i.l.bf16 %v12046_v57 }
 0x9ee   : > { %v6165_v37 = vsel %vm884_vm8, %v6157_v27, %v12037_v40  ;;  %v6166_v54 = vsel %vm884_vm8, %v6158_v9, %v12038_v52 }
 0x9ef   : > { %v12041_v1 = vpop.permute.xlu0 %12040  ;;  %v6136_v33 = vsel %vm435_vm4, %v15694_v62, %v12048_v53  ;;  %v6135_v51 = vsel %vm435_vm4, %v15680_v16, %v12047_v50 }
 0x9f0   : > { %v12043_v25 = vunpack.i.h.bf16 %v12041_v1  ;;  %v12042_v3 = vunpack.i.l.bf16 %v12041_v1  ;;  %v12051_v5 = vpop.permute.xlu1 %12050 }
 0x9f1   : > { %v12053_v55 = vunpack.i.h.bf16 %v12051_v5  ;;  %v12052_v46 = vunpack.i.l.bf16 %v12051_v5 }
 0x9f2   : > { %v6173_v43 = vsel %vm2931_vm9, %v6165_v37, %v12042_v3  ;;  %v6174_v11 = vsel %vm2931_vm9, %v6166_v54, %v12043_v25 }
 0x9f3   : > { %v12056_v28 = vpop.permute.xlu0 %12055  ;;  %v6183_v13 = vpack.c.bf16 %v6174_v11, %v6173_v43  ;;  %v6143_v48 = vsel %vm884_vm8, %v6135_v51, %v12052_v46  ;;  %v6144_v23 = vsel %vm884_vm8, %v6136_v33, %v12053_v55  ;;  %v12695_v33 = vld [vmem:[%s16902_s5 + $0x2f8] sm:$0xff]  }
 0x9f4   : > { %v12061_v14 = vpop.permute.xlu1 %12060  ;;  %v12058_v61 = vunpack.i.h.bf16 %v12056_v28  ;;  %v12057_v18 = vunpack.i.l.bf16 %v12056_v28 }
 0x9f5   : > { %6357 = vmatprep.mubr.bf16.mxu1 %v6183_v13  ;;  %v12063_v22 = vunpack.i.h.bf16 %v12061_v14  ;;  %v12062_v19 = vunpack.i.l.bf16 %v12061_v14 }
 0x9f6   : > { %6358 = vmatmul.mubr.bf16.gmra.mxu1 %v6182_v58  ;;  %v6160_v49 = vsel %vm435_vm4, %v15716_v38, %v12058_v61  ;;  %v6159_v21 = vsel %vm435_vm4, %v15696_v60, %v12057_v18  ;;  %v12688_v61 = vld [vmem:[%s16902_s5 + $0x358] sm:$0xff]   ;;  %v12689_v18 = vld [vmem:[%s16902_s5 + $0x350] sm:$0xff]  }
 0x9f7   : > { %v12066_v15 = vpop.permute.xlu0 %12065  ;;  %v6151_v16 = vsel %vm2931_vm9, %v6143_v48, %v12062_v19  ;;  %v6152_v24 = vsel %vm2931_vm9, %v6144_v23, %v12063_v22  ;;  %10662 = vmatprep.subr.bf16.mxu1 %v12688_v61  ;;  %v12691_v22 = vld [vmem:[%s16902_s5 + $0x308] sm:$0xff]   ;;  %v12692_v19 = vld [vmem:[%s16902_s5 + $0x340] sm:$0xff]  }
 0x9f8   : > { %v12076_v17 = vpop.permute.xlu1 %12075  ;;  %v12068_v10 = vunpack.i.h.bf16 %v12066_v15  ;;  %v12067_v4 = vunpack.i.l.bf16 %v12066_v15  ;;  %v6185_v36 = vpack.c.bf16 %v6152_v24, %v6151_v16  ;;  %10663 = vmatpush3.bf16.msra.mxu1 %v12688_v61  ;;  %v15831_v23 = vld [vmem:[%s16903_s6 + $0x4] ss:$0 sm:$0xff] }
 0x9f9   : > { %v12078_v52 = vunpack.i.h.bf16 %v12076_v17  ;;  %v12077_v40 = vunpack.i.l.bf16 %v12076_v17  ;;  %10664 = vmatprep.subr.bf16.mxu1 %v12689_v18  ;;  %v12690_v17 = vld [vmem:[%s16902_s5 + $0x348] sm:$0xff]  }
 0x9fa   : > { %v6167_v39 = vsel %vm884_vm8, %v6159_v21, %v12067_v4  ;;  %v6168_v62 = vsel %vm884_vm8, %v6160_v49, %v12068_v10  ;;  %10392 = vmatprep.subr.bf16.mxu0 %v12690_v17  ;;  %v12693_v10 = vld [vmem:[%s16902_s5 + $0x300] sm:$0xff]   ;;  %v12694_v4 = vld [vmem:[%s16902_s5 + $0x338] sm:$0xff]  }
 0x9fb   : > { %v12071_v26 = vpop.permute.xlu0 %12070  ;;  %v6138_v37 = vsel %vm435_vm4, %v15719_v20, %v12078_v52  ;;  %v6137_v54 = vsel %vm435_vm4, %v15709_v8, %v12077_v40  ;;  %10393 = vmatpush3.bf16.msra.mxu0 %v12691_v22 }
 0x9fc   : > { %v12073_v32 = vunpack.i.h.bf16 %v12071_v26  ;;  %v12072_v29 = vunpack.i.l.bf16 %v12071_v26  ;;  %v12081_v35 = vpop.permute.xlu1 %12080  ;;  %10665 = vmatpush3.bf16.msra.mxu1 %v12689_v18  ;;  %10394 = vmatprep.subr.bf16.mxu0 %v12692_v19 }
 0x9fd   : > { %v12083_v45 = vunpack.i.h.bf16 %v12081_v35  ;;  %v12082_v1 = vunpack.i.l.bf16 %v12081_v35 }
 0x9fe   : > { %v6175_v59 = vsel %vm2931_vm9, %v6167_v39, %v12072_v29  ;;  %v6176_v2 = vsel %vm2931_vm9, %v6168_v62, %v12073_v32  ;;  %v15837_v39 = vld [vmem:[%s16904_s7 + $0x4] ss:$0 sm:$0xff] }
 0x9ff   : > { %v12086_v57 = vpop.permute.xlu0 %12085  ;;  %v6186_v47 = vpack.c.bf16 %v6176_v2, %v6175_v59  ;;  %v6145_v31 = vsel %vm884_vm8, %v6137_v54, %v12082_v1  ;;  %v6146_v43 = vsel %vm884_vm8, %v6138_v37, %v12083_v45  ;;  %10395 = vmatpush3.bf16.msra.mxu0 %v12693_v10 }
 0xa00   : > { %v12101_v56 = vpop.permute.xlu1 %12100  ;;  %v12088_v12 = vunpack.i.h.bf16 %v12086_v57  ;;  %v12087_v9 = vunpack.i.l.bf16 %v12086_v57  ;;  %10396 = vmatprep.subr.bf16.mxu0 %v12694_v4 }
 0xa01   : > { %6365 = vmatprep.mubr.bf16.mxu1 %v6186_v47  ;;  %v12103_v27 = vunpack.i.h.bf16 %v12101_v56  ;;  %v12102_v25 = vunpack.i.l.bf16 %v12101_v56 }
 0xa02   : > { %6366 = vmatmul.mubr.bf16.gmra.mxu1 %v6185_v36  ;;  %v6162_v11 = vsel %vm435_vm4, %v15736_v30, %v12088_v12  ;;  %v6161_v28 = vsel %vm435_vm4, %v15721_v41, %v12087_v9  ;;  %v12696_v9 = vld [vmem:[%s16902_s5 + $0x330] sm:$0xff]  }
 0xa03   : > { %v12091_v42 = vpop.permute.xlu0 %12090  ;;  %v6153_v53 = vsel %vm2931_vm9, %v6145_v31, %v12102_v25  ;;  %v6154_v8 = vsel %vm2931_vm9, %v6146_v43, %v12103_v27  ;;  %10397 = vmatpush3.bf16.msra.mxu0 %v12695_v33  ;;  %v12697_v27 = vld [vmem:[%s16902_s5 + $0x2f0] sm:$0xff]   ;;  %v12699_v31 = vld [vmem:[%s16902_s5 + $0x2e8] sm:$0xff]  }
 0xa04   : > { %v12093_v3 = vunpack.i.h.bf16 %v12091_v42  ;;  %v12092_v5 = vunpack.i.l.bf16 %v12091_v42  ;;  %v6188_v15 = vpack.c.bf16 %v6154_v8, %v6153_v53  ;;  %10398 = vmatprep.subr.bf16.mxu0 %v12696_v9 }
 0xa06   : > { %v6169_v58 = vsel %vm884_vm8, %v6161_v28, %v12092_v5  ;;  %v6170_v20 = vsel %vm884_vm8, %v6162_v11, %v12093_v3  ;;  %v6511_v28 = vld [vmem:[#allocation3 + $0xa1] sm:$0xff] }
 0xa07   : > { %v12096_v0 = vpop.permute.xlu0 %12095  ;;  %10399 = vmatpush3.bf16.msra.mxu0 %v12697_v27 }
 0xa08   : > { %v12098_v13 = vunpack.i.h.bf16 %v12096_v0  ;;  %v12097_v14 = vunpack.i.l.bf16 %v12096_v0  ;;  %v12698_v0 = vld [vmem:[%s16902_s5 + $0x328] sm:$0xff]  }
 0xa09   : > { %10400 = vmatprep.subr.bf16.mxu0 %v12698_v0 }
 0xa0a   : > { %v6177_v50 = vsel %vm2931_vm9, %v6169_v58, %v12097_v14  ;;  %v6178_v55 = vsel %vm2931_vm9, %v6170_v20, %v12098_v13 }
 0xa0b   : > { %v6189_v46 = vpack.c.bf16 %v6178_v55, %v6177_v50  ;;  %10401 = vmatpush3.bf16.msra.mxu0 %v12699_v31  ;;  %v12700_v50 = vld [vmem:[%s16902_s5 + $0x320] sm:$0xff]  }
 0xa0c   : > { %v12701_v55 = vld [vmem:[%s16902_s5 + $0x2e0] sm:$0xff]   ;;  %10402 = vmatprep.subr.bf16.mxu0 %v12700_v50 }
 0xa0d   : > { %6373 = vmatprep.mubr.bf16.mxu1 %v6189_v46 }
 0xa0e   : > { %6374 = vmatmul.mubr.bf16.gmra.mxu1 %v6188_v15 }
 0xa0f   : > { %10403 = vmatpush3.bf16.msra.mxu0 %v12701_v55 }
 0xa38   : > { %v10656_v51 = vpop.f32.mrf.mxu0 }
 0xa3a   : > { %v6416_v48 = vpop.f32.mrf.mxu0 }
 0xa3c   : > { %v10657_v35 = vpop.f32.mrf.mxu0 }
 0xa3e   : > { %v6419_v57 = vpop.f32.mrf.mxu0 }
 0xa48   : > { %v15861_v13 = vpop.f32.mrf.mxu0 }
 0xa4a   : > { %v6432_v18 = vpop.f32.mrf.mxu0 }
 0xaaa   : > { %v10362_v26 = vpop.f32.mrf.mxu1 }
 0xaac   : > { %v10363_v49 = vpop.f32.mrf.mxu1 }
 0xaad   : > { %v10364_v21 = vadd.f32 %v10363_v49, %v10362_v26  ;;  %v12703_v49 = vld [vmem:[%s16902_s5 + $0x2d8] sm:$0xff]  }
 0xaae   : > { %v10365_v32 = vpop.f32.mrf.mxu1 }
 0xaaf   : > { %v6352_v29 = vadd.f32 %v10364_v21, %v15831_v23 }
 0xab0   : > { %v10366_v62 = vpop.f32.mrf.mxu1 }
 0xab1   : > { %v6417_v16 = vadd.f32 %v6416_v48, %v6352_v29  ;;  %v10367_v24 = vadd.f32 %v10366_v62, %v10365_v32  ;;  %v12702_v48 = vld [vmem:[%s16902_s5 + $0x318] sm:$0xff]   ;;  %v10661_v29 = vpop.f32.mrf.mxu0 }
 0xab2   : > { %10404 = vmatprep.subr.bf16.mxu0 %v12702_v48 }
 0xab3   : > { %v6455_v59 = vmul.f32 %v15837_v39, %v6417_v16  ;;  %v6355_v2 = vadd.f32 %v10367_v24, %v15831_v23  ;;  %10405 = vmatpush3.bf16.msra.mxu0 %v12703_v49 }
 0xab5   : > { %v6463_v47 = vadd.f32 %v6455_v59, %v15618_v44  ;;  %v6420_v36 = vadd.f32 %v6419_v57, %v6355_v2  ;;  %v12704_v2 = vld [vmem:[%s16902_s5 + $0x310] sm:$0xff]  }
 0xab6   : > { %v10368_v52 = vpop.f32.mrf.mxu1  ;;  %10406 = vmatprep.subr.bf16.mxu0 %v12704_v2 }
 0xab7   : > { %vm6471_vm6 = vcmp.ge.f32.partialorder %v6463_v47, 0.0  ;;  %v6479_v40 = vmul.f32 0.2, %v6463_v47  ;;  %v6456_v56 = vmul.f32 %v15837_v39, %v6420_v36 }
 0xab8   : > { %v10369_v45 = vpop.f32.mrf.mxu1 }
 0xab9   : > { %v6487_v1 = vsel %vm6471_vm6, %v6463_v47, %v6479_v40  ;;  %v6464_v42 = vadd.f32 %v6456_v56, %v15659_v34  ;;  %v10370_v12 = vadd.f32 %v10369_v45, %v10368_v52  ;;  %v12705_v47 = vld [vmem:[%s16902_s5 + $0x2d0] sm:$0xff]   ;;  %v6435_v40 = vpop.f32.mrf.mxu0 }
 0xaba   : > { %6495 = vst.msk [vmem:[#allocation3 + $0xb1] sm:$0xff] %vm435_vm4, %v6487_v1  ;;  %v10371_v44 = vpop.f32.mrf.mxu1  ;;  %10407 = vmatpush3.bf16.msra.mxu0 %v12705_v47 }
 0xabb   : > { %vm6472_vm11 = vcmp.ge.f32.partialorder %v6464_v42, 0.0  ;;  %v6480_v25 = vmul.f32 0.2, %v6464_v42  ;;  %v6360_v3 = vadd.f32 %v10370_v12, %v15831_v23 }
 0xabc   : > { %v10372_v5 = vpop.f32.mrf.mxu1 }
 0xabd   : > { %v6488_v34 = vsel %vm6472_vm11, %v6464_v42, %v6480_v25  ;;  %v6425_v37 = vadd.f32 %v10656_v51, %v6360_v3  ;;  %v10373_v54 = vadd.f32 %v10372_v5, %v10371_v44 }
 0xabe   : > { %6496 = vst.msk [vmem:[#allocation3 + $0xc1] sm:$0xff] %vm435_vm4, %v6488_v34 }
 0xabf   : > { %v6457_v43 = vmul.f32 %v15837_v39, %v6425_v37  ;;  %v6363_v11 = vadd.f32 %v10373_v54, %v15831_v23 }
 0xac1   : > { %v6465_v14 = vadd.f32 %v6457_v43, %v15664_v63  ;;  %v6428_v58 = vadd.f32 %v10657_v35, %v6363_v11  ;;  %v15864_v20 = vld [vmem:[#allocation3 + $0xb1] sm:$0xff]  ;;  %v6519_v63 = vld [vmem:[#allocation3 + $0xa2] sm:$0xff] }
 0xac2   : > { %v10374_v53 = vpop.f32.mrf.mxu1  ;;  %v12104_v8 = vpack.i.bf16 %v15864_v20, %v6511_v28  ;;  %v6543_v61 = vld [vmem:[#allocation3 + $0xb2] sm:$0xff] }
 0xac3   : > { %vm6473_vm12 = vcmp.ge.f32.partialorder %v6465_v14, 0.0  ;;  %v6481_v46 = vmul.f32 0.2, %v6465_v14  ;;  %v6458_v15 = vmul.f32 %v15837_v39, %v6428_v58  ;;  %v12109_v26 = vpack.i.bf16 %v6543_v61, %v6519_v63  ;;  %v15891_v59 = vld [vmem:[#allocation3 + $0xb0] sm:$0xff] }
 0xac4   : > { %v10375_v17 = vpop.f32.mrf.mxu1  ;;  %12105 = vrot.lane.b32.xlu1 %v12104_v8, %s12818_s22 }
 0xac5   : > { %v6489_v22 = vsel %vm6473_vm12, %v6465_v14, %v6481_v46  ;;  %v6466_v19 = vadd.f32 %v6458_v15, %v15690_v6  ;;  %v10376_v10 = vadd.f32 %v10375_v17, %v10374_v53  ;;  %v15876_v4 = vld [vmem:[#allocation3 + $0xc2] sm:$0xff] }
 0xac6   : > { %6497 = vst.msk [vmem:[#allocation3 + $0xd1] sm:$0xff] %vm435_vm4, %v6489_v22  ;;  %v10377_v33 = vpop.f32.mrf.mxu1  ;;  %v12114_v51 = vpack.i.bf16 %v15876_v4, %v6543_v61  ;;  %v15887_v32 = vld [vmem:[#allocation3 + $0xc0] sm:$0xff] }
 0xac7   : > { %vm6474_vm13 = vcmp.ge.f32.partialorder %v6466_v19, 0.0  ;;  %v6482_v6 = vmul.f32 0.2, %v6466_v19  ;;  %v6368_v21 = vadd.f32 %v10376_v10, %v15831_v23  ;;  %v12119_v57 = vpack.i.bf16 %v15887_v32, %v15891_v59  ;;  %v15905_v56 = vld [vmem:[#allocation3 + $0xc1] sm:$0xff] }
 0xac8   : > { %v10378_v35 = vpop.f32.mrf.mxu1  ;;  %12115 = vrot.lane.b32.xlu0 %v12114_v51, %s12818_s22  ;;  %12110 = vrot.lane.b32.xlu1 %v12109_v26, %s12822_s26 }
 0xac9   : > { %v6490_v62 = vsel %vm6474_vm13, %v6466_v19, %v6482_v6  ;;  %v6433_v16 = vadd.f32 %v6432_v18, %v6368_v21  ;;  %v10379_v24 = vadd.f32 %v10378_v35, %v10377_v33 }
 0xaca   : > { %6498 = vst.msk [vmem:[#allocation3 + $0xe1] sm:$0xff] %vm435_vm4, %v6490_v62 }
 0xacb   : > { %v6459_v36 = vmul.f32 %v15837_v39, %v6433_v16  ;;  %v6371_v52 = vadd.f32 %v10379_v24, %v15831_v23 }
 0xacc   : > { %12120 = vrot.lane.b32.xlu1 %v12119_v57, %s12825_s20 }
 0xacd   : > { %v6467_v45 = vadd.f32 %v6459_v36, %v15696_v60  ;;  %v6436_v1 = vadd.f32 %v6435_v40, %v6371_v52  ;;  %v6568_v42 = vld [vmem:[#allocation3 + $0xd2] sm:$0xff] }
 0xace   : > { %v15908_v12 = vld [vmem:[#allocation3 + $0xd0] sm:$0xff]  ;;  %v10380_v27 = vpop.f32.mrf.mxu1  ;;  %v6856_v44 = vpack.c.bf16 %v6568_v42, %v15876_v4  ;;  %v12139_v28 = vpack.i.bf16 %v6568_v42, %v15876_v4 }
 0xacf   : > { %v15910_v9 = vld [vmem:[#allocation3 + $0xd1] sm:$0xff]  ;;  %v12124_v25 = vpack.i.bf16 %v15908_v12, %v15887_v32  ;;  %vm6475_vm14 = vcmp.ge.f32.partialorder %v6467_v45, 0.0  ;;  %v6483_v5 = vmul.f32 0.2, %v6467_v45  ;;  %v6460_v60 = vmul.f32 %v15837_v39, %v6436_v1 }
 0xad0   : > { %v12134_v3 = vpack.i.bf16 %v15910_v9, %v15905_v56  ;;  %v10381_v34 = vpop.f32.mrf.mxu1  ;;  %10666 = vmatprep.mubr.msk.bf16.mxu1 %vm435_vm4, %v6856_v44  ;;  %v6574_v36 = vld [vmem:[#allocation3 + $0x132] sm:$0xff] }
 0xad1   : > { %12125 = vrot.lane.b32.xlu0 %v12124_v25, %s12822_s26  ;;  %v6491_v37 = vsel %vm6475_vm14, %v6467_v45, %v6483_v5  ;;  %v6468_v54 = vadd.f32 %v6460_v60, %v15716_v38  ;;  %v10382_v0 = vadd.f32 %v10381_v34, %v10380_v27  ;;  %v6546_v14 = vld [vmem:[#allocation3 + $0xe2] sm:$0xff]  ;;  %v6558_v44 = vld [vmem:[#allocation3 + $0x130] sm:$0xff] }
 0xad2   : > { %12135 = vrot.lane.b32.xlu1 %v12134_v3, %s12818_s22  ;;  %6499 = vst.msk [vmem:[#allocation3 + $0xf1] sm:$0xff] %vm435_vm4, %v6491_v37  ;;  %v10383_v31 = vpop.f32.mrf.mxu1  ;;  %v15926_v53 = vld [vmem:[#allocation3 + $0xe0] sm:$0xff]  ;;  %v12144_v55 = vpack.i.bf16 %v6546_v14, %v6568_v42  ;;  %v6566_v5 = vld [vmem:[#allocation3 + $0x131] sm:$0xff] }
 0xad3   : > { %vm6476_vm15 = vcmp.ge.f32.partialorder %v6468_v54, 0.0  ;;  %v6484_v43 = vmul.f32 0.2, %v6468_v54  ;;  %v6376_v11 = vadd.f32 %v10382_v0, %v15831_v23  ;;  %v12149_v61 = vpack.i.bf16 %v15926_v53, %v15908_v12  ;;  %v15936_v63 = vld [vmem:[#allocation3 + $0xe1] sm:$0xff] }
 0xad4   : > { %v10384_v58 = vpop.f32.mrf.mxu1 }
 0xad5   : > { %12130 = vrot.lane.b32.xlu0 %v12134_v3, %s12825_s20  ;;  %v6492_v8 = vsel %vm6476_vm15, %v6468_v54, %v6484_v43  ;;  %v6441_v38 = vadd.f32 %v15861_v13, %v6376_v11  ;;  %v10385_v50 = vadd.f32 %v10384_v58, %v10383_v31  ;;  %v6503_v58 = vld [vmem:[#allocation3 + $0xa0] sm:$0xff] }
 0xad6   : > { %12140 = vrot.lane.b32.xlu1 %v12139_v28, %s12822_s26  ;;  %6500 = vst.msk [vmem:[#allocation3 + $0x101] sm:$0xff] %vm435_vm4, %v6492_v8 }
 0xad7   : > { %v6461_v46 = vmul.f32 %v15837_v39, %v6441_v38  ;;  %v6379_v15 = vadd.f32 %v10385_v50, %v15831_v23 }
 0xad9   : > { %12145 = vrot.lane.b32.xlu0 %v12144_v55, %s12818_s22  ;;  %v6469_v18 = vadd.f32 %v6461_v46, %v15721_v41  ;;  %v6444_v13 = vadd.f32 %v10661_v29, %v6379_v15  ;;  %v6570_v17 = vld [vmem:[#allocation3 + $0xf2] sm:$0xff] }
 0xada   : > { %12150 = vrot.lane.b32.xlu1 %v12149_v61, %s12825_s20  ;;  %v15940_v22 = vld [vmem:[#allocation3 + $0xf0] sm:$0xff]  ;;  %v6859_v10 = vpack.c.bf16 %v6570_v17, %v6546_v14  ;;  %v12169_v49 = vpack.i.bf16 %v6570_v17, %v6546_v14 }
 0xadb   : > { %v15942_v19 = vld [vmem:[#allocation3 + $0xf1] sm:$0xff]  ;;  %v12154_v23 = vpack.i.bf16 %v15940_v22, %v15926_v53  ;;  %vm6477_vm0 = vcmp.ge.f32.partialorder %v6469_v18, 0.0  ;;  %v6485_v33 = vmul.f32 0.2, %v6469_v18  ;;  %v6462_v51 = vmul.f32 %v15837_v39, %v6444_v13 }
 0xadc   : > { %v12164_v4 = vpack.i.bf16 %v15942_v19, %v15936_v63  ;;  %10667 = vmatmul.mubr.msk.bf16.vlgmr.msra.gmra.mxu1 %vm435_vm4, %v6859_v10 }
 0xadd   : > { %12155 = vrot.lane.b32.xlu0 %v12154_v23, %s12822_s26  ;;  %v6493_v41 = vsel %vm6477_vm0, %v6469_v18, %v6485_v33  ;;  %v6470_v26 = vadd.f32 %v6462_v51, %v15736_v30  ;;  %v6548_v6 = vld [vmem:[#allocation3 + $0x102] sm:$0xff] }
 0xade   : > { %12165 = vrot.lane.b32.xlu1 %v12164_v4, %s12818_s22  ;;  %6501 = vst.msk [vmem:[#allocation3 + $0x111] sm:$0xff] %vm435_vm4, %v6493_v41  ;;  %v15955_v21 = vld [vmem:[#allocation3 + $0x100] sm:$0xff]  ;;  %v12174_v29 = vpack.i.bf16 %v6548_v6, %v6570_v17 }
 0xadf   : > { %vm6478_vm1 = vcmp.ge.f32.partialorder %v6470_v26, 0.0  ;;  %v6486_v48 = vmul.f32 0.2, %v6470_v26  ;;  %v12179_v30 = vpack.i.bf16 %v15955_v21, %v15940_v22  ;;  %v15962_v35 = vld [vmem:[#allocation3 + $0x101] sm:$0xff] }
 0xae1   : > { %12160 = vrot.lane.b32.xlu0 %v12164_v4, %s12825_s20  ;;  %v6494_v39 = vsel %vm6478_vm1, %v6470_v26, %v6486_v48 }
 0xae2   : > { %12170 = vrot.lane.b32.xlu1 %v12169_v49, %s12822_s26  ;;  %6502 = vst.msk [vmem:[#allocation3 + $0x121] sm:$0xff] %vm435_vm4, %v6494_v39 }
 0xae5   : > { %12175 = vrot.lane.b32.xlu0 %v12174_v29, %s12818_s22  ;;  %v6572_v62 = vld [vmem:[#allocation3 + $0x112] sm:$0xff] }
 0xae6   : > { %12180 = vrot.lane.b32.xlu1 %v12179_v30, %s12825_s20  ;;  %v15965_v16 = vld [vmem:[#allocation3 + $0x110] sm:$0xff]  ;;  %v6862_v2 = vpack.c.bf16 %v6572_v62, %v6548_v6  ;;  %v12199_v45 = vpack.i.bf16 %v6572_v62, %v6548_v6 }
 0xae7   : > { %v15967_v24 = vld [vmem:[#allocation3 + $0x111] sm:$0xff]  ;;  %v12184_v57 = vpack.i.bf16 %v15965_v16, %v15955_v21 }
 0xae8   : > { %v12194_v47 = vpack.i.bf16 %v15967_v24, %v15962_v35  ;;  %10670 = vmatprep.mubr.msk.bf16.mxu1 %vm435_vm4, %v6862_v2 }
 0xae9   : > { %12185 = vrot.lane.b32.xlu0 %v12184_v57, %s12822_s26  ;;  %v6573_v52 = vld [vmem:[#allocation3 + $0x122] sm:$0xff] }
 0xaea   : > { %12195 = vrot.lane.b32.xlu1 %v12194_v47, %s12818_s22  ;;  %v6865_v40 = vpack.c.bf16 %v6574_v36, %v6573_v52  ;;  %v6534_v1 = vld [vmem:[#allocation3 + $0x120] sm:$0xff]  ;;  %v12204_v42 = vpack.i.bf16 %v6573_v52, %v6572_v62 }
 0xaeb   : > { %v12219_v27 = vpack.i.bf16 %v6534_v1, %v15965_v16  ;;  %v12209_v25 = vpack.i.bf16 %v6558_v44, %v6534_v1  ;;  %v15982_v3 = vld [vmem:[#allocation3 + $0x121] sm:$0xff] }
 0xaec   : > { %10671 = vmatmul.mubr.msk.bf16.gmra.mxu1 %vm435_vm4, %v6865_v40  ;;  %v12214_v60 = vpack.i.bf16 %v6566_v5, %v15982_v3 }
 0xaed   : > { %12190 = vrot.lane.b32.xlu0 %v12194_v47, %s12825_s20 }
 0xaee   : > { %12200 = vrot.lane.b32.xlu1 %v12199_v45, %s12822_s26 }
 0xaf1   : > { %12205 = vrot.lane.b32.xlu0 %v12204_v42, %s12818_s22 }
 0xaf2   : > { %12220 = vrot.lane.b32.xlu1 %v12219_v27, %s12825_s20 }
 0xaf5   : > { %12210 = vrot.lane.b32.xlu0 %v12209_v25, %s12822_s26 }
 0xaf9   : > { %12215 = vrot.lane.b32.xlu0 %v12214_v60, %s12825_s20 }
 0xb36   : > { %v12106_v34 = vpop.permute.xlu1 %12105 }
 0xb37   : > { %v12108_v31 = vunpack.i.h.bf16 %v12106_v34  ;;  %v12107_v43 = vunpack.i.l.bf16 %v12106_v34 }
 0xb39   : > { %v6806_v18 = vsel %vm435_vm4, %v6503_v58, %v12107_v43  ;;  %v6807_v13 = vsel %vm435_vm4, %v15891_v59, %v12108_v31 }
 0xb3a   : > { %v12111_v37 = vpop.permute.xlu1 %12110  ;;  %v12116_v54 = vpop.permute.xlu0 %12115 }
 0xb3b   : > { %v12118_v11 = vunpack.i.h.bf16 %v12116_v54  ;;  %v12117_v28 = vunpack.i.l.bf16 %v12116_v54  ;;  %v12113_v8 = vunpack.i.h.bf16 %v12111_v37  ;;  %v12112_v38 = vunpack.i.l.bf16 %v12111_v37 }
 0xb3d   : > { %v6831_v17 = vsel %vm435_vm4, %v15905_v56, %v12118_v11  ;;  %v6830_v10 = vsel %vm435_vm4, %v15864_v20, %v12117_v28  ;;  %v6814_v4 = vsel %vm884_vm8, %v6806_v18, %v12112_v38  ;;  %v6815_v33 = vsel %vm884_vm8, %v6807_v13, %v12113_v8 }
 0xb3e   : > { %v12121_v0 = vpop.permute.xlu1 %12120 }
 0xb3f   : > { %v12123_v55 = vunpack.i.h.bf16 %v12121_v0  ;;  %v12122_v46 = vunpack.i.l.bf16 %v12121_v0 }
 0xb41   : > { %v6822_v48 = vsel %vm2931_vm9, %v6814_v4, %v12122_v46  ;;  %v6823_v49 = vsel %vm2931_vm9, %v6815_v33, %v12123_v55 }
 0xb42   : > { %v6854_v2 = vpack.c.bf16 %v6823_v49, %v6822_v48 }
 0xb43   : > { %v12126_v14 = vpop.permute.xlu0 %12125 }
 0xb44   : > { %v12136_v50 = vpop.permute.xlu1 %12135  ;;  %v12128_v15 = vunpack.i.h.bf16 %v12126_v14  ;;  %v12127_v61 = vunpack.i.l.bf16 %v12126_v14 }
 0xb45   : > { %v12138_v47 = vunpack.i.h.bf16 %v12136_v50  ;;  %v12137_v36 = vunpack.i.l.bf16 %v12136_v50 }
 0xb46   : > { %v6838_v59 = vsel %vm884_vm8, %v6830_v10, %v12127_v61  ;;  %v6839_v6 = vsel %vm884_vm8, %v6831_v17, %v12128_v15 }
 0xb47   : > { %v12131_v23 = vpop.permute.xlu0 %12130  ;;  %v6809_v34 = vsel %vm435_vm4, %v15908_v12, %v12138_v47  ;;  %v6808_v37 = vsel %vm435_vm4, %v15887_v32, %v12137_v36 }
 0xb48   : > { %v12133_v51 = vunpack.i.h.bf16 %v12131_v23  ;;  %v12132_v41 = vunpack.i.l.bf16 %v12131_v23  ;;  %v12141_v26 = vpop.permute.xlu1 %12140 }
 0xb49   : > { %v12143_v52 = vunpack.i.h.bf16 %v12141_v26  ;;  %v12142_v40 = vunpack.i.l.bf16 %v12141_v26 }
 0xb4a   : > { %v6846_v39 = vsel %vm2931_vm9, %v6838_v59, %v12132_v41  ;;  %v6847_v29 = vsel %vm2931_vm9, %v6839_v6, %v12133_v51 }
 0xb4b   : > { %v12146_v30 = vpop.permute.xlu0 %12145  ;;  %v6855_v62 = vpack.c.bf16 %v6847_v29, %v6846_v39  ;;  %v6816_v54 = vsel %vm884_vm8, %v6808_v37, %v12142_v40  ;;  %v6817_v0 = vsel %vm884_vm8, %v6809_v34, %v12143_v52 }
 0xb4c   : > { %v12151_v57 = vpop.permute.xlu1 %12150  ;;  %v12148_v1 = vunpack.i.h.bf16 %v12146_v30  ;;  %v12147_v42 = vunpack.i.l.bf16 %v12146_v30 }
 0xb4d   : > { %7024 = vmatprep.mubr.bf16.mxu0 %v6855_v62  ;;  %v12153_v44 = vunpack.i.h.bf16 %v12151_v57  ;;  %v12152_v25 = vunpack.i.l.bf16 %v12151_v57 }
 0xb4e   : > { %7025 = vmatmul.mubr.bf16.vlgmr.msra.gmra.mxu0 %v6854_v2  ;;  %v6833_v43 = vsel %vm435_vm4, %v15936_v63, %v12148_v1  ;;  %v6832_v11 = vsel %vm435_vm4, %v15910_v9, %v12147_v42 }
 0xb4f   : > { %v12156_v45 = vpop.permute.xlu0 %12155  ;;  %v6824_v32 = vsel %vm2931_vm9, %v6816_v54, %v12152_v25  ;;  %v6825_v38 = vsel %vm2931_vm9, %v6817_v0, %v12153_v44 }
 0xb50   : > { %v12166_v27 = vpop.permute.xlu1 %12165  ;;  %v12158_v5 = vunpack.i.h.bf16 %v12156_v45  ;;  %v12157_v60 = vunpack.i.l.bf16 %v12156_v45  ;;  %v6857_v18 = vpack.c.bf16 %v6825_v38, %v6824_v32 }
 0xb51   : > { %v12168_v13 = vunpack.i.h.bf16 %v12166_v27  ;;  %v12167_v17 = vunpack.i.l.bf16 %v12166_v27 }
 0xb52   : > { %v6840_v8 = vsel %vm884_vm8, %v6832_v11, %v12157_v60  ;;  %v6841_v12 = vsel %vm884_vm8, %v6833_v43, %v12158_v5 }
 0xb53   : > { %v12161_v31 = vpop.permute.xlu0 %12160  ;;  %v6811_v6 = vsel %vm435_vm4, %v15940_v22, %v12168_v13  ;;  %v6810_v39 = vsel %vm435_vm4, %v15926_v53, %v12167_v17 }
 0xb54   : > { %v12163_v28 = vunpack.i.h.bf16 %v12161_v31  ;;  %v12162_v14 = vunpack.i.l.bf16 %v12161_v31  ;;  %v12171_v58 = vpop.permute.xlu1 %12170 }
 0xb55   : > { %v12173_v10 = vunpack.i.h.bf16 %v12171_v58  ;;  %v12172_v23 = vunpack.i.l.bf16 %v12171_v58 }
 0xb56   : > { %v6848_v50 = vsel %vm2931_vm9, %v6840_v8, %v12162_v14  ;;  %v6849_v55 = vsel %vm2931_vm9, %v6841_v12, %v12163_v28 }
 0xb57   : > { %v12176_v46 = vpop.permute.xlu0 %12175  ;;  %v6858_v15 = vpack.c.bf16 %v6849_v55, %v6848_v50  ;;  %v6818_v29 = vsel %vm884_vm8, %v6810_v39, %v12172_v23  ;;  %v6819_v30 = vsel %vm884_vm8, %v6811_v6, %v12173_v10  ;;  %v12713_v6 = vld [vmem:[%s16902_s5 + $0x388] sm:$0xff]  }
 0xb58   : > { %v12181_v61 = vpop.permute.xlu1 %12180  ;;  %v12178_v33 = vunpack.i.h.bf16 %v12176_v46  ;;  %v12177_v51 = vunpack.i.l.bf16 %v12176_v46 }
 0xb59   : > { %7032 = vmatprep.mubr.bf16.mxu0 %v6858_v15  ;;  %v12183_v26 = vunpack.i.h.bf16 %v12181_v61  ;;  %v12182_v48 = vunpack.i.l.bf16 %v12181_v61 }
 0xb5a   : > { %7033 = vmatmul.mubr.bf16.gmra.mxu0 %v6857_v18  ;;  %v6835_v2 = vsel %vm435_vm4, %v15962_v35, %v12178_v33  ;;  %v6834_v57 = vsel %vm435_vm4, %v15942_v19, %v12177_v51  ;;  %v12706_v33 = vld [vmem:[%s16902_s5 + $0x3e8] sm:$0xff]   ;;  %v12707_v51 = vld [vmem:[%s16902_s5 + $0x3e0] sm:$0xff]  }
 0xb5b   : > { %v12186_v4 = vpop.permute.xlu0 %12185  ;;  %v6826_v53 = vsel %vm2931_vm9, %v6818_v29, %v12182_v48  ;;  %v6827_v45 = vsel %vm2931_vm9, %v6819_v30, %v12183_v26  ;;  %10674 = vmatprep.subr.bf16.mxu1 %v12706_v33  ;;  %v12709_v26 = vld [vmem:[%s16902_s5 + $0x398] sm:$0xff]   ;;  %v12710_v48 = vld [vmem:[%s16902_s5 + $0x3d0] sm:$0xff]  }
 0xb5c   : > { %v12196_v41 = vpop.permute.xlu1 %12195  ;;  %v12188_v49 = vunpack.i.h.bf16 %v12186_v4  ;;  %v12187_v59 = vunpack.i.l.bf16 %v12186_v4  ;;  %v6860_v25 = vpack.c.bf16 %v6827_v45, %v6826_v53  ;;  %10675 = vmatpush3.bf16.msra.mxu1 %v12706_v33 }
 0xb5d   : > { %v12198_v5 = vunpack.i.h.bf16 %v12196_v41  ;;  %v12197_v60 = vunpack.i.l.bf16 %v12196_v41  ;;  %10676 = vmatprep.subr.bf16.mxu1 %v12707_v51  ;;  %v12708_v41 = vld [vmem:[%s16902_s5 + $0x3d8] sm:$0xff]  }
 0xb5e   : > { %v6842_v40 = vsel %vm884_vm8, %v6834_v57, %v12187_v59  ;;  %v6843_v22 = vsel %vm884_vm8, %v6835_v2, %v12188_v49  ;;  %10438 = vmatprep.subr.bf16.mxu0 %v12708_v41  ;;  %v12711_v49 = vld [vmem:[%s16902_s5 + $0x390] sm:$0xff]   ;;  %v12712_v59 = vld [vmem:[%s16902_s5 + $0x3c8] sm:$0xff]  }
 0xb5f   : > { %v12191_v62 = vpop.permute.xlu0 %12190  ;;  %v6813_v8 = vsel %vm435_vm4, %v15965_v16, %v12198_v5  ;;  %v6812_v12 = vsel %vm435_vm4, %v15955_v21, %v12197_v60  ;;  %10439 = vmatpush3.bf16.msra.mxu0 %v12709_v26 }
 0xb60   : > { %v12193_v47 = vunpack.i.h.bf16 %v12191_v62  ;;  %v12192_v36 = vunpack.i.l.bf16 %v12191_v62  ;;  %v12201_v52 = vpop.permute.xlu1 %12200  ;;  %10677 = vmatpush3.bf16.msra.mxu1 %v12707_v51  ;;  %10440 = vmatprep.subr.bf16.mxu0 %v12710_v48  ;;  %v16077_v62 = vld [vmem:[%s16903_s6 + $0x5] ss:$0 sm:$0xff] }
 0xb61   : > { %v12203_v37 = vunpack.i.h.bf16 %v12201_v52  ;;  %v12202_v54 = vunpack.i.l.bf16 %v12201_v52 }
 0xb62   : > { %v6850_v1 = vsel %vm2931_vm9, %v6842_v40, %v12192_v36  ;;  %v6851_v42 = vsel %vm2931_vm9, %v6843_v22, %v12193_v47  ;;  %v16083_v40 = vld [vmem:[%s16904_s7 + $0x5] ss:$0 sm:$0xff] }
 0xb63   : > { %v12206_v27 = vpop.permute.xlu0 %12205  ;;  %v6861_v44 = vpack.c.bf16 %v6851_v42, %v6850_v1  ;;  %v6820_v32 = vsel %vm884_vm8, %v6812_v12, %v12202_v54  ;;  %v6821_v38 = vsel %vm884_vm8, %v6813_v8, %v12203_v37  ;;  %10441 = vmatpush3.bf16.msra.mxu0 %v12711_v49 }
 0xb64   : > { %v12221_v34 = vpop.permute.xlu1 %12220  ;;  %v12208_v31 = vunpack.i.h.bf16 %v12206_v27  ;;  %v12207_v43 = vunpack.i.l.bf16 %v12206_v27  ;;  %10442 = vmatprep.subr.bf16.mxu0 %v12712_v59 }
 0xb65   : > { %7040 = vmatprep.mubr.bf16.mxu0 %v6861_v44  ;;  %v12223_v11 = vunpack.i.h.bf16 %v12221_v34  ;;  %v12222_v28 = vunpack.i.l.bf16 %v12221_v34 }
 0xb66   : > { %7041 = vmatmul.mubr.bf16.gmra.mxu0 %v6860_v25  ;;  %v6837_v55 = vsel %vm435_vm4, %v15982_v3, %v12208_v31  ;;  %v6836_v46 = vsel %vm435_vm4, %v15967_v24, %v12207_v43  ;;  %v12714_v43 = vld [vmem:[%s16902_s5 + $0x3c0] sm:$0xff]  }
 0xb67   : > { %v12211_v0 = vpop.permute.xlu0 %12210  ;;  %v6828_v13 = vsel %vm2931_vm9, %v6820_v32, %v12222_v28  ;;  %v6829_v21 = vsel %vm2931_vm9, %v6821_v38, %v12223_v11  ;;  %10443 = vmatpush3.bf16.msra.mxu0 %v12713_v6  ;;  %v12715_v11 = vld [vmem:[%s16902_s5 + $0x380] sm:$0xff]   ;;  %v12716_v32 = vld [vmem:[%s16902_s5 + $0x3b8] sm:$0xff]  }
 0xb68   : > { %v12213_v14 = vunpack.i.h.bf16 %v12211_v0  ;;  %v12212_v58 = vunpack.i.l.bf16 %v12211_v0  ;;  %v6863_v4 = vpack.c.bf16 %v6829_v21, %v6828_v13  ;;  %10444 = vmatprep.subr.bf16.mxu0 %v12714_v43  ;;  %v12717_v38 = vld [vmem:[%s16902_s5 + $0x378] sm:$0xff]  }
 0xb6a   : > { %v6844_v18 = vsel %vm884_vm8, %v6836_v46, %v12212_v58  ;;  %v6845_v16 = vsel %vm884_vm8, %v6837_v55, %v12213_v14  ;;  %v7186_v46 = vld [vmem:[#allocation3 + $0x1] sm:$0xff] }
 0xb6b   : > { %v12216_v50 = vpop.permute.xlu0 %12215  ;;  %10445 = vmatpush3.bf16.msra.mxu0 %v12715_v11 }
 0xb6c   : > { %v12218_v15 = vunpack.i.h.bf16 %v12216_v50  ;;  %v12217_v61 = vunpack.i.l.bf16 %v12216_v50  ;;  %10446 = vmatprep.subr.bf16.mxu0 %v12716_v32 }
 0xb6e   : > { %v6852_v17 = vsel %vm2931_vm9, %v6844_v18, %v12217_v61  ;;  %v6853_v10 = vsel %vm2931_vm9, %v6845_v16, %v12218_v15 }
 0xb6f   : > { %v6864_v23 = vpack.c.bf16 %v6853_v10, %v6852_v17  ;;  %10447 = vmatpush3.bf16.msra.mxu0 %v12717_v38  ;;  %v12718_v17 = vld [vmem:[%s16902_s5 + $0x3b0] sm:$0xff]  }
 0xb70   : > { %v12719_v10 = vld [vmem:[%s16902_s5 + $0x370] sm:$0xff]   ;;  %10448 = vmatprep.subr.bf16.mxu0 %v12718_v17 }
 0xb71   : > { %7048 = vmatprep.mubr.bf16.mxu0 %v6864_v23 }
 0xb72   : > { %7049 = vmatmul.mubr.bf16.gmra.mxu0 %v6863_v4 }
 0xb73   : > { %10449 = vmatpush3.bf16.msra.mxu0 %v12719_v10 }
 0xb9c   : > { %v10668_v39 = vpop.f32.mrf.mxu1 }
 0xb9e   : > { %v7091_v30 = vpop.f32.mrf.mxu1 }
 0xba0   : > { %v10669_v52 = vpop.f32.mrf.mxu1 }
 0xba2   : > { %v7094_v27 = vpop.f32.mrf.mxu1 }
 0xbac   : > { %v16107_v15 = vpop.f32.mrf.mxu1 }
 0xbae   : > { %v7107_v51 = vpop.f32.mrf.mxu1 }
 0xc0e   : > { %v10408_v29 = vpop.f32.mrf.mxu0 }
 0xc10   : > { %v10409_v2 = vpop.f32.mrf.mxu0 }
 0xc11   : > { %v10410_v57 = vadd.f32 %v10409_v2, %v10408_v29  ;;  %v12721_v2 = vld [vmem:[%s16902_s5 + $0x368] sm:$0xff]  }
 0xc12   : > { %v10411_v47 = vpop.f32.mrf.mxu0 }
 0xc13   : > { %v7027_v36 = vadd.f32 %v10410_v57, %v16077_v62 }
 0xc14   : > { %v10412_v22 = vpop.f32.mrf.mxu0 }
 0xc15   : > { %v7092_v53 = vadd.f32 %v7091_v30, %v7027_v36  ;;  %v10413_v45 = vadd.f32 %v10412_v22, %v10411_v47  ;;  %v12720_v30 = vld [vmem:[%s16902_s5 + $0x3a8] sm:$0xff]   ;;  %v10673_v36 = vpop.f32.mrf.mxu1 }
 0xc16   : > { %10450 = vmatprep.subr.bf16.mxu0 %v12720_v30 }
 0xc17   : > { %v7130_v1 = vmul.f32 %v16083_v40, %v7092_v53  ;;  %v7030_v42 = vadd.f32 %v10413_v45, %v16077_v62  ;;  %10451 = vmatpush3.bf16.msra.mxu0 %v12721_v2 }
 0xc19   : > { %v7138_v44 = vadd.f32 %v7130_v1, %v15864_v20  ;;  %v7095_v25 = vadd.f32 %v7094_v27, %v7030_v42  ;;  %v12722_v42 = vld [vmem:[%s16902_s5 + $0x3a0] sm:$0xff]  }
 0xc1a   : > { %v10414_v5 = vpop.f32.mrf.mxu0  ;;  %10452 = vmatprep.subr.bf16.mxu0 %v12722_v42 }
 0xc1b   : > { %vm7146_vm3 = vcmp.ge.f32.partialorder %v7138_v44, 0.0  ;;  %v7154_v60 = vmul.f32 0.2, %v7138_v44  ;;  %v7131_v34 = vmul.f32 %v16083_v40, %v7095_v25 }
 0xc1c   : > { %v10415_v37 = vpop.f32.mrf.mxu0 }
 0xc1d   : > { %v7162_v54 = vsel %vm7146_vm3, %v7138_v44, %v7154_v60  ;;  %v7139_v0 = vadd.f32 %v7131_v34, %v15905_v56  ;;  %v10416_v31 = vadd.f32 %v10415_v37, %v10414_v5  ;;  %v12723_v44 = vld [vmem:[%s16902_s5 + $0x360] sm:$0xff]   ;;  %v7110_v60 = vpop.f32.mrf.mxu1 }
 0xc1e   : > { %7170 = vst.msk [vmem:[#allocation3 + $0x11] sm:$0xff] %vm435_vm4, %v7162_v54  ;;  %v10417_v20 = vpop.f32.mrf.mxu0  ;;  %10453 = vmatpush3.bf16.msra.mxu0 %v12723_v44 }
 0xc1f   : > { %vm7147_vm5 = vcmp.ge.f32.partialorder %v7139_v0, 0.0  ;;  %v7155_v28 = vmul.f32 0.2, %v7139_v0  ;;  %v7035_v14 = vadd.f32 %v10416_v31, %v16077_v62 }
 0xc20   : > { %v10418_v58 = vpop.f32.mrf.mxu0 }
 0xc21   : > { %v7163_v56 = vsel %vm7147_vm5, %v7139_v0, %v7155_v28  ;;  %v7100_v8 = vadd.f32 %v10668_v39, %v7035_v14  ;;  %v10419_v12 = vadd.f32 %v10418_v58, %v10417_v20 }
 0xc22   : > { %7171 = vst.msk [vmem:[#allocation3 + $0x21] sm:$0xff] %vm435_vm4, %v7163_v56 }
 0xc23   : > { %v7132_v50 = vmul.f32 %v16083_v40, %v7100_v8  ;;  %v7038_v55 = vadd.f32 %v10419_v12, %v16077_v62 }
 0xc25   : > { %v7140_v61 = vadd.f32 %v7132_v50, %v15910_v9  ;;  %v7103_v18 = vadd.f32 %v10669_v52, %v7038_v55  ;;  %v16110_v16 = vld [vmem:[#allocation3 + $0x11] sm:$0xff]  ;;  %v7194_v9 = vld [vmem:[#allocation3 + $0x2] sm:$0xff] }
 0xc26   : > { %v10420_v13 = vpop.f32.mrf.mxu0  ;;  %v12224_v21 = vpack.i.bf16 %v16110_v16, %v7186_v46  ;;  %v7218_v33 = vld [vmem:[#allocation3 + $0x12] sm:$0xff] }
 0xc27   : > { %vm7148_vm7 = vcmp.ge.f32.partialorder %v7140_v61, 0.0  ;;  %v7156_v23 = vmul.f32 0.2, %v7140_v61  ;;  %v7133_v4 = vmul.f32 %v16083_v40, %v7103_v18  ;;  %v12229_v29 = vpack.i.bf16 %v7218_v33, %v7194_v9  ;;  %v16137_v1 = vld [vmem:[#allocation3 + $0x10] sm:$0xff] }
 0xc28   : > { %v10421_v41 = vpop.f32.mrf.mxu0  ;;  %12225 = vrot.lane.b32.xlu1 %v12224_v21, %s12818_s22 }
 0xc29   : > { %v7164_v26 = vsel %vm7148_vm7, %v7140_v61, %v7156_v23  ;;  %v7141_v48 = vadd.f32 %v7133_v4, %v15936_v63  ;;  %v10422_v49 = vadd.f32 %v10421_v41, %v10420_v13  ;;  %v16122_v59 = vld [vmem:[#allocation3 + $0x22] sm:$0xff] }
 0xc2a   : > { %7172 = vst.msk [vmem:[#allocation3 + $0x31] sm:$0xff] %vm435_vm4, %v7164_v26  ;;  %v10423_v6 = vpop.f32.mrf.mxu0  ;;  %v12234_v39 = vpack.i.bf16 %v16122_v59, %v7218_v33  ;;  %v16133_v47 = vld [vmem:[#allocation3 + $0x20] sm:$0xff] }
 0xc2b   : > { %vm7149_vm10 = vcmp.ge.f32.partialorder %v7141_v48, 0.0  ;;  %v7157_v63 = vmul.f32 0.2, %v7141_v48  ;;  %v7043_v57 = vadd.f32 %v10422_v49, %v16077_v62  ;;  %v12239_v27 = vpack.i.bf16 %v16133_v47, %v16137_v1  ;;  %v16151_v34 = vld [vmem:[#allocation3 + $0x21] sm:$0xff] }
 0xc2c   : > { %v10424_v52 = vpop.f32.mrf.mxu0  ;;  %12235 = vrot.lane.b32.xlu0 %v12234_v39, %s12818_s22  ;;  %12230 = vrot.lane.b32.xlu1 %v12229_v29, %s12822_s26 }
 0xc2d   : > { %v7165_v22 = vsel %vm7149_vm10, %v7141_v48, %v7157_v63  ;;  %v7108_v53 = vadd.f32 %v7107_v51, %v7043_v57  ;;  %v10425_v45 = vadd.f32 %v10424_v52, %v10423_v6 }
 0xc2e   : > { %7173 = vst.msk [vmem:[#allocation3 + $0x41] sm:$0xff] %vm435_vm4, %v7165_v22 }
 0xc2f   : > { %v7134_v25 = vmul.f32 %v16083_v40, %v7108_v53  ;;  %v7046_v5 = vadd.f32 %v10425_v45, %v16077_v62 }
 0xc30   : > { %12240 = vrot.lane.b32.xlu1 %v12239_v27, %s12825_s20 }
 0xc31   : > { %v7142_v37 = vadd.f32 %v7134_v25, %v15942_v19  ;;  %v7111_v54 = vadd.f32 %v7110_v60, %v7046_v5  ;;  %v7243_v0 = vld [vmem:[#allocation3 + $0x32] sm:$0xff] }
 0xc32   : > { %v16154_v31 = vld [vmem:[#allocation3 + $0x30] sm:$0xff]  ;;  %v10426_v11 = vpop.f32.mrf.mxu0  ;;  %v7531_v20 = vpack.c.bf16 %v7243_v0, %v16122_v59  ;;  %v12259_v46 = vpack.i.bf16 %v7243_v0, %v16122_v59 }
 0xc33   : > { %v16156_v43 = vld [vmem:[#allocation3 + $0x31] sm:$0xff]  ;;  %v12244_v28 = vpack.i.bf16 %v16154_v31, %v16133_v47  ;;  %vm7150_vm2 = vcmp.ge.f32.partialorder %v7142_v37, 0.0  ;;  %v7158_v58 = vmul.f32 0.2, %v7142_v37  ;;  %v7135_v19 = vmul.f32 %v16083_v40, %v7111_v54 }
 0xc34   : > { %v12254_v14 = vpack.i.bf16 %v16156_v43, %v16151_v34  ;;  %v10427_v56 = vpop.f32.mrf.mxu0  ;;  %10678 = vmatprep.mubr.msk.bf16.mxu1 %vm435_vm4, %v7531_v20  ;;  %v7249_v25 = vld [vmem:[#allocation3 + $0x92] sm:$0xff] }
 0xc35   : > { %12245 = vrot.lane.b32.xlu0 %v12244_v28, %s12822_s26  ;;  %v7166_v8 = vsel %vm7150_vm2, %v7142_v37, %v7158_v58  ;;  %v7143_v12 = vadd.f32 %v7135_v19, %v15962_v35  ;;  %v10428_v32 = vadd.f32 %v10427_v56, %v10426_v11  ;;  %v7221_v61 = vld [vmem:[#allocation3 + $0x42] sm:$0xff]  ;;  %v7233_v20 = vld [vmem:[#allocation3 + $0x90] sm:$0xff] }
 0xc36   : > { %12255 = vrot.lane.b32.xlu1 %v12254_v14, %s12818_s22  ;;  %7174 = vst.msk [vmem:[#allocation3 + $0x51] sm:$0xff] %vm435_vm4, %v7166_v8  ;;  %v10429_v38 = vpop.f32.mrf.mxu0  ;;  %v16172_v13 = vld [vmem:[#allocation3 + $0x40] sm:$0xff]  ;;  %v12264_v10 = vpack.i.bf16 %v7221_v61, %v7243_v0  ;;  %v7241_v58 = vld [vmem:[#allocation3 + $0x91] sm:$0xff] }
 0xc37   : > { %vm7151_vm6 = vcmp.ge.f32.partialorder %v7143_v12, 0.0  ;;  %v7159_v50 = vmul.f32 0.2, %v7143_v12  ;;  %v7051_v55 = vadd.f32 %v10428_v32, %v16077_v62  ;;  %v12269_v33 = vpack.i.bf16 %v16172_v13, %v16154_v31  ;;  %v16182_v9 = vld [vmem:[#allocation3 + $0x41] sm:$0xff] }
 0xc38   : > { %v10430_v18 = vpop.f32.mrf.mxu0 }
 0xc39   : > { %12250 = vrot.lane.b32.xlu0 %v12254_v14, %s12825_s20  ;;  %v7167_v21 = vsel %vm7151_vm6, %v7143_v12, %v7159_v50  ;;  %v7116_v35 = vadd.f32 %v16107_v15, %v7051_v55  ;;  %v10431_v17 = vadd.f32 %v10430_v18, %v10429_v38  ;;  %v7178_v18 = vld [vmem:[#allocation3] sm:$0xff] }
 0xc3a   : > { %12260 = vrot.lane.b32.xlu1 %v12259_v46, %s12822_s26  ;;  %7175 = vst.msk [vmem:[#allocation3 + $0x61] sm:$0xff] %vm435_vm4, %v7167_v21 }
 0xc3b   : > { %v7136_v23 = vmul.f32 %v16083_v40, %v7116_v35  ;;  %v7054_v4 = vadd.f32 %v10431_v17, %v16077_v62 }
 0xc3d   : > { %12265 = vrot.lane.b32.xlu0 %v12264_v10, %s12818_s22  ;;  %v7144_v51 = vadd.f32 %v7136_v23, %v15967_v24  ;;  %v7119_v15 = vadd.f32 %v10673_v36, %v7054_v4  ;;  %v7245_v41 = vld [vmem:[#allocation3 + $0x52] sm:$0xff] }
 0xc3e   : > { %12270 = vrot.lane.b32.xlu1 %v12269_v33, %s12825_s20  ;;  %v16186_v26 = vld [vmem:[#allocation3 + $0x50] sm:$0xff]  ;;  %v7534_v49 = vpack.c.bf16 %v7245_v41, %v7221_v61  ;;  %v12289_v2 = vpack.i.bf16 %v7245_v41, %v7221_v61 }
 0xc3f   : > { %v16188_v48 = vld [vmem:[#allocation3 + $0x51] sm:$0xff]  ;;  %v12274_v62 = vpack.i.bf16 %v16186_v26, %v16172_v13  ;;  %vm7152_vm11 = vcmp.ge.f32.partialorder %v7144_v51, 0.0  ;;  %v7160_v6 = vmul.f32 0.2, %v7144_v51  ;;  %v7137_v39 = vmul.f32 %v16083_v40, %v7119_v15 }
 0xc40   : > { %v12284_v59 = vpack.i.bf16 %v16188_v48, %v16182_v9  ;;  %10679 = vmatmul.mubr.msk.bf16.vlgmr.msra.gmra.mxu1 %vm435_vm4, %v7534_v49 }
 0xc41   : > { %12275 = vrot.lane.b32.xlu0 %v12274_v62, %s12822_s26  ;;  %v7168_v24 = vsel %vm7152_vm11, %v7144_v51, %v7160_v6  ;;  %v7145_v29 = vadd.f32 %v7137_v39, %v15982_v3  ;;  %v7223_v63 = vld [vmem:[#allocation3 + $0x62] sm:$0xff] }
 0xc42   : > { %12285 = vrot.lane.b32.xlu1 %v12284_v59, %s12818_s22  ;;  %7176 = vst.msk [vmem:[#allocation3 + $0x71] sm:$0xff] %vm435_vm4, %v7168_v24  ;;  %v16201_v57 = vld [vmem:[#allocation3 + $0x60] sm:$0xff]  ;;  %v12294_v36 = vpack.i.bf16 %v7223_v63, %v7245_v41 }
 0xc43   : > { %vm7153_vm12 = vcmp.ge.f32.partialorder %v7145_v29, 0.0  ;;  %v7161_v30 = vmul.f32 0.2, %v7145_v29  ;;  %v12299_v3 = vpack.i.bf16 %v16201_v57, %v16186_v26  ;;  %v16208_v52 = vld [vmem:[#allocation3 + $0x61] sm:$0xff] }
 0xc45   : > { %12280 = vrot.lane.b32.xlu0 %v12284_v59, %s12825_s20  ;;  %v7169_v40 = vsel %vm7153_vm12, %v7145_v29, %v7161_v30 }
 0xc46   : > { %12290 = vrot.lane.b32.xlu1 %v12289_v2, %s12822_s26  ;;  %7177 = vst.msk [vmem:[#allocation3 + $0x81] sm:$0xff] %vm435_vm4, %v7169_v40 }
 0xc49   : > { %12295 = vrot.lane.b32.xlu0 %v12294_v36, %s12818_s22  ;;  %v7247_v22 = vld [vmem:[#allocation3 + $0x72] sm:$0xff] }
 0xc4a   : > { %12300 = vrot.lane.b32.xlu1 %v12299_v3, %s12825_s20  ;;  %v16211_v53 = vld [vmem:[#allocation3 + $0x70] sm:$0xff]  ;;  %v7537_v42 = vpack.c.bf16 %v7247_v22, %v7223_v63  ;;  %v12319_v37 = vpack.i.bf16 %v7247_v22, %v7223_v63 }
 0xc4b   : > { %v16213_v45 = vld [vmem:[#allocation3 + $0x71] sm:$0xff]  ;;  %v12304_v27 = vpack.i.bf16 %v16211_v53, %v16201_v57 }
 0xc4c   : > { %v12314_v44 = vpack.i.bf16 %v16213_v45, %v16208_v52  ;;  %10682 = vmatprep.mubr.msk.bf16.mxu1 %vm435_vm4, %v7537_v42 }
 0xc4d   : > { %12305 = vrot.lane.b32.xlu0 %v12304_v27, %s12822_s26  ;;  %v7248_v5 = vld [vmem:[#allocation3 + $0x82] sm:$0xff] }
 0xc4e   : > { %12315 = vrot.lane.b32.xlu1 %v12314_v44, %s12818_s22  ;;  %v7540_v60 = vpack.c.bf16 %v7249_v25, %v7248_v5  ;;  %v7209_v54 = vld [vmem:[#allocation3 + $0x80] sm:$0xff]  ;;  %v12324_v0 = vpack.i.bf16 %v7248_v5, %v7247_v22 }
 0xc4f   : > { %v12339_v11 = vpack.i.bf16 %v7209_v54, %v16211_v53  ;;  %v12329_v28 = vpack.i.bf16 %v7233_v20, %v7209_v54  ;;  %v16228_v14 = vld [vmem:[#allocation3 + $0x81] sm:$0xff] }
 0xc50   : > { %10683 = vmatmul.mubr.msk.bf16.gmra.mxu1 %vm435_vm4, %v7540_v60  ;;  %v12334_v19 = vpack.i.bf16 %v7241_v58, %v16228_v14 }
 0xc51   : > { %12310 = vrot.lane.b32.xlu0 %v12314_v44, %s12825_s20 }
 0xc52   : > { %12320 = vrot.lane.b32.xlu1 %v12319_v37, %s12822_s26 }
 0xc55   : > { %12325 = vrot.lane.b32.xlu0 %v12324_v0, %s12818_s22 }
 0xc56   : > { %12340 = vrot.lane.b32.xlu1 %v12339_v11, %s12825_s20 }
 0xc59   : > { %12330 = vrot.lane.b32.xlu0 %v12329_v28, %s12822_s26 }
 0xc5d   : > { %12335 = vrot.lane.b32.xlu0 %v12334_v19, %s12825_s20 }
 0xc9a   : > { %v12226_v56 = vpop.permute.xlu1 %12225 }
 0xc9b   : > { %v12228_v38 = vunpack.i.h.bf16 %v12226_v56  ;;  %v12227_v50 = vunpack.i.l.bf16 %v12226_v56 }
 0xc9d   : > { %v7481_v51 = vsel %vm435_vm4, %v7178_v18, %v12227_v50  ;;  %v7482_v15 = vsel %vm435_vm4, %v16137_v1, %v12228_v38 }
 0xc9e   : > { %v12231_v8 = vpop.permute.xlu1 %12230  ;;  %v12236_v12 = vpop.permute.xlu0 %12235 }
 0xc9f   : > { %v12238_v55 = vunpack.i.h.bf16 %v12236_v12  ;;  %v12237_v46 = vunpack.i.l.bf16 %v12236_v12  ;;  %v12233_v21 = vunpack.i.h.bf16 %v12231_v8  ;;  %v12232_v35 = vunpack.i.l.bf16 %v12231_v8 }
 0xca1   : > { %v7506_v41 = vsel %vm435_vm4, %v16151_v34, %v12238_v55  ;;  %v7505_v49 = vsel %vm435_vm4, %v16110_v16, %v12237_v46  ;;  %v7489_v59 = vsel %vm884_vm8, %v7481_v51, %v12232_v35  ;;  %v7490_v6 = vsel %vm884_vm8, %v7482_v15, %v12233_v21 }
 0xca2   : > { %v12241_v32 = vpop.permute.xlu1 %12240 }
 0xca3   : > { %v12243_v10 = vunpack.i.h.bf16 %v12241_v32  ;;  %v12242_v23 = vunpack.i.l.bf16 %v12241_v32 }
 0xca5   : > { %v7497_v30 = vsel %vm2931_vm9, %v7489_v59, %v12242_v23  ;;  %v7498_v2 = vsel %vm2931_vm9, %v7490_v6, %v12243_v10 }
 0xca6   : > { %v7529_v42 = vpack.c.bf16 %v7498_v2, %v7497_v30 }
 0xca7   : > { %v12246_v61 = vpop.permute.xlu0 %12245 }
 0xca8   : > { %v12256_v17 = vpop.permute.xlu1 %12255  ;;  %v12248_v4 = vunpack.i.h.bf16 %v12246_v61  ;;  %v12247_v33 = vunpack.i.l.bf16 %v12246_v61 }
 0xca9   : > { %v12258_v44 = vunpack.i.h.bf16 %v12256_v17  ;;  %v12257_v25 = vunpack.i.l.bf16 %v12256_v17 }
 0xcaa   : > { %v7513_v1 = vsel %vm884_vm8, %v7505_v49, %v12247_v33  ;;  %v7514_v63 = vsel %vm884_vm8, %v7506_v41, %v12248_v4 }
 0xcab   : > { %v12251_v62 = vpop.permute.xlu0 %12250  ;;  %v7484_v56 = vsel %vm435_vm4, %v16154_v31, %v12258_v44  ;;  %v7483_v8 = vsel %vm435_vm4, %v16133_v47, %v12257_v25 }
 0xcac   : > { %v12253_v39 = vunpack.i.h.bf16 %v12251_v62  ;;  %v12252_v24 = vunpack.i.l.bf16 %v12251_v62  ;;  %v12261_v29 = vpop.permute.xlu1 %12260 }
 0xcad   : > { %v12263_v5 = vunpack.i.h.bf16 %v12261_v29  ;;  %v12262_v60 = vunpack.i.l.bf16 %v12261_v29 }
 0xcae   : > { %v7521_v40 = vsel %vm2931_vm9, %v7513_v1, %v12252_v24  ;;  %v7522_v36 = vsel %vm2931_vm9, %v7514_v63, %v12253_v39 }
 0xcaf   : > { %v12266_v3 = vpop.permute.xlu0 %12265  ;;  %v7530_v22 = vpack.c.bf16 %v7522_v36, %v7521_v40  ;;  %v7491_v12 = vsel %vm884_vm8, %v7483_v8, %v12262_v60  ;;  %v7492_v32 = vsel %vm884_vm8, %v7484_v56, %v12263_v5 }
 0xcb0   : > { %v12271_v27 = vpop.permute.xlu1 %12270  ;;  %v12268_v54 = vunpack.i.h.bf16 %v12266_v3  ;;  %v12267_v0 = vunpack.i.l.bf16 %v12266_v3 }
 0xcb1   : > { %7699 = vmatprep.mubr.bf16.mxu0 %v7530_v22  ;;  %v12273_v20 = vunpack.i.h.bf16 %v12271_v27  ;;  %v12272_v28 = vunpack.i.l.bf16 %v12271_v27 }
 0xcb2   : > { %7700 = vmatmul.mubr.bf16.vlgmr.msra.gmra.mxu0 %v7529_v42  ;;  %v7508_v50 = vsel %vm435_vm4, %v16182_v9, %v12268_v54  ;;  %v7507_v55 = vsel %vm435_vm4, %v16156_v43, %v12267_v0 }
 0xcb3   : > { %v12276_v37 = vpop.permute.xlu0 %12275  ;;  %v7499_v47 = vsel %vm2931_vm9, %v7491_v12, %v12272_v28  ;;  %v7500_v35 = vsel %vm2931_vm9, %v7492_v32, %v12273_v20 }
 0xcb4   : > { %v12286_v11 = vpop.permute.xlu1 %12285  ;;  %v12278_v58 = vunpack.i.h.bf16 %v12276_v37  ;;  %v12277_v19 = vunpack.i.l.bf16 %v12276_v37  ;;  %v7532_v51 = vpack.c.bf16 %v7500_v35, %v7499_v47 }
 0xcb5   : > { %v12288_v15 = vunpack.i.h.bf16 %v12286_v11  ;;  %v12287_v41 = vunpack.i.l.bf16 %v12286_v11 }
 0xcb6   : > { %v7515_v21 = vsel %vm884_vm8, %v7507_v55, %v12277_v19  ;;  %v7516_v31 = vsel %vm884_vm8, %v7508_v50, %v12278_v58 }
 0xcb7   : > { %v12281_v38 = vpop.permute.xlu0 %12280  ;;  %v7486_v63 = vsel %vm435_vm4, %v16186_v26, %v12288_v15  ;;  %v7485_v40 = vsel %vm435_vm4, %v16172_v13, %v12287_v41 }
 0xcb8   : > { %v12283_v46 = vunpack.i.h.bf16 %v12281_v38  ;;  %v12282_v61 = vunpack.i.l.bf16 %v12281_v38  ;;  %v12291_v18 = vpop.permute.xlu1 %12290 }
 0xcb9   : > { %v12293_v49 = vunpack.i.h.bf16 %v12291_v18  ;;  %v12292_v62 = vunpack.i.l.bf16 %v12291_v18 }
 0xcba   : > { %v7523_v17 = vsel %vm2931_vm9, %v7515_v21, %v12282_v61  ;;  %v7524_v10 = vsel %vm2931_vm9, %v7516_v31, %v12283_v46 }
 0xcbb   : > { %v12296_v23 = vpop.permute.xlu0 %12295  ;;  %v7533_v4 = vpack.c.bf16 %v7524_v10, %v7523_v17  ;;  %v7493_v36 = vsel %vm884_vm8, %v7485_v40, %v12292_v62  ;;  %v7494_v3 = vsel %vm884_vm8, %v7486_v63, %v12293_v49  ;;  %v12731_v63 = vld [vmem:[%s16902_s5 + $0x418] sm:$0xff]  }
 0xcbc   : > { %v12301_v33 = vpop.permute.xlu1 %12300  ;;  %v12298_v6 = vunpack.i.h.bf16 %v12296_v23  ;;  %v12297_v39 = vunpack.i.l.bf16 %v12296_v23 }
 0xcbd   : > { %7707 = vmatprep.mubr.bf16.mxu0 %v7533_v4  ;;  %v12303_v29 = vunpack.i.h.bf16 %v12301_v33  ;;  %v12302_v30 = vunpack.i.l.bf16 %v12301_v33 }
 0xcbe   : > { %7708 = vmatmul.mubr.bf16.gmra.mxu0 %v7532_v51  ;;  %v7510_v42 = vsel %vm435_vm4, %v16208_v52, %v12298_v6  ;;  %v7509_v27 = vsel %vm435_vm4, %v16188_v48, %v12297_v39  ;;  %v12724_v6 = vld [vmem:[%s16902_s5 + $0x478] sm:$0xff]   ;;  %v12725_v39 = vld [vmem:[%s16902_s5 + $0x470] sm:$0xff]  }
 0xcbf   : > { %v12306_v59 = vpop.permute.xlu0 %12305  ;;  %v7501_v60 = vsel %vm2931_vm9, %v7493_v36, %v12302_v30  ;;  %v7502_v26 = vsel %vm2931_vm9, %v7494_v3, %v12303_v29  ;;  %10686 = vmatprep.subr.bf16.mxu0 %v12724_v6  ;;  %v12727_v29 = vld [vmem:[%s16902_s5 + $0x428] sm:$0xff]   ;;  %v12728_v30 = vld [vmem:[%s16902_s5 + $0x460] sm:$0xff]  }
 0xcc0   : > { %v12316_v24 = vpop.permute.xlu1 %12315  ;;  %v12308_v2 = vunpack.i.h.bf16 %v12306_v59  ;;  %v12307_v1 = vunpack.i.l.bf16 %v12306_v59  ;;  %v7535_v28 = vpack.c.bf16 %v7502_v26, %v7501_v60  ;;  %10687 = vmatpush3.bf16.msra.mxu0 %v12724_v6  ;;  %v16329_v60 = vld [vmem:[%s16904_s7 + $0x6] ss:$0 sm:$0xff] }
 0xcc1   : > { %v12318_v58 = vunpack.i.h.bf16 %v12316_v24  ;;  %v12317_v19 = vunpack.i.l.bf16 %v12316_v24  ;;  %10688 = vmatprep.subr.bf16.mxu0 %v12725_v39  ;;  %v12726_v24 = vld [vmem:[%s16902_s5 + $0x468] sm:$0xff]  }
 0xcc2   : > { %v7517_v13 = vsel %vm884_vm8, %v7509_v27, %v12307_v1  ;;  %v7518_v37 = vsel %vm884_vm8, %v7510_v42, %v12308_v2  ;;  %10484 = vmatprep.subr.bf16.mxu1 %v12726_v24  ;;  %v12729_v2 = vld [vmem:[%s16902_s5 + $0x420] sm:$0xff]   ;;  %v12730_v1 = vld [vmem:[%s16902_s5 + $0x458] sm:$0xff]  }
 0xcc3   : > { %v12311_v22 = vpop.permute.xlu0 %12310  ;;  %v7488_v21 = vsel %vm435_vm4, %v16211_v53, %v12318_v58  ;;  %v7487_v31 = vsel %vm435_vm4, %v16201_v57, %v12317_v19  ;;  %10485 = vmatpush3.bf16.msra.mxu1 %v12727_v29 }
 0xcc4   : > { %v12313_v44 = vunpack.i.h.bf16 %v12311_v22  ;;  %v12312_v25 = vunpack.i.l.bf16 %v12311_v22  ;;  %v12321_v5 = vpop.permute.xlu1 %12320  ;;  %10689 = vmatpush3.bf16.msra.mxu0 %v12725_v39  ;;  %10486 = vmatprep.subr.bf16.mxu1 %v12728_v30  ;;  %v16323_v22 = vld [vmem:[%s16903_s6 + $0x6] ss:$0 sm:$0xff] }
 0xcc5   : > { %v12323_v8 = vunpack.i.h.bf16 %v12321_v5  ;;  %v12322_v12 = vunpack.i.l.bf16 %v12321_v5 }
 0xcc6   : > { %v7525_v54 = vsel %vm2931_vm9, %v7517_v13, %v12312_v25  ;;  %v7526_v0 = vsel %vm2931_vm9, %v7518_v37, %v12313_v44 }
 0xcc7   : > { %v12326_v11 = vpop.permute.xlu0 %12325  ;;  %v7536_v20 = vpack.c.bf16 %v7526_v0, %v7525_v54  ;;  %v7495_v47 = vsel %vm884_vm8, %v7487_v31, %v12322_v12  ;;  %v7496_v35 = vsel %vm884_vm8, %v7488_v21, %v12323_v8  ;;  %10487 = vmatpush3.bf16.msra.mxu1 %v12729_v2 }
 0xcc8   : > { %v12341_v56 = vpop.permute.xlu1 %12340  ;;  %v12328_v38 = vunpack.i.h.bf16 %v12326_v11  ;;  %v12327_v50 = vunpack.i.l.bf16 %v12326_v11  ;;  %10488 = vmatprep.subr.bf16.mxu1 %v12730_v1 }
 0xcc9   : > { %7715 = vmatprep.mubr.bf16.mxu0 %v7536_v20  ;;  %v12343_v55 = vunpack.i.h.bf16 %v12341_v56  ;;  %v12342_v46 = vunpack.i.l.bf16 %v12341_v56 }
 0xcca   : > { %7716 = vmatmul.mubr.bf16.gmra.mxu0 %v7535_v28  ;;  %v7512_v10 = vsel %vm435_vm4, %v16228_v14, %v12328_v38  ;;  %v7511_v23 = vsel %vm435_vm4, %v16213_v45, %v12327_v50  ;;  %v12732_v50 = vld [vmem:[%s16902_s5 + $0x450] sm:$0xff]  }
 0xccb   : > { %v12331_v32 = vpop.permute.xlu0 %12330  ;;  %v7503_v51 = vsel %vm2931_vm9, %v7495_v47, %v12342_v46  ;;  %v7504_v53 = vsel %vm2931_vm9, %v7496_v35, %v12343_v55  ;;  %10489 = vmatpush3.bf16.msra.mxu1 %v12731_v63  ;;  %v12733_v55 = vld [vmem:[%s16902_s5 + $0x410] sm:$0xff]   ;;  %v12734_v47 = vld [vmem:[%s16902_s5 + $0x448] sm:$0xff]  }
 0xccc   : > { %v12333_v61 = vunpack.i.h.bf16 %v12331_v32  ;;  %v12332_v18 = vunpack.i.l.bf16 %v12331_v32  ;;  %v7538_v59 = vpack.c.bf16 %v7504_v53, %v7503_v51  ;;  %10490 = vmatprep.subr.bf16.mxu1 %v12732_v50  ;;  %v12735_v35 = vld [vmem:[%s16902_s5 + $0x408] sm:$0xff]  }
 0xcce   : > { %v7519_v15 = vsel %vm884_vm8, %v7511_v23, %v12332_v18  ;;  %v7520_v57 = vsel %vm884_vm8, %v7512_v10, %v12333_v61  ;;  %v7861_v23 = vld [vmem:[#allocation3 + $0xa1] sm:$0xff] }
 0xccf   : > { %v12336_v17 = vpop.permute.xlu0 %12335  ;;  %10491 = vmatpush3.bf16.msra.mxu1 %v12733_v55 }
 0xcd0   : > { %v12338_v4 = vunpack.i.h.bf16 %v12336_v17  ;;  %v12337_v33 = vunpack.i.l.bf16 %v12336_v17  ;;  %10492 = vmatprep.subr.bf16.mxu1 %v12734_v47 }
 0xcd2   : > { %v7527_v41 = vsel %vm2931_vm9, %v7519_v15, %v12337_v33  ;;  %v7528_v49 = vsel %vm2931_vm9, %v7520_v57, %v12338_v4 }
 0xcd3   : > { %v7539_v62 = vpack.c.bf16 %v7528_v49, %v7527_v41  ;;  %10493 = vmatpush3.bf16.msra.mxu1 %v12735_v35  ;;  %v12736_v41 = vld [vmem:[%s16902_s5 + $0x440] sm:$0xff]  }
 0xcd4   : > { %v12737_v49 = vld [vmem:[%s16902_s5 + $0x400] sm:$0xff]   ;;  %10494 = vmatprep.subr.bf16.mxu1 %v12736_v41 }
 0xcd5   : > { %7723 = vmatprep.mubr.bf16.mxu0 %v7539_v62 }
 0xcd6   : > { %7724 = vmatmul.mubr.bf16.gmra.mxu0 %v7538_v59 }
 0xcd7   : > { %10495 = vmatpush3.bf16.msra.mxu1 %v12737_v49 }
 0xd00   : > { %v10680_v40 = vpop.f32.mrf.mxu1 }
 0xd02   : > { %v7766_v3 = vpop.f32.mrf.mxu1 }
 0xd04   : > { %v10681_v5 = vpop.f32.mrf.mxu1 }
 0xd06   : > { %v7769_v11 = vpop.f32.mrf.mxu1 }
 0xd10   : > { %v16353_v4 = vpop.f32.mrf.mxu1 }
 0xd12   : > { %v7782_v39 = vpop.f32.mrf.mxu1 }
 0xd72   : > { %v10454_v36 = vpop.f32.mrf.mxu0 }
 0xd74   : > { %v10455_v42 = vpop.f32.mrf.mxu0 }
 0xd75   : > { %v10456_v27 = vadd.f32 %v10455_v42, %v10454_v36  ;;  %v12739_v42 = vld [vmem:[%s16902_s5 + $0x3f8] sm:$0xff]  }
 0xd76   : > { %v10457_v44 = vpop.f32.mrf.mxu0 }
 0xd77   : > { %v7702_v25 = vadd.f32 %v10456_v27, %v16323_v22 }
 0xd78   : > { %v10458_v26 = vpop.f32.mrf.mxu0 }
 0xd79   : > { %v7767_v13 = vadd.f32 %v7766_v3, %v7702_v25  ;;  %v10459_v37 = vadd.f32 %v10458_v26, %v10457_v44  ;;  %v12738_v3 = vld [vmem:[%s16902_s5 + $0x438] sm:$0xff]   ;;  %v10685_v25 = vpop.f32.mrf.mxu1 }
 0xd7a   : > { %10496 = vmatprep.subr.bf16.mxu1 %v12738_v3 }
 0xd7b   : > { %v7805_v54 = vmul.f32 %v16329_v60, %v7767_v13  ;;  %v7705_v0 = vadd.f32 %v10459_v37, %v16323_v22  ;;  %10497 = vmatpush3.bf16.msra.mxu1 %v12739_v42 }
 0xd7d   : > { %v7813_v20 = vadd.f32 %v7805_v54, %v16110_v16  ;;  %v7770_v28 = vadd.f32 %v7769_v11, %v7705_v0  ;;  %v12740_v0 = vld [vmem:[%s16902_s5 + $0x430] sm:$0xff]  }
 0xd7e   : > { %v10460_v58 = vpop.f32.mrf.mxu0  ;;  %10498 = vmatprep.subr.bf16.mxu1 %v12740_v0 }
 0xd7f   : > { %vm7821_vm13 = vcmp.ge.f32.partialorder %v7813_v20, 0.0  ;;  %v7829_v19 = vmul.f32 0.2, %v7813_v20  ;;  %v7806_v56 = vmul.f32 %v16329_v60, %v7770_v28 }
 0xd80   : > { %v10461_v8 = vpop.f32.mrf.mxu0 }
 0xd81   : > { %v7837_v12 = vsel %vm7821_vm13, %v7813_v20, %v7829_v19  ;;  %v7814_v32 = vadd.f32 %v7806_v56, %v16151_v34  ;;  %v10462_v38 = vadd.f32 %v10461_v8, %v10460_v58  ;;  %v12741_v20 = vld [vmem:[%s16902_s5 + $0x3f0] sm:$0xff]   ;;  %v7785_v19 = vpop.f32.mrf.mxu1 }
 0xd82   : > { %7845 = vst.msk [vmem:[#allocation3 + $0xb1] sm:$0xff] %vm435_vm4, %v7837_v12  ;;  %v10463_v16 = vpop.f32.mrf.mxu0  ;;  %10499 = vmatpush3.bf16.msra.mxu1 %v12741_v20 }
 0xd83   : > { %vm7822_vm14 = vcmp.ge.f32.partialorder %v7814_v32, 0.0  ;;  %v7830_v46 = vmul.f32 0.2, %v7814_v32  ;;  %v7710_v61 = vadd.f32 %v10462_v38, %v16323_v22 }
 0xd84   : > { %v10464_v18 = vpop.f32.mrf.mxu0 }
 0xd85   : > { %v7838_v34 = vsel %vm7822_vm14, %v7814_v32, %v7830_v46  ;;  %v7775_v21 = vadd.f32 %v10680_v40, %v7710_v61  ;;  %v10465_v31 = vadd.f32 %v10464_v18, %v10463_v16 }
 0xd86   : > { %7846 = vst.msk [vmem:[#allocation3 + $0xc1] sm:$0xff] %vm435_vm4, %v7838_v34 }
 0xd87   : > { %v7807_v17 = vmul.f32 %v16329_v60, %v7775_v21  ;;  %v7713_v10 = vadd.f32 %v10465_v31, %v16323_v22 }
 0xd89   : > { %v7815_v33 = vadd.f32 %v7807_v17, %v16156_v43  ;;  %v7778_v51 = vadd.f32 %v10681_v5, %v7713_v10  ;;  %v16356_v53 = vld [vmem:[#allocation3 + $0xb1] sm:$0xff]  ;;  %v7869_v43 = vld [vmem:[#allocation3 + $0xa2] sm:$0xff] }
 0xd8a   : > { %v10466_v15 = vpop.f32.mrf.mxu0  ;;  %v12344_v57 = vpack.i.bf16 %v16356_v53, %v7861_v23  ;;  %v7893_v6 = vld [vmem:[#allocation3 + $0xb2] sm:$0xff] }
 0xd8b   : > { %vm7823_vm15 = vcmp.ge.f32.partialorder %v7815_v33, 0.0  ;;  %v7831_v62 = vmul.f32 0.2, %v7815_v33  ;;  %v7808_v59 = vmul.f32 %v16329_v60, %v7778_v51  ;;  %v12349_v36 = vpack.i.bf16 %v7893_v6, %v7869_v43  ;;  %v16383_v54 = vld [vmem:[#allocation3 + $0xb0] sm:$0xff] }
 0xd8c   : > { %v10467_v24 = vpop.f32.mrf.mxu0  ;;  %12345 = vrot.lane.b32.xlu1 %v12344_v57, %s12818_s22 }
 0xd8d   : > { %v7839_v29 = vsel %vm7823_vm15, %v7815_v33, %v7831_v62  ;;  %v7816_v30 = vadd.f32 %v7808_v59, %v16182_v9  ;;  %v10468_v2 = vadd.f32 %v10467_v24, %v10466_v15  ;;  %v16368_v1 = vld [vmem:[#allocation3 + $0xc2] sm:$0xff] }
 0xd8e   : > { %7847 = vst.msk [vmem:[#allocation3 + $0xd1] sm:$0xff] %vm435_vm4, %v7839_v29  ;;  %v10469_v63 = vpop.f32.mrf.mxu0  ;;  %v12354_v40 = vpack.i.bf16 %v16368_v1, %v7893_v6  ;;  %v16379_v44 = vld [vmem:[#allocation3 + $0xc0] sm:$0xff] }
 0xd8f   : > { %vm7824_vm0 = vcmp.ge.f32.partialorder %v7816_v30, 0.0  ;;  %v7832_v9 = vmul.f32 0.2, %v7816_v30  ;;  %v7718_v27 = vadd.f32 %v10468_v2, %v16323_v22  ;;  %v12359_v11 = vpack.i.bf16 %v16379_v44, %v16383_v54  ;;  %v16397_v56 = vld [vmem:[#allocation3 + $0xc1] sm:$0xff] }
 0xd90   : > { %v10470_v5 = vpop.f32.mrf.mxu0  ;;  %12355 = vrot.lane.b32.xlu0 %v12354_v40, %s12818_s22  ;;  %12350 = vrot.lane.b32.xlu1 %v12349_v36, %s12822_s26 }
 0xd91   : > { %v7840_v26 = vsel %vm7824_vm0, %v7816_v30, %v7832_v9  ;;  %v7783_v13 = vadd.f32 %v7782_v39, %v7718_v27  ;;  %v10471_v37 = vadd.f32 %v10470_v5, %v10469_v63 }
 0xd92   : > { %7848 = vst.msk [vmem:[#allocation3 + $0xe1] sm:$0xff] %vm435_vm4, %v7840_v26 }
 0xd93   : > { %v7809_v28 = vmul.f32 %v16329_v60, %v7783_v13  ;;  %v7721_v58 = vadd.f32 %v10471_v37, %v16323_v22 }
 0xd94   : > { %12360 = vrot.lane.b32.xlu1 %v12359_v11, %s12825_s20 }
 0xd95   : > { %v7817_v8 = vadd.f32 %v7809_v28, %v16188_v48  ;;  %v7786_v12 = vadd.f32 %v7785_v19, %v7721_v58  ;;  %v7918_v32 = vld [vmem:[#allocation3 + $0xd2] sm:$0xff] }
 0xd96   : > { %v16400_v38 = vld [vmem:[#allocation3 + $0xd0] sm:$0xff]  ;;  %v10472_v55 = vpop.f32.mrf.mxu0  ;;  %v8206_v16 = vpack.c.bf16 %v7918_v32, %v16368_v1  ;;  %v12379_v23 = vpack.i.bf16 %v7918_v32, %v16368_v1 }
 0xd97   : > { %v16402_v50 = vld [vmem:[#allocation3 + $0xd1] sm:$0xff]  ;;  %v12364_v46 = vpack.i.bf16 %v16400_v38, %v16379_v44  ;;  %vm7825_vm1 = vcmp.ge.f32.partialorder %v7817_v8, 0.0  ;;  %v7833_v18 = vmul.f32 0.2, %v7817_v8  ;;  %v7810_v48 = vmul.f32 %v16329_v60, %v7786_v12 }
 0xd98   : > { %v12374_v61 = vpack.i.bf16 %v16402_v50, %v16397_v56  ;;  %v10473_v34 = vpop.f32.mrf.mxu0  ;;  %10690 = vmatprep.mubr.msk.bf16.mxu0 %vm435_vm4, %v8206_v16  ;;  %v7924_v28 = vld [vmem:[#allocation3 + $0x132] sm:$0xff] }
 0xd99   : > { %12365 = vrot.lane.b32.xlu0 %v12364_v46, %s12822_s26  ;;  %v7841_v21 = vsel %vm7825_vm1, %v7817_v8, %v7833_v18  ;;  %v7818_v31 = vadd.f32 %v7810_v48, %v16208_v52  ;;  %v10474_v47 = vadd.f32 %v10473_v34, %v10472_v55  ;;  %v7896_v33 = vld [vmem:[#allocation3 + $0xe2] sm:$0xff]  ;;  %v7908_v16 = vld [vmem:[#allocation3 + $0x130] sm:$0xff] }
 0xd9a   : > { %12375 = vrot.lane.b32.xlu1 %v12374_v61, %s12818_s22  ;;  %7849 = vst.msk [vmem:[#allocation3 + $0xf1] sm:$0xff] %vm435_vm4, %v7841_v21  ;;  %v10475_v35 = vpop.f32.mrf.mxu0  ;;  %v16418_v15 = vld [vmem:[#allocation3 + $0xe0] sm:$0xff]  ;;  %v12384_v49 = vpack.i.bf16 %v7896_v33, %v7918_v32  ;;  %v7916_v18 = vld [vmem:[#allocation3 + $0x131] sm:$0xff] }
 0xd9b   : > { %vm7826_vm3 = vcmp.ge.f32.partialorder %v7818_v31, 0.0  ;;  %v7834_v17 = vmul.f32 0.2, %v7818_v31  ;;  %v7726_v10 = vadd.f32 %v10474_v47, %v16323_v22  ;;  %v12389_v6 = vpack.i.bf16 %v16418_v15, %v16400_v38  ;;  %v16428_v43 = vld [vmem:[#allocation3 + $0xe1] sm:$0xff] }
 0xd9c   : > { %v10476_v51 = vpop.f32.mrf.mxu0 }
 0xd9d   : > { %12370 = vrot.lane.b32.xlu0 %v12374_v61, %s12825_s20  ;;  %v7842_v57 = vsel %vm7826_vm3, %v7818_v31, %v7834_v17  ;;  %v7791_v52 = vadd.f32 %v16353_v4, %v7726_v10  ;;  %v10477_v41 = vadd.f32 %v10476_v51, %v10475_v35  ;;  %v7853_v51 = vld [vmem:[#allocation3 + $0xa0] sm:$0xff] }
 0xd9e   : > { %12380 = vrot.lane.b32.xlu1 %v12379_v23, %s12822_s26  ;;  %7850 = vst.msk [vmem:[#allocation3 + $0x101] sm:$0xff] %vm435_vm4, %v7842_v57 }
 0xd9f   : > { %v7811_v62 = vmul.f32 %v16329_v60, %v7791_v52  ;;  %v7729_v59 = vadd.f32 %v10477_v41, %v16323_v22 }
 0xda1   : > { %12385 = vrot.lane.b32.xlu0 %v12384_v49, %s12818_s22  ;;  %v7819_v39 = vadd.f32 %v7811_v62, %v16213_v45  ;;  %v7794_v4 = vadd.f32 %v10685_v25, %v7729_v59  ;;  %v7920_v24 = vld [vmem:[#allocation3 + $0xf2] sm:$0xff] }
 0xda2   : > { %12390 = vrot.lane.b32.xlu1 %v12389_v6, %s12825_s20  ;;  %v16432_v29 = vld [vmem:[#allocation3 + $0xf0] sm:$0xff]  ;;  %v8209_v2 = vpack.c.bf16 %v7920_v24, %v7896_v33  ;;  %v12409_v42 = vpack.i.bf16 %v7920_v24, %v7896_v33 }
 0xda3   : > { %v16434_v30 = vld [vmem:[#allocation3 + $0xf1] sm:$0xff]  ;;  %v12394_v22 = vpack.i.bf16 %v16432_v29, %v16418_v15  ;;  %vm7827_vm5 = vcmp.ge.f32.partialorder %v7819_v39, 0.0  ;;  %v7835_v63 = vmul.f32 0.2, %v7819_v39  ;;  %v7812_v40 = vmul.f32 %v16329_v60, %v7794_v4 }
 0xda4   : > { %v12404_v1 = vpack.i.bf16 %v16434_v30, %v16428_v43  ;;  %10691 = vmatmul.mubr.msk.bf16.vlgmr.msra.gmra.mxu0 %vm435_vm4, %v8209_v2 }
 0xda5   : > { %12395 = vrot.lane.b32.xlu0 %v12394_v22, %s12822_s26  ;;  %v7843_v45 = vsel %vm7827_vm5, %v7819_v39, %v7835_v63  ;;  %v7820_v36 = vadd.f32 %v7812_v40, %v16228_v14  ;;  %v7898_v9 = vld [vmem:[#allocation3 + $0x102] sm:$0xff] }
 0xda6   : > { %12405 = vrot.lane.b32.xlu1 %v12404_v1, %s12818_s22  ;;  %7851 = vst.msk [vmem:[#allocation3 + $0x111] sm:$0xff] %vm435_vm4, %v7843_v45  ;;  %v16447_v27 = vld [vmem:[#allocation3 + $0x100] sm:$0xff]  ;;  %v12414_v25 = vpack.i.bf16 %v7898_v9, %v7920_v24 }
 0xda7   : > { %vm7828_vm7 = vcmp.ge.f32.partialorder %v7820_v36, 0.0  ;;  %v7836_v3 = vmul.f32 0.2, %v7820_v36  ;;  %v12419_v14 = vpack.i.bf16 %v16447_v27, %v16432_v29  ;;  %v16454_v5 = vld [vmem:[#allocation3 + $0x101] sm:$0xff] }
 0xda9   : > { %12400 = vrot.lane.b32.xlu0 %v12404_v1, %s12825_s20  ;;  %v7844_v60 = vsel %vm7828_vm7, %v7820_v36, %v7836_v3 }
 0xdaa   : > { %12410 = vrot.lane.b32.xlu1 %v12409_v42, %s12822_s26  ;;  %7852 = vst.msk [vmem:[#allocation3 + $0x121] sm:$0xff] %vm435_vm4, %v7844_v60 }
 0xdad   : > { %12415 = vrot.lane.b32.xlu0 %v12414_v25, %s12818_s22  ;;  %v7922_v26 = vld [vmem:[#allocation3 + $0x112] sm:$0xff] }
 0xdae   : > { %12420 = vrot.lane.b32.xlu1 %v12419_v14, %s12825_s20  ;;  %v16457_v13 = vld [vmem:[#allocation3 + $0x110] sm:$0xff]  ;;  %v8212_v0 = vpack.c.bf16 %v7922_v26, %v7898_v9  ;;  %v12439_v8 = vpack.i.bf16 %v7922_v26, %v7898_v9 }
 0xdaf   : > { %v16459_v37 = vld [vmem:[#allocation3 + $0x111] sm:$0xff]  ;;  %v12424_v11 = vpack.i.bf16 %v16457_v13, %v16447_v27 }
 0xdb0   : > { %v12434_v20 = vpack.i.bf16 %v16459_v37, %v16454_v5  ;;  %10694 = vmatprep.mubr.msk.bf16.mxu0 %vm435_vm4, %v8212_v0 }
 0xdb1   : > { %12425 = vrot.lane.b32.xlu0 %v12424_v11, %s12822_s26  ;;  %v7923_v58 = vld [vmem:[#allocation3 + $0x122] sm:$0xff] }
 0xdb2   : > { %12435 = vrot.lane.b32.xlu1 %v12434_v20, %s12818_s22  ;;  %v8215_v19 = vpack.c.bf16 %v7924_v28, %v7923_v58  ;;  %v7884_v12 = vld [vmem:[#allocation3 + $0x120] sm:$0xff]  ;;  %v12444_v32 = vpack.i.bf16 %v7923_v58, %v7922_v26 }
 0xdb3   : > { %v12459_v55 = vpack.i.bf16 %v7884_v12, %v16457_v13  ;;  %v12449_v46 = vpack.i.bf16 %v7908_v16, %v7884_v12  ;;  %v16475_v61 = vld [vmem:[#allocation3 + $0x121] sm:$0xff] }
 0xdb4   : > { %10695 = vmatmul.mubr.msk.bf16.gmra.mxu0 %vm435_vm4, %v8215_v19  ;;  %v12454_v48 = vpack.i.bf16 %v7916_v18, %v16475_v61 }
 0xdb5   : > { %12430 = vrot.lane.b32.xlu0 %v12434_v20, %s12825_s20  ;;  %9197 = vmatprep.mubr.bf16.mxu0 %v12824_v7 }
 0xdb6   : > { %12440 = vrot.lane.b32.xlu1 %v12439_v8, %s12822_s26 }
 0xdb9   : > { %12445 = vrot.lane.b32.xlu0 %v12444_v32, %s12818_s22 }
 0xdba   : > { %12460 = vrot.lane.b32.xlu1 %v12459_v55, %s12825_s20 }
 0xdbd   : > { %12450 = vrot.lane.b32.xlu0 %v12449_v46, %s12822_s26 }
 0xdc1   : > { %12455 = vrot.lane.b32.xlu0 %v12454_v48, %s12825_s20 }
 0xdfe   : > { %v12346_v34 = vpop.permute.xlu1 %12345 }
 0xdff   : > { %v12348_v35 = vunpack.i.h.bf16 %v12346_v34  ;;  %v12347_v17 = vunpack.i.l.bf16 %v12346_v34 }
 0xe01   : > { %v8156_v39 = vsel %vm435_vm4, %v7853_v51, %v12347_v17  ;;  %v8157_v4 = vsel %vm435_vm4, %v16383_v54, %v12348_v35 }
 0xe02   : > { %v12351_v21 = vpop.permute.xlu1 %12350  ;;  %v12356_v31 = vpop.permute.xlu0 %12355 }
 0xe03   : > { %v12358_v10 = vunpack.i.h.bf16 %v12356_v31  ;;  %v12357_v23 = vunpack.i.l.bf16 %v12356_v31  ;;  %v12353_v57 = vunpack.i.h.bf16 %v12351_v21  ;;  %v12352_v52 = vunpack.i.l.bf16 %v12351_v21 }
 0xe05   : > { %v8181_v24 = vsel %vm435_vm4, %v16397_v56, %v12358_v10  ;;  %v8180_v2 = vsel %vm435_vm4, %v16356_v53, %v12357_v23  ;;  %v8164_v1 = vsel %vm884_vm8, %v8156_v39, %v12352_v52  ;;  %v8165_v63 = vsel %vm884_vm8, %v8157_v4, %v12353_v57 }
 0xe06   : > { %v12361_v47 = vpop.permute.xlu1 %12360 }
 0xe07   : > { %v12363_v49 = vunpack.i.h.bf16 %v12361_v47  ;;  %v12362_v62 = vunpack.i.l.bf16 %v12361_v47 }
 0xe09   : > { %v8172_v3 = vsel %vm2931_vm9, %v8164_v1, %v12362_v62  ;;  %v8173_v42 = vsel %vm2931_vm9, %v8165_v63, %v12363_v49 }
 0xe0a   : > { %v8204_v0 = vpack.c.bf16 %v8173_v42, %v8172_v3 }
 0xe0b   : > { %v12366_v33 = vpop.permute.xlu0 %12365 }
 0xe0c   : > { %v12376_v41 = vpop.permute.xlu1 %12375  ;;  %v12368_v59 = vunpack.i.h.bf16 %v12366_v33  ;;  %v12367_v6 = vunpack.i.l.bf16 %v12366_v33 }
 0xe0d   : > { %v12378_v20 = vunpack.i.h.bf16 %v12376_v41  ;;  %v12377_v28 = vunpack.i.l.bf16 %v12376_v41 }
 0xe0e   : > { %v8188_v54 = vsel %vm884_vm8, %v8180_v2, %v12367_v6  ;;  %v8189_v9 = vsel %vm884_vm8, %v8181_v24, %v12368_v59 }
 0xe0f   : > { %v12371_v22 = vpop.permute.xlu0 %12370  ;;  %v8159_v34 = vsel %vm435_vm4, %v16400_v38, %v12378_v20  ;;  %v8158_v21 = vsel %vm435_vm4, %v16379_v44, %v12377_v28 }
 0xe10   : > { %v12373_v40 = vunpack.i.h.bf16 %v12371_v22  ;;  %v12372_v45 = vunpack.i.l.bf16 %v12371_v22  ;;  %v12381_v36 = vpop.permute.xlu1 %12380 }
 0xe11   : > { %v12383_v58 = vunpack.i.h.bf16 %v12381_v36  ;;  %v12382_v19 = vunpack.i.l.bf16 %v12381_v36 }
 0xe12   : > { %v8196_v60 = vsel %vm2931_vm9, %v8188_v54, %v12372_v45  ;;  %v8197_v25 = vsel %vm2931_vm9, %v8189_v9, %v12373_v40 }
 0xe13   : > { %v12386_v14 = vpop.permute.xlu0 %12385  ;;  %v8205_v26 = vpack.c.bf16 %v8197_v25, %v8196_v60  ;;  %v8166_v31 = vsel %vm884_vm8, %v8158_v21, %v12382_v19  ;;  %v8167_v47 = vsel %vm884_vm8, %v8159_v34, %v12383_v58 }
 0xe14   : > { %v12391_v11 = vpop.permute.xlu1 %12390  ;;  %v12388_v12 = vunpack.i.h.bf16 %v12386_v14  ;;  %v12387_v32 = vunpack.i.l.bf16 %v12386_v14 }
 0xe15   : > { %8374 = vmatprep.mubr.bf16.mxu1 %v8205_v26  ;;  %v12393_v16 = vunpack.i.h.bf16 %v12391_v11  ;;  %v12392_v46 = vunpack.i.l.bf16 %v12391_v11 }
 0xe16   : > { %8375 = vmatmul.mubr.bf16.vlgmr.msra.gmra.mxu1 %v8204_v0  ;;  %v8183_v17 = vsel %vm435_vm4, %v16428_v43, %v12388_v12  ;;  %v8182_v10 = vsel %vm435_vm4, %v16402_v50, %v12387_v32 }
 0xe17   : > { %v12396_v8 = vpop.permute.xlu0 %12395  ;;  %v8174_v44 = vsel %vm2931_vm9, %v8166_v31, %v12392_v46  ;;  %v8175_v52 = vsel %vm2931_vm9, %v8167_v47, %v12393_v16 }
 0xe18   : > { %v12406_v55 = vpop.permute.xlu1 %12405  ;;  %v12398_v18 = vunpack.i.h.bf16 %v12396_v8  ;;  %v12397_v48 = vunpack.i.l.bf16 %v12396_v8  ;;  %v8207_v39 = vpack.c.bf16 %v8175_v52, %v8174_v44 }
 0xe19   : > { %v12408_v4 = vunpack.i.h.bf16 %v12406_v55  ;;  %v12407_v24 = vunpack.i.l.bf16 %v12406_v55 }
 0xe1a   : > { %v8190_v57 = vsel %vm884_vm8, %v8182_v10, %v12397_v48  ;;  %v8191_v38 = vsel %vm884_vm8, %v8183_v17, %v12398_v18 }
 0xe1b   : > { %v12401_v35 = vpop.permute.xlu0 %12400  ;;  %v8161_v9 = vsel %vm435_vm4, %v16432_v29, %v12408_v4  ;;  %v8160_v60 = vsel %vm435_vm4, %v16418_v15, %v12407_v24 }
 0xe1c   : > { %v12403_v23 = vunpack.i.h.bf16 %v12401_v35  ;;  %v12402_v33 = vunpack.i.l.bf16 %v12401_v35  ;;  %v12411_v51 = vpop.permute.xlu1 %12410 }
 0xe1d   : > { %v12413_v2 = vunpack.i.h.bf16 %v12411_v51  ;;  %v12412_v22 = vunpack.i.l.bf16 %v12411_v51 }
 0xe1e   : > { %v8198_v41 = vsel %vm2931_vm9, %v8190_v57, %v12402_v33  ;;  %v8199_v49 = vsel %vm2931_vm9, %v8191_v38, %v12403_v23 }
 0xe1f   : > { %v12416_v62 = vpop.permute.xlu0 %12415  ;;  %v8208_v59 = vpack.c.bf16 %v8199_v49, %v8198_v41  ;;  %v8168_v25 = vsel %vm884_vm8, %v8160_v60, %v12412_v22  ;;  %v8169_v14 = vsel %vm884_vm8, %v8161_v9, %v12413_v2  ;;  %v12751_v9 = vld [vmem:[%s16905_s8 + $0x60] ss:$8 sps:$4 sm:$0xff]   ;;  %v12756_v60 = vld [vmem:[%s16905_s8 + $0x54] ss:$8 sps:$4 sm:$0xff]  }
 0xe20   : > { %v12421_v6 = vpop.permute.xlu1 %12420  ;;  %v12418_v63 = vunpack.i.h.bf16 %v12416_v62  ;;  %v12417_v40 = vunpack.i.l.bf16 %v12416_v62 }
 0xe21   : > { %8382 = vmatprep.mubr.bf16.mxu1 %v8208_v59  ;;  %v12423_v36 = vunpack.i.h.bf16 %v12421_v6  ;;  %v12422_v3 = vunpack.i.l.bf16 %v12421_v6 }
 0xe22   : > { %8383 = vmatmul.mubr.bf16.gmra.mxu1 %v8207_v39  ;;  %v8185_v0 = vsel %vm435_vm4, %v16454_v5, %v12418_v63  ;;  %v8184_v11 = vsel %vm435_vm4, %v16434_v30, %v12417_v40  ;;  %v12744_v63 = vld [vmem:[%s16905_s8 + $0x114] ss:$8 sps:$4 sm:$0xff]   ;;  %v12742_v40 = vld [vmem:[%s16905_s8 + $0x110] ss:$8 sps:$4 sm:$0xff]  }
 0xe23   : > { %v12426_v1 = vpop.permute.xlu0 %12425  ;;  %v8176_v15 = vsel %vm2931_vm9, %v8168_v25, %v12422_v3  ;;  %v8177_v8 = vsel %vm2931_vm9, %v8169_v14, %v12423_v36  ;;  %9177 = vmatprep.subr.bf16.mxu0 %v12744_v63  ;;  %v12745_v36 = vld [vmem:[%s16905_s8 + $0x100] ss:$8 sps:$4 sm:$0xff]   ;;  %v12748_v3 = vld [vmem:[%s16905_s8 + $0x70] ss:$8 sps:$4 sm:$0xff]   ;;  %v12759_v14 = vld [vmem:[%s16905_s8 + $0x44] ss:$8 sps:$4 sm:$0xff]  }
 0xe24   : > { %v12436_v45 = vpop.permute.xlu1 %12435  ;;  %v12428_v42 = vunpack.i.h.bf16 %v12426_v1  ;;  %v12427_v54 = vunpack.i.l.bf16 %v12426_v1  ;;  %v8210_v46 = vpack.c.bf16 %v8177_v8, %v8176_v15  ;;  %9178 = vmatpush1.bf16.msra.mxu0 %v12742_v40  ;;  %v12754_v25 = vld [vmem:[%s16905_s8 + $0x50] ss:$8 sps:$4 sm:$0xff]   ;;  %v12769_v15 = vld [vmem:[%s16905_s8] ss:$8 sps:$4 sm:$0xff]   ;;  %v12774_v8 = vld [vmem:[%s16905_s8 + $0xf4] ss:$8 sps:$4 sm:$0xff]  }
 0xe25   : > { %v12438_v18 = vunpack.i.h.bf16 %v12436_v45  ;;  %v12437_v48 = vunpack.i.l.bf16 %v12436_v45  ;;  %v12747_v45 = vld [vmem:[%s16905_s8 + $0x104] ss:$8 sps:$4 sm:$0xff]  }
 0xe26   : > { %v8192_v19 = vsel %vm884_vm8, %v8184_v11, %v12427_v54  ;;  %v8193_v29 = vsel %vm884_vm8, %v8185_v0, %v12428_v42  ;;  %9179 = vmatprep.subr.bf16.mxu0 %v12747_v45  ;;  %v12750_v42 = vld [vmem:[%s16905_s8 + $0x74] ss:$8 sps:$4 sm:$0xff]   ;;  %v12753_v54 = vld [vmem:[%s16905_s8 + $0x64] ss:$8 sps:$4 sm:$0xff]   ;;  %v12760_v11 = vld [vmem:[%s16905_s8 + $0x30] ss:$8 sps:$4 sm:$0xff]  }
 0xe27   : > { %v12431_v26 = vpop.permute.xlu0 %12430  ;;  %v8163_v57 = vsel %vm435_vm4, %v16457_v13, %v12438_v18  ;;  %v8162_v38 = vsel %vm435_vm4, %v16447_v27, %v12437_v48  ;;  %9092 = vmatprep.subr.bf16.mxu1 %v12750_v42  ;;  %v12762_v0 = vld [vmem:[%s16905_s8 + $0x34] ss:$8 sps:$4 sm:$0xff]  }
 0xe28   : > { %v12433_v20 = vunpack.i.h.bf16 %v12431_v26  ;;  %v12432_v28 = vunpack.i.l.bf16 %v12431_v26  ;;  %v12441_v58 = vpop.permute.xlu1 %12440  ;;  %9180 = vmatpush1.bf16.msra.mxu0 %v12745_v36  ;;  %9093 = vmatpush1.bf16.msra.mxu1 %v12748_v3  ;;  %v12757_v26 = vld [vmem:[%s16905_s8 + $0x40] ss:$8 sps:$4 sm:$0xff]   ;;  %v12784_v36 = vld [vmem:[%s16905_s8 + $0xb0] ss:$8 sps:$4 sm:$0xff]   ;;  %v12786_v3 = vld [vmem:[%s16905_s8 + $0xb4] ss:$8 sps:$4 sm:$0xff]  }
 0xe29   : > { %v12443_v21 = vunpack.i.h.bf16 %v12441_v58  ;;  %v12442_v31 = vunpack.i.l.bf16 %v12441_v58  ;;  %9094 = vmatprep.subr.bf16.mxu1 %v12753_v54  ;;  %v12768_v58 = vld [vmem:[%s16905_s8 + $0x14] ss:$8 sps:$4 sm:$0xff]  }
 0xe2a   : > { %v8200_v12 = vsel %vm2931_vm9, %v8192_v19, %v12432_v28  ;;  %v8201_v32 = vsel %vm2931_vm9, %v8193_v29, %v12433_v20  ;;  %v12765_v20 = vld [vmem:[%s16905_s8 + $0x24] ss:$8 sps:$4 sm:$0xff]   ;;  %v12763_v28 = vld [vmem:[%s16905_s8 + $0x20] ss:$8 sps:$4 sm:$0xff]   ;;  %v12766_v19 = vld [vmem:[%s16905_s8 + $0x10] ss:$8 sps:$4 sm:$0xff]  }
 0xe2b   : > { %v12446_v55 = vpop.permute.xlu0 %12445  ;;  %v8211_v16 = vpack.c.bf16 %v8201_v32, %v8200_v12  ;;  %v8170_v44 = vsel %vm884_vm8, %v8162_v38, %v12442_v31  ;;  %v8171_v52 = vsel %vm884_vm8, %v8163_v57, %v12443_v21  ;;  %v12771_v29 = vld [vmem:[%s16905_s8 + $0x4] ss:$8 sps:$4 sm:$0xff]   ;;  %v12772_v12 = vld [vmem:[%s16905_s8 + $0xf0] ss:$8 sps:$4 sm:$0xff]  }
 0xe2c   : > { %v12461_v34 = vpop.permute.xlu1 %12460  ;;  %v12448_v35 = vunpack.i.h.bf16 %v12446_v55  ;;  %v12447_v17 = vunpack.i.l.bf16 %v12446_v55  ;;  %9095 = vmatpush1.bf16.msra.mxu1 %v12751_v9  ;;  %v12777_v32 = vld [vmem:[%s16905_s8 + $0xe4] ss:$8 sps:$4 sm:$0xff]   ;;  %v12775_v55 = vld [vmem:[%s16905_s8 + $0xe0] ss:$8 sps:$4 sm:$0xff]  }
 0xe2d   : > { %8390 = vmatprep.mubr.bf16.mxu1 %v8211_v16  ;;  %v12463_v10 = vunpack.i.h.bf16 %v12461_v34  ;;  %v12462_v23 = vunpack.i.l.bf16 %v12461_v34  ;;  %9096 = vmatprep.subr.bf16.mxu1 %v12756_v60  ;;  %v12780_v16 = vld [vmem:[%s16905_s8 + $0xd4] ss:$8 sps:$4 sm:$0xff]   ;;  %v16624_v21 = vld [vmem:[%s16903_s6 + $0x7] ss:$0 sm:$0xff] }
 0xe2e   : > { %8391 = vmatmul.mubr.bf16.gmra.mxu1 %v8210_v46  ;;  %v8187_v49 = vsel %vm435_vm4, %v16475_v61, %v12448_v35  ;;  %v8186_v62 = vsel %vm435_vm4, %v16459_v37, %v12447_v17  ;;  %v12778_v46 = vld [vmem:[%s16905_s8 + $0xd0] ss:$8 sps:$4 sm:$0xff]   ;;  %v8536_v9 = vld [vmem:[#allocation3 + $0x1] sm:$0xff] }
 0xe2f   : > { %v12451_v47 = vpop.permute.xlu0 %12450  ;;  %v8178_v4 = vsel %vm2931_vm9, %v8170_v44, %v12462_v23  ;;  %v8179_v27 = vsel %vm2931_vm9, %v8171_v52, %v12463_v10  ;;  %v16630_v23 = vld [vmem:[%s16904_s7 + $0x7] ss:$0 sm:$0xff] }
 0xe30   : > { %v12453_v33 = vunpack.i.h.bf16 %v12451_v47  ;;  %v12452_v51 = vunpack.i.l.bf16 %v12451_v47  ;;  %v8213_v1 = vpack.c.bf16 %v8179_v27, %v8178_v4  ;;  %9097 = vmatpush1.bf16.msra.mxu1 %v12754_v25 }
 0xe31   : > { %9098 = vmatprep.subr.bf16.mxu1 %v12759_v14 }
 0xe32   : > { %v8194_v39 = vsel %vm884_vm8, %v8186_v62, %v12452_v51  ;;  %v8195_v13 = vsel %vm884_vm8, %v8187_v49, %v12453_v33 }
 0xe33   : > { %v12456_v41 = vpop.permute.xlu0 %12455 }
 0xe34   : > { %v12458_v59 = vunpack.i.h.bf16 %v12456_v41  ;;  %v12457_v6 = vunpack.i.l.bf16 %v12456_v41  ;;  %9099 = vmatpush1.bf16.msra.mxu1 %v12757_v26 }
 0xe35   : > { %9100 = vmatprep.subr.bf16.mxu1 %v12762_v0 }
 0xe36   : > { %v8202_v24 = vsel %vm2931_vm9, %v8194_v39, %v12457_v6  ;;  %v8203_v2 = vsel %vm2931_vm9, %v8195_v13, %v12458_v59 }
 0xe37   : > { %v8214_v22 = vpack.c.bf16 %v8203_v2, %v8202_v24  ;;  %v12781_v24 = vld [vmem:[%s16905_s8 + $0xc0] ss:$8 sps:$4 sm:$0xff]   ;;  %v12783_v2 = vld [vmem:[%s16905_s8 + $0xc4] ss:$8 sps:$4 sm:$0xff]  }
 0xe38   : > { %9101 = vmatpush1.bf16.msra.mxu1 %v12760_v11 }
 0xe39   : > { %8398 = vmatprep.mubr.bf16.mxu1 %v8214_v22  ;;  %9102 = vmatprep.subr.bf16.mxu1 %v12765_v20  ;;  %v12787_v20 = vld [vmem:[%s16905_s8 + $0xa0] ss:$8 sps:$4 sm:$0xff]  }
 0xe3a   : > { %8399 = vmatmul.mubr.bf16.gmra.mxu1 %v8213_v1 }
 0xe3c   : > { %9103 = vmatpush1.bf16.msra.mxu1 %v12763_v28  ;;  %v12789_v28 = vld [vmem:[%s16905_s8 + $0xa4] ss:$8 sps:$4 sm:$0xff]  }
 0xe3d   : > { %9104 = vmatprep.subr.bf16.mxu1 %v12768_v58 }
 0xe40   : > { %9105 = vmatpush1.bf16.msra.mxu1 %v12766_v19 }
 0xe41   : > { %9106 = vmatprep.subr.bf16.mxu1 %v12771_v29 }
 0xe44   : > { %9107 = vmatpush1.bf16.msra.mxu1 %v12769_v15 }
 0xe45   : > { %9108 = vmatprep.subr.bf16.mxu1 %v12774_v8 }
 0xe48   : > { %9109 = vmatpush2.bf16.msra.mxu1 %v12772_v12 }
 0xe49   : > { %9110 = vmatprep.subr.bf16.mxu1 %v12777_v32 }
 0xe4c   : > { %9111 = vmatpush2.bf16.msra.mxu1 %v12775_v55 }
 0xe4d   : > { %9112 = vmatprep.subr.bf16.mxu1 %v12780_v16 }
 0xe50   : > { %9113 = vmatpush2.bf16.msra.mxu1 %v12778_v46 }
 0xe51   : > { %9114 = vmatprep.subr.bf16.mxu1 %v12783_v2 }
 0xe54   : > { %9115 = vmatpush2.bf16.msra.mxu1 %v12781_v24 }
 0xe55   : > { %9116 = vmatprep.subr.bf16.mxu1 %v12786_v3 }
 0xe58   : > { %9117 = vmatpush2.bf16.msra.mxu1 %v12784_v36 }
 0xe59   : > { %9118 = vmatprep.subr.bf16.mxu1 %v12789_v28 }
 0xe5c   : > { %9119 = vmatpush2.bf16.msra.mxu1 %v12787_v20 }
 0xe64   : > { %v10692_v18 = vpop.f32.mrf.mxu0 }
 0xe66   : > { %v8441_v34 = vpop.f32.mrf.mxu0 }
 0xe68   : > { %v10693_v10 = vpop.f32.mrf.mxu0 }
 0xe6a   : > { %v8444_v52 = vpop.f32.mrf.mxu0 }
 0xe74   : > { %v16654_v60 = vpop.f32.mrf.mxu0 }
 0xe76   : > { %v8457_v15 = vpop.f32.mrf.mxu0 }
 0xed6   : > { %v10500_v48 = vpop.f32.mrf.mxu1 }
 0xed8   : > { %v10501_v31 = vpop.f32.mrf.mxu1 }
 0xed9   : > { %v10502_v47 = vadd.f32 %v10501_v31, %v10500_v48  ;;  %v12792_v31 = vld [vmem:[%s16905_s8 + $0x94] ss:$8 sps:$4 sm:$0xff]  }
 0xeda   : > { %v10503_v35 = vpop.f32.mrf.mxu1  ;;  %9120 = vmatprep.subr.bf16.mxu1 %v12792_v31 }
 0xedb   : > { %v8377_v17 = vadd.f32 %v10502_v47, %v16624_v21 }
 0xedc   : > { %v10504_v33 = vpop.f32.mrf.mxu1 }
 0xedd   : > { %v8442_v51 = vadd.f32 %v8441_v34, %v8377_v17  ;;  %v10505_v57 = vadd.f32 %v10504_v33, %v10503_v35  ;;  %v12790_v34 = vld [vmem:[%s16905_s8 + $0x90] ss:$8 sps:$4 sm:$0xff]   ;;  %v16682_v17 = vpop.f32.mrf.mxu0 }
 0xede   : > { %9121 = vmatpush2.bf16.msra.mxu1 %v12790_v34 }
 0xedf   : > { %v8480_v38 = vmul.f32 %v16630_v23, %v8442_v51  ;;  %v8380_v44 = vadd.f32 %v10505_v57, %v16624_v21 }
 0xee1   : > { %v8488_v41 = vadd.f32 %v8480_v38, %v16356_v53  ;;  %v8445_v49 = vadd.f32 %v8444_v52, %v8380_v44  ;;  %v12795_v44 = vld [vmem:[%s16905_s8 + $0x84] ss:$8 sps:$4 sm:$0xff]  }
 0xee2   : > { %v10506_v62 = vpop.f32.mrf.mxu1  ;;  %9122 = vmatprep.subr.bf16.mxu1 %v12795_v44 }
 0xee3   : > { %vm8496_vm10 = vcmp.ge.f32.partialorder %v8488_v41, 0.0  ;;  %v8504_v59 = vmul.f32 0.2, %v8488_v41  ;;  %v8481_v6 = vmul.f32 %v16630_v23, %v8445_v49 }
 0xee4   : > { %v10507_v39 = vpop.f32.mrf.mxu1 }
 0xee5   : > { %v8512_v13 = vsel %vm8496_vm10, %v8488_v41, %v8504_v59  ;;  %v8489_v4 = vadd.f32 %v8481_v6, %v16397_v56  ;;  %v10508_v27 = vadd.f32 %v10507_v39, %v10506_v62  ;;  %v12793_v41 = vld [vmem:[%s16905_s8 + $0x80] ss:$8 sps:$4 sm:$0xff]   ;;  %v8460_v59 = vpop.f32.mrf.mxu0 }
 0xee6   : > { %8520 = vst.msk [vmem:[#allocation3 + $0x11] sm:$0xff] %vm435_vm4, %v8512_v13  ;;  %v10509_v53 = vpop.f32.mrf.mxu1  ;;  %9123 = vmatpush2.bf16.msra.mxu1 %v12793_v41 }
 0xee7   : > { %vm8497_vm2 = vcmp.ge.f32.partialorder %v8489_v4, 0.0  ;;  %v8505_v22 = vmul.f32 0.2, %v8489_v4  ;;  %v8385_v1 = vadd.f32 %v10508_v27, %v16624_v21 }
 0xee8   : > { %v10510_v63 = vpop.f32.mrf.mxu1 }
 0xee9   : > { %v8513_v56 = vsel %vm8497_vm2, %v8489_v4, %v8505_v22  ;;  %v8450_v40 = vadd.f32 %v10692_v18, %v8385_v1  ;;  %v10511_v45 = vadd.f32 %v10510_v63, %v10509_v53 }
 0xeea   : > { %8521 = vst.msk [vmem:[#allocation3 + $0x21] sm:$0xff] %vm435_vm4, %v8513_v56 }
 0xeeb   : > { %v8482_v42 = vmul.f32 %v16630_v23, %v8450_v40  ;;  %v8388_v54 = vadd.f32 %v10511_v45, %v16624_v21 }
 0xeed   : > { %v8490_v25 = vadd.f32 %v8482_v42, %v16402_v50  ;;  %v8453_v14 = vadd.f32 %v10693_v10, %v8388_v54  ;;  %v16657_v26 = vld [vmem:[#allocation3 + $0x11] sm:$0xff]  ;;  %v8544_v50 = vld [vmem:[#allocation3 + $0x2] sm:$0xff] }
 0xeee   : > { %v10512_v0 = vpop.f32.mrf.mxu1  ;;  %v12464_v11 = vpack.i.bf16 %v16657_v26, %v8536_v9  ;;  %v8568_v29 = vld [vmem:[#allocation3 + $0x12] sm:$0xff] }
 0xeef   : > { %vm8498_vm6 = vcmp.ge.f32.partialorder %v8490_v25, 0.0  ;;  %v8506_v58 = vmul.f32 0.2, %v8490_v25  ;;  %v8483_v19 = vmul.f32 %v16630_v23, %v8453_v14  ;;  %v12469_v48 = vpack.i.bf16 %v8568_v29, %v8544_v50  ;;  %v16686_v38 = vld [vmem:[#allocation3 + $0x10] sm:$0xff] }
 0xef0   : > { %v10513_v8 = vpop.f32.mrf.mxu1  ;;  %12465 = vrot.lane.b32.xlu1 %v12464_v11, %s12818_s22 }
 0xef1   : > { %v8514_v12 = vsel %vm8498_vm6, %v8490_v25, %v8506_v58  ;;  %v8491_v32 = vadd.f32 %v8483_v19, %v16428_v43  ;;  %v10514_v55 = vadd.f32 %v10513_v8, %v10512_v0  ;;  %v16669_v16 = vld [vmem:[#allocation3 + $0x22] sm:$0xff] }
 0xef2   : > { %8522 = vst.msk [vmem:[#allocation3 + $0x31] sm:$0xff] %vm435_vm4, %v8514_v12  ;;  %v10515_v46 = vpop.f32.mrf.mxu1  ;;  %v12474_v18 = vpack.i.bf16 %v16669_v16, %v8568_v29  ;;  %v16680_v35 = vld [vmem:[#allocation3 + $0x20] sm:$0xff] }
 0xef3   : > { %vm8499_vm11 = vcmp.ge.f32.partialorder %v8491_v32, 0.0  ;;  %v8507_v43 = vmul.f32 0.2, %v8491_v32  ;;  %v8393_v47 = vadd.f32 %v10514_v55, %v16624_v21  ;;  %v12479_v52 = vpack.i.bf16 %v16680_v35, %v16686_v38  ;;  %v16700_v6 = vld [vmem:[#allocation3 + $0x21] sm:$0xff] }
 0xef4   : > { %v10516_v10 = vpop.f32.mrf.mxu1  ;;  %12475 = vrot.lane.b32.xlu0 %v12474_v18, %s12818_s22  ;;  %12470 = vrot.lane.b32.xlu1 %v12469_v48, %s12822_s26 }
 0xef5   : > { %v8515_v33 = vsel %vm8499_vm11, %v8491_v32, %v8507_v43  ;;  %v8458_v51 = vadd.f32 %v8457_v15, %v8393_v47  ;;  %v10517_v57 = vadd.f32 %v10516_v10, %v10515_v46 }
 0xef6   : > { %8523 = vst.msk [vmem:[#allocation3 + $0x41] sm:$0xff] %vm435_vm4, %v8515_v33 }
 0xef7   : > { %v8484_v49 = vmul.f32 %v16630_v23, %v8458_v51  ;;  %v8396_v62 = vadd.f32 %v10517_v57, %v16624_v21 }
 0xef8   : > { %12480 = vrot.lane.b32.xlu1 %v12479_v52, %s12825_s20 }
 0xef9   : > { %v8492_v39 = vadd.f32 %v8484_v49, %v16434_v30  ;;  %v8461_v13 = vadd.f32 %v8460_v59, %v8396_v62  ;;  %v8593_v4 = vld [vmem:[#allocation3 + $0x32] sm:$0xff] }
 0xefa   : > { %v16703_v27 = vld [vmem:[#allocation3 + $0x30] sm:$0xff]  ;;  %v10518_v2 = vpop.f32.mrf.mxu1  ;;  %v8879_v53 = vpack.c.bf16 %v8593_v4, %v16669_v16  ;;  %v12499_v9 = vpack.i.bf16 %v8593_v4, %v16669_v16 }
 0xefb   : > { %v16705_v24 = vld [vmem:[#allocation3 + $0x31] sm:$0xff]  ;;  %v12484_v22 = vpack.i.bf16 %v16703_v27, %v16680_v35  ;;  %vm8500_vm12 = vcmp.ge.f32.partialorder %v8492_v39, 0.0  ;;  %v8508_v63 = vmul.f32 0.2, %v8492_v39  ;;  %v8485_v30 = vmul.f32 %v16630_v23, %v8461_v13 }
 0xefc   : > { %v12494_v1 = vpack.i.bf16 %v16705_v24, %v16700_v6  ;;  %v10519_v56 = vpop.f32.mrf.mxu1  ;;  %10119 = vmatmul.mubr.msk.bf16.vlgmr.msra.gmra.mxu0 %vm435_vm4, %v8879_v53  ;;  %v8599_v59 = vld [vmem:[#allocation3 + $0x92] sm:$0xff] }
 0xefd   : > { %12485 = vrot.lane.b32.xlu0 %v12484_v22, %s12822_s26  ;;  %v8516_v40 = vsel %vm8500_vm12, %v8492_v39, %v8508_v63  ;;  %v8493_v45 = vadd.f32 %v8485_v30, %v16454_v5  ;;  %v10520_v36 = vadd.f32 %v10519_v56, %v10518_v2  ;;  %9207 = vmatprep.mubr.bf16.mxu0 %v12824_v7  ;;  %v8571_v25 = vld [vmem:[#allocation3 + $0x42] sm:$0xff]  ;;  %v8583_v53 = vld [vmem:[#allocation3 + $0x90] sm:$0xff] }
 0xefe   : > { %12495 = vrot.lane.b32.xlu1 %v12494_v1, %s12818_s22  ;;  %8524 = vst.msk [vmem:[#allocation3 + $0x51] sm:$0xff] %vm435_vm4, %v8516_v40  ;;  %v10521_v3 = vpop.f32.mrf.mxu1  ;;  %v16722_v0 = vld [vmem:[#allocation3 + $0x40] sm:$0xff]  ;;  %v12504_v28 = vpack.i.bf16 %v8571_v25, %v8593_v4 }
 0xeff   : > { %vm8501_vm13 = vcmp.ge.f32.partialorder %v8493_v45, 0.0  ;;  %v8509_v42 = vmul.f32 0.2, %v8493_v45  ;;  %v8401_v54 = vadd.f32 %v10520_v36, %v16624_v21  ;;  %v12509_v29 = vpack.i.bf16 %v16722_v0, %v16703_v27  ;;  %v16732_v50 = vld [vmem:[#allocation3 + $0x41] sm:$0xff] }
 0xf00   : > { %v10522_v14 = vpop.f32.mrf.mxu1 }
 0xf01   : > { %12490 = vrot.lane.b32.xlu0 %v12494_v1, %s12825_s20  ;;  %v8517_v5 = vsel %vm8501_vm13, %v8493_v45, %v8509_v42  ;;  %v8466_v11 = vadd.f32 %v16654_v60, %v8401_v54  ;;  %v10523_v20 = vadd.f32 %v10522_v14, %v10521_v3  ;;  %v8591_v1 = vld [vmem:[#allocation3 + $0x91] sm:$0xff] }
 0xf02   : > { %12500 = vrot.lane.b32.xlu1 %v12499_v9, %s12822_s26  ;;  %8525 = vst.msk [vmem:[#allocation3 + $0x61] sm:$0xff] %vm435_vm4, %v8517_v5 }
 0xf03   : > { %v8486_v58 = vmul.f32 %v16630_v23, %v8466_v11  ;;  %v8404_v19 = vadd.f32 %v10523_v20, %v16624_v21 }
 0xf05   : > { %12505 = vrot.lane.b32.xlu0 %v12504_v28, %s12818_s22  ;;  %v8494_v15 = vadd.f32 %v8486_v58, %v16459_v37  ;;  %v8469_v60 = vadd.f32 %v16682_v17, %v8404_v19  ;;  %v8595_v8 = vld [vmem:[#allocation3 + $0x52] sm:$0xff] }
 0xf06   : > { %12510 = vrot.lane.b32.xlu1 %v12509_v29, %s12825_s20  ;;  %v16737_v12 = vld [vmem:[#allocation3 + $0x50] sm:$0xff]  ;;  %v8882_v55 = vpack.c.bf16 %v8595_v8, %v8571_v25  ;;  %v12529_v31 = vpack.i.bf16 %v8595_v8, %v8571_v25  ;;  %v8528_v25 = vld [vmem:[#allocation3] sm:$0xff] }
 0xf07   : > { %v16739_v32 = vld [vmem:[#allocation3 + $0x51] sm:$0xff]  ;;  %v12514_v21 = vpack.i.bf16 %v16737_v12, %v16722_v0  ;;  %vm8502_vm14 = vcmp.ge.f32.partialorder %v8494_v15, 0.0  ;;  %v8510_v46 = vmul.f32 0.2, %v8494_v15  ;;  %v8487_v37 = vmul.f32 %v16630_v23, %v8469_v60 }
 0xf08   : > { %v12524_v16 = vpack.i.bf16 %v16739_v32, %v16732_v50  ;;  %10120 = vmatmul.mubr.msk.bf16.gmra.mxu0 %vm435_vm4, %v8882_v55 }
 0xf09   : > { %12515 = vrot.lane.b32.xlu0 %v12514_v21, %s12822_s26  ;;  %v8518_v18 = vsel %vm8502_vm14, %v8494_v15, %v8510_v46  ;;  %v8495_v48 = vadd.f32 %v8487_v37, %v16475_v61  ;;  %9217 = vmatprep.mubr.bf16.mxu0 %v12824_v7  ;;  %v8573_v43 = vld [vmem:[#allocation3 + $0x62] sm:$0xff] }
 0xf0a   : > { %12525 = vrot.lane.b32.xlu1 %v12524_v16, %s12818_s22  ;;  %8526 = vst.msk [vmem:[#allocation3 + $0x71] sm:$0xff] %vm435_vm4, %v8518_v18  ;;  %v16753_v23 = vld [vmem:[#allocation3 + $0x60] sm:$0xff]  ;;  %v12534_v61 = vpack.i.bf16 %v8573_v43, %v8595_v8 }
 0xf0b   : > { %vm8503_vm15 = vcmp.ge.f32.partialorder %v8495_v48, 0.0  ;;  %v8511_v34 = vmul.f32 0.2, %v8495_v48  ;;  %v12539_v17 = vpack.i.bf16 %v16753_v23, %v16737_v12  ;;  %v16760_v10 = vld [vmem:[#allocation3 + $0x61] sm:$0xff] }
 0xf0d   : > { %12520 = vrot.lane.b32.xlu0 %v12524_v16, %s12825_s20  ;;  %v8519_v47 = vsel %vm8503_vm15, %v8495_v48, %v8511_v34 }
 0xf0e   : > { %12530 = vrot.lane.b32.xlu1 %v12529_v31, %s12822_s26  ;;  %8527 = vst.msk [vmem:[#allocation3 + $0x81] sm:$0xff] %vm435_vm4, %v8519_v47 }
 0xf11   : > { %12535 = vrot.lane.b32.xlu0 %v12534_v61, %s12818_s22  ;;  %v8597_v33 = vld [vmem:[#allocation3 + $0x72] sm:$0xff] }
 0xf12   : > { %12540 = vrot.lane.b32.xlu1 %v12539_v17, %s12825_s20  ;;  %v16763_v51 = vld [vmem:[#allocation3 + $0x70] sm:$0xff]  ;;  %v8885_v44 = vpack.c.bf16 %v8597_v33, %v8573_v43  ;;  %v12559_v49 = vpack.i.bf16 %v8597_v33, %v8573_v43 }
 0xf13   : > { %v16765_v57 = vld [vmem:[#allocation3 + $0x71] sm:$0xff]  ;;  %v12544_v52 = vpack.i.bf16 %v16763_v51, %v16753_v23 }
 0xf14   : > { %v12554_v41 = vpack.i.bf16 %v16765_v57, %v16760_v10  ;;  %10121 = vmatmul.mubr.msk.bf16.gmra.mxu0 %vm435_vm4, %v8885_v44 }
 0xf15   : > { %12545 = vrot.lane.b32.xlu0 %v12544_v52, %s12822_s26  ;;  %9227 = vmatprep.mubr.bf16.mxu0 %v12824_v7  ;;  %v8598_v62 = vld [vmem:[#allocation3 + $0x82] sm:$0xff] }
 0xf16   : > { %12555 = vrot.lane.b32.xlu1 %v12554_v41, %s12818_s22  ;;  %v8559_v39 = vld [vmem:[#allocation3 + $0x80] sm:$0xff]  ;;  %v8888_v13 = vpack.c.bf16 %v8599_v59, %v8598_v62  ;;  %v12564_v4 = vpack.i.bf16 %v8598_v62, %v8597_v33 }
 0xf17   : > { %v12579_v2 = vpack.i.bf16 %v8559_v39, %v16763_v51  ;;  %v12569_v7 = vpack.i.bf16 %v8583_v53, %v8559_v39  ;;  %v16781_v22 = vld [vmem:[#allocation3 + $0x81] sm:$0xff] }
 0xf18   : > { %v12574_v63 = vpack.i.bf16 %v8591_v1, %v16781_v22 }
 0xf19   : > { %12550 = vrot.lane.b32.xlu0 %v12554_v41, %s12825_s20 }
 0xf1a   : > { %12560 = vrot.lane.b32.xlu1 %v12559_v49, %s12822_s26 }
 0xf1c   : > { %10122 = vmatmul.mubr.msk.bf16.gmra.mxu0 %vm435_vm4, %v8888_v13 }
 0xf1d   : > { %12565 = vrot.lane.b32.xlu0 %v12564_v4, %s12818_s22 }
 0xf1e   : > { %12580 = vrot.lane.b32.xlu1 %v12579_v2, %s12825_s20 }
 0xf21   : > { %12570 = vrot.lane.b32.xlu0 %v12569_v7, %s12822_s26 }
 0xf25   : > { %12575 = vrot.lane.b32.xlu0 %v12574_v63, %s12825_s20  ;;  %s10125_s20 = sshll.u32 %s16909_s14, 7 }
 0xf26   : > { %s16861_s28 = scalar_lea.vmem %s16907_s10, %s10125_s20 }
 0xf62   : > { %v12466_v30 = vpop.permute.xlu1 %12465 }
 0xf63   : > { %v12468_v36 = vunpack.i.h.bf16 %v12466_v30  ;;  %v12467_v3 = vunpack.i.l.bf16 %v12466_v30 }
 0xf65   : > { %v8829_v29 = vsel %vm435_vm4, %v8528_v25, %v12467_v3  ;;  %v8830_v15 = vsel %vm435_vm4, %v16686_v38, %v12468_v36 }
 0xf66   : > { %v12471_v56 = vpop.permute.xlu1 %12470  ;;  %v12476_v40 = vpop.permute.xlu0 %12475 }
 0xf67   : > { %v12478_v42 = vunpack.i.h.bf16 %v12476_v40  ;;  %v12477_v54 = vunpack.i.l.bf16 %v12476_v40  ;;  %v12473_v14 = vunpack.i.h.bf16 %v12471_v56  ;;  %v12472_v5 = vunpack.i.l.bf16 %v12471_v56 }
 0xf69   : > { %v8854_v60 = vsel %vm435_vm4, %v16700_v6, %v12478_v42  ;;  %v8853_v8 = vsel %vm435_vm4, %v16657_v26, %v12477_v54  ;;  %v8837_v21 = vsel %vm884_vm8, %v8829_v29, %v12472_v5  ;;  %v8838_v16 = vsel %vm884_vm8, %v8830_v15, %v12473_v14 }
 0xf6a   : > { %v12481_v45 = vpop.permute.xlu1 %12480 }
 0xf6b   : > { %v12483_v20 = vunpack.i.h.bf16 %v12481_v45  ;;  %v12482_v28 = vunpack.i.l.bf16 %v12481_v45 }
 0xf6d   : > { %v8845_v48 = vsel %vm2931_vm9, %v8837_v21, %v12482_v28  ;;  %v8846_v34 = vsel %vm2931_vm9, %v8838_v16, %v12483_v20 }
 0xf6e   : > { %v8877_v61 = vpack.c.bf16 %v8846_v34, %v8845_v48 }
 0xf6f   : > { %v12486_v9 = vpop.permute.xlu0 %12485 }
 0xf70   : > { %v12496_v11 = vpop.permute.xlu1 %12495  ;;  %v12488_v58 = vunpack.i.h.bf16 %v12486_v9  ;;  %v12487_v19 = vunpack.i.l.bf16 %v12486_v9 }
 0xf71   : > { %v12498_v33 = vunpack.i.h.bf16 %v12496_v11  ;;  %v12497_v44 = vunpack.i.l.bf16 %v12496_v11 }
 0xf72   : > { %v8861_v38 = vsel %vm884_vm8, %v8853_v8, %v12487_v19  ;;  %v8862_v31 = vsel %vm884_vm8, %v8854_v60, %v12488_v58 }
 0xf73   : > { %v12491_v55 = vpop.permute.xlu0 %12490  ;;  %v8832_v7 = vsel %vm435_vm4, %v16703_v27, %v12498_v33  ;;  %v8831_v1 = vsel %vm435_vm4, %v16680_v35, %v12497_v44 }
 0xf74   : > { %v12493_v46 = vunpack.i.h.bf16 %v12491_v55  ;;  %v12492_v37 = vunpack.i.l.bf16 %v12491_v55  ;;  %v12501_v18 = vpop.permute.xlu1 %12500 }
 0xf75   : > { %v12503_v52 = vunpack.i.h.bf16 %v12501_v18  ;;  %v12502_v41 = vunpack.i.l.bf16 %v12501_v18 }
 0xf76   : > { %v8869_v6 = vsel %vm2931_vm9, %v8861_v38, %v12492_v37  ;;  %v8870_v26 = vsel %vm2931_vm9, %v8862_v31, %v12493_v46 }
 0xf77   : > { %v12506_v43 = vpop.permute.xlu0 %12505  ;;  %v8878_v47 = vpack.c.bf16 %v8870_v26, %v8869_v6  ;;  %v8839_v63 = vsel %vm884_vm8, %v8831_v1, %v12502_v41  ;;  %v8840_v30 = vsel %vm884_vm8, %v8832_v7, %v12503_v52 }
 0xf78   : > { %v12511_v17 = vpop.permute.xlu1 %12510  ;;  %v12508_v62 = vunpack.i.h.bf16 %v12506_v43  ;;  %v12507_v59 = vunpack.i.l.bf16 %v12506_v43 }
 0xf79   : > { %9124 = vmatprep.mubr.bf16.mxu1 %v8878_v47  ;;  %v12513_v13 = vunpack.i.h.bf16 %v12511_v17  ;;  %v12512_v4 = vunpack.i.l.bf16 %v12511_v17 }
 0xf7a   : > { %9125 = vmatmul.mubr.bf16.vlgmr.msra.gmra.mxu1 %v8877_v61  ;;  %v8856_v40 = vsel %vm435_vm4, %v16732_v50, %v12508_v62  ;;  %v8855_v45 = vsel %vm435_vm4, %v16705_v24, %v12507_v59 }
 0xf7b   : > { %v12516_v49 = vpop.permute.xlu0 %12515  ;;  %v8847_v54 = vsel %vm2931_vm9, %v8839_v63, %v12512_v4  ;;  %v8848_v27 = vsel %vm2931_vm9, %v8840_v30, %v12513_v13 }
 0xf7c   : > { %v12526_v39 = vpop.permute.xlu1 %12525  ;;  %v12518_v2 = vunpack.i.h.bf16 %v12516_v49  ;;  %v12517_v53 = vunpack.i.l.bf16 %v12516_v49  ;;  %v8880_v11 = vpack.c.bf16 %v8848_v27, %v8847_v54 }
 0xf7d   : > { %v12528_v24 = vunpack.i.h.bf16 %v12526_v39  ;;  %v12527_v28 = vunpack.i.l.bf16 %v12526_v39 }
 0xf7e   : > { %v8863_v35 = vsel %vm884_vm8, %v8855_v45, %v12517_v53  ;;  %v8864_v9 = vsel %vm884_vm8, %v8856_v40, %v12518_v2 }
 0xf7f   : > { %v12521_v56 = vpop.permute.xlu0 %12520  ;;  %v8834_v37 = vsel %vm435_vm4, %v16737_v12, %v12528_v24  ;;  %v8833_v18 = vsel %vm435_vm4, %v16722_v0, %v12527_v28  ;;  %v8636_v28 = vld [vmem:[%s16906_s9] sm:$0x3] }
 0xf80   : > { %v12523_v36 = vunpack.i.h.bf16 %v12521_v56  ;;  %v12522_v3 = vunpack.i.l.bf16 %v12521_v56  ;;  %v12531_v42 = vpop.permute.xlu1 %12530 }
 0xf81   : > { %v12533_v58 = vunpack.i.h.bf16 %v12531_v42  ;;  %v12532_v19 = vunpack.i.l.bf16 %v12531_v42 }
 0xf82   : > { %v8871_v25 = vsel %vm2931_vm9, %v8863_v35, %v12522_v3  ;;  %v8872_v14 = vsel %vm2931_vm9, %v8864_v9, %v12523_v36 }
 0xf83   : > { %v12536_v5 = vpop.permute.xlu0 %12535  ;;  %v8881_v50 = vpack.c.bf16 %v8872_v14, %v8871_v25  ;;  %v8841_v48 = vsel %vm884_vm8, %v8833_v18, %v12532_v19  ;;  %v8842_v34 = vsel %vm884_vm8, %v8834_v37, %v12533_v58 }
 0xf84   : > { %v12541_v20 = vpop.permute.xlu1 %12540  ;;  %v12538_v15 = vunpack.i.h.bf16 %v12536_v5  ;;  %v12537_v60 = vunpack.i.l.bf16 %v12536_v5 }
 0xf85   : > { %9134 = vmatprep.mubr.bf16.mxu1 %v8881_v50  ;;  %v12543_v55 = vunpack.i.h.bf16 %v12541_v20  ;;  %v12542_v21 = vunpack.i.l.bf16 %v12541_v20 }
 0xf86   : > { %9135 = vmatmul.mubr.bf16.gmra.mxu1 %v8880_v11  ;;  %v8858_v31 = vsel %vm435_vm4, %v16760_v10, %v12538_v15  ;;  %v8857_v6 = vsel %vm435_vm4, %v16739_v32, %v12537_v60 }
 0xf87   : > { %v12546_v29 = vpop.permute.xlu0 %12545  ;;  %v8849_v61 = vsel %vm2931_vm9, %v8841_v48, %v12542_v21  ;;  %v8850_v12 = vsel %vm2931_vm9, %v8842_v34, %v12543_v55 }
 0xf88   : > { %v12556_v8 = vpop.permute.xlu1 %12555  ;;  %v12548_v16 = vunpack.i.h.bf16 %v12546_v29  ;;  %v12547_v46 = vunpack.i.l.bf16 %v12546_v29  ;;  %v8883_v41 = vpack.c.bf16 %v8850_v12, %v8849_v61 }
 0xf89   : > { %v12558_v32 = vunpack.i.h.bf16 %v12556_v8  ;;  %v12557_v49 = vunpack.i.l.bf16 %v12556_v8 }
 0xf8a   : > { %v8865_v0 = vsel %vm884_vm8, %v8857_v6, %v12547_v46  ;;  %v8866_v17 = vsel %vm884_vm8, %v8858_v31, %v12548_v16 }
 0xf8b   : > { %v12551_v38 = vpop.permute.xlu0 %12550  ;;  %v8836_v30 = vsel %vm435_vm4, %v16763_v51, %v12558_v32  ;;  %v8835_v56 = vsel %vm435_vm4, %v16753_v23, %v12557_v49 }
 0xf8c   : > { %v12553_v26 = vunpack.i.h.bf16 %v12551_v38  ;;  %v12552_v43 = vunpack.i.l.bf16 %v12551_v38  ;;  %v12561_v47 = vpop.permute.xlu1 %12560 }
 0xf8d   : > { %v12563_v59 = vunpack.i.h.bf16 %v12561_v47  ;;  %v12562_v39 = vunpack.i.l.bf16 %v12561_v47 }
 0xf8e   : > { %v8873_v33 = vsel %vm2931_vm9, %v8865_v0, %v12552_v43  ;;  %v8874_v44 = vsel %vm2931_vm9, %v8866_v17, %v12553_v26 }
 0xf8f   : > { %v12566_v52 = vpop.permute.xlu0 %12565  ;;  %v8884_v10 = vpack.c.bf16 %v8874_v44, %v8873_v33  ;;  %v8843_v40 = vsel %vm884_vm8, %v8835_v56, %v12562_v39  ;;  %v8844_v45 = vsel %vm884_vm8, %v8836_v30, %v12563_v59 }
 0xf90   : > { %v12581_v62 = vpop.permute.xlu1 %12580  ;;  %v12568_v4 = vunpack.i.h.bf16 %v12566_v52  ;;  %v12567_v2 = vunpack.i.l.bf16 %v12566_v52 }
 0xf91   : > { %9144 = vmatprep.mubr.bf16.mxu1 %v8884_v10  ;;  %v12583_v53 = vunpack.i.h.bf16 %v12581_v62  ;;  %v12582_v7 = vunpack.i.l.bf16 %v12581_v62 }
 0xf92   : > { %9145 = vmatmul.mubr.bf16.gmra.mxu1 %v8883_v41  ;;  %v8860_v3 = vsel %vm435_vm4, %v16781_v22, %v12568_v4  ;;  %v8859_v42 = vsel %vm435_vm4, %v16765_v57, %v12567_v2  ;;  %v8890_v57 = vlaneseq }
 0xf93   : > { %v12571_v13 = vpop.permute.xlu0 %12570  ;;  %v8851_v35 = vsel %vm2931_vm9, %v8843_v40, %v12582_v7  ;;  %v8852_v51 = vsel %vm2931_vm9, %v8844_v45, %v12583_v53 }
 0xf94   : > { %v12573_v1 = vunpack.i.h.bf16 %v12571_v13  ;;  %v12572_v63 = vunpack.i.l.bf16 %v12571_v13  ;;  %v8886_v22 = vpack.c.bf16 %v8852_v51, %v8851_v35  ;;  %v8891_v11 = vshrl.u32 %v8890_v57, 7 }
 0xf96   : > { %v8867_v9 = vsel %vm884_vm8, %v8859_v42, %v12572_v63  ;;  %v8868_v23 = vsel %vm884_vm8, %v8860_v3, %v12573_v1  ;;  %v8892_v24 = vsub.s32 0, %v8891_v11  ;;  %v8896_v58 = vsub.s32 1, %v8891_v11 }
 0xf97   : > { %v12576_v36 = vpop.permute.xlu0 %12575 }
 0xf98   : > { %v12578_v54 = vunpack.i.h.bf16 %v12576_v36  ;;  %v12577_v27 = vunpack.i.l.bf16 %v12576_v36  ;;  %v16852_v29 = vrot.slane %v8636_v28, %v8892_v24  ;;  %v16855_v15 = vrot.slane %v8636_v28, %v8896_v58 }
 0xf9a   : > { %v8875_v25 = vsel %vm2931_vm9, %v8867_v9, %v12577_v27  ;;  %v8876_v14 = vsel %vm2931_vm9, %v8868_v23, %v12578_v54 }
 0xf9b   : > { %v8887_v5 = vpack.c.bf16 %v8876_v14, %v8875_v25 }
 0xf9d   : > { %9154 = vmatprep.mubr.bf16.mxu1 %v8887_v5 }
 0xf9e   : > { %9155 = vmatmul.mubr.bf16.gmra.mxu1 %v8886_v22 }
 0xfbc   : > { %v9199_v50 = vpop.f32.mrf.mxu0 }
 0xfbe   : > { %v9201_v20 = vpop.f32.mrf.mxu0 }
 0xfc0   : > { %v9203_v19 = vpop.f32.mrf.mxu0 }
 0xfc2   : > { %v9205_v60 = vpop.f32.mrf.mxu0 }
 0xfc8   : > { %v9209_v21 = vpop.f32.mrf.mxu0 }
 0xfca   : > { %v9211_v38 = vpop.f32.mrf.mxu0 }
 0xfcc   : > { %v9213_v47 = vpop.f32.mrf.mxu0 }
 0xfce   : > { %v9215_v0 = vpop.f32.mrf.mxu0 }
 0xfd4   : > { %v9219_v52 = vpop.f32.mrf.mxu0 }
 0xfd6   : > { %v9221_v39 = vpop.f32.mrf.mxu0 }
 0xfd8   : > { %v9223_v4 = vpop.f32.mrf.mxu0 }
 0xfda   : > { %v9225_v30 = vpop.f32.mrf.mxu0 }
 0xfdc   : > { %v9229_v54 = vpop.f32.mrf.mxu0 }
 0xfde   : > { %v9231_v35 = vpop.f32.mrf.mxu0 }
 0xfe0   : > { %v9233_v5 = vpop.f32.mrf.mxu0 }
 0xfe2   : > { %v9235_v28 = vpop.f32.mrf.mxu0 }
0x103a   : > { %v9126_v8 = vpop.f32.mrf.mxu1 }
0x103b   : > { %v9127_v55 = vadd.f32 %v9126_v8, %v16852_v29 }
0x103c   : > { %v9128_v16 = vpop.f32.mrf.mxu1 }
0x103d   : > { %v9200_v46 = vadd.f32 %v9199_v50, %v9127_v55  ;;  %v9129_v37 = vadd.f32 %v9128_v16, %v16855_v15 }
0x103e   : > { %v9130_v18 = vpop.f32.mrf.mxu1 }
0x103f   : > { %9238 = vst [vmem:[%s16861_s28] sm:$0xff] %v9200_v46  ;;  %v9202_v48 = vadd.f32 %v9201_v20, %v9129_v37  ;;  %v9131_v34 = vadd.f32 %v9130_v18, %v16852_v29 }
0x1040   : > { %v9132_v31 = vpop.f32.mrf.mxu1 }
0x1041   : > { %9239 = vst [vmem:[%s16861_s28 + $0x8] sm:$0xff] %v9202_v48  ;;  %v9204_v6 = vadd.f32 %v9203_v19, %v9131_v34  ;;  %v9133_v26 = vadd.f32 %v9132_v31, %v16855_v15 }
0x1043   : > { %9240 = vst [vmem:[%s16861_s28 + $0x10] sm:$0xff] %v9204_v6  ;;  %v9206_v43 = vadd.f32 %v9205_v60, %v9133_v26 }
0x1045   : > { %9241 = vst [vmem:[%s16861_s28 + $0x18] sm:$0xff] %v9206_v43 }
0x1046   : > { %v9136_v61 = vpop.f32.mrf.mxu1 }
0x1047   : > { %v9137_v12 = vadd.f32 %v9136_v61, %v16852_v29 }
0x1048   : > { %v9138_v17 = vpop.f32.mrf.mxu1 }
0x1049   : > { %v9210_v33 = vadd.f32 %v9209_v21, %v9137_v12  ;;  %v9139_v44 = vadd.f32 %v9138_v17, %v16855_v15 }
0x104a   : > { %v9140_v10 = vpop.f32.mrf.mxu1 }
0x104b   : > { %9242 = vst [vmem:[%s16861_s28 + $0x20] sm:$0xff] %v9210_v33  ;;  %v9212_v41 = vadd.f32 %v9211_v38, %v9139_v44  ;;  %v9141_v32 = vadd.f32 %v9140_v10, %v16852_v29 }
0x104c   : > { %v9142_v49 = vpop.f32.mrf.mxu1 }
0x104d   : > { %9243 = vst [vmem:[%s16861_s28 + $0x28] sm:$0xff] %v9212_v41  ;;  %v9214_v62 = vadd.f32 %v9213_v47, %v9141_v32  ;;  %v9143_v59 = vadd.f32 %v9142_v49, %v16855_v15 }
0x104f   : > { %9244 = vst [vmem:[%s16861_s28 + $0x30] sm:$0xff] %v9214_v62  ;;  %v9216_v13 = vadd.f32 %v9215_v0, %v9143_v59 }
0x1051   : > { %9245 = vst [vmem:[%s16861_s28 + $0x38] sm:$0xff] %v9216_v13 }
0x1052   : > { %v9146_v2 = vpop.f32.mrf.mxu1 }
0x1053   : > { %v9147_v53 = vadd.f32 %v9146_v2, %v16852_v29 }
0x1054   : > { %v9148_v7 = vpop.f32.mrf.mxu1 }
0x1055   : > { %v9220_v1 = vadd.f32 %v9219_v52, %v9147_v53  ;;  %v9149_v63 = vadd.f32 %v9148_v7, %v16855_v15 }
0x1056   : > { %v9150_v56 = vpop.f32.mrf.mxu1 }
0x1057   : > { %9246 = vst [vmem:[%s16861_s28 + $0x40] sm:$0xff] %v9220_v1  ;;  %v9222_v40 = vadd.f32 %v9221_v39, %v9149_v63  ;;  %v9151_v45 = vadd.f32 %v9150_v56, %v16852_v29 }
0x1058   : > { %v9152_v36 = vpop.f32.mrf.mxu1 }
0x1059   : > { %9247 = vst [vmem:[%s16861_s28 + $0x48] sm:$0xff] %v9222_v40  ;;  %v9224_v3 = vadd.f32 %v9223_v4, %v9151_v45  ;;  %v9153_v42 = vadd.f32 %v9152_v36, %v16855_v15 }
0x105b   : > { %9248 = vst [vmem:[%s16861_s28 + $0x50] sm:$0xff] %v9224_v3  ;;  %v9226_v27 = vadd.f32 %v9225_v30, %v9153_v42 }
0x105d   : > { %9249 = vst [vmem:[%s16861_s28 + $0x58] sm:$0xff] %v9226_v27 }
0x105e   : > { %v9156_v51 = vpop.f32.mrf.mxu1 }
0x105f   : > { %v9157_v9 = vadd.f32 %v9156_v51, %v16852_v29 }
0x1060   : > { %v9158_v23 = vpop.f32.mrf.mxu1 }
0x1061   : > { %v9230_v25 = vadd.f32 %v9229_v54, %v9157_v9  ;;  %v9159_v14 = vadd.f32 %v9158_v23, %v16855_v15 }
0x1062   : > { %v9160_v22 = vpop.f32.mrf.mxu1 }
0x1063   : > { %9250 = vst [vmem:[%s16861_s28 + $0x60] sm:$0xff] %v9230_v25  ;;  %v9232_v57 = vadd.f32 %v9231_v35, %v9159_v14  ;;  %v9161_v50 = vadd.f32 %v9160_v22, %v16852_v29 }
0x1064   : > { %v9162_v11 = vpop.f32.mrf.mxu1 }
0x1065   : > { %9251 = vst [vmem:[%s16861_s28 + $0x68] sm:$0xff] %v9232_v57  ;;  %v9234_v20 = vadd.f32 %v9233_v5, %v9161_v50  ;;  %v9163_v24 = vadd.f32 %v9162_v11, %v16855_v15 }
0x1067   : > { %9252 = vst [vmem:[%s16861_s28 + $0x70] sm:$0xff] %v9234_v20  ;;  %v9236_v58 = vadd.f32 %v9235_v28, %v9163_v24 }
0x1069   : > { %9253 = vst [vmem:[%s16861_s28 + $0x78] sm:$0xff] %v9236_v58 }
0x106a PF: > { %s20_s13 = sadd.s32 1, %s12813_s13  }
0x106b   : > { %p17_p4 = scmp.ge.s32.totalorder %s20_s13, 4  }
0x106d   :  { %19 = sbr.rel (!%p17_p4) target bundleno = 1 (0x1), region = 140 }

</bundles_post_ra>
